<compile_context>
chip_gen: v6e
topology: v6e:2x2x1
jax: 0.10.0
libtpu: 0.0.40
codegen_flags: <defaults>
</compile_context>

<pallas_src>
import functools

import jax
import jax.numpy as jnp
from jax import lax
from jax.experimental import pallas as pl
from jax.experimental.pallas import tpu as pltpu


def _round_up(x, m):
    return (x + m - 1) // m * m


# ----------------------------- kernel helpers ------------------------------

def _layer_norm(x, g, b, eps=1e-5):
    # single-pass LN: one traversal computes sum and sum-of-squares.
    inv_n = 1.0 / x.shape[-1]
    s1 = jnp.sum(x, axis=-1, keepdims=True)
    s2 = jnp.sum(x * x, axis=-1, keepdims=True)
    mu = s1 * inv_n
    var = s2 * inv_n - mu * mu
    return (x - mu) * lax.rsqrt(var + eps) * g + b


_WEIGHT_ORDER = ('ln1_g', 'ln1_b', 'w_qkv', 'b_qkv', 'w_out', 'b_out',
                 'ln2_g', 'ln2_b', 'w_fc', 'b_fc', 'w_pr', 'b_pr')


# --------------------- fused transformer-stack kernel ----------------------

def _encoder_kernel(mask_ref, x_ref,
                    ln1_g, ln1_b, w_qkv, b_qkv, w_out, b_out,
                    ln2_g, ln2_b, w_fc, b_fc, w_pr, b_pr,
                    o_ref, *, heads, head_dim):
    layer = pl.program_id(1)

    # The output block (index constant over the inner layer axis) is the
    # VMEM-resident activation accumulator for this batch tile; load the
    # embeddings into it at layer 0 only.
    @pl.when(layer == 0)
    def _():
        o_ref[...] = x_ref[...]

    BT, Lp, W = o_ref.shape
    N = BT * Lp
    hd = head_dim

    x = o_ref[...].reshape(N, W)                                  # [N, W] f32

    # ---- attention sub-block: x = x + out_proj(MHA(ln_1(x))) ----
    h = _layer_norm(x, ln1_g[0], ln1_b[0]).astype(jnp.bfloat16)   # [N, W]
    # one full-width QKV matmul; q-scale already folded into the weights/bias
    qkv = jnp.dot(h, w_qkv[0], preferred_element_type=jnp.float32) + b_qkv[0]
    qkv = qkv.reshape(BT, Lp, 3 * W)                              # [BT, Lp, 3W]
    mask = mask_ref[...]                                          # [Lp, Lp] additive

    ctx = []
    for hh in range(heads):                                       # static unroll
        q = qkv[:, :, hh * hd:(hh + 1) * hd].astype(jnp.bfloat16)
        k = qkv[:, :, W + hh * hd:W + (hh + 1) * hd].astype(jnp.bfloat16)
        v = qkv[:, :, 2 * W + hh * hd:2 * W + (hh + 1) * hd].astype(jnp.bfloat16)
        s = jnp.einsum('bqd,bkd->bqk', q, k,
                       preferred_element_type=jnp.float32) + mask[None]
        s = s - jnp.max(s, axis=-1, keepdims=True)
        p = jnp.exp(s)
        p = p * pl.reciprocal(jnp.sum(p, axis=-1, keepdims=True), approx=True)
        ctx.append(jnp.einsum('bqk,bkd->bqd', p.astype(jnp.bfloat16), v,
                              preferred_element_type=jnp.float32))
    # re-pack heads along lanes once, then a single K=W output projection
    ctx = jnp.concatenate(ctx, axis=-1).reshape(N, W)             # [N, W] f32
    attn = jnp.dot(ctx.astype(jnp.bfloat16), w_out[0],
                   preferred_element_type=jnp.float32) + b_out[0]
    x = x + attn

    # ---- MLP sub-block: x = x + c_proj(QuickGELU(c_fc(ln_2(x)))) ----
    h2 = _layer_norm(x, ln2_g[0], ln2_b[0]).astype(jnp.bfloat16)
    h2 = jnp.dot(h2, w_fc[0], preferred_element_type=jnp.float32) + b_fc[0]
    h2 = h2 * jax.nn.sigmoid(1.702 * h2)                          # QuickGELU (f32)
    h2 = jnp.dot(h2.astype(jnp.bfloat16), w_pr[0],
                 preferred_element_type=jnp.float32) + b_pr[0]
    o_ref[...] = (x + h2).reshape(BT, Lp, W)


def encoder_blocks(x, mask, kparams, heads, *, batch_tile=8,
                   vmem_limit_bytes=64 * 1024 * 1024):
    """Run all residual attention blocks in one pallas_call.

    x: [B, Lp, W] f32, mask: [Lp, Lp] f32 additive causal mask.
    batch_tile / vmem_limit_bytes tuning: v6e/v5e (128 MiB VMEM) can raise the
    limit to ~100 MiB and enlarge the batch tile; v7x (64 MiB VMEM) should keep
    the limit lower or switch the weights to fp8 (see TODO at top).
    """
    B, Lp, W = x.shape
    n_layers = kparams['w_qkv'].shape[0]
    bt = max(1, min(batch_tile, B))
    Bp = _round_up(B, bt)
    if Bp != B:
        x = jnp.pad(x, ((0, Bp - B), (0, 0), (0, 0)))
    weights = [kparams[k] for k in _WEIGHT_ORDER]

    def wspec(arr):
        nd = arr.ndim
        # block index varies with the (inner, "arbitrary") layer axis only, so
        # BlockSpec double-buffering prefetches layer l+1 while layer l runs,
        # and each weight fetch is amortized over the whole batch tile.
        return pl.BlockSpec((1,) + arr.shape[1:],
                            lambda b, l, _nd=nd: (l,) + (0,) * (_nd - 1))

    out = pl.pallas_call(
        functools.partial(_encoder_kernel, heads=heads, head_dim=W // heads),
        out_shape=jax.ShapeDtypeStruct((Bp, Lp, W), jnp.float32),
        grid=(Bp // bt, n_layers),
        in_specs=[pl.BlockSpec((Lp, Lp), lambda b, l: (0, 0)),      # mask: DMA'd once
                  pl.BlockSpec((bt, Lp, W), lambda b, l: (b, 0, 0))]
                 + [wspec(a) for a in weights],
        out_specs=pl.BlockSpec((bt, Lp, W), lambda b, l: (b, 0, 0)),
        compiler_params=pltpu.CompilerParams(
            dimension_semantics=("parallel", "arbitrary"),
            vmem_limit_bytes=vmem_limit_bytes),
    )(mask, x, *weights)
    return out[:B]


# ------------------- final LN + text projection + L2 norm ------------------

def _final_kernel(x_ref, g_ref, b_ref, proj_ref, o_ref):
    h = _layer_norm(x_ref[...], g_ref[...], b_ref[...])
    y = jnp.dot(h, proj_ref[...], preferred_element_type=jnp.float32)   # [Bp, E]
    o_ref[...] = y * lax.rsqrt(jnp.sum(y * y, axis=-1, keepdims=True) + 1e-12)


def final_project(x_eos, lnf_g, lnf_b, text_projection):
    B, W = x_eos.shape
    E = text_projection.shape[1]
    Bp = max(8, _round_up(B, 8))            # sublane-pad the batch dimension
    if Bp != B:
        x_eos = jnp.pad(x_eos, ((0, Bp - B), (0, 0)))
    vmem = pl.BlockSpec(memory_space=pltpu.MemorySpace.VMEM)
    out = pl.pallas_call(
        _final_kernel,
        out_shape=jax.ShapeDtypeStruct((Bp, E), jnp.float32),
        in_specs=[vmem, vmem, vmem, vmem],
        out_specs=vmem,
    )(x_eos, lnf_g, lnf_b, text_projection)
    return out[:B]


# ------------------------------ full forward -------------------------------

def text_encoder_forward(text, params, kparams, *, batch_tile=8):
    """Equivalent of TEXT_ENCODER.forward(text, add=False)."""
    # token embedding gather + positional embedding (JAX glue)
    x = params['token_embedding'][text] + params['positional_embedding'][None]  # [B, L, W]
    B, L, W = x.shape
    # pad the sequence to a lane multiple (128) so the [Lp, Lp] scores/softmax
    # and the P@V matmul are lane-dense; padded keys sit at col >= L and are
    # killed by the causal mask, padded query rows are dropped before use.
    Lp = _round_up(L, 128)
    if Lp != L:
        x = jnp.pad(x, ((0, 0), (0, Lp - L), (0, 0)))
    # additive causal mask, built once on the host; large finite negative (not
    # -inf) keeps padded rows finite.  DMA'd once into VMEM by the kernel.
    row = jnp.arange(Lp, dtype=jnp.int32)[:, None]
    col = jnp.arange(Lp, dtype=jnp.int32)[None, :]
    mask = jnp.where(col > row, jnp.float32(-1e9), jnp.float32(0.0))

    x = encoder_blocks(x, mask, kparams, heads=params['heads'],
                       batch_tile=batch_tile)
    # features at the EOS position (argmax over token ids), then ln_final +
    # text_projection + L2 normalize inside the final kernel.
    # TODO(synk): eos gather could be folded into the last layer via scalar
    # prefetch to skip the full [B, Lp, W] HBM writeback (minor).
    eos_idx = jnp.argmax(text, axis=-1)
    x_eos = x[jnp.arange(B), eos_idx]                                      # [B, W]
    return final_project(x_eos, params['lnf_g'], params['lnf_b'],
                         params['text_projection'])


# ------------------------- deterministic parameters ------------------------

def init_params(key, *, embed_dim, context_length, vocab_size, width, heads, layers):
    attn_std = width ** -0.5
    proj_std = (width ** -0.5) * ((2 * layers) ** -0.5)
    fc_std = (2 * width) ** -0.5

    k_tok, k_pos, k_proj, k_layers = jax.random.split(key, 4)
    p = {
        'token_embedding': 0.02 * jax.random.normal(k_tok, (vocab_size, width), jnp.float32),
        'positional_embedding': 0.01 * jax.random.normal(k_pos, (context_length, width), jnp.float32),
        'text_projection': attn_std * jax.random.normal(k_proj, (width, embed_dim), jnp.float32),
        'lnf_g': jnp.ones((1, width), jnp.float32),
        'lnf_b': jnp.zeros((1, width), jnp.float32),
        'heads': heads,
    }
    layer_list = []
    for kl in jax.random.split(k_layers, layers):
        ks = jax.random.split(kl, 12)
        layer_list.append((
            1.0 + 0.05 * jax.random.normal(ks[0], (1, width), jnp.float32),        # ln1 gamma
            0.02 * jax.random.normal(ks[1], (1, width), jnp.float32),              # ln1 beta
            attn_std * jax.random.normal(ks[2], (3 * width, width), jnp.float32),  # in_proj_weight
            0.02 * jax.random.normal(ks[3], (1, 3 * width), jnp.float32),          # in_proj_bias
            proj_std * jax.random.normal(ks[4], (width, width), jnp.float32),      # out_proj.weight
            0.02 * jax.random.normal(ks[5], (1, width), jnp.float32),              # out_proj.bias
            1.0 + 0.05 * jax.random.normal(ks[6], (1, width), jnp.float32),        # ln2 gamma
            0.02 * jax.random.normal(ks[7], (1, width), jnp.float32),              # ln2 beta
            fc_std * jax.random.normal(ks[8], (4 * width, width), jnp.float32),    # c_fc.weight
            0.02 * jax.random.normal(ks[9], (1, 4 * width), jnp.float32),          # c_fc.bias
            proj_std * jax.random.normal(ks[10], (width, 4 * width), jnp.float32), # c_proj.weight
            0.02 * jax.random.normal(ks[11], (1, width), jnp.float32),             # c_proj.bias
        ))
    p['layers'] = layer_list
    return p


def prepare_kernel_params(params):
    """Stack per-layer weights, pre-transpose, fold the q-scale, cast to bf16."""
    layers = params['layers']
    heads = params['heads']
    W = layers[0][0].shape[-1]
    hd = W // heads
    scale = float(hd) ** -0.5

    acc = {k: [] for k in _WEIGHT_ORDER}
    for (g1, b1, wqkv, bqkv, wo, bo, g2, b2, wfc, bfc, wpr, bpr) in layers:
        acc['ln1_g'].append(g1)                           # [1, W]
        acc['ln1_b'].append(b1)
        # in_proj_weight [3W, W] -> [W, 3W] (columns = [Q | K | V], each block
        # head-major), with the 1/sqrt(hd) attention scale folded into Q.
        wqkv_t = jnp.transpose(wqkv)                      # [W, 3W]
        wqkv_t = wqkv_t.at[:, :W].multiply(scale)
        acc['w_qkv'].append(wqkv_t)
        acc['b_qkv'].append(bqkv.at[:, :W].multiply(scale))   # [1, 3W]
        acc['w_out'].append(jnp.transpose(wo))            # [W, W]
        acc['b_out'].append(bo)
        acc['ln2_g'].append(g2)
        acc['ln2_b'].append(b2)
        acc['w_fc'].append(jnp.transpose(wfc))            # [W, 4W]
        acc['b_fc'].append(bfc)
        acc['w_pr'].append(jnp.transpose(wpr))            # [4W, W]
        acc['b_pr'].append(bpr)

    stacked = {k: jnp.stack(v) for k, v in acc.items()}
    for k in ('w_qkv', 'w_out', 'w_fc', 'w_pr'):
        stacked[k] = stacked[k].astype(jnp.bfloat16)      # MXU weights in bf16
    return stacked


# --------------------------- plain-JAX reference ---------------------------

def _ref_forward(text, params):
    def ln(x, g, b):
        mu = x.mean(-1, keepdims=True)
        var = ((x - mu) ** 2).mean(-1, keepdims=True)
        return (x - mu) / jnp.sqrt(var + 1e-5) * g + b

    x = params['token_embedding'][text] + params['positional_embedding'][None]
    heads = params['heads']
    B, L, W = x.shape
    hd = W // heads
    idx = jnp.arange(L)
    mask = jnp.where(idx[None, :] > idx[:, None], -jnp.inf, 0.0).astype(jnp.float32)
    for (g1, b1, wqkv, bqkv, wo, bo, g2, b2, wfc, bfc, wpr, bpr) in params['layers']:
        h = ln(x, g1, b1)
        qkv = h @ wqkv.T + bqkv
        q, k, v = qkv[..., :W], qkv[..., W:2 * W], qkv[..., 2 * W:]
        q = q.reshape(B, L, heads, hd).transpose(0, 2, 1, 3) * (hd ** -0.5)
        k = k.reshape(B, L, heads, hd).transpose(0, 2, 1, 3)
        v = v.reshape(B, L, heads, hd).transpose(0, 2, 1, 3)
        s = jnp.einsum('bhqd,bhkd->bhqk', q, k) + mask
        p = jax.nn.softmax(s, axis=-1)
        a = jnp.einsum('bhqk,bhkd->bhqd', p, v).transpose(0, 2, 1, 3).reshape(B, L, W)
        x = x + a @ wo.T + bo
        h2 = ln(x, g2, b2)
        h2 = h2 @ wfc.T + bfc
        h2 = h2 * jax.nn.sigmoid(1.702 * h2)
        x = x + h2 @ wpr.T + bpr
    eos = jnp.argmax(text, axis=-1)
    xe = x[jnp.arange(B), eos]
    y = ln(xe, params['lnf_g'], params['lnf_b']) @ params['text_projection']
    return y / jnp.linalg.norm(y, axis=-1, keepdims=True)


# ----------------------------------- main -----------------------------------

if __name__ == "__main__":
    B = 2              # batch of tokenized texts
    L = 8              # context_length
    W = 32             # transformer_width
    H = 4              # transformer_heads
    LAYERS = 2         # transformer_layers
    E = 16             # embed_dim
    V = 64             # vocab_size

    key = jax.random.PRNGKey(0)
    kp, kt = jax.random.split(key)
    params = init_params(kp, embed_dim=E, context_length=L, vocab_size=V,
                         width=W, heads=H, layers=LAYERS)
    kparams = prepare_kernel_params(params)
    text = jax.random.randint(kt, (B, L), 0, V, dtype=jnp.int32)

    out = text_encoder_forward(text, params, kparams, batch_tile=8)
    out = jax.block_until_ready(out)

    ref = _ref_forward(text, params)
    assert out.shape == (B, E), out.shape
    # bf16 matmuls (f32 accumulation) + approx softmax reciprocal vs. the pure
    # f32 reference: loosen tolerance accordingly.
    err = float(jnp.max(jnp.abs(out - ref)))
    assert err < 5e-2, f"mismatch vs reference: max abs err {err}"

    print("KERNEL_OK")
</pallas_src>

<mosaic_0001>
module attributes {stable_mosaic.version = 11 : i64} {
  func.func @_encoder_kernel(%arg0: i32, %arg1: i32, %arg2: memref<128x128xf32, #tpu.memory_space<vmem>>, %arg3: memref<2x128x32xf32, #tpu.memory_space<vmem>>, %arg4: memref<1x1x32xf32, #tpu.memory_space<vmem>>, %arg5: memref<1x1x32xf32, #tpu.memory_space<vmem>>, %arg6: memref<1x32x96xbf16, #tpu.memory_space<vmem>>, %arg7: memref<1x1x96xf32, #tpu.memory_space<vmem>>, %arg8: memref<1x32x32xbf16, #tpu.memory_space<vmem>>, %arg9: memref<1x1x32xf32, #tpu.memory_space<vmem>>, %arg10: memref<1x1x32xf32, #tpu.memory_space<vmem>>, %arg11: memref<1x1x32xf32, #tpu.memory_space<vmem>>, %arg12: memref<1x32x128xbf16, #tpu.memory_space<vmem>>, %arg13: memref<1x1x128xf32, #tpu.memory_space<vmem>>, %arg14: memref<1x128x32xbf16, #tpu.memory_space<vmem>>, %arg15: memref<1x1x32xf32, #tpu.memory_space<vmem>>, %arg16: memref<2x128x32xf32, #tpu.memory_space<vmem>>) attributes {dimension_semantics = [#tpu.dimension_semantics<parallel>, #tpu.dimension_semantics<arbitrary>], iteration_bounds = array<i64: 1, 2>, scalar_prefetch = 0 : i64, scratch_operands = 0 : i64, tpu.core_type = #tpu.core_type<tc>, window_params = [{pipeline_mode = #tpu.pipeline_mode<synchronous>, transform_indices = @transform_0, window_bounds = array<i64: 128, 128>}, {transform_indices = @transform_1, window_bounds = array<i64: 2, 128, 32>}, {transform_indices = @transform_2, window_bounds = array<i64: 1, 1, 32>}, {transform_indices = @transform_3, window_bounds = array<i64: 1, 1, 32>}, {transform_indices = @transform_4, window_bounds = array<i64: 1, 32, 96>}, {transform_indices = @transform_5, window_bounds = array<i64: 1, 1, 96>}, {transform_indices = @transform_6, window_bounds = array<i64: 1, 32, 32>}, {transform_indices = @transform_7, window_bounds = array<i64: 1, 1, 32>}, {transform_indices = @transform_8, window_bounds = array<i64: 1, 1, 32>}, {transform_indices = @transform_9, window_bounds = array<i64: 1, 1, 32>}, {transform_indices = @transform_10, window_bounds = array<i64: 1, 32, 128>}, {transform_indices = @transform_11, window_bounds = array<i64: 1, 1, 128>}, {transform_indices = @transform_12, window_bounds = array<i64: 1, 128, 32>}, {transform_indices = @transform_13, window_bounds = array<i64: 1, 1, 32>}, {transform_indices = @transform_14, window_bounds = array<i64: 2, 128, 32>}]} {
    %c0_i32 = arith.constant 0 : i32
    %0 = arith.cmpi eq, %arg1, %c0_i32 : i32
    %1 = arith.extui %0 : i1 to i32
    %c0_i32_0 = arith.constant 0 : i32
    %2 = arith.cmpi ne, %1, %c0_i32_0 : i32
    scf.if %2 {
      %c0_75 = arith.constant 0 : index
      %c0_76 = arith.constant 0 : index
      %c0_77 = arith.constant 0 : index
      %193 = vector.load %arg3[%c0_75, %c0_76, %c0_77] : memref<2x128x32xf32, #tpu.memory_space<vmem>>, vector<2x128x32xf32>
      %c0_78 = arith.constant 0 : index
      %c0_79 = arith.constant 0 : index
      %c0_80 = arith.constant 0 : index
      %194 = vector.load %arg16[%c0_78, %c0_79, %c0_80] : memref<2x128x32xf32, #tpu.memory_space<vmem>>, vector<2x128x32xf32>
      tpu.vector_store %arg16[%c0_78, %c0_79, %c0_80], %193 {strides = array<i32>} : memref<2x128x32xf32, #tpu.memory_space<vmem>>, vector<2x128x32xf32>,
    } else {
    }
    %c0 = arith.constant 0 : index
    %c0_1 = arith.constant 0 : index
    %c0_2 = arith.constant 0 : index
    %3 = vector.load %arg16[%c0, %c0_1, %c0_2] : memref<2x128x32xf32, #tpu.memory_space<vmem>>, vector<2x128x32xf32>
    %4 = vector.shape_cast %3 : vector<2x128x32xf32> to vector<256x32xf32>
    %c0_3 = arith.constant 0 : index
    %c0_4 = arith.constant 0 : index
    %c0_5 = arith.constant 0 : index
    %5 = vector.load %arg4[%c0_3, %c0_4, %c0_5] : memref<1x1x32xf32, #tpu.memory_space<vmem>>, vector<1x1x32xf32>
    %6 = vector.shape_cast %5 : vector<1x1x32xf32> to vector<1x32xf32>
    %c0_6 = arith.constant 0 : index
    %c0_7 = arith.constant 0 : index
    %c0_8 = arith.constant 0 : index
    %7 = vector.load %arg5[%c0_6, %c0_7, %c0_8] : memref<1x1x32xf32, #tpu.memory_space<vmem>>, vector<1x1x32xf32>
    %8 = vector.shape_cast %7 : vector<1x1x32xf32> to vector<1x32xf32>
    %cst = arith.constant dense<0.000000e+00> : vector<256xf32>
    %9 = vector.multi_reduction <add>, %4, %cst [1] : vector<256x32xf32> to vector<256xf32>
    %10 = vector.shape_cast %9 : vector<256xf32> to vector<256x1xf32>
    %11 = arith.mulf %4, %4 : vector<256x32xf32>
    %cst_9 = arith.constant dense<0.000000e+00> : vector<256xf32>
    %12 = vector.multi_reduction <add>, %11, %cst_9 [1] : vector<256x32xf32> to vector<256xf32>
    %13 = vector.shape_cast %12 : vector<256xf32> to vector<256x1xf32>
    %cst_10 = arith.constant 3.125000e-02 : f32
    %14 = vector.broadcast %cst_10 : f32 to vector<256x1xf32>
    %15 = arith.mulf %10, %14 : vector<256x1xf32>
    %cst_11 = arith.constant 3.125000e-02 : f32
    %16 = vector.broadcast %cst_11 : f32 to vector<256x1xf32>
    %17 = arith.mulf %13, %16 : vector<256x1xf32>
    %18 = arith.mulf %15, %15 : vector<256x1xf32>
    %19 = arith.subf %17, %18 : vector<256x1xf32>
    %20 = vector.broadcast %15 : vector<256x1xf32> to vector<256x32xf32>
    %21 = arith.subf %4, %20 : vector<256x32xf32>
    %cst_12 = arith.constant 9.99999974E-6 : f32
    %22 = vector.broadcast %cst_12 : f32 to vector<256x1xf32>
    %23 = arith.addf %19, %22 : vector<256x1xf32>
    %24 = math.rsqrt %23 : vector<256x1xf32>
    %25 = vector.broadcast %24 : vector<256x1xf32> to vector<256x32xf32>
    %26 = arith.mulf %21, %25 : vector<256x32xf32>
    %27 = vector.broadcast %6 : vector<1x32xf32> to vector<256x32xf32>
    %28 = arith.mulf %26, %27 : vector<256x32xf32>
    %29 = vector.broadcast %8 : vector<1x32xf32> to vector<256x32xf32>
    %30 = arith.addf %28, %29 : vector<256x32xf32>
    %31 = arith.truncf %30 : vector<256x32xf32> to vector<256x32xbf16>
    %c0_13 = arith.constant 0 : index
    %c0_14 = arith.constant 0 : index
    %c0_15 = arith.constant 0 : index
    %32 = vector.load %arg6[%c0_13, %c0_14, %c0_15] : memref<1x32x96xbf16, #tpu.memory_space<vmem>>, vector<1x32x96xbf16>
    %33 = vector.shape_cast %32 : vector<1x32x96xbf16> to vector<32x96xbf16>
    %cst_16 = arith.constant dense<0.000000e+00> : vector<256x96xf32>
    %34 = tpu.matmul %31, %33, %cst_16 {dimension_numbers = #tpu.dot_dimension_numbers<[1], [0], [0], [1], [0, 0, 1, 1], [], []>} : vector<256x32xbf16>, vector<32x96xbf16>, vector<256x96xf32> -> vector<256x96xf32>
    %c0_17 = arith.constant 0 : index
    %c0_18 = arith.constant 0 : index
    %c0_19 = arith.constant 0 : index
    %35 = vector.load %arg7[%c0_17, %c0_18, %c0_19] : memref<1x1x96xf32, #tpu.memory_space<vmem>>, vector<1x1x96xf32>
    %36 = vector.shape_cast %35 : vector<1x1x96xf32> to vector<1x96xf32>
    %37 = vector.broadcast %36 : vector<1x96xf32> to vector<256x96xf32>
    %38 = arith.addf %34, %37 : vector<256x96xf32>
    %39 = vector.shape_cast %38 : vector<256x96xf32> to vector<2x128x96xf32>
    %c0_20 = arith.constant 0 : index
    %c0_21 = arith.constant 0 : index
    %40 = vector.load %arg2[%c0_20, %c0_21] : memref<128x128xf32, #tpu.memory_space<vmem>>, vector<128x128xf32>
    %41 = vector.extract_strided_slice %39 {offsets = [0, 0, 0], sizes = [2, 128, 8], strides = [1, 1, 1]} : vector<2x128x96xf32> to vector<2x128x8xf32>
    %42 = arith.truncf %41 : vector<2x128x8xf32> to vector<2x128x8xbf16>
    %43 = vector.extract_strided_slice %39 {offsets = [0, 0, 32], sizes = [2, 128, 8], strides = [1, 1, 1]} : vector<2x128x96xf32> to vector<2x128x8xf32>
    %44 = arith.truncf %43 : vector<2x128x8xf32> to vector<2x128x8xbf16>
    %45 = vector.extract_strided_slice %39 {offsets = [0, 0, 64], sizes = [2, 128, 8], strides = [1, 1, 1]} : vector<2x128x96xf32> to vector<2x128x8xf32>
    %46 = arith.truncf %45 : vector<2x128x8xf32> to vector<2x128x8xbf16>
    "tpu.trace_start"() <{level = 10 : i32, message = "bqd,bkd->bqk"}> : () -> ()
    %cst_22 = arith.constant dense<0.000000e+00> : vector<2x128x128xf32>
    %47 = tpu.matmul %42, %44, %cst_22 {dimension_numbers = #tpu.dot_dimension_numbers<[2], [2], [1], [1], [0, 0, 0, 1, 1, 1], [0], [0]>} : vector<2x128x8xbf16>, vector<2x128x8xbf16>, vector<2x128x128xf32> -> vector<2x128x128xf32>
    "tpu.trace_stop"() : () -> ()
    %48 = vector.shape_cast %40 : vector<128x128xf32> to vector<1x128x128xf32>
    %49 = vector.broadcast %48 : vector<1x128x128xf32> to vector<2x128x128xf32>
    %50 = arith.addf %47, %49 : vector<2x128x128xf32>
    %cst_23 = arith.constant dense<0xFF800000> : vector<2x128xf32>
    %51 = vector.multi_reduction <maximumf>, %50, %cst_23 [2] : vector<2x128x128xf32> to vector<2x128xf32>
    %52 = vector.shape_cast %51 : vector<2x128xf32> to vector<2x128x1xf32>
    %53 = vector.broadcast %52 : vector<2x128x1xf32> to vector<2x128x128xf32>
    %54 = arith.subf %50, %53 : vector<2x128x128xf32>
    %55 = math.exp %54 : vector<2x128x128xf32>
    %cst_24 = arith.constant dense<0.000000e+00> : vector<2x128xf32>
    %56 = vector.multi_reduction <add>, %55, %cst_24 [2] : vector<2x128x128xf32> to vector<2x128xf32>
    %57 = vector.shape_cast %56 : vector<2x128xf32> to vector<2x128x1xf32>
    %58 = tpu.reciprocal %57 {approx = true} : vector<2x128x1xf32> -> vector<2x128x1xf32>
    %59 = vector.broadcast %58 : vector<2x128x1xf32> to vector<2x128x128xf32>
    %60 = arith.mulf %55, %59 : vector<2x128x128xf32>
    %61 = arith.truncf %60 : vector<2x128x128xf32> to vector<2x128x128xbf16>
    "tpu.trace_start"() <{level = 10 : i32, message = "bqk,bkd->bqd"}> : () -> ()
    %cst_25 = arith.constant dense<0.000000e+00> : vector<2x128x8xf32>
    %62 = tpu.matmul %61, %46, %cst_25 {dimension_numbers = #tpu.dot_dimension_numbers<[2], [1], [1], [2], [0, 0, 0, 1, 1, 2], [0], [0]>} : vector<2x128x128xbf16>, vector<2x128x8xbf16>, vector<2x128x8xf32> -> vector<2x128x8xf32>
    "tpu.trace_stop"() : () -> ()
    %63 = vector.extract_strided_slice %39 {offsets = [0, 0, 8], sizes = [2, 128, 8], strides = [1, 1, 1]} : vector<2x128x96xf32> to vector<2x128x8xf32>
    %64 = arith.truncf %63 : vector<2x128x8xf32> to vector<2x128x8xbf16>
    %65 = vector.extract_strided_slice %39 {offsets = [0, 0, 40], sizes = [2, 128, 8], strides = [1, 1, 1]} : vector<2x128x96xf32> to vector<2x128x8xf32>
    %66 = arith.truncf %65 : vector<2x128x8xf32> to vector<2x128x8xbf16>
    %67 = vector.extract_strided_slice %39 {offsets = [0, 0, 72], sizes = [2, 128, 8], strides = [1, 1, 1]} : vector<2x128x96xf32> to vector<2x128x8xf32>
    %68 = arith.truncf %67 : vector<2x128x8xf32> to vector<2x128x8xbf16>
    "tpu.trace_start"() <{level = 10 : i32, message = "bqd,bkd->bqk"}> : () -> ()
    %cst_26 = arith.constant dense<0.000000e+00> : vector<2x128x128xf32>
    %69 = tpu.matmul %64, %66, %cst_26 {dimension_numbers = #tpu.dot_dimension_numbers<[2], [2], [1], [1], [0, 0, 0, 1, 1, 1], [0], [0]>} : vector<2x128x8xbf16>, vector<2x128x8xbf16>, vector<2x128x128xf32> -> vector<2x128x128xf32>
    "tpu.trace_stop"() : () -> ()
    %70 = vector.shape_cast %40 : vector<128x128xf32> to vector<1x128x128xf32>
    %71 = vector.broadcast %70 : vector<1x128x128xf32> to vector<2x128x128xf32>
    %72 = arith.addf %69, %71 : vector<2x128x128xf32>
    %cst_27 = arith.constant dense<0xFF800000> : vector<2x128xf32>
    %73 = vector.multi_reduction <maximumf>, %72, %cst_27 [2] : vector<2x128x128xf32> to vector<2x128xf32>
    %74 = vector.shape_cast %73 : vector<2x128xf32> to vector<2x128x1xf32>
    %75 = vector.broadcast %74 : vector<2x128x1xf32> to vector<2x128x128xf32>
    %76 = arith.subf %72, %75 : vector<2x128x128xf32>
    %77 = math.exp %76 : vector<2x128x128xf32>
    %cst_28 = arith.constant dense<0.000000e+00> : vector<2x128xf32>
    %78 = vector.multi_reduction <add>, %77, %cst_28 [2] : vector<2x128x128xf32> to vector<2x128xf32>
    %79 = vector.shape_cast %78 : vector<2x128xf32> to vector<2x128x1xf32>
    %80 = tpu.reciprocal %79 {approx = true} : vector<2x128x1xf32> -> vector<2x128x1xf32>
    %81 = vector.broadcast %80 : vector<2x128x1xf32> to vector<2x128x128xf32>
    %82 = arith.mulf %77, %81 : vector<2x128x128xf32>
    %83 = arith.truncf %82 : vector<2x128x128xf32> to vector<2x128x128xbf16>
    "tpu.trace_start"() <{level = 10 : i32, message = "bqk,bkd->bqd"}> : () -> ()
    %cst_29 = arith.constant dense<0.000000e+00> : vector<2x128x8xf32>
    %84 = tpu.matmul %83, %68, %cst_29 {dimension_numbers = #tpu.dot_dimension_numbers<[2], [1], [1], [2], [0, 0, 0, 1, 1, 2], [0], [0]>} : vector<2x128x128xbf16>, vector<2x128x8xbf16>, vector<2x128x8xf32> -> vector<2x128x8xf32>
    "tpu.trace_stop"() : () -> ()
    %85 = vector.extract_strided_slice %39 {offsets = [0, 0, 16], sizes = [2, 128, 8], strides = [1, 1, 1]} : vector<2x128x96xf32> to vector<2x128x8xf32>
    %86 = arith.truncf %85 : vector<2x128x8xf32> to vector<2x128x8xbf16>
    %87 = vector.extract_strided_slice %39 {offsets = [0, 0, 48], sizes = [2, 128, 8], strides = [1, 1, 1]} : vector<2x128x96xf32> to vector<2x128x8xf32>
    %88 = arith.truncf %87 : vector<2x128x8xf32> to vector<2x128x8xbf16>
    %89 = vector.extract_strided_slice %39 {offsets = [0, 0, 80], sizes = [2, 128, 8], strides = [1, 1, 1]} : vector<2x128x96xf32> to vector<2x128x8xf32>
    %90 = arith.truncf %89 : vector<2x128x8xf32> to vector<2x128x8xbf16>
    "tpu.trace_start"() <{level = 10 : i32, message = "bqd,bkd->bqk"}> : () -> ()
    %cst_30 = arith.constant dense<0.000000e+00> : vector<2x128x128xf32>
    %91 = tpu.matmul %86, %88, %cst_30 {dimension_numbers = #tpu.dot_dimension_numbers<[2], [2], [1], [1], [0, 0, 0, 1, 1, 1], [0], [0]>} : vector<2x128x8xbf16>, vector<2x128x8xbf16>, vector<2x128x128xf32> -> vector<2x128x128xf32>
    "tpu.trace_stop"() : () -> ()
    %92 = vector.shape_cast %40 : vector<128x128xf32> to vector<1x128x128xf32>
    %93 = vector.broadcast %92 : vector<1x128x128xf32> to vector<2x128x128xf32>
    %94 = arith.addf %91, %93 : vector<2x128x128xf32>
    %cst_31 = arith.constant dense<0xFF800000> : vector<2x128xf32>
    %95 = vector.multi_reduction <maximumf>, %94, %cst_31 [2] : vector<2x128x128xf32> to vector<2x128xf32>
    %96 = vector.shape_cast %95 : vector<2x128xf32> to vector<2x128x1xf32>
    %97 = vector.broadcast %96 : vector<2x128x1xf32> to vector<2x128x128xf32>
    %98 = arith.subf %94, %97 : vector<2x128x128xf32>
    %99 = math.exp %98 : vector<2x128x128xf32>
    %cst_32 = arith.constant dense<0.000000e+00> : vector<2x128xf32>
    %100 = vector.multi_reduction <add>, %99, %cst_32 [2] : vector<2x128x128xf32> to vector<2x128xf32>
    %101 = vector.shape_cast %100 : vector<2x128xf32> to vector<2x128x1xf32>
    %102 = tpu.reciprocal %101 {approx = true} : vector<2x128x1xf32> -> vector<2x128x1xf32>
    %103 = vector.broadcast %102 : vector<2x128x1xf32> to vector<2x128x128xf32>
    %104 = arith.mulf %99, %103 : vector<2x128x128xf32>
    %105 = arith.truncf %104 : vector<2x128x128xf32> to vector<2x128x128xbf16>
    "tpu.trace_start"() <{level = 10 : i32, message = "bqk,bkd->bqd"}> : () -> ()
    %cst_33 = arith.constant dense<0.000000e+00> : vector<2x128x8xf32>
    %106 = tpu.matmul %105, %90, %cst_33 {dimension_numbers = #tpu.dot_dimension_numbers<[2], [1], [1], [2], [0, 0, 0, 1, 1, 2], [0], [0]>} : vector<2x128x128xbf16>, vector<2x128x8xbf16>, vector<2x128x8xf32> -> vector<2x128x8xf32>
    "tpu.trace_stop"() : () -> ()
    %107 = vector.extract_strided_slice %39 {offsets = [0, 0, 24], sizes = [2, 128, 8], strides = [1, 1, 1]} : vector<2x128x96xf32> to vector<2x128x8xf32>
    %108 = arith.truncf %107 : vector<2x128x8xf32> to vector<2x128x8xbf16>
    %109 = vector.extract_strided_slice %39 {offsets = [0, 0, 56], sizes = [2, 128, 8], strides = [1, 1, 1]} : vector<2x128x96xf32> to vector<2x128x8xf32>
    %110 = arith.truncf %109 : vector<2x128x8xf32> to vector<2x128x8xbf16>
    %111 = vector.extract_strided_slice %39 {offsets = [0, 0, 88], sizes = [2, 128, 8], strides = [1, 1, 1]} : vector<2x128x96xf32> to vector<2x128x8xf32>
    %112 = arith.truncf %111 : vector<2x128x8xf32> to vector<2x128x8xbf16>
    "tpu.trace_start"() <{level = 10 : i32, message = "bqd,bkd->bqk"}> : () -> ()
    %cst_34 = arith.constant dense<0.000000e+00> : vector<2x128x128xf32>
    %113 = tpu.matmul %108, %110, %cst_34 {dimension_numbers = #tpu.dot_dimension_numbers<[2], [2], [1], [1], [0, 0, 0, 1, 1, 1], [0], [0]>} : vector<2x128x8xbf16>, vector<2x128x8xbf16>, vector<2x128x128xf32> -> vector<2x128x128xf32>
    "tpu.trace_stop"() : () -> ()
    %114 = vector.shape_cast %40 : vector<128x128xf32> to vector<1x128x128xf32>
    %115 = vector.broadcast %114 : vector<1x128x128xf32> to vector<2x128x128xf32>
    %116 = arith.addf %113, %115 : vector<2x128x128xf32>
    %cst_35 = arith.constant dense<0xFF800000> : vector<2x128xf32>
    %117 = vector.multi_reduction <maximumf>, %116, %cst_35 [2] : vector<2x128x128xf32> to vector<2x128xf32>
    %118 = vector.shape_cast %117 : vector<2x128xf32> to vector<2x128x1xf32>
    %119 = vector.broadcast %118 : vector<2x128x1xf32> to vector<2x128x128xf32>
    %120 = arith.subf %116, %119 : vector<2x128x128xf32>
    %121 = math.exp %120 : vector<2x128x128xf32>
    %cst_36 = arith.constant dense<0.000000e+00> : vector<2x128xf32>
    %122 = vector.multi_reduction <add>, %121, %cst_36 [2] : vector<2x128x128xf32> to vector<2x128xf32>
    %123 = vector.shape_cast %122 : vector<2x128xf32> to vector<2x128x1xf32>
    %124 = tpu.reciprocal %123 {approx = true} : vector<2x128x1xf32> -> vector<2x128x1xf32>
    %125 = vector.broadcast %124 : vector<2x128x1xf32> to vector<2x128x128xf32>
    %126 = arith.mulf %121, %125 : vector<2x128x128xf32>
    %127 = arith.truncf %126 : vector<2x128x128xf32> to vector<2x128x128xbf16>
    "tpu.trace_start"() <{level = 10 : i32, message = "bqk,bkd->bqd"}> : () -> ()
    %cst_37 = arith.constant dense<0.000000e+00> : vector<2x128x8xf32>
    %128 = tpu.matmul %127, %112, %cst_37 {dimension_numbers = #tpu.dot_dimension_numbers<[2], [1], [1], [2], [0, 0, 0, 1, 1, 2], [0], [0]>} : vector<2x128x128xbf16>, vector<2x128x8xbf16>, vector<2x128x8xf32> -> vector<2x128x8xf32>
    "tpu.trace_stop"() : () -> ()
    %129 = tpu.concatenate %62, %84, %106, %128 in 2 : vector<2x128x8xf32>, vector<2x128x8xf32>, vector<2x128x8xf32>, vector<2x128x8xf32> -> vector<2x128x32xf32>
    %130 = vector.shape_cast %129 : vector<2x128x32xf32> to vector<256x32xf32>
    %131 = arith.truncf %130 : vector<256x32xf32> to vector<256x32xbf16>
    %c0_38 = arith.constant 0 : index
    %c0_39 = arith.constant 0 : index
    %c0_40 = arith.constant 0 : index
    %132 = vector.load %arg8[%c0_38, %c0_39, %c0_40] : memref<1x32x32xbf16, #tpu.memory_space<vmem>>, vector<1x32x32xbf16>
    %133 = vector.shape_cast %132 : vector<1x32x32xbf16> to vector<32x32xbf16>
    %cst_41 = arith.constant dense<0.000000e+00> : vector<256x32xf32>
    %134 = tpu.matmul %131, %133, %cst_41 {dimension_numbers = #tpu.dot_dimension_numbers<[1], [0], [0], [1], [0, 0, 1, 1], [], []>} : vector<256x32xbf16>, vector<32x32xbf16>, vector<256x32xf32> -> vector<256x32xf32>
    %c0_42 = arith.constant 0 : index
    %c0_43 = arith.constant 0 : index
    %c0_44 = arith.constant 0 : index
    %135 = vector.load %arg9[%c0_42, %c0_43, %c0_44] : memref<1x1x32xf32, #tpu.memory_space<vmem>>, vector<1x1x32xf32>
    %136 = vector.shape_cast %135 : vector<1x1x32xf32> to vector<1x32xf32>
    %137 = vector.broadcast %136 : vector<1x32xf32> to vector<256x32xf32>
    %138 = arith.addf %134, %137 : vector<256x32xf32>
    %139 = arith.addf %4, %138 : vector<256x32xf32>
    %c0_45 = arith.constant 0 : index
    %c0_46 = arith.constant 0 : index
    %c0_47 = arith.constant 0 : index
    %140 = vector.load %arg10[%c0_45, %c0_46, %c0_47] : memref<1x1x32xf32, #tpu.memory_space<vmem>>, vector<1x1x32xf32>
    %141 = vector.shape_cast %140 : vector<1x1x32xf32> to vector<1x32xf32>
    %c0_48 = arith.constant 0 : index
    %c0_49 = arith.constant 0 : index
    %c0_50 = arith.constant 0 : index
    %142 = vector.load %arg11[%c0_48, %c0_49, %c0_50] : memref<1x1x32xf32, #tpu.memory_space<vmem>>, vector<1x1x32xf32>
    %143 = vector.shape_cast %142 : vector<1x1x32xf32> to vector<1x32xf32>
    %cst_51 = arith.constant dense<0.000000e+00> : vector<256xf32>
    %144 = vector.multi_reduction <add>, %139, %cst_51 [1] : vector<256x32xf32> to vector<256xf32>
    %145 = vector.shape_cast %144 : vector<256xf32> to vector<256x1xf32>
    %146 = arith.mulf %139, %139 : vector<256x32xf32>
    %cst_52 = arith.constant dense<0.000000e+00> : vector<256xf32>
    %147 = vector.multi_reduction <add>, %146, %cst_52 [1] : vector<256x32xf32> to vector<256xf32>
    %148 = vector.shape_cast %147 : vector<256xf32> to vector<256x1xf32>
    %cst_53 = arith.constant 3.125000e-02 : f32
    %149 = vector.broadcast %cst_53 : f32 to vector<256x1xf32>
    %150 = arith.mulf %145, %149 : vector<256x1xf32>
    %cst_54 = arith.constant 3.125000e-02 : f32
    %151 = vector.broadcast %cst_54 : f32 to vector<256x1xf32>
    %152 = arith.mulf %148, %151 : vector<256x1xf32>
    %153 = arith.mulf %150, %150 : vector<256x1xf32>
    %154 = arith.subf %152, %153 : vector<256x1xf32>
    %155 = vector.broadcast %150 : vector<256x1xf32> to vector<256x32xf32>
    %156 = arith.subf %139, %155 : vector<256x32xf32>
    %cst_55 = arith.constant 9.99999974E-6 : f32
    %157 = vector.broadcast %cst_55 : f32 to vector<256x1xf32>
    %158 = arith.addf %154, %157 : vector<256x1xf32>
    %159 = math.rsqrt %158 : vector<256x1xf32>
    %160 = vector.broadcast %159 : vector<256x1xf32> to vector<256x32xf32>
    %161 = arith.mulf %156, %160 : vector<256x32xf32>
    %162 = vector.broadcast %141 : vector<1x32xf32> to vector<256x32xf32>
    %163 = arith.mulf %161, %162 : vector<256x32xf32>
    %164 = vector.broadcast %143 : vector<1x32xf32> to vector<256x32xf32>
    %165 = arith.addf %163, %164 : vector<256x32xf32>
    %166 = arith.truncf %165 : vector<256x32xf32> to vector<256x32xbf16>
    %c0_56 = arith.constant 0 : index
    %c0_57 = arith.constant 0 : index
    %c0_58 = arith.constant 0 : index
    %167 = vector.load %arg12[%c0_56, %c0_57, %c0_58] : memref<1x32x128xbf16, #tpu.memory_space<vmem>>, vector<1x32x128xbf16>
    %168 = vector.shape_cast %167 : vector<1x32x128xbf16> to vector<32x128xbf16>
    %cst_59 = arith.constant dense<0.000000e+00> : vector<256x128xf32>
    %169 = tpu.matmul %166, %168, %cst_59 {dimension_numbers = #tpu.dot_dimension_numbers<[1], [0], [0], [1], [0, 0, 1, 1], [], []>} : vector<256x32xbf16>, vector<32x128xbf16>, vector<256x128xf32> -> vector<256x128xf32>
    %c0_60 = arith.constant 0 : index
    %c0_61 = arith.constant 0 : index
    %c0_62 = arith.constant 0 : index
    %170 = vector.load %arg13[%c0_60, %c0_61, %c0_62] : memref<1x1x128xf32, #tpu.memory_space<vmem>>, vector<1x1x128xf32>
    %171 = vector.shape_cast %170 : vector<1x1x128xf32> to vector<1x128xf32>
    %172 = vector.broadcast %171 : vector<1x128xf32> to vector<256x128xf32>
    %173 = arith.addf %169, %172 : vector<256x128xf32>
    %cst_63 = arith.constant 1.702000e+00 : f32
    %174 = vector.broadcast %cst_63 : f32 to vector<256x128xf32>
    %175 = arith.mulf %174, %173 : vector<256x128xf32>
    %176 = arith.negf %175 : vector<256x128xf32>
    %177 = math.exp %176 : vector<256x128xf32>
    %cst_64 = arith.constant 1.000000e+00 : f32
    %178 = vector.broadcast %cst_64 : f32 to vector<256x128xf32>
    %179 = arith.addf %178, %177 : vector<256x128xf32>
    %180 = arith.divf %178, %179 : vector<256x128xf32>
    %181 = arith.mulf %173, %180 : vector<256x128xf32>
    %182 = arith.truncf %181 : vector<256x128xf32> to vector<256x128xbf16>
    %c0_65 = arith.constant 0 : index
    %c0_66 = arith.constant 0 : index
    %c0_67 = arith.constant 0 : index
    %183 = vector.load %arg14[%c0_65, %c0_66, %c0_67] : memref<1x128x32xbf16, #tpu.memory_space<vmem>>, vector<1x128x32xbf16>
    %184 = vector.shape_cast %183 : vector<1x128x32xbf16> to vector<128x32xbf16>
    %cst_68 = arith.constant dense<0.000000e+00> : vector<256x32xf32>
    %185 = tpu.matmul %182, %184, %cst_68 {dimension_numbers = #tpu.dot_dimension_numbers<[1], [0], [0], [1], [0, 0, 1, 1], [], []>} : vector<256x128xbf16>, vector<128x32xbf16>, vector<256x32xf32> -> vector<256x32xf32>
    %c0_69 = arith.constant 0 : index
    %c0_70 = arith.constant 0 : index
    %c0_71 = arith.constant 0 : index
    %186 = vector.load %arg15[%c0_69, %c0_70, %c0_71] : memref<1x1x32xf32, #tpu.memory_space<vmem>>, vector<1x1x32xf32>
    %187 = vector.shape_cast %186 : vector<1x1x32xf32> to vector<1x32xf32>
    %188 = vector.broadcast %187 : vector<1x32xf32> to vector<256x32xf32>
    %189 = arith.addf %185, %188 : vector<256x32xf32>
    %190 = arith.addf %139, %189 : vector<256x32xf32>
    %191 = vector.shape_cast %190 : vector<256x32xf32> to vector<2x128x32xf32>
    %c0_72 = arith.constant 0 : index
    %c0_73 = arith.constant 0 : index
    %c0_74 = arith.constant 0 : index
    %192 = vector.load %arg16[%c0_72, %c0_73, %c0_74] : memref<2x128x32xf32, #tpu.memory_space<vmem>>, vector<2x128x32xf32>
    tpu.vector_store %arg16[%c0_72, %c0_73, %c0_74], %191 {strides = array<i32>} : memref<2x128x32xf32, #tpu.memory_space<vmem>>, vector<2x128x32xf32>,
    return
  }
  func.func @transform_0(%arg0: i32, %arg1: i32) -> (i32, i32) {
    %c0_i32 = arith.constant 0 : i32
    %c0_i32_0 = arith.constant 0 : i32
    %c0_i32_1 = arith.constant 0 : i32
    return %c0_i32, %c0_i32_0 : i32, i32
  }
  func.func @transform_1(%arg0: i32, %arg1: i32) -> (i32, i32, i32) {
    %c0_i32 = arith.constant 0 : i32
    %c0_i32_0 = arith.constant 0 : i32
    %c0_i32_1 = arith.constant 0 : i32
    return %arg0, %c0_i32, %c0_i32_0 : i32, i32, i32
  }
  func.func @transform_2(%arg0: i32, %arg1: i32) -> (i32, i32, i32) {
    %c0_i32 = arith.constant 0 : i32
    %c0_i32_0 = arith.constant 0 : i32
    %c0_i32_1 = arith.constant 0 : i32
    return %arg1, %c0_i32, %c0_i32_0 : i32, i32, i32
  }
  func.func @transform_3(%arg0: i32, %arg1: i32) -> (i32, i32, i32) {
    %c0_i32 = arith.constant 0 : i32
    %c0_i32_0 = arith.constant 0 : i32
    %c0_i32_1 = arith.constant 0 : i32
    return %arg1, %c0_i32, %c0_i32_0 : i32, i32, i32
  }
  func.func @transform_4(%arg0: i32, %arg1: i32) -> (i32, i32, i32) {
    %c0_i32 = arith.constant 0 : i32
    %c0_i32_0 = arith.constant 0 : i32
    %c0_i32_1 = arith.constant 0 : i32
    return %arg1, %c0_i32, %c0_i32_0 : i32, i32, i32
  }
  func.func @transform_5(%arg0: i32, %arg1: i32) -> (i32, i32, i32) {
    %c0_i32 = arith.constant 0 : i32
    %c0_i32_0 = arith.constant 0 : i32
    %c0_i32_1 = arith.constant 0 : i32
    return %arg1, %c0_i32, %c0_i32_0 : i32, i32, i32
  }
  func.func @transform_6(%arg0: i32, %arg1: i32) -> (i32, i32, i32) {
    %c0_i32 = arith.constant 0 : i32
    %c0_i32_0 = arith.constant 0 : i32
    %c0_i32_1 = arith.constant 0 : i32
    return %arg1, %c0_i32, %c0_i32_0 : i32, i32, i32
  }
  func.func @transform_7(%arg0: i32, %arg1: i32) -> (i32, i32, i32) {
    %c0_i32 = arith.constant 0 : i32
    %c0_i32_0 = arith.constant 0 : i32
    %c0_i32_1 = arith.constant 0 : i32
    return %arg1, %c0_i32, %c0_i32_0 : i32, i32, i32
  }
  func.func @transform_8(%arg0: i32, %arg1: i32) -> (i32, i32, i32) {
    %c0_i32 = arith.constant 0 : i32
    %c0_i32_0 = arith.constant 0 : i32
    %c0_i32_1 = arith.constant 0 : i32
    return %arg1, %c0_i32, %c0_i32_0 : i32, i32, i32
  }
  func.func @transform_9(%arg0: i32, %arg1: i32) -> (i32, i32, i32) {
    %c0_i32 = arith.constant 0 : i32
    %c0_i32_0 = arith.constant 0 : i32
    %c0_i32_1 = arith.constant 0 : i32
    return %arg1, %c0_i32, %c0_i32_0 : i32, i32, i32
  }
  func.func @transform_10(%arg0: i32, %arg1: i32) -> (i32, i32, i32) {
    %c0_i32 = arith.constant 0 : i32
    %c0_i32_0 = arith.constant 0 : i32
    %c0_i32_1 = arith.constant 0 : i32
    return %arg1, %c0_i32, %c0_i32_0 : i32, i32, i32
  }
  func.func @transform_11(%arg0: i32, %arg1: i32) -> (i32, i32, i32) {
    %c0_i32 = arith.constant 0 : i32
    %c0_i32_0 = arith.constant 0 : i32
    %c0_i32_1 = arith.constant 0 : i32
    return %arg1, %c0_i32, %c0_i32_0 : i32, i32, i32
  }
  func.func @transform_12(%arg0: i32, %arg1: i32) -> (i32, i32, i32) {
    %c0_i32 = arith.constant 0 : i32
    %c0_i32_0 = arith.constant 0 : i32
    %c0_i32_1 = arith.constant 0 : i32
    return %arg1, %c0_i32, %c0_i32_0 : i32, i32, i32
  }
  func.func @transform_13(%arg0: i32, %arg1: i32) -> (i32, i32, i32) {
    %c0_i32 = arith.constant 0 : i32
    %c0_i32_0 = arith.constant 0 : i32
    %c0_i32_1 = arith.constant 0 : i32
    return %arg1, %c0_i32, %c0_i32_0 : i32, i32, i32
  }
  func.func @transform_14(%arg0: i32, %arg1: i32) -> (i32, i32, i32) {
    %c0_i32 = arith.constant 0 : i32
    %c0_i32_0 = arith.constant 0 : i32
    %c0_i32_1 = arith.constant 0 : i32
    return %arg0, %c0_i32, %c0_i32_0 : i32, i32, i32
  }
}

</mosaic_0001>

<bundles_post_ra>
// kernel: tpu_custom_call.1
= control target key start
LH: loop header
LB: loop body
LE: loop exit
PB: predicated region body
PF: predicated region fallthrough
CT: control target
= control target key end

     0   :  { %s10040_s29 = smov 0   ;;  %s10042_s30 = smov 0   ;;  %s14965_s0 = inlined_call_operand.vmem [shape: f32[128,128], index: 0, kind: input, shape index: {}]   ;;  %s14966_s1 = inlined_call_operand.vmem [shape: f32[2,128,32], index: 1, kind: input, shape index: {}]   ;;  %s14967_s2 = inlined_call_operand.vmem [shape: f32[2,1,32], index: 2, kind: input, shape index: {}]   ;;  %s14968_s3 = inlined_call_operand.vmem [shape: f32[2,1,32], index: 3, kind: input, shape index: {}]   ;;  %s14969_s4 = inlined_call_operand.vmem [shape: bf16[2,32,96], index: 4, kind: input, shape index: {}]   ;;  %s14970_s5 = inlined_call_operand.vmem [shape: f32[2,1,96], index: 5, kind: input, shape index: {}]   ;;  %s14971_s6 = inlined_call_operand.vmem [shape: bf16[2,32,32], index: 6, kind: input, shape index: {}]   ;;  %s14972_s7 = inlined_call_operand.vmem [shape: f32[2,1,32], index: 7, kind: input, shape index: {}]   ;;  %s14973_s8 = inlined_call_operand.vmem [shape: f32[2,1,32], index: 8, kind: input, shape index: {}]   ;;  %s14974_s9 = inlined_call_operand.vmem [shape: f32[2,1,32], index: 9, kind: input, shape index: {}]   ;;  %s14975_s10 = inlined_call_operand.vmem [shape: bf16[2,32,128], index: 10, kind: input, shape index: {}]   ;;  %s14976_s11 = inlined_call_operand.vmem [shape: f32[2,1,128], index: 11, kind: input, shape index: {}]   ;;  %s14977_s12 = inlined_call_operand.vmem [shape: bf16[2,128,32], index: 12, kind: input, shape index: {}]   ;;  %s14978_s13 = inlined_call_operand.vmem [shape: f32[2,1,32], index: 13, kind: input, shape index: {}]   ;;  %s14979_s14 = inlined_call_operand.vmem [shape: f32[2,128,32], index: 14, kind: output, shape index: {}]  }
   0x1   :  { %15125 = sst [smem:[#allocation95_spill]] %s14965_s0  ;;  %s10044_s15 = smov 0  }
   0x2   :  { %15126 = sst [smem:[#allocation96_spill]] %s14969_s4 }
   0x3   :  { %15127 = sst [smem:[#allocation97_spill]] %s14971_s6 }
   0x4   :  { %15128 = sst [smem:[#allocation98_spill]] %s14972_s7 }
   0x5   :  { %15129 = sst [smem:[#allocation99_spill]] %s14973_s8 }
   0x6   :  { %15130 = sst [smem:[#allocation100_spill]] %s14974_s9 }
   0x7 LB: > { %15131 = sst [smem:[#allocation2_spill]] %s9945_s30  ;;  %s33_s16 = sadd.s32 1, %s9945_s30  ;;  %s9949_s15 = sphi %s10044_s15, %s24_s15   ;;  %s9945_s30 = sphi %s10042_s30, %s15528_s30   ;;  %s9941_s29 = sphi %s10040_s29, %s15527_s29  }
   0x8   : > { %15132 = sst [smem:[#allocation3_spill]] %s9949_s15  ;;  %p7533_p0 = scmp.ge.s32.totalorder %s9949_s15, 1 }
   0x9   : > { %p34_p1 = scmp.ge.s32.totalorder %s33_s16, 2  ;;  %p530_p2 = scmp.lt.s32.totalorder %s9949_s15, 3 }
   0xb   : > { %s15530_s16 = smov (%p34_p1, %s33_s16), 0  ;;  %p531_p3 = pnand %p7533_p0, %p530_p2 }
   0xc   : > { %15133 = sst [smem:[#allocation4_spill]] %s15530_s16 }
   0xd   : > { %534 = sbr.rel (%p531_p3) target bundleno = 4496 (0x1190), region = 76 }
  0x12   : > { %p629_p4 = scmp.lt.s32.totalorder %s9941_s29, 1  ;;  %s15134_s4 = sld [smem:[#allocation96_spill]] }
  0x13   : > { %s15135_s6 = sld [smem:[#allocation97_spill]]  ;;  %p7542_p5 = scmp.ne.s32.totalorder %s9941_s29, 0 }
  0x14   : > { %s10058_s17 = scalar_select %p629_p4, %s9941_s29, 1 }
  0x15   : > { %s15136_s7 = sld [smem:[#allocation98_spill]] }
  0x16   : > { %s7713_s24 = sshll.u32 %s10058_s17, 4  ;;  %s15137_s8 = sld [smem:[#allocation99_spill]] }
  0x17   : > { %s15138_s9 = sld [smem:[#allocation100_spill]]  ;;  %s10104_s30 = scalar_lea.vmem %s14975_s10, %s7713_s24 }
  0x18   : > { %s10076_s19 = scalar_lea.vmem %s15134_s4, %s7713_s24  ;;  %s10110_s0 = scalar_lea.vmem %s14976_s11, %s10058_s17 }
  0x19   : > { %s10081_s15 = scalar_lea.vmem %s15135_s6, %s7713_s24  ;;  %s7716_s20 = sshll.u32 %s10058_s17, 6 }
  0x1a   : > { %s10116_s22 = scalar_lea.vmem %s14977_s12, %s7716_s20  ;;  %s672_s26 = scalar_lea.vmem %s14978_s13, %s10058_s17 }
  0x1b   : > { %s10087_s21 = scalar_lea.vmem %s15136_s7, %s10058_s17  ;;  %684 = sbr.rel (%p7542_p5) target bundleno = 49 (0x31), region = 80 }
  0x1c   : > { %s10093_s25 = scalar_lea.vmem %s15137_s8, %s10058_s17 }
  0x1d   : > { %s10099_s28 = scalar_lea.vmem %s15138_s9, %s10058_s17 }
  0x20   : > { %v685_v0 = vld [vmem:[%s14966_s1] sm:$0xff]  ;;  %vm717_vm0 = vcmask 261120   ;;  %v686_v1 = vld [vmem:[%s14966_s1 + $0x8] sm:$0xff]  ;;  %v687_v2 = vld [vmem:[%s14966_s1 + $0x10] sm:$0xff] }
  0x21   : > { %718 = vst.msk [vmem:[%s14979_s14] sm:$0xff] %vm717_vm0, %v685_v0  ;;  %719 = vst.msk [vmem:[%s14979_s14 + $0x8] sm:$0xff] %vm717_vm0, %v686_v1  ;;  %v688_v3 = vld [vmem:[%s14966_s1 + $0x18] sm:$0xff]  ;;  %v689_v4 = vld [vmem:[%s14966_s1 + $0x20] sm:$0xff] }
  0x22   : > { %720 = vst.msk [vmem:[%s14979_s14 + $0x10] sm:$0xff] %vm717_vm0, %v687_v2  ;;  %v690_v5 = vld [vmem:[%s14966_s1 + $0x28] sm:$0xff]  ;;  %721 = vst.msk [vmem:[%s14979_s14 + $0x18] sm:$0xff] %vm717_vm0, %v688_v3  ;;  %v691_v6 = vld [vmem:[%s14966_s1 + $0x30] sm:$0xff] }
  0x23   : > { %722 = vst.msk [vmem:[%s14979_s14 + $0x20] sm:$0xff] %vm717_vm0, %v689_v4  ;;  %723 = vst.msk [vmem:[%s14979_s14 + $0x28] sm:$0xff] %vm717_vm0, %v690_v5  ;;  %v692_v7 = vld [vmem:[%s14966_s1 + $0x38] sm:$0xff]  ;;  %v693_v8 = vld [vmem:[%s14966_s1 + $0x40] sm:$0xff] }
  0x24   : > { %724 = vst.msk [vmem:[%s14979_s14 + $0x30] sm:$0xff] %vm717_vm0, %v691_v6  ;;  %725 = vst.msk [vmem:[%s14979_s14 + $0x38] sm:$0xff] %vm717_vm0, %v692_v7  ;;  %v694_v9 = vld [vmem:[%s14966_s1 + $0x48] sm:$0xff]  ;;  %v695_v10 = vld [vmem:[%s14966_s1 + $0x50] sm:$0xff] }
  0x25   : > { %726 = vst.msk [vmem:[%s14979_s14 + $0x40] sm:$0xff] %vm717_vm0, %v693_v8  ;;  %v696_v11 = vld [vmem:[%s14966_s1 + $0x58] sm:$0xff]  ;;  %727 = vst.msk [vmem:[%s14979_s14 + $0x48] sm:$0xff] %vm717_vm0, %v694_v9  ;;  %v697_v12 = vld [vmem:[%s14966_s1 + $0x60] sm:$0xff] }
  0x26   : > { %728 = vst.msk [vmem:[%s14979_s14 + $0x50] sm:$0xff] %vm717_vm0, %v695_v10  ;;  %729 = vst.msk [vmem:[%s14979_s14 + $0x58] sm:$0xff] %vm717_vm0, %v696_v11  ;;  %v698_v13 = vld [vmem:[%s14966_s1 + $0x68] sm:$0xff]  ;;  %v699_v14 = vld [vmem:[%s14966_s1 + $0x70] sm:$0xff] }
  0x27   : > { %730 = vst.msk [vmem:[%s14979_s14 + $0x60] sm:$0xff] %vm717_vm0, %v697_v12  ;;  %731 = vst.msk [vmem:[%s14979_s14 + $0x68] sm:$0xff] %vm717_vm0, %v698_v13  ;;  %v700_v15 = vld [vmem:[%s14966_s1 + $0x78] sm:$0xff]  ;;  %v701_v16 = vld [vmem:[%s14966_s1 + $0x80] sm:$0xff] }
  0x28   : > { %732 = vst.msk [vmem:[%s14979_s14 + $0x70] sm:$0xff] %vm717_vm0, %v699_v14  ;;  %v702_v17 = vld [vmem:[%s14966_s1 + $0x88] sm:$0xff]  ;;  %733 = vst.msk [vmem:[%s14979_s14 + $0x78] sm:$0xff] %vm717_vm0, %v700_v15  ;;  %v703_v18 = vld [vmem:[%s14966_s1 + $0x90] sm:$0xff] }
  0x29   : > { %734 = vst.msk [vmem:[%s14979_s14 + $0x80] sm:$0xff] %vm717_vm0, %v701_v16  ;;  %735 = vst.msk [vmem:[%s14979_s14 + $0x88] sm:$0xff] %vm717_vm0, %v702_v17  ;;  %v704_v19 = vld [vmem:[%s14966_s1 + $0x98] sm:$0xff]  ;;  %v705_v20 = vld [vmem:[%s14966_s1 + $0xa0] sm:$0xff] }
  0x2a   : > { %736 = vst.msk [vmem:[%s14979_s14 + $0x90] sm:$0xff] %vm717_vm0, %v703_v18  ;;  %737 = vst.msk [vmem:[%s14979_s14 + $0x98] sm:$0xff] %vm717_vm0, %v704_v19  ;;  %v706_v21 = vld [vmem:[%s14966_s1 + $0xa8] sm:$0xff]  ;;  %v707_v22 = vld [vmem:[%s14966_s1 + $0xb0] sm:$0xff] }
  0x2b   : > { %738 = vst.msk [vmem:[%s14979_s14 + $0xa0] sm:$0xff] %vm717_vm0, %v705_v20  ;;  %v708_v23 = vld [vmem:[%s14966_s1 + $0xb8] sm:$0xff]  ;;  %739 = vst.msk [vmem:[%s14979_s14 + $0xa8] sm:$0xff] %vm717_vm0, %v706_v21  ;;  %v709_v24 = vld [vmem:[%s14966_s1 + $0xc0] sm:$0xff] }
  0x2c   : > { %740 = vst.msk [vmem:[%s14979_s14 + $0xb0] sm:$0xff] %vm717_vm0, %v707_v22  ;;  %741 = vst.msk [vmem:[%s14979_s14 + $0xb8] sm:$0xff] %vm717_vm0, %v708_v23  ;;  %v710_v25 = vld [vmem:[%s14966_s1 + $0xc8] sm:$0xff]  ;;  %v711_v26 = vld [vmem:[%s14966_s1 + $0xd0] sm:$0xff] }
  0x2d   : > { %742 = vst.msk [vmem:[%s14979_s14 + $0xc0] sm:$0xff] %vm717_vm0, %v709_v24  ;;  %743 = vst.msk [vmem:[%s14979_s14 + $0xc8] sm:$0xff] %vm717_vm0, %v710_v25  ;;  %v712_v27 = vld [vmem:[%s14966_s1 + $0xd8] sm:$0xff]  ;;  %v713_v28 = vld [vmem:[%s14966_s1 + $0xe0] sm:$0xff] }
  0x2e   : > { %744 = vst.msk [vmem:[%s14979_s14 + $0xd0] sm:$0xff] %vm717_vm0, %v711_v26  ;;  %v714_v29 = vld [vmem:[%s14966_s1 + $0xe8] sm:$0xff]  ;;  %745 = vst.msk [vmem:[%s14979_s14 + $0xd8] sm:$0xff] %vm717_vm0, %v712_v27  ;;  %v715_v30 = vld [vmem:[%s14966_s1 + $0xf0] sm:$0xff] }
  0x2f   : > { %746 = vst.msk [vmem:[%s14979_s14 + $0xe0] sm:$0xff] %vm717_vm0, %v713_v28  ;;  %747 = vst.msk [vmem:[%s14979_s14 + $0xe8] sm:$0xff] %vm717_vm0, %v714_v29  ;;  %v716_v31 = vld [vmem:[%s14966_s1 + $0xf8] sm:$0xff] }
  0x30   : > { %748 = vst.msk [vmem:[%s14979_s14 + $0xf0] sm:$0xff] %vm717_vm0, %v715_v30  ;;  %749 = vst.msk [vmem:[%s14979_s14 + $0xf8] sm:$0xff] %vm717_vm0, %v716_v31 }
  0x31 PF: > { %v10349_v32 = vld [vmem:[%s14979_s14 + $0x10] sm:$0xff]  ;;  %vm784_vm1 = vcmask 261120   ;;  %v10354_v33 = vld [vmem:[%s14979_s14] sm:$0xff]  ;;  %v10359_v34 = vld [vmem:[%s14979_s14 + $0x18] sm:$0xff]  ;;  %s15139_s27 = scalar_lea.vmem %s14967_s2, %s10058_s17  ;;  %s15140_s9 = scalar_lea.vmem %s14968_s3, %s10058_s17  ;;  %vm1645_vm2 = vcmask 64512   ;;  %vm5622_vm3 = vcmask 130048  }
  0x32   : > { %v791_v35 = vsel %vm784_vm1, %v10349_v32, 0.0  ;;  %v785_v36 = vsel %vm784_vm1, %v10354_v33, 0.0  ;;  %v10368_v37 = vld [vmem:[%s14979_s14 + $0x8] sm:$0xff]  ;;  %v794_v38 = vsel %vm784_vm1, %v10359_v34, 0.0  ;;  %v881_v41 = vmul.f32 %v10354_v33, %v10354_v33  ;;  %v10394_v49 = vld [vmem:[%s14979_s14 + $0x20] sm:$0xff]  ;;  %v10403_v52 = vld [vmem:[%s14979_s14 + $0x38] sm:$0xff]  ;;  %s15141_s18 = scalar_lea.vmem %s14970_s5, %s10058_s17 }
  0x33   : > { %792 = vadd.xlane.f32.xlu1 %v791_v35  ;;  %786 = vadd.xlane.f32.xlu0 %v785_v36  ;;  %v788_v39 = vsel %vm784_vm1, %v10368_v37, 0.0  ;;  %v882_v40 = vmul.f32 %v10368_v37, %v10368_v37  ;;  %v884_v44 = vmul.f32 %v10359_v34, %v10359_v34  ;;  %v883_v45 = vmul.f32 %v10349_v32, %v10349_v32  ;;  %v10389_v48 = vld [vmem:[%s14979_s14 + $0x28] sm:$0xff]  ;;  %v10408_v53 = vld [vmem:[%s14979_s14 + $0x30] sm:$0xff]  ;;  %v10434_v1 = vld [vmem:[%s14979_s14 + $0x40] sm:$0xff]  ;;  %s9951_s16 = smov 96   ;;  %s9952_s7 = smov 64  }
  0x34   : > { %v913_v43 = vsel %vm784_vm1, %v881_v41, 0.0  ;;  %v800_v50 = vsel %vm784_vm1, %v10389_v48, 0.0  ;;  %v797_v51 = vsel %vm784_vm1, %v10394_v49, 0.0  ;;  %v886_v54 = vmul.f32 %v10389_v48, %v10389_v48  ;;  %v10429_v0 = vld [vmem:[%s14979_s14 + $0x48] sm:$0xff]  ;;  %v10443_v4 = vld [vmem:[%s14979_s14 + $0x58] sm:$0xff]  ;;  %v10448_v5 = vld [vmem:[%s14979_s14 + $0x50] sm:$0xff] }
  0x35   : > { %v916_v42 = vsel %vm784_vm1, %v882_v40, 0.0  ;;  %v922_v46 = vsel %vm784_vm1, %v884_v44, 0.0  ;;  %v919_v47 = vsel %vm784_vm1, %v883_v45, 0.0  ;;  %v885_v55 = vmul.f32 %v10394_v49, %v10394_v49  ;;  %v9061_v16 = vld [vmem:[%s10076_s19 + $0x8] sm:$0xff]   ;;  %v10475_v18 = vld [vmem:[%s14979_s14 + $0x60] sm:$0xff]  ;;  %v10485_v22 = vld [vmem:[%s14979_s14 + $0x78] sm:$0xff] }
  0x36   : > { %v806_v56 = vsel %vm784_vm1, %v10403_v52, 0.0  ;;  %v803_v57 = vsel %vm784_vm1, %v10408_v53, 0.0  ;;  %v888_v58 = vmul.f32 %v10403_v52, %v10403_v52  ;;  %v887_v59 = vmul.f32 %v10408_v53, %v10408_v53  ;;  %v10470_v17 = vld [vmem:[%s14979_s14 + $0x68] sm:$0xff]  ;;  %8051 = vmatprep.subr.bf16.mxu0 %v9061_v16  ;;  %v9062_v21 = vld [vmem:[%s10076_s19] sm:$0xff]   ;;  %v10490_v23 = vld [vmem:[%s14979_s14 + $0x70] sm:$0xff]  ;;  %s9953_s20 = smov 88  }
  0x37   : > { %795 = vadd.xlane.f32.xlu1 %v794_v38  ;;  %789 = vadd.xlane.f32.xlu0 %v788_v39  ;;  %v928_v60 = vsel %vm784_vm1, %v886_v54, 0.0  ;;  %v925_v61 = vsel %vm784_vm1, %v885_v55, 0.0  ;;  %v812_v2 = vsel %vm784_vm1, %v10429_v0, 0.0  ;;  %v809_v3 = vsel %vm784_vm1, %v10434_v1, 0.0  ;;  %v10511_v38 = vld [vmem:[%s14979_s14 + $0x88] sm:$0xff]  ;;  %v10516_v39 = vld [vmem:[%s14979_s14 + $0x80] sm:$0xff] }
  0x38   : > { %v934_v62 = vsel %vm784_vm1, %v888_v58, 0.0  ;;  %v931_v63 = vsel %vm784_vm1, %v887_v59, 0.0  ;;  %v818_v6 = vsel %vm784_vm1, %v10443_v4, 0.0  ;;  %v815_v7 = vsel %vm784_vm1, %v10448_v5, 0.0  ;;  %8052 = vmatpush3.bf16.msra.mxu0 %v9061_v16  ;;  %v10551_v58 = vld [vmem:[%s14979_s14 + $0xa8] sm:$0xff]  ;;  %v10556_v59 = vld [vmem:[%s14979_s14 + $0xa0] sm:$0xff] }
  0x39   : > { %v890_v8 = vmul.f32 %v10429_v0, %v10429_v0  ;;  %v889_v9 = vmul.f32 %v10434_v1, %v10434_v1  ;;  %v892_v12 = vmul.f32 %v10443_v4, %v10443_v4  ;;  %v891_v13 = vmul.f32 %v10448_v5, %v10448_v5  ;;  %8053 = vmatprep.subr.bf16.mxu0 %v9062_v21  ;;  %s9954_s8 = smov 120   ;;  %s9957_s29 = smov 112  }
  0x3a   : > { %v824_v19 = vsel %vm784_vm1, %v10470_v17, 0.0  ;;  %v821_v20 = vsel %vm784_vm1, %v10475_v18, 0.0  ;;  %v830_v24 = vsel %vm784_vm1, %v10485_v22, 0.0  ;;  %v827_v25 = vsel %vm784_vm1, %v10490_v23, 0.0  ;;  %s9960_s23 = smov 104   ;;  %s9962_s24 = smov 8  }
  0x3b   : > { %917 = vadd.xlane.f32.xlu1 %v916_v42  ;;  %914 = vadd.xlane.f32.xlu0 %v913_v43  ;;  %v940_v10 = vsel %vm784_vm1, %v890_v8, 0.0  ;;  %v937_v11 = vsel %vm784_vm1, %v889_v9, 0.0  ;;  %v946_v14 = vsel %vm784_vm1, %v892_v12, 0.0  ;;  %v943_v15 = vsel %vm784_vm1, %v891_v13, 0.0  ;;  %v10525_v42 = vld [vmem:[%s14979_s14 + $0x98] sm:$0xff]  ;;  %v10530_v43 = vld [vmem:[%s14979_s14 + $0x90] sm:$0xff] }
  0x3c   : > { %v894_v26 = vmul.f32 %v10470_v17, %v10470_v17  ;;  %v893_v27 = vmul.f32 %v10475_v18, %v10475_v18  ;;  %8054 = vmatpush3.bf16.msra.mxu0 %v9062_v21  ;;  %v896_v30 = vmul.f32 %v10485_v22, %v10485_v22  ;;  %v895_v31 = vmul.f32 %v10490_v23, %v10490_v23  ;;  %v10610_v21 = vld [vmem:[%s14979_s14 + $0xd0] sm:$0xff] }
  0x3d   : > { %v836_v40 = vsel %vm784_vm1, %v10511_v38, 0.0  ;;  %v833_v41 = vsel %vm784_vm1, %v10516_v39, 0.0  ;;  %v842_v44 = vsel %vm784_vm1, %v10525_v42, 0.0  ;;  %v839_v45 = vsel %vm784_vm1, %v10530_v43, 0.0 }
  0x3e   : > { %v952_v28 = vsel %vm784_vm1, %v894_v26, 0.0  ;;  %v949_v29 = vsel %vm784_vm1, %v893_v27, 0.0  ;;  %v958_v35 = vsel %vm784_vm1, %v896_v30, 0.0  ;;  %v955_v36 = vsel %vm784_vm1, %v895_v31, 0.0 }
  0x3f   : > { %923 = vadd.xlane.f32.xlu1 %v922_v46  ;;  %920 = vadd.xlane.f32.xlu0 %v919_v47  ;;  %v898_v46 = vmul.f32 %v10511_v38, %v10511_v38  ;;  %v897_v47 = vmul.f32 %v10516_v39, %v10516_v39  ;;  %v900_v54 = vmul.f32 %v10525_v42, %v10525_v42  ;;  %vm5655_vm4 = vcmask 195584  }
  0x40   : > { %v899_v55 = vmul.f32 %v10530_v43, %v10530_v43  ;;  %v907_v31 = vmul.f32 %v10610_v21, %v10610_v21 }
  0x43   : > { %801 = vadd.xlane.f32.xlu1 %v800_v50  ;;  %798 = vadd.xlane.f32.xlu0 %v797_v51  ;;  %v964_v50 = vsel %vm784_vm1, %v898_v46, 0.0  ;;  %v961_v51 = vsel %vm784_vm1, %v897_v47, 0.0  ;;  %v10645_v46 = vld [vmem:[%s14979_s14 + $0xf8] sm:$0xff]  ;;  %v10650_v47 = vld [vmem:[%s14979_s14 + $0xf0] sm:$0xff] }
  0x47   : > { %807 = vadd.xlane.f32.xlu1 %v806_v56  ;;  %804 = vadd.xlane.f32.xlu0 %v803_v57  ;;  %v970_v56 = vsel %vm784_vm1, %v900_v54, 0.0  ;;  %v967_v57 = vsel %vm784_vm1, %v899_v55, 0.0 }
  0x4b   : > { %929 = vadd.xlane.f32.xlu1 %v928_v60  ;;  %926 = vadd.xlane.f32.xlu0 %v925_v61  ;;  %v848_v60 = vsel %vm784_vm1, %v10551_v58, 0.0  ;;  %v845_v61 = vsel %vm784_vm1, %v10556_v59, 0.0 }
  0x4f   : > { %935 = vadd.xlane.f32.xlu1 %v934_v62  ;;  %932 = vadd.xlane.f32.xlu0 %v931_v63  ;;  %v10565_v62 = vld [vmem:[%s14979_s14 + $0xb8] sm:$0xff]  ;;  %v10570_v63 = vld [vmem:[%s14979_s14 + $0xb0] sm:$0xff] }
  0x53   : > { %813 = vadd.xlane.f32.xlu1 %v812_v2  ;;  %810 = vadd.xlane.f32.xlu0 %v809_v3  ;;  %v854_v2 = vsel %vm784_vm1, %v10565_v62, 0.0  ;;  %v851_v3 = vsel %vm784_vm1, %v10570_v63, 0.0 }
  0x57   : > { %819 = vadd.xlane.f32.xlu1 %v818_v6  ;;  %816 = vadd.xlane.f32.xlu0 %v815_v7  ;;  %v902_v6 = vmul.f32 %v10551_v58, %v10551_v58  ;;  %v901_v7 = vmul.f32 %v10556_v59, %v10556_v59 }
  0x59   : > { %v976_v8 = vsel %vm784_vm1, %v902_v6, 0.0  ;;  %v973_v9 = vsel %vm784_vm1, %v901_v7, 0.0 }
  0x5b   : > { %941 = vadd.xlane.f32.xlu1 %v940_v10  ;;  %938 = vadd.xlane.f32.xlu0 %v937_v11  ;;  %v904_v10 = vmul.f32 %v10565_v62, %v10565_v62  ;;  %v903_v11 = vmul.f32 %v10570_v63, %v10570_v63 }
  0x5d   : > { %v982_v12 = vsel %vm784_vm1, %v904_v10, 0.0  ;;  %v979_v13 = vsel %vm784_vm1, %v903_v11, 0.0 }
  0x5f   : > { %947 = vadd.xlane.f32.xlu1 %v946_v14  ;;  %944 = vadd.xlane.f32.xlu0 %v943_v15  ;;  %v10591_v14 = vld [vmem:[%s14979_s14 + $0xc8] sm:$0xff]  ;;  %v10596_v15 = vld [vmem:[%s14979_s14 + $0xc0] sm:$0xff] }
  0x60   : > { %v860_v16 = vsel %vm784_vm1, %v10591_v14, 0.0  ;;  %v906_v26 = vmul.f32 %v10591_v14, %v10591_v14  ;;  %v905_v27 = vmul.f32 %v10596_v15, %v10596_v15 }
  0x63   : > { %825 = vadd.xlane.f32.xlu1 %v824_v19  ;;  %822 = vadd.xlane.f32.xlu0 %v821_v20  ;;  %v857_v19 = vsel %vm784_vm1, %v10596_v15, 0.0  ;;  %v10605_v20 = vld [vmem:[%s14979_s14 + $0xd8] sm:$0xff] }
  0x64   : > { %v908_v30 = vmul.f32 %v10605_v20, %v10605_v20 }
  0x67   : > { %831 = vadd.xlane.f32.xlu1 %v830_v24  ;;  %828 = vadd.xlane.f32.xlu0 %v827_v25  ;;  %v866_v24 = vsel %vm784_vm1, %v10605_v20, 0.0  ;;  %v863_v25 = vsel %vm784_vm1, %v10610_v21, 0.0 }
  0x6b   : > { %953 = vadd.xlane.f32.xlu1 %v952_v28  ;;  %950 = vadd.xlane.f32.xlu0 %v949_v29  ;;  %v988_v28 = vsel %vm784_vm1, %v906_v26, 0.0  ;;  %v985_v29 = vsel %vm784_vm1, %v905_v27, 0.0 }
  0x6f   : > { %959 = vadd.xlane.f32.xlu1 %v958_v35  ;;  %956 = vadd.xlane.f32.xlu0 %v955_v36  ;;  %v994_v35 = vsel %vm784_vm1, %v908_v30, 0.0  ;;  %v991_v36 = vsel %vm784_vm1, %v907_v31, 0.0 }
  0x73   : > { %837 = vadd.xlane.f32.xlu1 %v836_v40  ;;  %834 = vadd.xlane.f32.xlu0 %v833_v41  ;;  %v10631_v40 = vld [vmem:[%s14979_s14 + $0xe8] sm:$0xff]  ;;  %v10636_v41 = vld [vmem:[%s14979_s14 + $0xe0] sm:$0xff] }
  0x74   : > { %v910_v54 = vmul.f32 %v10631_v40, %v10631_v40  ;;  %v909_v55 = vmul.f32 %v10636_v41, %v10636_v41 }
  0x77   : > { %843 = vadd.xlane.f32.xlu1 %v842_v44  ;;  %840 = vadd.xlane.f32.xlu0 %v839_v45  ;;  %v872_v44 = vsel %vm784_vm1, %v10631_v40, 0.0  ;;  %v869_v45 = vsel %vm784_vm1, %v10636_v41, 0.0 }
  0x7b   : > { %965 = vadd.xlane.f32.xlu1 %v964_v50  ;;  %962 = vadd.xlane.f32.xlu0 %v961_v51  ;;  %v878_v50 = vsel %vm784_vm1, %v10645_v46, 0.0  ;;  %v875_v51 = vsel %vm784_vm1, %v10650_v47, 0.0 }
  0x7f   : > { %971 = vadd.xlane.f32.xlu1 %v970_v56  ;;  %968 = vadd.xlane.f32.xlu0 %v967_v57  ;;  %v1000_v56 = vsel %vm784_vm1, %v910_v54, 0.0  ;;  %v997_v57 = vsel %vm784_vm1, %v909_v55, 0.0 }
  0x83   : > { %849 = vadd.xlane.f32.xlu1 %v848_v60  ;;  %846 = vadd.xlane.f32.xlu0 %v845_v61  ;;  %v912_v60 = vmul.f32 %v10645_v46, %v10645_v46  ;;  %v911_v61 = vmul.f32 %v10650_v47, %v10650_v47 }
  0x87   : > { %855 = vadd.xlane.f32.xlu1 %v854_v2  ;;  %852 = vadd.xlane.f32.xlu0 %v851_v3  ;;  %v1006_v2 = vsel %vm784_vm1, %v912_v60, 0.0  ;;  %v1003_v3 = vsel %vm784_vm1, %v911_v61, 0.0 }
  0x8b   : > { %977 = vadd.xlane.f32.xlu1 %v976_v8  ;;  %974 = vadd.xlane.f32.xlu0 %v973_v9 }
  0x8f   : > { %983 = vadd.xlane.f32.xlu1 %v982_v12  ;;  %980 = vadd.xlane.f32.xlu0 %v979_v13 }
  0x93   : > { %861 = vadd.xlane.f32.xlu1 %v860_v16  ;;  %858 = vadd.xlane.f32.xlu0 %v857_v19 }
  0x97   : > { %867 = vadd.xlane.f32.xlu1 %v866_v24  ;;  %864 = vadd.xlane.f32.xlu0 %v863_v25 }
  0x9b   : > { %989 = vadd.xlane.f32.xlu1 %v988_v28  ;;  %986 = vadd.xlane.f32.xlu0 %v985_v29 }
  0x9f   : > { %995 = vadd.xlane.f32.xlu1 %v994_v35  ;;  %992 = vadd.xlane.f32.xlu0 %v991_v36 }
  0xa3   : > { %873 = vadd.xlane.f32.xlu1 %v872_v44  ;;  %870 = vadd.xlane.f32.xlu0 %v869_v45 }
  0xa7   : > { %879 = vadd.xlane.f32.xlu1 %v878_v50  ;;  %876 = vadd.xlane.f32.xlu0 %v875_v51 }
  0xab   : > { %1001 = vadd.xlane.f32.xlu1 %v1000_v56  ;;  %998 = vadd.xlane.f32.xlu0 %v997_v57 }
  0xaf   : > { %1007 = vadd.xlane.f32.xlu1 %v1006_v2  ;;  %1004 = vadd.xlane.f32.xlu0 %v1003_v3 }
  0xbc   : > { %v793_v6 = vpop.xlane.xlu1 %792  ;;  %v787_v7 = vpop.xlane.xlu0 %786 }
  0xbd   : > { %v1009_v10 = vmul.f32 0.03125, %v787_v7  ;;  %v10668_v12 = vmul.f32 0.03125, %v793_v6 }
  0xbf   : > { %v1073_v24 = vmul.f32 %v1009_v10, %v1009_v10  ;;  %v1075_v30 = vmul.f32 %v10668_v12, %v10668_v12 }
  0xc0   : > { %v796_v8 = vpop.xlane.xlu1 %795  ;;  %v790_v9 = vpop.xlane.xlu0 %789 }
  0xc1   : > { %v1010_v11 = vmul.f32 0.03125, %v790_v9  ;;  %v10670_v13 = vmul.f32 0.03125, %v796_v8 }
  0xc3   : > { %v1074_v25 = vmul.f32 %v1010_v11, %v1010_v11  ;;  %v1076_v31 = vmul.f32 %v10670_v13, %v10670_v13 }
  0xc4   : > { %v918_v16 = vpop.xlane.xlu1 %917  ;;  %v915_v19 = vpop.xlane.xlu0 %914 }
  0xc5   : > { %v1042_v26 = vmul.f32 0.03125, %v918_v16  ;;  %v1041_v27 = vmul.f32 0.03125, %v915_v19 }
  0xc7   : > { %v1106_v28 = vsub.f32 %v1042_v26, %v1074_v25  ;;  %v1105_v29 = vsub.f32 %v1041_v27, %v1073_v24 }
  0xc8   : > { %v924_v35 = vpop.xlane.xlu1 %923  ;;  %v921_v36 = vpop.xlane.xlu0 %920 }
  0xc9   : > { %v1170_v44 = vadd.f32 1e-05, %v1106_v28  ;;  %v1169_v45 = vadd.f32 1e-05, %v1105_v29  ;;  %v1044_v50 = vmul.f32 0.03125, %v924_v35  ;;  %v1043_v51 = vmul.f32 0.03125, %v921_v36 }
  0xca   : > { %v1138_v35 = vsub.f32 %v10368_v37, %v1010_v11 }
  0xcb   : > { %9075 = vrsqrt.f32 %v1170_v44  ;;  %v1108_v54 = vsub.f32 %v1044_v50, %v1076_v31  ;;  %v1107_v55 = vsub.f32 %v1043_v51, %v1075_v30  ;;  %v1137_v31 = vsub.f32 %v10354_v33, %v1009_v10  ;;  %v10699_v51 = vld [vmem:[%s15139_s27] ss:$0 sm:$0xff]  ;;  %s15172_s27 = sld [smem:[#allocation95_spill]] }
  0xcc   : > { %9077 = vrsqrt.f32 %v1169_v45  ;;  %v802_v56 = vpop.xlane.xlu1 %801  ;;  %v799_v57 = vpop.xlane.xlu0 %798 }
  0xcd   : > { %v1172_v60 = vadd.f32 1e-05, %v1108_v54  ;;  %v1171_v61 = vadd.f32 1e-05, %v1107_v55  ;;  %v10676_v6 = vmul.f32 0.03125, %v802_v56  ;;  %v10678_v7 = vmul.f32 0.03125, %v799_v57 }
  0xce   : > { %v1139_v57 = vsub.f32 %v10349_v32, %v10668_v12 }
  0xcf   : > { %9079 = vrsqrt.f32 %v1172_v60  ;;  %v1078_v24 = vmul.f32 %v10676_v6, %v10676_v6  ;;  %v1077_v25 = vmul.f32 %v10678_v7, %v10678_v7 }
  0xd0   : > { %9081 = vrsqrt.f32 %v1171_v61  ;;  %v808_v2 = vpop.xlane.xlu1 %807  ;;  %v805_v3 = vpop.xlane.xlu0 %804 }
  0xd1   : > { %v10680_v8 = vmul.f32 0.03125, %v808_v2  ;;  %v10682_v9 = vmul.f32 0.03125, %v805_v3  ;;  %v10708_v2 = vld [vmem:[%s15140_s9] ss:$0 sm:$0xff]  ;;  %s9964_s9 = smov 24  }
  0xd3   : > { %v1080_v36 = vmul.f32 %v10680_v8, %v10680_v8  ;;  %v1079_v44 = vmul.f32 %v10682_v9, %v10682_v9 }
  0xd4   : > { %v930_v16 = vpop.xlane.xlu1 %929  ;;  %v927_v19 = vpop.xlane.xlu0 %926 }
  0xd5   : > { %v1046_v26 = vmul.f32 0.03125, %v930_v16  ;;  %v1045_v27 = vmul.f32 0.03125, %v927_v19  ;;  %v1140_v16 = vsub.f32 %v10359_v34, %v10670_v13 }
  0xd7   : > { %v1110_v28 = vsub.f32 %v1046_v26, %v1078_v24  ;;  %v1109_v29 = vsub.f32 %v1045_v27, %v1077_v25 }
  0xd8   : > { %v9076_v30 = vpop.eup %9075  ;;  %v936_v45 = vpop.xlane.xlu1 %935 }
  0xd9   : > { %v933_v50 = vpop.xlane.xlu0 %932  ;;  %v9078_v54 = vpop.eup %9077  ;;  %v1174_v55 = vadd.f32 1e-05, %v1110_v28  ;;  %v1173_v33 = vadd.f32 1e-05, %v1109_v29  ;;  %v1048_v10 = vmul.f32 0.03125, %v936_v45  ;;  %v1234_v56 = vmul.f32 %v9076_v30, %v1138_v35 }
  0xda   : > { %v1047_v37 = vmul.f32 0.03125, %v933_v50  ;;  %v1233_v11 = vmul.f32 %v9078_v54, %v1137_v31 }
  0xdb   : > { %9083 = vrsqrt.f32 %v1174_v55  ;;  %v1112_v60 = vsub.f32 %v1048_v10, %v1080_v36  ;;  %v1272_v32 = vmul.f32 %v10699_v51, %v1234_v56 }
  0xdc   : > { %v1111_v61 = vsub.f32 %v1047_v37, %v1079_v44  ;;  %v9080_v3 = vpop.eup %9079  ;;  %9085 = vrsqrt.f32 %v1173_v33  ;;  %v814_v19 = vpop.xlane.xlu1 %813  ;;  %v1271_v25 = vmul.f32 %v10699_v51, %v1233_v11 }
  0xdd   : > { %v811_v24 = vpop.xlane.xlu0 %810  ;;  %v9082_v12 = vpop.eup %9081  ;;  %v1176_v26 = vadd.f32 1e-05, %v1112_v60  ;;  %v1310_v29 = vadd.f32 %v10708_v2, %v1272_v32  ;;  %v1236_v31 = vmul.f32 %v9080_v3, %v1140_v16  ;;  %v10717_v44 = vmul.f32 0.03125, %v814_v19 }
  0xde   : > { %v1175_v27 = vadd.f32 1e-05, %v1111_v61  ;;  %v1309_v28 = vadd.f32 %v10708_v2, %v1271_v25  ;;  %v1235_v30 = vmul.f32 %v9082_v12, %v1139_v57  ;;  %v10719_v45 = vmul.f32 0.03125, %v811_v24 }
  0xdf   : > { %9087 = vrsqrt.f32 %v1176_v26  ;;  %v1274_v50 = vmul.f32 %v10699_v51, %v1236_v31  ;;  %v1082_v56 = vmul.f32 %v10717_v44, %v10717_v44  ;;  %v1142_v25 = vsub.f32 %v10389_v48, %v10676_v6 }
  0xe0   : > { %9089 = vrsqrt.f32 %v1175_v27  ;;  %v820_v35 = vpop.xlane.xlu1 %819  ;;  %v1341_v13 = vpack.c.bf16 %v1310_v29, %v1309_v28  ;;  %v1273_v36 = vmul.f32 %v10699_v51, %v1235_v30  ;;  %v1081_v57 = vmul.f32 %v10719_v45, %v10719_v45 }
  0xe1   : > { %v817_v34 = vpop.xlane.xlu0 %816  ;;  %v10724_v55 = vmul.f32 0.03125, %v820_v35  ;;  %v1312_v11 = vadd.f32 %v10708_v2, %v1274_v50  ;;  %v1141_v32 = vsub.f32 %v10394_v49, %v10678_v7  ;;  %v1144_v49 = vsub.f32 %v10403_v52, %v10680_v8 }
  0xe2   : > { %8055 = vmatprep.mubr.msk.bf16.mxu0 %vm784_vm1, %v1341_v13  ;;  %v1311_v54 = vadd.f32 %v10708_v2, %v1273_v36  ;;  %v10726_v33 = vmul.f32 0.03125, %v817_v34  ;;  %v1143_v50 = vsub.f32 %v10408_v53, %v10682_v9 }
  0xe3   : > { %v1084_v12 = vmul.f32 %v10724_v55, %v10724_v55 }
  0xe4   : > { %v942_v10 = vpop.xlane.xlu1 %941  ;;  %v1342_v3 = vpack.c.bf16 %v1312_v11, %v1311_v54  ;;  %v1083_v26 = vmul.f32 %v10726_v33, %v10726_v33 }
  0xe5   : > { %v939_v37 = vpop.xlane.xlu0 %938  ;;  %v1050_v60 = vmul.f32 0.03125, %v942_v10 }
  0xe6   : > { %v1049_v61 = vmul.f32 0.03125, %v939_v37  ;;  %8056 = vmatmul.mubr.msk.bf16.vlgmr.msra.gmra.mxu0 %vm784_vm1, %v1342_v3 }
  0xe7   : > { %v1114_v16 = vsub.f32 %v1050_v60, %v1082_v56 }
  0xe8   : > { %v1113_v19 = vsub.f32 %v1049_v61, %v1081_v57  ;;  %v9084_v24 = vpop.eup %9083  ;;  %v948_v27 = vpop.xlane.xlu1 %947 }
  0xe9   : > { %v945_v28 = vpop.xlane.xlu0 %944  ;;  %v9086_v29 = vpop.eup %9085  ;;  %v1178_v30 = vadd.f32 1e-05, %v1114_v16  ;;  %v1052_v35 = vmul.f32 0.03125, %v948_v27  ;;  %v1238_v48 = vmul.f32 %v9084_v24, %v1142_v25 }
  0xea   : > { %v1177_v31 = vadd.f32 1e-05, %v1113_v19  ;;  %v1051_v34 = vmul.f32 0.03125, %v945_v28  ;;  %v1237_v13 = vmul.f32 %v9086_v29, %v1141_v32 }
  0xeb   : > { %9091 = vrsqrt.f32 %v1178_v30  ;;  %v1116_v6 = vsub.f32 %v1052_v35, %v1084_v12  ;;  %v1276_v11 = vmul.f32 %v10699_v51, %v1238_v48 }
  0xec   : > { %v1115_v7 = vsub.f32 %v1051_v34, %v1083_v26  ;;  %v9088_v36 = vpop.eup %9087  ;;  %9093 = vrsqrt.f32 %v1177_v31  ;;  %v826_v54 = vpop.xlane.xlu1 %825  ;;  %v1275_v37 = vmul.f32 %v10699_v51, %v1237_v13 }
  0xed   : > { %v823_v10 = vpop.xlane.xlu0 %822  ;;  %v9090_v56 = vpop.eup %9089  ;;  %v1180_v57 = vadd.f32 1e-05, %v1116_v6  ;;  %v1314_v52 = vadd.f32 %v10708_v2, %v1276_v11  ;;  %v1240_v3 = vmul.f32 %v9088_v36, %v1144_v49  ;;  %v10751_v24 = vmul.f32 0.03125, %v826_v54 }
  0xee   : > { %v1179_v60 = vadd.f32 1e-05, %v1115_v7  ;;  %v1313_v61 = vadd.f32 %v10708_v2, %v1275_v37  ;;  %v1239_v8 = vmul.f32 %v9090_v56, %v1143_v50  ;;  %v10753_v25 = vmul.f32 0.03125, %v823_v10 }
  0xef   : > { %9095 = vrsqrt.f32 %v1180_v57  ;;  %v1278_v32 = vmul.f32 %v10699_v51, %v1240_v3  ;;  %v1086_v31 = vmul.f32 %v10751_v24, %v10751_v24  ;;  %v1146_v36 = vsub.f32 %v10429_v0, %v10717_v44 }
  0xf0   : > { %9097 = vrsqrt.f32 %v1179_v60  ;;  %v832_v16 = vpop.xlane.xlu1 %831  ;;  %v1343_v9 = vpack.c.bf16 %v1314_v52, %v1313_v61  ;;  %v1277_v19 = vmul.f32 %v10699_v51, %v1239_v8  ;;  %v1085_v35 = vmul.f32 %v10753_v25, %v10753_v25 }
  0xf1   : > { %v829_v53 = vpop.xlane.xlu0 %828  ;;  %v10758_v26 = vmul.f32 0.03125, %v832_v16  ;;  %v1316_v30 = vadd.f32 %v10708_v2, %v1278_v32  ;;  %v1145_v50 = vsub.f32 %v10434_v1, %v10719_v45  ;;  %v1148_v1 = vsub.f32 %v10443_v4, %v10724_v55 }
  0xf2   : > { %8059 = vmatprep.mubr.msk.bf16.mxu0 %vm784_vm1, %v1343_v9  ;;  %v1315_v12 = vadd.f32 %v10708_v2, %v1277_v19  ;;  %v10760_v27 = vmul.f32 0.03125, %v829_v53  ;;  %v1147_v16 = vsub.f32 %v10448_v5, %v10726_v33 }
  0xf3   : > { %v1088_v54 = vmul.f32 %v10758_v26, %v10758_v26 }
  0xf4   : > { %v954_v28 = vpop.xlane.xlu1 %953  ;;  %v1344_v48 = vpack.c.bf16 %v1316_v30, %v1315_v12  ;;  %v1087_v10 = vmul.f32 %v10760_v27, %v10760_v27 }
  0xf5   : > { %v951_v29 = vpop.xlane.xlu0 %950  ;;  %v1054_v34 = vmul.f32 0.03125, %v954_v28 }
  0xf6   : > { %v1053_v13 = vmul.f32 0.03125, %v951_v29  ;;  %8060 = vmatmul.mubr.msk.bf16.gmra.mxu0 %vm784_vm1, %v1344_v48 }
  0xf7   : > { %v1118_v49 = vsub.f32 %v1054_v34, %v1086_v31 }
  0xf8   : > { %v1117_v6 = vsub.f32 %v1053_v13, %v1085_v35  ;;  %v9092_v7 = vpop.eup %9091  ;;  %v960_v37 = vpop.xlane.xlu1 %959 }
  0xf9   : > { %v957_v11 = vpop.xlane.xlu0 %956  ;;  %v9094_v56 = vpop.eup %9093  ;;  %v1182_v57 = vadd.f32 1e-05, %v1118_v49  ;;  %v1056_v61 = vmul.f32 0.03125, %v960_v37  ;;  %v1242_v0 = vmul.f32 %v9092_v7, %v1146_v36 }
  0xfa   : > { %v1181_v60 = vadd.f32 1e-05, %v1117_v6  ;;  %v1055_v52 = vmul.f32 0.03125, %v957_v11  ;;  %v1241_v8 = vmul.f32 %v9094_v56, %v1145_v50 }
  0xfb   : > { %9099 = vrsqrt.f32 %v1182_v57  ;;  %v1120_v44 = vsub.f32 %v1056_v61, %v1088_v54  ;;  %v1280_v32 = vmul.f32 %v10699_v51, %v1242_v0  ;;  %v1150_v0 = vsub.f32 %v10470_v17, %v10751_v24 }
  0xfc   : > { %v1119_v45 = vsub.f32 %v1055_v52, %v1087_v10  ;;  %v9096_v3 = vpop.eup %9095  ;;  %9101 = vrsqrt.f32 %v1181_v60  ;;  %v838_v53 = vpop.xlane.xlu1 %837  ;;  %v1279_v19 = vmul.f32 %v10699_v51, %v1241_v8 }
  0xfd   : > { %v835_v9 = vpop.xlane.xlu0 %834  ;;  %v9098_v12 = vpop.eup %9097  ;;  %v1184_v28 = vadd.f32 1e-05, %v1120_v44  ;;  %v1318_v4 = vadd.f32 %v10708_v2, %v1280_v32  ;;  %v1244_v31 = vmul.f32 %v9096_v3, %v1148_v1  ;;  %v10785_v13 = vmul.f32 0.03125, %v838_v53 }
  0xfe   : > { %v1183_v29 = vadd.f32 1e-05, %v1119_v45  ;;  %v1317_v30 = vadd.f32 %v10708_v2, %v1279_v19  ;;  %v1243_v55 = vmul.f32 %v9098_v12, %v1147_v16  ;;  %v10787_v48 = vmul.f32 0.03125, %v835_v9 }
  0xff   : > { %9103 = vrsqrt.f32 %v1184_v28  ;;  %v1282_v49 = vmul.f32 %v10699_v51, %v1244_v31  ;;  %v1090_v37 = vmul.f32 %v10785_v13, %v10785_v13  ;;  %v1149_v1 = vsub.f32 %v10475_v18, %v10753_v25 }
 0x100   : > { %9105 = vrsqrt.f32 %v1183_v29  ;;  %v844_v35 = vpop.xlane.xlu1 %843  ;;  %v1345_v33 = vpack.c.bf16 %v1318_v4, %v1317_v30  ;;  %v1281_v34 = vmul.f32 %v10699_v51, %v1243_v55  ;;  %v1089_v11 = vmul.f32 %v10787_v48, %v10787_v48 }
 0x101   : > { %v841_v5 = vpop.xlane.xlu0 %840  ;;  %v10792_v7 = vmul.f32 0.03125, %v844_v35  ;;  %v1320_v10 = vadd.f32 %v10708_v2, %v1282_v49  ;;  %v1152_v18 = vsub.f32 %v10485_v22, %v10758_v26  ;;  %v1151_v30 = vsub.f32 %v10490_v23, %v10760_v27 }
 0x102   : > { %8063 = vmatprep.mubr.msk.bf16.mxu0 %vm784_vm1, %v1345_v33  ;;  %v1319_v6 = vadd.f32 %v10708_v2, %v1281_v34  ;;  %v10794_v36 = vmul.f32 0.03125, %v841_v5 }
 0x103   : > { %v1092_v44 = vmul.f32 %v10792_v7, %v10792_v7 }
 0x104   : > { %v966_v50 = vpop.xlane.xlu1 %965  ;;  %v1346_v60 = vpack.c.bf16 %v1320_v10, %v1319_v6  ;;  %v1091_v45 = vmul.f32 %v10794_v36, %v10794_v36 }
 0x105   : > { %v963_v54 = vpop.xlane.xlu0 %962  ;;  %v1058_v56 = vmul.f32 0.03125, %v966_v50 }
 0x106   : > { %v1057_v57 = vmul.f32 0.03125, %v963_v54  ;;  %8064 = vmatmul.mubr.msk.bf16.gmra.mxu0 %vm784_vm1, %v1346_v60 }
 0x107   : > { %v1122_v61 = vsub.f32 %v1058_v56, %v1090_v37 }
 0x108   : > { %v1121_v52 = vsub.f32 %v1057_v57, %v1089_v11  ;;  %v9100_v8 = vpop.eup %9099  ;;  %v972_v3 = vpop.xlane.xlu1 %971 }
 0x109   : > { %v969_v16 = vpop.xlane.xlu0 %968  ;;  %v9102_v53 = vpop.eup %9101  ;;  %v1186_v9 = vadd.f32 1e-05, %v1122_v61  ;;  %v1060_v32 = vmul.f32 0.03125, %v972_v3  ;;  %v1246_v17 = vmul.f32 %v9100_v8, %v1150_v0 }
 0x10a   : > { %v1185_v19 = vadd.f32 1e-05, %v1121_v52  ;;  %v1059_v12 = vmul.f32 0.03125, %v969_v16  ;;  %v1245_v28 = vmul.f32 %v9102_v53, %v1149_v1 }
 0x10b   : > { %9107 = vrsqrt.f32 %v1186_v9  ;;  %v1124_v24 = vsub.f32 %v1060_v32, %v1092_v44  ;;  %v1284_v35 = vmul.f32 %v10699_v51, %v1246_v17  ;;  %v1153_v32 = vsub.f32 %v10516_v39, %v10787_v48 }
 0x10c   : > { %v1123_v25 = vsub.f32 %v1059_v12, %v1091_v45  ;;  %v9104_v29 = vpop.eup %9103  ;;  %9109 = vrsqrt.f32 %v1185_v19  ;;  %v850_v4 = vpop.xlane.xlu1 %849  ;;  %v1283_v31 = vmul.f32 %v10699_v51, %v1245_v28  ;;  %v1154_v19 = vsub.f32 %v10511_v38, %v10785_v13 }
 0x10d   : > { %v847_v55 = vpop.xlane.xlu0 %846  ;;  %v9106_v5 = vpop.eup %9105  ;;  %v1188_v33 = vadd.f32 1e-05, %v1124_v24  ;;  %v1322_v22 = vadd.f32 %v10708_v2, %v1284_v35  ;;  %v1248_v6 = vmul.f32 %v9104_v29, %v1152_v18  ;;  %v10819_v10 = vmul.f32 0.03125, %v850_v4 }
 0x10e   : > { %v1187_v34 = vadd.f32 1e-05, %v1123_v25  ;;  %v1321_v49 = vadd.f32 %v10708_v2, %v1283_v31  ;;  %v1247_v26 = vmul.f32 %v9106_v5, %v1151_v30  ;;  %v10821_v37 = vmul.f32 0.03125, %v847_v55 }
 0x10f   : > { %9111 = vrsqrt.f32 %v1188_v33  ;;  %v1286_v11 = vmul.f32 %v10699_v51, %v1248_v6  ;;  %v1094_v0 = vmul.f32 %v10819_v10, %v10819_v10  ;;  %v1156_v39 = vsub.f32 %v10525_v42, %v10792_v7 }
 0x110   : > { %9113 = vrsqrt.f32 %v1187_v34  ;;  %v856_v50 = vpop.xlane.xlu1 %855  ;;  %v1347_v27 = vpack.c.bf16 %v1322_v22, %v1321_v49  ;;  %v1285_v54 = vmul.f32 %v10699_v51, %v1247_v26  ;;  %v1093_v1 = vmul.f32 %v10821_v37, %v10821_v37 }
 0x111   : > { %v853_v23 = vpop.xlane.xlu0 %852  ;;  %v10826_v57 = vmul.f32 0.03125, %v856_v50  ;;  %v1324_v8 = vadd.f32 %v10708_v2, %v1286_v11  ;;  %v1155_v35 = vsub.f32 %v10530_v43, %v10794_v36 }
 0x112   : > { %8067 = vmatprep.mubr.msk.bf16.mxu0 %vm784_vm1, %v1347_v27  ;;  %v1323_v56 = vadd.f32 %v10708_v2, %v1285_v54  ;;  %v10828_v60 = vmul.f32 0.03125, %v853_v23 }
 0x113   : > { %v1096_v12 = vmul.f32 %v10826_v57, %v10826_v57 }
 0x114   : > { %v978_v61 = vpop.xlane.xlu1 %977  ;;  %v1348_v3 = vpack.c.bf16 %v1324_v8, %v1323_v56  ;;  %v1095_v28 = vmul.f32 %v10828_v60, %v10828_v60 }
 0x115   : > { %v975_v52 = vpop.xlane.xlu0 %974  ;;  %v1062_v44 = vmul.f32 0.03125, %v978_v61 }
 0x116   : > { %v1061_v45 = vmul.f32 0.03125, %v975_v52  ;;  %8068 = vmatmul.mubr.msk.bf16.gmra.mxu0 %vm784_vm1, %v1348_v3 }
 0x117   : > { %v1126_v16 = vsub.f32 %v1062_v44, %v1094_v0 }
 0x118   : > { %v1125_v53 = vsub.f32 %v1061_v45, %v1093_v1  ;;  %v9108_v9 = vpop.eup %9107  ;;  %v984_v17 = vpop.xlane.xlu1 %983 }
 0x119   : > { %v981_v18 = vpop.xlane.xlu0 %980  ;;  %v9110_v24 = vpop.eup %9109  ;;  %v1190_v25 = vadd.f32 1e-05, %v1126_v16  ;;  %v1064_v30 = vmul.f32 0.03125, %v984_v17  ;;  %v1250_v38 = vmul.f32 %v9108_v9, %v1154_v19  ;;  %v1158_v17 = vsub.f32 %v10551_v58, %v10819_v10 }
 0x11a   : > { %v1189_v29 = vadd.f32 1e-05, %v1125_v53  ;;  %v1063_v4 = vmul.f32 0.03125, %v981_v18  ;;  %v1249_v55 = vmul.f32 %v9110_v24, %v1153_v32  ;;  %v1157_v18 = vsub.f32 %v10556_v59, %v10821_v37 }
 0x11b   : > { %9115 = vrsqrt.f32 %v1190_v25  ;;  %v1128_v13 = vsub.f32 %v1064_v30, %v1096_v12  ;;  %v1288_v49 = vmul.f32 %v10699_v51, %v1250_v38  ;;  %v1160_v59 = vsub.f32 %v10565_v62, %v10826_v57 }
 0x11c   : > { %v1127_v48 = vsub.f32 %v1063_v4, %v1095_v28  ;;  %v9112_v31 = vpop.eup %9111  ;;  %9117 = vrsqrt.f32 %v1189_v29  ;;  %v862_v5 = vpop.xlane.xlu1 %861  ;;  %v1287_v34 = vmul.f32 %v10699_v51, %v1249_v55 }
 0x11d   : > { %v859_v33 = vpop.xlane.xlu0 %858  ;;  %v9114_v22 = vpop.eup %9113  ;;  %v1192_v26 = vadd.f32 1e-05, %v1128_v13  ;;  %v1326_v42 = vadd.f32 %v10708_v2, %v1288_v49  ;;  %v1252_v23 = vmul.f32 %v9112_v31, %v1156_v39  ;;  %v10853_v11 = vmul.f32 0.03125, %v862_v5 }
 0x11e   : > { %v1191_v6 = vadd.f32 1e-05, %v1127_v48  ;;  %v1325_v50 = vadd.f32 %v10708_v2, %v1287_v34  ;;  %v1251_v7 = vmul.f32 %v9114_v22, %v1155_v35  ;;  %v10855_v56 = vmul.f32 0.03125, %v859_v33 }
 0x11f   : > { %9119 = vrsqrt.f32 %v1192_v26  ;;  %v1290_v61 = vmul.f32 %v10699_v51, %v1252_v23  ;;  %v1098_v3 = vmul.f32 %v10853_v11, %v10853_v11  ;;  %v1159_v35 = vsub.f32 %v10570_v63, %v10828_v60 }
 0x120   : > { %9121 = vrsqrt.f32 %v1191_v6  ;;  %v868_v27 = vpop.xlane.xlu1 %867  ;;  %v1349_v36 = vpack.c.bf16 %v1326_v42, %v1325_v50  ;;  %v1289_v54 = vmul.f32 %v10699_v51, %v1251_v7  ;;  %v1097_v16 = vmul.f32 %v10855_v56, %v10855_v56 }
 0x121   : > { %v865_v43 = vpop.xlane.xlu0 %864  ;;  %v10860_v8 = vmul.f32 0.03125, %v868_v27  ;;  %v1328_v45 = vadd.f32 %v10708_v2, %v1290_v61 }
 0x122   : > { %8071 = vmatprep.mubr.msk.bf16.mxu0 %vm784_vm1, %v1349_v36  ;;  %v1327_v52 = vadd.f32 %v10708_v2, %v1289_v54  ;;  %v10862_v0 = vmul.f32 0.03125, %v865_v43 }
 0x123   : > { %v1100_v24 = vmul.f32 %v10860_v8, %v10860_v8 }
 0x124   : > { %v990_v1 = vpop.xlane.xlu1 %989  ;;  %v1350_v19 = vpack.c.bf16 %v1328_v45, %v1327_v52  ;;  %v1099_v25 = vmul.f32 %v10862_v0, %v10862_v0 }
 0x125   : > { %v987_v44 = vpop.xlane.xlu0 %986  ;;  %v1066_v53 = vmul.f32 0.03125, %v990_v1 }
 0x126   : > { %v1065_v9 = vmul.f32 0.03125, %v987_v44  ;;  %8072 = vmatmul.mubr.msk.bf16.gmra.mxu0 %vm784_vm1, %v1350_v19 }
 0x127   : > { %v1130_v32 = vsub.f32 %v1066_v53, %v1098_v3 }
 0x128   : > { %v1129_v12 = vsub.f32 %v1065_v9, %v1097_v16  ;;  %v9116_v28 = vpop.eup %9115  ;;  %v996_v29 = vpop.xlane.xlu1 %995 }
 0x129   : > { %v993_v30 = vpop.xlane.xlu0 %992  ;;  %v9118_v4 = vpop.eup %9117  ;;  %v1194_v55 = vadd.f32 1e-05, %v1130_v32  ;;  %v1068_v39 = vmul.f32 0.03125, %v996_v29  ;;  %v1254_v58 = vmul.f32 %v9116_v28, %v1158_v17  ;;  %v1162_v17 = vsub.f32 %v10591_v14, %v10853_v11 }
 0x12a   : > { %v1193_v38 = vadd.f32 1e-05, %v1129_v12  ;;  %v1067_v13 = vmul.f32 0.03125, %v993_v30  ;;  %v1253_v48 = vmul.f32 %v9118_v4, %v1157_v18  ;;  %v1161_v18 = vsub.f32 %v10596_v15, %v10855_v56 }
 0x12b   : > { %9123 = vrsqrt.f32 %v1194_v55  ;;  %v1132_v10 = vsub.f32 %v1068_v39, %v1100_v24  ;;  %v1292_v49 = vmul.f32 %v10699_v51, %v1254_v58  ;;  %v1164_v15 = vsub.f32 %v10605_v20, %v10860_v8 }
 0x12c   : > { %v1131_v37 = vsub.f32 %v1067_v13, %v1099_v25  ;;  %v9120_v31 = vpop.eup %9119  ;;  %9125 = vrsqrt.f32 %v1193_v38  ;;  %v874_v5 = vpop.xlane.xlu1 %873  ;;  %v1291_v34 = vmul.f32 %v10699_v51, %v1253_v48 }
 0x12d   : > { %v871_v33 = vpop.xlane.xlu0 %870  ;;  %v9122_v22 = vpop.eup %9121  ;;  %v1196_v26 = vadd.f32 1e-05, %v1132_v10  ;;  %v1330_v62 = vadd.f32 %v10708_v2, %v1292_v49  ;;  %v1256_v42 = vmul.f32 %v9120_v31, %v1160_v59  ;;  %v10887_v27 = vmul.f32 0.03125, %v874_v5 }
 0x12e   : > { %v1195_v6 = vadd.f32 1e-05, %v1131_v37  ;;  %v1329_v50 = vadd.f32 %v10708_v2, %v1291_v34  ;;  %v1255_v57 = vmul.f32 %v9122_v22, %v1159_v35  ;;  %v10889_v43 = vmul.f32 0.03125, %v871_v33 }
 0x12f   : > { %9127 = vrsqrt.f32 %v1196_v26  ;;  %v1294_v36 = vmul.f32 %v10699_v51, %v1256_v42  ;;  %v1102_v3 = vmul.f32 %v10887_v27, %v10887_v27  ;;  %v1163_v59 = vsub.f32 %v10610_v21, %v10862_v0 }
 0x130   : > { %9129 = vrsqrt.f32 %v1195_v6  ;;  %v880_v7 = vpop.xlane.xlu1 %879  ;;  %v1351_v60 = vpack.c.bf16 %v1330_v62, %v1329_v50  ;;  %v1293_v23 = vmul.f32 %v10699_v51, %v1255_v57  ;;  %v1101_v16 = vmul.f32 %v10889_v43, %v10889_v43 }
 0x131   : > { %v877_v63 = vpop.xlane.xlu0 %876  ;;  %v10894_v61 = vmul.f32 0.03125, %v880_v7  ;;  %v1332_v45 = vadd.f32 %v10708_v2, %v1294_v36  ;;  %v1166_v50 = vsub.f32 %v10631_v40, %v10887_v27  ;;  %v1165_v57 = vsub.f32 %v10636_v41, %v10889_v43 }
 0x132   : > { %8075 = vmatprep.mubr.msk.bf16.mxu0 %vm784_vm1, %v1351_v60  ;;  %v1331_v54 = vadd.f32 %v10708_v2, %v1293_v23  ;;  %v10896_v52 = vmul.f32 0.03125, %v877_v63 }
 0x133   : > { %v1104_v24 = vmul.f32 %v10894_v61, %v10894_v61  ;;  %v1168_v60 = vsub.f32 %v10645_v46, %v10894_v61 }
 0x134   : > { %v1002_v1 = vpop.xlane.xlu1 %1001  ;;  %v1352_v19 = vpack.c.bf16 %v1332_v45, %v1331_v54  ;;  %v1103_v25 = vmul.f32 %v10896_v52, %v10896_v52  ;;  %v1167_v54 = vsub.f32 %v10650_v47, %v10896_v52 }
 0x135   : > { %v999_v44 = vpop.xlane.xlu0 %998  ;;  %v1070_v53 = vmul.f32 0.03125, %v1002_v1 }
 0x136   : > { %v1069_v9 = vmul.f32 0.03125, %v999_v44  ;;  %8076 = vmatmul.mubr.msk.bf16.gmra.mxu0 %vm784_vm1, %v1352_v19  ;;  %v10949_v19 = vld [vmem:[%s15141_s18] ss:$0 sm:$0xff] }
 0x137   : > { %v1134_v32 = vsub.f32 %v1070_v53, %v1102_v3 }
 0x138   : > { %v1133_v12 = vsub.f32 %v1069_v9, %v1101_v16  ;;  %v9124_v28 = vpop.eup %9123  ;;  %v1008_v29 = vpop.xlane.xlu1 %1007 }
 0x139   : > { %v1005_v30 = vpop.xlane.xlu0 %1004  ;;  %v9126_v4 = vpop.eup %9125  ;;  %v1198_v55 = vadd.f32 1e-05, %v1134_v32  ;;  %v1072_v39 = vmul.f32 0.03125, %v1008_v29  ;;  %v1258_v14 = vmul.f32 %v9124_v28, %v1162_v17 }
 0x13a   : > { %v1197_v38 = vadd.f32 1e-05, %v1133_v12  ;;  %v1071_v13 = vmul.f32 0.03125, %v1005_v30  ;;  %v1257_v48 = vmul.f32 %v9126_v4, %v1161_v18 }
 0x13b   : > { %9131 = vrsqrt.f32 %v1198_v55  ;;  %v1136_v11 = vsub.f32 %v1072_v39, %v1104_v24  ;;  %v1296_v37 = vmul.f32 %v10699_v51, %v1258_v14 }
 0x13c   : > { %v1135_v56 = vsub.f32 %v1071_v13, %v1103_v25  ;;  %v9128_v58 = vpop.eup %9127  ;;  %9133 = vrsqrt.f32 %v1197_v38  ;;  %v1295_v10 = vmul.f32 %v10699_v51, %v1257_v48 }
 0x13d   : > { %v9130_v31 = vpop.eup %9129  ;;  %v1200_v35 = vadd.f32 1e-05, %v1136_v11  ;;  %v1260_v33 = vmul.f32 %v9128_v58, %v1164_v15  ;;  %v1334_v20 = vadd.f32 %v10708_v2, %v1296_v37 }
 0x13e   : > { %v1199_v5 = vadd.f32 1e-05, %v1135_v56  ;;  %v1333_v34 = vadd.f32 %v10708_v2, %v1295_v10  ;;  %v1259_v8 = vmul.f32 %v9130_v31, %v1163_v59 }
 0x13f   : > { %9135 = vrsqrt.f32 %v1200_v35  ;;  %v1298_v49 = vmul.f32 %v10699_v51, %v1260_v33 }
 0x140   : > { %9137 = vrsqrt.f32 %v1199_v5  ;;  %v1353_v22 = vpack.c.bf16 %v1334_v20, %v1333_v34  ;;  %v1297_v21 = vmul.f32 %v10699_v51, %v1259_v8 }
 0x141   : > { %v1336_v0 = vadd.f32 %v10708_v2, %v1298_v49 }
 0x142   : > { %8079 = vmatprep.mubr.msk.bf16.mxu0 %vm784_vm1, %v1353_v22  ;;  %v1335_v26 = vadd.f32 %v10708_v2, %v1297_v21 }
 0x144   : > { %v1354_v6 = vpack.c.bf16 %v1336_v0, %v1335_v26 }
 0x146   : > { %8080 = vmatmul.mubr.msk.bf16.gmra.mxu0 %vm784_vm1, %v1354_v6 }
 0x148   : > { %v9132_v62 = vpop.eup %9131 }
 0x149   : > { %v9134_v42 = vpop.eup %9133  ;;  %v1262_v7 = vmul.f32 %v9132_v62, %v1166_v50 }
 0x14a   : > { %v1261_v63 = vmul.f32 %v9134_v42, %v1165_v57 }
 0x14b   : > { %v1300_v23 = vmul.f32 %v10699_v51, %v1262_v7 }
 0x14c   : > { %v9136_v36 = vpop.eup %9135  ;;  %v1299_v1 = vmul.f32 %v10699_v51, %v1261_v63 }
 0x14d   : > { %v9138_v44 = vpop.eup %9137  ;;  %v1338_v40 = vadd.f32 %v10708_v2, %v1300_v23  ;;  %v1264_v27 = vmul.f32 %v9136_v36, %v1168_v60 }
 0x14e   : > { %v1337_v41 = vadd.f32 %v10708_v2, %v1299_v1  ;;  %v1263_v43 = vmul.f32 %v9138_v44, %v1167_v54 }
 0x14f   : > { %v1302_v45 = vmul.f32 %v10699_v51, %v1264_v27 }
 0x150   : > { %v1355_v3 = vpack.c.bf16 %v1338_v40, %v1337_v41  ;;  %v1301_v46 = vmul.f32 %v10699_v51, %v1263_v43 }
 0x151   : > { %v1340_v61 = vadd.f32 %v10708_v2, %v1302_v45 }
 0x152   : > { %8083 = vmatprep.mubr.msk.bf16.mxu0 %vm784_vm1, %v1355_v3  ;;  %v1339_v47 = vadd.f32 %v10708_v2, %v1301_v46 }
 0x154   : > { %v1356_v52 = vpack.c.bf16 %v1340_v61, %v1339_v47 }
 0x156   : > { %8084 = vmatmul.mubr.msk.bf16.gmra.mxu0 %vm784_vm1, %v1356_v52 }
 0x1a6   : > { %v8057_v16 = vpop.f32.mrf.mxu0 }
 0x1a7   : > { %v1471_v0 = vadd.f32 %v8057_v16, %v10949_v19 }
 0x1a8   : > { %v1462_v53 = vpop.f32.mrf.mxu0 }
 0x1a9   : > { %v1463_v51 = vadd.f32 %v10949_v19, %v1462_v53 }
 0x1aa   : > { %v8058_v9 = vpop.f32.mrf.mxu0 }
 0x1ab   : > { %v1474_v8 = vadd.f32 %v8058_v9, %v10949_v19 }
 0x1ac   : > { %v1465_v32 = vpop.f32.mrf.mxu0 }
 0x1ad   : > { %v1466_v12 = vadd.f32 %v10949_v19, %v1465_v32  ;;  %v10993_v50 = vpack.c.bf16 %v1474_v8, %v1471_v0 }
 0x1af   : > { %v10953_v28 = vpack.c.bf16 %v1466_v12, %v1463_v51  ;;  %15149 = vst [vmem:[#allocation12_spill] sm:$0xff] %v10993_v50 }
 0x1b1   : > { %15142 = vst [vmem:[#allocation5_spill] sm:$0xff] %v10953_v28  ;;  %8103 = vmatprep.mubr.msk.bf16.mxu1 %vm1645_vm2, %v10953_v28 }
 0x1b6   : > { %v8061_v2 = vpop.f32.mrf.mxu0 }
 0x1b7   : > { %v1487_v59 = vadd.f32 %v8061_v2, %v10949_v19 }
 0x1b8   : > { %v1478_v17 = vpop.f32.mrf.mxu0 }
 0x1b9   : > { %v1479_v33 = vadd.f32 %v10949_v19, %v1478_v17 }
 0x1ba   : > { %v8062_v18 = vpop.f32.mrf.mxu0 }
 0x1bb   : > { %v1490_v15 = vadd.f32 %v8062_v18, %v10949_v19 }
 0x1bc   : > { %v1481_v24 = vpop.f32.mrf.mxu0 }
 0x1bd   : > { %v10970_v31 = vpack.c.bf16 %v1490_v15, %v1487_v59  ;;  %v1482_v35 = vadd.f32 %v10949_v19, %v1481_v24 }
 0x1bf   : > { %15145 = vst [vmem:[#allocation8_spill] sm:$0xff] %v10970_v31  ;;  %v10983_v49 = vpack.c.bf16 %v1482_v35, %v1479_v33 }
 0x1c1   : > { %15147 = vst [vmem:[#allocation10_spill] sm:$0xff] %v10983_v49 }
 0x1c6   : > { %v8065_v25 = vpop.f32.mrf.mxu0 }
 0x1c7   : > { %v1503_v5 = vadd.f32 %v8065_v25, %v10949_v19 }
 0x1c8   : > { %v1494_v29 = vpop.f32.mrf.mxu0 }
 0x1c9   : > { %v1495_v22 = vadd.f32 %v10949_v19, %v1494_v29 }
 0x1ca   : > { %v8066_v30 = vpop.f32.mrf.mxu0 }
 0x1cb   : > { %v1506_v10 = vadd.f32 %v8066_v30, %v10949_v19 }
 0x1cc   : > { %v1497_v4 = vpop.f32.mrf.mxu0 }
 0x1cd   : > { %v10977_v34 = vpack.c.bf16 %v1506_v10, %v1503_v5  ;;  %v1498_v20 = vadd.f32 %v10949_v19, %v1497_v4 }
 0x1cf   : > { %15146 = vst [vmem:[#allocation9_spill] sm:$0xff] %v10977_v34  ;;  %v10989_v26 = vpack.c.bf16 %v1498_v20, %v1495_v22 }
 0x1d1   : > { %15148 = vst [vmem:[#allocation11_spill] sm:$0xff] %v10989_v26 }
 0x1d6   : > { %v8069_v55 = vpop.f32.mrf.mxu0 }
 0x1d7   : > { %v1519_v13 = vadd.f32 %v8069_v55, %v10949_v19 }
 0x1d8   : > { %v1510_v38 = vpop.f32.mrf.mxu0 }
 0x1d9   : > { %v1511_v11 = vadd.f32 %v10949_v19, %v1510_v38 }
 0x1da   : > { %v8070_v39 = vpop.f32.mrf.mxu0 }
 0x1db   : > { %v1522_v48 = vadd.f32 %v8070_v39, %v10949_v19 }
 0x1dc   : > { %v1513_v14 = vpop.f32.mrf.mxu0 }
 0x1dd   : > { %v10961_v56 = vpack.c.bf16 %v1522_v48, %v1519_v13  ;;  %v1514_v58 = vadd.f32 %v10949_v19, %v1513_v14 }
 0x1df   : > { %15143 = vst [vmem:[#allocation6_spill] sm:$0xff] %v10961_v56  ;;  %v10966_v37 = vpack.c.bf16 %v1514_v58, %v1511_v11  ;;  %1643 = vrot.lane.b32.xlu0 %v10961_v56, %s9951_s16 }
 0x1e1   : > { %15144 = vst [vmem:[#allocation7_spill] sm:$0xff] %v10966_v37  ;;  %1641 = vrot.lane.b32.xlu1 %v10966_v37, %s9951_s16 }
 0x1e3   : > { %1635 = vrot.lane.b32.xlu0 %v10970_v31, %s9951_s16 }
 0x1e5   : > { %1639 = vrot.lane.b32.xlu1 %v10977_v34, %s9951_s16 }
 0x1e6   : > { %v8073_v21 = vpop.f32.mrf.mxu0 }
 0x1e7   : > { %1633 = vrot.lane.b32.xlu0 %v10983_v49, %s9951_s16  ;;  %v1535_v27 = vadd.f32 %v8073_v21, %v10949_v19 }
 0x1e8   : > { %v1526_v6 = vpop.f32.mrf.mxu0 }
 0x1e9   : > { %1637 = vrot.lane.b32.xlu1 %v10989_v26, %s9951_s16  ;;  %v1527_v42 = vadd.f32 %v10949_v19, %v1526_v6 }
 0x1ea   : > { %v8074_v62 = vpop.f32.mrf.mxu0 }
 0x1eb   : > { %1631 = vrot.lane.b32.xlu0 %v10993_v50, %s9951_s16  ;;  %v1538_v44 = vadd.f32 %v8074_v62, %v10949_v19 }
 0x1ec   : > { %v1529_v57 = vpop.f32.mrf.mxu0 }
 0x1ed   : > { %v1530_v7 = vadd.f32 %v10949_v19, %v1529_v57  ;;  %v11015_v41 = vpack.c.bf16 %v1538_v44, %v1535_v27 }
 0x1ef   : > { %v11001_v63 = vpack.c.bf16 %v1530_v7, %v1527_v42  ;;  %1629 = vrot.lane.b32.xlu0 %v10953_v28, %s9951_s16  ;;  %15152 = vst [vmem:[#allocation15_spill] sm:$0xff] %v11015_v41 }
 0x1f1   : > { %15150 = vst [vmem:[#allocation13_spill] sm:$0xff] %v11001_v63  ;;  %8135 = vmatprep.mubr.msk.bf16.mxu0 %vm1645_vm2, %v11001_v63 }
 0x1f6   : > { %v8077_v60 = vpop.f32.mrf.mxu0 }
 0x1f7   : > { %v1551_v54 = vadd.f32 %v8077_v60, %v10949_v19 }
 0x1f8   : > { %v1542_v23 = vpop.f32.mrf.mxu0 }
 0x1f9   : > { %v1543_v53 = vadd.f32 %v10949_v19, %v1542_v23 }
 0x1fa   : > { %v8078_v36 = vpop.f32.mrf.mxu0 }
 0x1fb   : > { %v1554_v1 = vadd.f32 %v8078_v36, %v10949_v19 }
 0x1fc   : > { %v1545_v43 = vpop.f32.mrf.mxu0 }
 0x1fd   : > { %v11010_v40 = vpack.c.bf16 %v1554_v1, %v1551_v54  ;;  %v1546_v52 = vadd.f32 %v10949_v19, %v1545_v43 }
 0x1ff   : > { %15151 = vst [vmem:[#allocation14_spill] sm:$0xff] %v11010_v40  ;;  %1805 = vrot.lane.b32.xlu0 %v11010_v40, %s9951_s16  ;;  %v11031_v32 = vpack.c.bf16 %v1546_v52, %v1543_v53 }
 0x201   : > { %15153 = vst [vmem:[#allocation16_spill] sm:$0xff] %v11031_v32 }
 0x203   : > { %1801 = vrot.lane.b32.xlu0 %v11015_v41, %s9951_s16 }
 0x206   : > { %v8081_v45 = vpop.f32.mrf.mxu0 }
 0x207   : > { %2278 = vrot.lane.b32.xlu0 %v10961_v56, %s9952_s7  ;;  %v1567_v30 = vadd.f32 %v8081_v45, %v10949_v19 }
 0x208   : > { %v1558_v3 = vpop.f32.mrf.mxu0 }
 0x209   : > { %v1559_v38 = vadd.f32 %v10949_v19, %v1558_v3 }
 0x20a   : > { %v8082_v46 = vpop.f32.mrf.mxu0 }
 0x20b   : > { %2272 = vrot.lane.b32.xlu0 %v10989_v26, %s9952_s7  ;;  %v1570_v25 = vadd.f32 %v8082_v46, %v10949_v19 }
 0x20c   : > { %v1561_v61 = vpop.f32.mrf.mxu0 }
 0x20d   : > { %v11051_v4 = vpack.c.bf16 %v1570_v25, %v1567_v30  ;;  %v1562_v55 = vadd.f32 %v10949_v19, %v1561_v61 }
 0x20f   : > { %2268 = vrot.lane.b32.xlu0 %v10983_v49, %s9952_s7  ;;  %15154 = vst [vmem:[#allocation17_spill] sm:$0xff] %v11051_v4  ;;  %v11059_v39 = vpack.c.bf16 %v1562_v55, %v1559_v38 }
 0x211   : > { %15155 = vst [vmem:[#allocation18_spill] sm:$0xff] %v11059_v39 }
 0x213   : > { %2264 = vrot.lane.b32.xlu0 %v10953_v28, %s9952_s7 }
 0x216   : > { %v8085_v47 = vpop.f32.mrf.mxu0 }
 0x217   : > { %2391 = vrot.lane.b32.xlu0 %v11010_v40, %s9952_s7  ;;  %v1583_v51 = vadd.f32 %v8085_v47, %v10949_v19 }
 0x218   : > { %v1574_v16 = vpop.f32.mrf.mxu0 }
 0x219   : > { %v1575_v24 = vadd.f32 %v10949_v19, %v1574_v16 }
 0x21a   : > { %v8086_v9 = vpop.f32.mrf.mxu0 }
 0x21b   : > { %v1586_v12 = vadd.f32 %v8086_v9, %v10949_v19  ;;  %2389 = vrot.lane.b32.xlu0 %v11031_v32, %s9952_s7 }
 0x21c   : > { %v1577_v2 = vpop.f32.mrf.mxu0 }
 0x21d   : > { %v11035_v17 = vpack.c.bf16 %v1586_v12, %v1583_v51  ;;  %v1578_v18 = vadd.f32 %v10949_v19, %v1577_v2 }
 0x21f   : > { %1813 = vrot.lane.b32.xlu1 %v11035_v17, %s9951_s16  ;;  %v11044_v29 = vpack.c.bf16 %v1578_v18, %v1575_v24  ;;  %2530 = vrot.lane.b32.xlu0 %v10989_v26, %s9953_s20 }
 0x223   : > { %1811 = vrot.lane.b32.xlu1 %v11044_v29, %s9951_s16  ;;  %2528 = vrot.lane.b32.xlu0 %v10970_v31, %s9953_s20 }
 0x227   : > { %1809 = vrot.lane.b32.xlu1 %v11051_v4, %s9951_s16  ;;  %2526 = vrot.lane.b32.xlu0 %v10983_v49, %s9953_s20 }
 0x22b   : > { %1807 = vrot.lane.b32.xlu1 %v11059_v39, %s9951_s16  ;;  %2524 = vrot.lane.b32.xlu0 %v10993_v50, %s9953_s20 }
 0x22f   : > { %1803 = vrot.lane.b32.xlu1 %v11031_v32, %s9951_s16  ;;  %2522 = vrot.lane.b32.xlu0 %v10953_v28, %s9953_s20 }
 0x233   : > { %1799 = vrot.lane.b32.xlu1 %v11001_v63, %s9951_s16  ;;  %2506 = vrot.lane.b32.xlu0 %v10953_v28, %s9954_s8 }
 0x237   : > { %2276 = vrot.lane.b32.xlu1 %v10966_v37, %s9952_s7  ;;  %2701 = vrot.lane.b32.xlu0 %v11015_v41, %s9953_s20 }
 0x23b   : > { %2274 = vrot.lane.b32.xlu1 %v10977_v34, %s9952_s7  ;;  %2683 = vrot.lane.b32.xlu0 %v11001_v63, %s9954_s8 }
 0x23f   : > { %2270 = vrot.lane.b32.xlu1 %v10970_v31, %s9952_s7  ;;  %2510 = vrot.lane.b32.xlu0 %v10983_v49, %s9954_s8 }
 0x243   : > { %2266 = vrot.lane.b32.xlu1 %v10993_v50, %s9952_s7  ;;  %2514 = vrot.lane.b32.xlu0 %v10989_v26, %s9954_s8 }
 0x247   : > { %2399 = vrot.lane.b32.xlu1 %v11035_v17, %s9952_s7  ;;  %2518 = vrot.lane.b32.xlu0 %v10966_v37, %s9954_s8 }
 0x24b   : > { %2536 = vrot.lane.b32.xlu1 %v10961_v56, %s9953_s20  ;;  %2687 = vrot.lane.b32.xlu0 %v11031_v32, %s9954_s8 }
 0x24f   : > { %2395 = vrot.lane.b32.xlu1 %v11051_v4, %s9952_s7  ;;  %2691 = vrot.lane.b32.xlu0 %v11059_v39, %s9954_s8 }
 0x251   : > { %v1644_v19 = vpop.permute.xlu0 %1643 }
 0x252   : > { %8719 = vmatprep.subr.msk.bf16.mxu1 %vm1645_vm2, %v1644_v19  ;;  %v1692_v13 = vsel %vm1645_vm2, %v1644_v19, 0 }
 0x253   : > { %2534 = vrot.lane.b32.xlu1 %v10966_v37, %s9953_s20  ;;  %v1642_v48 = vpop.permute.xlu1 %1641  ;;  %2397 = vrot.lane.b32.xlu0 %v11044_v29, %s9952_s7 }
 0x254   : > { %8088 = vmatpush3.bf16.xpose.msra.mxu1 %v1692_v13  ;;  %v1689_v14 = vsel %vm1645_vm2, %v1642_v48, 0 }
 0x255   : > { %8720 = vmatprep.subr.msk.bf16.mxu1 %vm1645_vm2, %v1642_v48  ;;  %v1636_v15 = vpop.permute.xlu0 %1635 }
 0x256   : > { %v1680_v8 = vsel %vm1645_vm2, %v1636_v15, 0 }
 0x257   : > { %2393 = vrot.lane.b32.xlu1 %v11059_v39, %s9952_s7  ;;  %v1640_v11 = vpop.permute.xlu1 %1639 }
 0x258   : > { %v1686_v59 = vsel %vm1645_vm2, %v1640_v11, 0 }
 0x259   : > { %v1634_v58 = vpop.permute.xlu0 %1633 }
 0x25a   : > { %v1677_v0 = vsel %vm1645_vm2, %v1634_v58, 0 }
 0x25b   : > { %2532 = vrot.lane.b32.xlu1 %v10977_v34, %s9953_s20  ;;  %v1638_v10 = vpop.permute.xlu1 %1637 }
 0x25c   : > { %8090 = vmatpush3.bf16.xpose.msra.mxu1 %v1689_v14  ;;  %v1683_v5 = vsel %vm1645_vm2, %v1638_v10, 0 }
 0x25d   : > { %8721 = vmatprep.subr.msk.bf16.mxu1 %vm1645_vm2, %v1640_v11  ;;  %v1632_v35 = vpop.permute.xlu0 %1631 }
 0x25e   : > { %v1674_v57 = vsel %vm1645_vm2, %v1632_v35, 0 }
 0x25f   : > { %2387 = vrot.lane.b32.xlu1 %v11015_v41, %s9952_s7 }
 0x261   : > { %v1630_v33 = vpop.permute.xlu0 %1629 }
 0x262   : > { %v1671_v60 = vsel %vm1645_vm2, %v1630_v33, 0 }
 0x263   : > { %2385 = vrot.lane.b32.xlu1 %v11001_v63, %s9952_s7 }
 0x264   : > { %8092 = vmatpush3.bf16.xpose.msra.mxu1 %v1686_v59 }
 0x265   : > { %8722 = vmatprep.subr.msk.bf16.mxu1 %vm1645_vm2, %v1638_v10 }
 0x267   : > { %2713 = vrot.lane.b32.xlu1 %v11035_v17, %s9953_s20 }
 0x26b   : > { %2709 = vrot.lane.b32.xlu1 %v11051_v4, %s9953_s20 }
 0x26c   : > { %8094 = vmatpush3.bf16.xpose.msra.mxu1 %v1683_v5 }
 0x26d   : > { %8723 = vmatprep.subr.msk.bf16.mxu1 %vm1645_vm2, %v1636_v15 }
 0x26f   : > { %2707 = vrot.lane.b32.xlu1 %v11059_v39, %s9953_s20 }
 0x271   : > { %v11130_v20 = vpop.permute.xlu0 %1805 }
 0x272   : > { %v1849_v24 = vsel %vm1645_vm2, %v11130_v20, 0 }
 0x273   : > { %2508 = vrot.lane.b32.xlu1 %v10993_v50, %s9954_s8 }
 0x274   : > { %8096 = vmatpush3.bf16.xpose.msra.mxu1 %v1680_v8 }
 0x275   : > { %8724 = vmatprep.subr.msk.bf16.mxu1 %vm1645_vm2, %v1634_v58  ;;  %v11136_v22 = vpop.permute.xlu0 %1801 }
 0x276   : > { %v1843_v48 = vsel %vm1645_vm2, %v11136_v22, 0 }
 0x277   : > { %2705 = vrot.lane.b32.xlu1 %v11010_v40, %s9953_s20 }
 0x279   : > { %v11140_v21 = vpop.permute.xlu0 %2278 }
 0x27b   : > { %2703 = vrot.lane.b32.xlu1 %v11031_v32, %s9953_s20 }
 0x27c   : > { %8098 = vmatpush3.bf16.xpose.msra.mxu1 %v1677_v0 }
 0x27d   : > { %8725 = vmatprep.subr.msk.bf16.mxu1 %vm1645_vm2, %v1632_v35  ;;  %v11146_v6 = vpop.permute.xlu0 %2272 }
 0x27f   : > { %2699 = vrot.lane.b32.xlu1 %v11001_v63, %s9953_s20 }
 0x281   : > { %v11150_v62 = vpop.permute.xlu0 %2268 }
 0x283   : > { %2685 = vrot.lane.b32.xlu1 %v11015_v41, %s9954_s8 }
 0x284   : > { %8100 = vmatpush3.bf16.xpose.msra.mxu1 %v1674_v57 }
 0x285   : > { %8726 = vmatprep.subr.msk.bf16.mxu1 %vm1645_vm2, %v1630_v33  ;;  %v11156_v42 = vpop.permute.xlu0 %2264 }
 0x287   : > { %2512 = vrot.lane.b32.xlu1 %v10970_v31, %s9954_s8 }
 0x289   : > { %v11160_v7 = vpop.permute.xlu0 %2391 }
 0x28a   : > { %15156 = vst [vmem:[#allocation19_spill] sm:$0xff] %v11160_v7 }
 0x28b   : > { %2516 = vrot.lane.b32.xlu1 %v10977_v34, %s9954_s8 }
 0x28c   : > { %8102 = vmatpush3.bf16.xpose.msra.mxu1 %v1671_v60 }
 0x28d   : > { %v11165_v23 = vpop.permute.xlu0 %2389 }
 0x28e   : > { %15157 = vst [vmem:[#allocation20_spill] sm:$0xff] %v11165_v23 }
 0x28f   : > { %2520 = vrot.lane.b32.xlu1 %v10961_v56, %s9954_s8 }
 0x291   : > { %v1814_v36 = vpop.permute.xlu1 %1813  ;;  %v11171_v1 = vpop.permute.xlu0 %2530 }
 0x292   : > { %8727 = vmatprep.subr.msk.bf16.mxu0 %vm1645_vm2, %v1814_v36  ;;  %v1861_v54 = vsel %vm1645_vm2, %v1814_v36, 0  ;;  %v2575_v33 = vsel %vm1645_vm2, %v11171_v1, 0 }
 0x293   : > { %8120 = vmatpush3.bf16.xpose.msra.mxu0 %v1861_v54  ;;  %2689 = vrot.lane.b32.xlu1 %v11010_v40, %s9954_s8 }
 0x294   : > { %8104 = vmatmul.mubr.msk.bf16.vlgmr.msra.gmra.mxu1 %vm1645_vm2, %v10993_v50 }
 0x295   : > { %8107 = vmatprep.mubr.msk.bf16.mxu1 %vm1645_vm2, %v10983_v49  ;;  %v1812_v44 = vpop.permute.xlu1 %1811  ;;  %v11180_v27 = vpop.permute.xlu0 %2528 }
 0x296   : > { %8728 = vmatprep.subr.msk.bf16.mxu0 %vm1645_vm2, %v1812_v44  ;;  %v1858_v45 = vsel %vm1645_vm2, %v1812_v44, 0 }
 0x297   : > { %2693 = vrot.lane.b32.xlu1 %v11051_v4, %s9954_s8 }
 0x299   : > { %v1810_v43 = vpop.permute.xlu1 %1809  ;;  %v11185_v3 = vpop.permute.xlu0 %2526 }
 0x29a   : > { %v1855_v52 = vsel %vm1645_vm2, %v1810_v43, 0  ;;  %v2569_v0 = vsel %vm1645_vm2, %v11185_v3, 0 }
 0x29b   : > { %2711 = vrot.lane.b32.xlu1 %v11044_v29, %s9953_s20  ;;  %8122 = vmatpush3.bf16.xpose.msra.mxu0 %v1858_v45  ;;  %s9956_s20 = smov 80  }
 0x29c   : > { %8108 = vmatmul.mubr.msk.bf16.gmra.mxu1 %vm1645_vm2, %v10970_v31  ;;  %8729 = vmatprep.subr.msk.bf16.mxu0 %vm1645_vm2, %v1810_v43 }
 0x29d   : > { %8111 = vmatprep.mubr.msk.bf16.mxu1 %vm1645_vm2, %v10989_v26  ;;  %v1808_v46 = vpop.permute.xlu1 %1807  ;;  %v11194_v61 = vpop.permute.xlu0 %2524 }
 0x29e   : > { %v1852_v51 = vsel %vm1645_vm2, %v1808_v46, 0  ;;  %v2566_v60 = vsel %vm1645_vm2, %v11194_v61, 0 }
 0x2a1   : > { %v1804_v47 = vpop.permute.xlu1 %1803  ;;  %v11202_v53 = vpop.permute.xlu0 %2522 }
 0x2a2   : > { %v1846_v55 = vsel %vm1645_vm2, %v1804_v47, 0  ;;  %v2563_v54 = vsel %vm1645_vm2, %v11202_v53, 0 }
 0x2a3   : > { %8124 = vmatpush3.bf16.xpose.msra.mxu0 %v1855_v52 }
 0x2a4   : > { %8112 = vmatmul.mubr.msk.bf16.gmra.mxu1 %vm1645_vm2, %v10977_v34  ;;  %8730 = vmatprep.subr.msk.bf16.mxu0 %vm1645_vm2, %v1808_v46 }
 0x2a5   : > { %8115 = vmatprep.mubr.msk.bf16.mxu1 %vm1645_vm2, %v10966_v37  ;;  %v1800_v16 = vpop.permute.xlu1 %1799  ;;  %v2507_v12 = vpop.permute.xlu0 %2506 }
 0x2a6   : > { %v1840_v58 = vsel %vm1645_vm2, %v1800_v16, 0 }
 0x2a9   : > { %v2277_v9 = vpop.permute.xlu1 %2276 }
 0x2ab   : > { %8126 = vmatpush3.bf16.xpose.msra.mxu0 %v1852_v51 }
 0x2ac   : > { %8116 = vmatmul.mubr.msk.bf16.gmra.mxu1 %vm1645_vm2, %v10961_v56  ;;  %8731 = vmatprep.subr.msk.bf16.mxu0 %vm1645_vm2, %v11130_v20 }
 0x2ad   : > { %8231 = vmatprep.mubr.msk.bf16.mxu1 %vm1645_vm2, %v2507_v12  ;;  %v2275_v2 = vpop.permute.xlu1 %2274  ;;  %v11321_v12 = vld [vmem:[%s15172_s27 + $0x8] sm:$0xff] }
 0x2b1   : > { %v2271_v18 = vpop.permute.xlu1 %2270 }
 0x2b3   : > { %8128 = vmatpush3.bf16.xpose.msra.mxu0 %v1849_v24 }
 0x2b4   : > { %8732 = vmatprep.subr.msk.bf16.mxu0 %vm1645_vm2, %v1804_v47  ;;  %v11307_v47 = vld [vmem:[%s15172_s27 + $0x10] sm:$0xff] }
 0x2b5   : > { %v2267_v25 = vpop.permute.xlu1 %2266 }
 0x2b9   : > { %v11213_v30 = vpop.permute.xlu1 %2399 }
 0x2ba   : > { %15158 = vst [vmem:[#allocation21_spill] sm:$0xff] %v11213_v30 }
 0x2bb   : > { %8130 = vmatpush3.bf16.xpose.msra.mxu0 %v1846_v55 }
 0x2bc   : > { %8733 = vmatprep.subr.msk.bf16.mxu0 %vm1645_vm2, %v11136_v22  ;;  %v2572_v22 = vsel %vm1645_vm2, %v11180_v27, 0 }
 0x2bd   : > { %v2537_v38 = vpop.permute.xlu1 %2536 }
 0x2be   : > { %8735 = vmatprep.subr.msk.bf16.mxu1 %vm1645_vm2, %v2537_v38  ;;  %v2584_v19 = vsel %vm1645_vm2, %v2537_v38, 0 }
 0x2bf   : > { %8216 = vmatpush3.bf16.xpose.msra.mxu1 %v2584_v19  ;;  %v11342_v19 = vld [vmem:[%s15172_s27 + $0x30] sm:$0xff] }
 0x2c1   : > { %v11220_v13 = vpop.permute.xlu1 %2395 }
 0x2c2   : > { %15159 = vst [vmem:[#allocation22_spill] sm:$0xff] %v11220_v13 }
 0x2c3   : > { %8132 = vmatpush3.bf16.xpose.msra.mxu0 %v1843_v48 }
 0x2c4   : > { %8734 = vmatprep.subr.msk.bf16.mxu0 %vm1645_vm2, %v1800_v16 }
 0x2c5   : > { %v2535_v14 = vpop.permute.xlu1 %2534 }
 0x2c6   : > { %8736 = vmatprep.subr.msk.bf16.mxu1 %vm1645_vm2, %v2535_v14  ;;  %v2581_v15 = vsel %vm1645_vm2, %v2535_v14, 0  ;;  %v11347_v14 = vld [vmem:[%s15172_s27 + $0x38] sm:$0xff] }
 0x2c7   : > { %8218 = vmatpush3.bf16.xpose.msra.mxu1 %v2581_v15 }
 0x2c9   : > { %v11227_v11 = vpop.permute.xlu1 %2393 }
 0x2ca   : > { %15160 = vst [vmem:[#allocation23_spill] sm:$0xff] %v11227_v11 }
 0x2cb   : > { %8134 = vmatpush3.bf16.xpose.msra.mxu0 %v1840_v58 }
 0x2cc   : > { %8151 = vmatprep.subr.bf16.mxu0 %v11140_v21 }
 0x2cd   : > { %v2533_v59 = vpop.permute.xlu1 %2532 }
 0x2ce   : > { %8737 = vmatprep.subr.msk.bf16.mxu1 %vm1645_vm2, %v2533_v59  ;;  %v2578_v10 = vsel %vm1645_vm2, %v2533_v59, 0 }
 0x2cf   : > { %8220 = vmatpush3.bf16.xpose.msra.mxu1 %v2578_v10  ;;  %v11359_v10 = vld [vmem:[%s15172_s27 + $0x20] sm:$0xff] }
 0x2d0   : > { %8738 = vmatprep.subr.msk.bf16.mxu1 %vm1645_vm2, %v11171_v1 }
 0x2d1   : > { %v11235_v35 = vpop.permute.xlu1 %2387 }
 0x2d2   : > { %15161 = vst [vmem:[#allocation24_spill] sm:$0xff] %v11235_v35  ;;  %8136 = vmatmul.mubr.msk.bf16.vlgmr.msra.gmra.mxu0 %vm1645_vm2, %v11015_v41 }
 0x2d3   : > { %8139 = vmatprep.mubr.msk.bf16.mxu0 %vm1645_vm2, %v11031_v32  ;;  %8152 = vmatpush3.bf16.msra.mxu0 %v11140_v21  ;;  %v11436_v32 = vld [vmem:[%s15172_s27 + $0x68] sm:$0xff] }
 0x2d4   : > { %8153 = vmatprep.subr.bf16.mxu0 %v2277_v9 }
 0x2d5   : > { %v11242_v5 = vpop.permute.xlu1 %2385 }
 0x2d6   : > { %15162 = vst [vmem:[#allocation25_spill] sm:$0xff] %v11242_v5 }
 0x2d7   : > { %8154 = vmatpush3.bf16.msra.mxu0 %v2277_v9  ;;  %8222 = vmatpush3.bf16.xpose.msra.mxu1 %v2575_v33  ;;  %v11315_v9 = vld [vmem:[%s15172_s27] sm:$0xff] }
 0x2d8   : > { %8155 = vmatprep.subr.bf16.mxu0 %v2275_v2  ;;  %8739 = vmatprep.subr.msk.bf16.mxu1 %vm1645_vm2, %v11180_v27 }
 0x2d9   : > { %v11248_v20 = vpop.permute.xlu1 %2713 }
 0x2da   : > { %15163 = vst [vmem:[#allocation26_spill] sm:$0xff] %v11248_v20  ;;  %8140 = vmatmul.mubr.msk.bf16.gmra.mxu0 %vm1645_vm2, %v11010_v40 }
 0x2db   : > { %8143 = vmatprep.mubr.msk.bf16.mxu0 %vm1645_vm2, %v11059_v39  ;;  %8156 = vmatpush3.bf16.msra.mxu0 %v2275_v2 }
 0x2dc   : > { %8157 = vmatprep.subr.bf16.mxu0 %v11146_v6 }
 0x2dd   : > { %v11255_v8 = vpop.permute.xlu1 %2709 }
 0x2de   : > { %15164 = vst [vmem:[#allocation27_spill] sm:$0xff] %v11255_v8 }
 0x2df   : > { %8158 = vmatpush3.bf16.msra.mxu0 %v11146_v6  ;;  %8224 = vmatpush3.bf16.xpose.msra.mxu1 %v2572_v22  ;;  %v11364_v22 = vld [vmem:[%s15172_s27 + $0x28] sm:$0xff] }
 0x2e0   : > { %8159 = vmatprep.subr.bf16.mxu0 %v2271_v18  ;;  %8740 = vmatprep.subr.msk.bf16.mxu1 %vm1645_vm2, %v11185_v3 }
 0x2e1   : > { %v11262_v21 = vpop.permute.xlu1 %2707 }
 0x2e2   : > { %15165 = vst [vmem:[#allocation28_spill] sm:$0xff] %v11262_v21  ;;  %8144 = vmatmul.mubr.msk.bf16.gmra.mxu0 %vm1645_vm2, %v11051_v4 }
 0x2e3   : > { %8147 = vmatprep.mubr.msk.bf16.mxu0 %vm1645_vm2, %v11044_v29  ;;  %8160 = vmatpush3.bf16.msra.mxu0 %v2271_v18  ;;  %v11329_v18 = vld [vmem:[%s15172_s27 + $0x18] sm:$0xff] }
 0x2e4   : > { %8161 = vmatprep.subr.bf16.mxu0 %v11150_v62 }
 0x2e5   : > { %v2509_v6 = vpop.permute.xlu1 %2508 }
 0x2e7   : > { %8162 = vmatpush3.bf16.msra.mxu0 %v11150_v62  ;;  %8226 = vmatpush3.bf16.xpose.msra.mxu1 %v2569_v0  ;;  %v11285_v62 = vpop.permute.xlu0 %2701 }
 0x2e8   : > { %8163 = vmatprep.subr.bf16.mxu0 %v2267_v25  ;;  %8741 = vmatprep.subr.msk.bf16.mxu1 %vm1645_vm2, %v11194_v61  ;;  %15167 = vst [vmem:[#allocation30_spill] sm:$0xff] %v11285_v62 }
 0x2e9   : > { %v11277_v57 = vpop.permute.xlu1 %2705 }
 0x2ea   : > { %8148 = vmatmul.mubr.msk.bf16.gmra.mxu0 %vm1645_vm2, %v11035_v17  ;;  %15166 = vst [vmem:[#allocation29_spill] sm:$0xff] %v11277_v57 }
 0x2eb   : > { %8164 = vmatpush3.bf16.msra.mxu0 %v2267_v25  ;;  %v11291_v1 = vpop.permute.xlu0 %2683 }
 0x2ec   : > { %8165 = vmatprep.subr.bf16.mxu0 %v11156_v42  ;;  %15169 = vst [vmem:[#allocation32_spill] sm:$0xff] %v11291_v1 }
 0x2ed   : > { %v11287_v36 = vpop.permute.xlu1 %2703 }
 0x2ee   : > { %15168 = vst [vmem:[#allocation31_spill] sm:$0xff] %v11287_v36 }
 0x2ef   : > { %8166 = vmatpush3.bf16.msra.mxu0 %v11156_v42  ;;  %8228 = vmatpush3.bf16.xpose.msra.mxu1 %v2566_v60  ;;  %v2511_v27 = vpop.permute.xlu0 %2510 }
 0x2f0   : > { %8183 = vmatprep.subr.bf16.mxu0 %v11213_v30  ;;  %8742 = vmatprep.subr.msk.bf16.mxu1 %vm1645_vm2, %v11202_v53 }
 0x2f1   : > { %v11293_v44 = vpop.permute.xlu1 %2699 }
 0x2f2   : > { %15170 = vst [vmem:[#allocation33_spill] sm:$0xff] %v11293_v44 }
 0x2f3   : > { %v2515_v45 = vpop.permute.xlu0 %2514 }
 0x2f5   : > { %v11296_v42 = vpop.permute.xlu1 %2685 }
 0x2f6   : > { %15171 = vst [vmem:[#allocation34_spill] sm:$0xff] %v11296_v42 }
 0x2f7   : > { %8230 = vmatpush3.bf16.xpose.msra.mxu1 %v2563_v54  ;;  %v2519_v46 = vpop.permute.xlu0 %2518  ;;  %v11377_v54 = vld [vmem:[%s15172_s27 + $0x50] sm:$0xff] }
 0x2f8   : > { %15173 = vst [vmem:[#allocation35_spill] sm:$0xff] %v11377_v54 }
 0x2f9   : > { %v2513_v43 = vpop.permute.xlu1 %2512 }
 0x2fd   : > { %v2517_v3 = vpop.permute.xlu1 %2516 }
 0x2fe   : > { %8232 = vmatmul.mubr.msk.bf16.vlgmr.msra.gmra.mxu1 %vm1645_vm2, %v2509_v6 }
 0x2ff   : > { %8235 = vmatprep.mubr.msk.bf16.mxu1 %vm1645_vm2, %v2511_v27 }
 0x301   : > { %v2521_v61 = vpop.permute.xlu1 %2520 }
 0x306   : > { %8236 = vmatmul.mubr.msk.bf16.gmra.mxu1 %vm1645_vm2, %v2513_v43  ;;  %v11382_v43 = vld [vmem:[%s15172_s27 + $0x58] sm:$0xff] }
 0x307   : > { %8239 = vmatprep.mubr.msk.bf16.mxu1 %vm1645_vm2, %v2515_v45 }
 0x30e   : > { %8240 = vmatmul.mubr.msk.bf16.gmra.mxu1 %vm1645_vm2, %v2517_v3 }
 0x30f   : > { %8243 = vmatprep.mubr.msk.bf16.mxu1 %vm1645_vm2, %v2519_v46 }
 0x316   : > { %8244 = vmatmul.mubr.msk.bf16.gmra.mxu1 %vm1645_vm2, %v2521_v61  ;;  %v11395_v61 = vld [vmem:[%s15172_s27 + $0x40] sm:$0xff] }
 0x317   : > { %15174 = vst [vmem:[#allocation36_spill] sm:$0xff] %v11395_v61 }
 0x354   : > { %v8105_v52 = vpop.f32.mrf.mxu1 }
 0x355   : > { %v11310_v16 = vadd.f32 %v8105_v52, %v11307_v47 }
 0x356   : > { %v1728_v53 = vpop.f32.mrf.mxu1 }
 0x357   : > { %1964 = vmax.xlane.f32.xlu0 %v11310_v16  ;;  %v11324_v2 = vadd.f32 %v1728_v53, %v11315_v9  ;;  %v11400_v53 = vld [vmem:[%s15172_s27 + $0x48] sm:$0xff] }
 0x358   : > { %v8106_v51 = vpop.f32.mrf.mxu1 }
 0x359   : > { %v11336_v38 = vadd.f32 %v8106_v51, %v11329_v18 }
 0x35a   : > { %v1731_v24 = vpop.f32.mrf.mxu1 }
 0x35b   : > { %v11332_v25 = vadd.f32 %v1731_v24, %v11321_v12  ;;  %1960 = vmax.xlane.f32.xlu0 %v11324_v2 }
 0x35c   : > { %v8109_v55 = vpop.f32.mrf.mxu1 }
 0x35d   : > { %1962 = vmax.xlane.f32.xlu1 %v11332_v25  ;;  %v11351_v58 = vadd.f32 %v8109_v55, %v11342_v19 }
 0x35e   : > { %v1744_v48 = vpop.f32.mrf.mxu1 }
 0x35f   : > { %1966 = vmax.xlane.f32.xlu0 %v11336_v38  ;;  %v11369_v6 = vadd.f32 %v1744_v48, %v11359_v10  ;;  %v11413_v48 = vld [vmem:[%s15172_s27 + $0x70] sm:$0xff] }
 0x360   : > { %v8110_v15 = vpop.f32.mrf.mxu1  ;;  %15175 = vst [vmem:[#allocation37_spill] sm:$0xff] %v11413_v48 }
 0x361   : > { %v11354_v59 = vadd.f32 %v8110_v15, %v11347_v14 }
 0x362   : > { %v1747_v33 = vpop.f32.mrf.mxu1 }
 0x363   : > { %1974 = vmax.xlane.f32.xlu1 %v11354_v59  ;;  %1972 = vmax.xlane.f32.xlu0 %v11351_v58  ;;  %v11372_v60 = vadd.f32 %v1747_v33, %v11364_v22  ;;  %v11418_v33 = vld [vmem:[%s15172_s27 + $0x78] sm:$0xff] }
 0x364   : > { %v8113_v0 = vpop.f32.mrf.mxu1 }
 0x365   : > { %v11387_v3 = vadd.f32 %v8113_v0, %v11377_v54 }
 0x366   : > { %v1760_v27 = vpop.f32.mrf.mxu1 }
 0x367   : > { %1970 = vmax.xlane.f32.xlu1 %v11372_v60  ;;  %1968 = vmax.xlane.f32.xlu0 %v11369_v6  ;;  %v11405_v24 = vadd.f32 %v1760_v27, %v11395_v61 }
 0x368   : > { %v8114_v45 = vpop.f32.mrf.mxu1 }
 0x369   : > { %v11390_v46 = vadd.f32 %v8114_v45, %v11382_v43 }
 0x36a   : > { %v1763_v52 = vpop.f32.mrf.mxu1 }
 0x36b   : > { %1982 = vmax.xlane.f32.xlu1 %v11390_v46  ;;  %1980 = vmax.xlane.f32.xlu0 %v11387_v3  ;;  %v11408_v55 = vadd.f32 %v1763_v52, %v11400_v53  ;;  %v11431_v52 = vld [vmem:[%s15172_s27 + $0x60] sm:$0xff] }
 0x36c   : > { %v8117_v51 = vpop.f32.mrf.mxu1  ;;  %15176 = vst [vmem:[#allocation38_spill] sm:$0xff] %v11431_v52 }
 0x36d   : > { %v11423_v27 = vadd.f32 %v8117_v51, %v11413_v48 }
 0x36e   : > { %v1776_v15 = vpop.f32.mrf.mxu1 }
 0x36f   : > { %1978 = vmax.xlane.f32.xlu1 %v11408_v55  ;;  %1976 = vmax.xlane.f32.xlu0 %v11405_v24  ;;  %v11441_v51 = vadd.f32 %v1776_v15, %v11431_v52 }
 0x370   : > { %v8118_v0 = vpop.f32.mrf.mxu1 }
 0x371   : > { %v11426_v45 = vadd.f32 %v8118_v0, %v11418_v33 }
 0x372   : > { %v1779_v63 = vpop.f32.mrf.mxu1 }
 0x373   : > { %1990 = vmax.xlane.f32.xlu1 %v11426_v45  ;;  %1988 = vmax.xlane.f32.xlu0 %v11423_v27  ;;  %v11444_v0 = vadd.f32 %v1779_v63, %v11436_v32 }
 0x377   : > { %1986 = vmax.xlane.f32.xlu1 %v11444_v0  ;;  %1984 = vmax.xlane.f32.xlu0 %v11441_v51 }
 0x392   : > { %v8137_v41 = vpop.f32.mrf.mxu0 }
 0x393   : > { %v11449_v42 = vadd.f32 %v8137_v41, %v11307_v47 }
 0x394   : > { %v1897_v1 = vpop.f32.mrf.mxu0 }
 0x395   : > { %1996 = vmax.xlane.f32.xlu0 %v11449_v42  ;;  %v11453_v62 = vadd.f32 %v1897_v1, %v11315_v9 }
 0x396   : > { %v8138_v44 = vpop.f32.mrf.mxu0 }
 0x397   : > { %v11456_v15 = vadd.f32 %v8138_v44, %v11329_v18 }
 0x398   : > { %v1900_v63 = vpop.f32.mrf.mxu0 }
 0x399   : > { %1998 = vmax.xlane.f32.xlu1 %v11456_v15  ;;  %1992 = vmax.xlane.f32.xlu0 %v11453_v62  ;;  %v11461_v57 = vadd.f32 %v1900_v63, %v11321_v12 }
 0x39a   : > { %v8141_v36 = vpop.f32.mrf.mxu0 }
 0x39b   : > { %v11464_v41 = vadd.f32 %v8141_v36, %v11342_v19 }
 0x39c   : > { %v1913_v21 = vpop.f32.mrf.mxu0 }
 0x39d   : > { %1994 = vmax.xlane.f32.xlu1 %v11461_v57  ;;  %2004 = vmax.xlane.f32.xlu0 %v11464_v41  ;;  %v11469_v44 = vadd.f32 %v1913_v21, %v11359_v10 }
 0x39e   : > { %v8142_v1 = vpop.f32.mrf.mxu0 }
 0x39f   : > { %v11472_v8 = vadd.f32 %v8142_v1, %v11347_v14 }
 0x3a0   : > { %v1916_v40 = vpop.f32.mrf.mxu0 }
 0x3a1   : > { %2006 = vmax.xlane.f32.xlu1 %v11472_v8  ;;  %2000 = vmax.xlane.f32.xlu0 %v11469_v44  ;;  %v11477_v36 = vadd.f32 %v1916_v40, %v11364_v22 }
 0x3a2   : > { %v8145_v63 = vpop.f32.mrf.mxu0 }
 0x3a3   : > { %v11480_v31 = vadd.f32 %v8145_v63, %v11377_v54 }
 0x3a4   : > { %v1929_v20 = vpop.f32.mrf.mxu0 }
 0x3a5   : > { %2002 = vmax.xlane.f32.xlu1 %v11477_v36  ;;  %2012 = vmax.xlane.f32.xlu0 %v11480_v31  ;;  %v11485_v1 = vadd.f32 %v1929_v20, %v11395_v61 }
 0x3a6   : > { %v8146_v21 = vpop.f32.mrf.mxu0 }
 0x3a7   : > { %v11488_v5 = vadd.f32 %v8146_v21, %v11382_v43 }
 0x3a8   : > { %v1932_v35 = vpop.f32.mrf.mxu0 }
 0x3a9   : > { %2014 = vmax.xlane.f32.xlu1 %v11488_v5  ;;  %2008 = vmax.xlane.f32.xlu0 %v11485_v1  ;;  %v11493_v40 = vadd.f32 %v1932_v35, %v11400_v53 }
 0x3aa   : > { %v8149_v63 = vpop.f32.mrf.mxu0 }
 0x3ab   : > { %v11497_v39 = vadd.f32 %v8149_v63, %v11413_v48  ;;  %v11512_v63 = vpop.permute.xlu0 %2687 }
 0x3ac   : > { %v1945_v23 = vpop.f32.mrf.mxu0  ;;  %15177 = vst [vmem:[#allocation39_spill] sm:$0xff] %v11512_v63 }
 0x3ad   : > { %2010 = vmax.xlane.f32.xlu1 %v11493_v40  ;;  %v11501_v20 = vadd.f32 %v1945_v23, %v11431_v52  ;;  %v11516_v23 = vpop.permute.xlu1 %2689 }
 0x3ae   : > { %v8150_v21 = vpop.f32.mrf.mxu0  ;;  %15179 = vst [vmem:[#allocation41_spill] sm:$0xff] %v11516_v23 }
 0x3af   : > { %v11505_v7 = vadd.f32 %v8150_v21, %v11418_v33  ;;  %v11514_v48 = vpop.permute.xlu0 %2691 }
 0x3b0   : > { %v1948_v35 = vpop.f32.mrf.mxu0  ;;  %15178 = vst [vmem:[#allocation40_spill] sm:$0xff] %v11514_v48 }
 0x3b1   : > { %2020 = vmax.xlane.f32.xlu1 %v11497_v39  ;;  %v11509_v4 = vadd.f32 %v1948_v35, %v11436_v32  ;;  %v11520_v56 = vpop.permute.xlu1 %2693 }
 0x3b2   : > { %15181 = vst [vmem:[#allocation43_spill] sm:$0xff] %v11520_v56 }
 0x3b3   : > { %v11518_v11 = vpop.permute.xlu0 %2397 }
 0x3b4   : > { %15180 = vst [vmem:[#allocation42_spill] sm:$0xff] %v11518_v11 }
 0x3b5   : > { %2016 = vmax.xlane.f32.xlu1 %v11501_v20  ;;  %v11523_v13 = vpop.permute.xlu1 %2711 }
 0x3b6   : > { %15182 = vst [vmem:[#allocation44_spill] sm:$0xff] %v11523_v13 }
 0x3b9   : > { %2022 = vmax.xlane.f32.xlu1 %v11505_v7 }
 0x3bd   : > { %2018 = vmax.xlane.f32.xlu1 %v11509_v4 }
 0x3e0   : > { %v1965_v21 = vpop.xlane.xlu0 %1964 }
 0x3e1   : > { %v2026_v52 = vsub.f32 %v11310_v16, %v1965_v21 }
 0x3e3   : > { %v2060_v54 = vmul.f32 1.442695, %v2026_v52 }
 0x3e4   : > { %v1961_v35 = vpop.xlane.xlu0 %1960 }
 0x3e5   : > { %9139 = vpow2.f32 %v2060_v54  ;;  %v2024_v28 = vsub.f32 %v11324_v2, %v1961_v35 }
 0x3e6   : > { %v1963_v30 = vpop.xlane.xlu1 %1962 }
 0x3e7   : > { %v2056_v63 = vmul.f32 1.442695, %v2024_v28  ;;  %v2025_v48 = vsub.f32 %v11332_v25, %v1963_v30 }
 0x3e8   : > { %v1967_v61 = vpop.xlane.xlu0 %1966 }
 0x3e9   : > { %9141 = vpow2.f32 %v2056_v63  ;;  %v2027_v23 = vsub.f32 %v11336_v38, %v1967_v61  ;;  %v2058_v49 = vmul.f32 1.442695, %v2025_v48 }
 0x3eb   : > { %v2062_v11 = vmul.f32 1.442695, %v2027_v23 }
 0x3ec   : > { %v1975_v56 = vpop.xlane.xlu1 %1974  ;;  %v1973_v50 = vpop.xlane.xlu0 %1972 }
 0x3ed   : > { %9143 = vpow2.f32 %v2062_v11  ;;  %v2031_v16 = vsub.f32 %v11354_v59, %v1975_v56  ;;  %v2030_v52 = vsub.f32 %v11351_v58, %v1973_v50 }
 0x3ee   : > { %9145 = vpow2.f32 %v2058_v49 }
 0x3ef   : > { %v2068_v54 = vmul.f32 1.442695, %v2030_v52  ;;  %v2070_v28 = vmul.f32 1.442695, %v2031_v16 }
 0x3f0   : > { %v1971_v21 = vpop.xlane.xlu1 %1970  ;;  %v1969_v2 = vpop.xlane.xlu0 %1968 }
 0x3f1   : > { %v2028_v63 = vsub.f32 %v11369_v6, %v1969_v2  ;;  %9147 = vpow2.f32 %v2068_v54  ;;  %v2029_v30 = vsub.f32 %v11372_v60, %v1971_v21 }
 0x3f2   : > { %v11531_v35 = vpop.eup %9139  ;;  %9149 = vpow2.f32 %v2070_v28 }
 0x3f3   : > { %v2064_v25 = vmul.f32 1.442695, %v2028_v63  ;;  %2124 = vadd.xlane.f32.xlu0 %v11531_v35  ;;  %v2066_v50 = vmul.f32 1.442695, %v2029_v30 }
 0x3f4   : > { %v1983_v11 = vpop.xlane.xlu1 %1982  ;;  %v1981_v38 = vpop.xlane.xlu0 %1980 }
 0x3f5   : > { %9151 = vpow2.f32 %v2064_v25  ;;  %v2034_v49 = vsub.f32 %v11387_v3, %v1981_v38  ;;  %v2035_v3 = vsub.f32 %v11390_v46, %v1983_v11 }
 0x3f6   : > { %v11535_v56 = vpop.eup %9141  ;;  %9153 = vpow2.f32 %v2066_v50 }
 0x3f7   : > { %2120 = vadd.xlane.f32.xlu1 %v11535_v56  ;;  %v2076_v60 = vmul.f32 1.442695, %v2034_v49  ;;  %v2078_v63 = vmul.f32 1.442695, %v2035_v3 }
 0x3f8   : > { %v1979_v58 = vpop.xlane.xlu1 %1978  ;;  %v1977_v59 = vpop.xlane.xlu0 %1976 }
 0x3f9   : > { %v2033_v6 = vsub.f32 %v11408_v55, %v1979_v58  ;;  %v2032_v48 = vsub.f32 %v11405_v24, %v1977_v59 }
 0x3fa   : > { %v11540_v61 = vpop.eup %9143 }
 0x3fb   : > { %v2074_v23 = vmul.f32 1.442695, %v2033_v6  ;;  %2126 = vadd.xlane.f32.xlu1 %v11540_v61  ;;  %v11544_v54 = vpop.eup %9145  ;;  %v2072_v21 = vmul.f32 1.442695, %v2032_v48 }
 0x3fc   : > { %v1991_v16 = vpop.xlane.xlu1 %1990  ;;  %v1989_v52 = vpop.xlane.xlu0 %1988 }
 0x3fd   : > { %9155 = vpow2.f32 %v2074_v23  ;;  %v2038_v30 = vsub.f32 %v11423_v27, %v1989_v52  ;;  %v2039_v27 = vsub.f32 %v11426_v45, %v1991_v16 }
 0x3fe   : > { %9157 = vpow2.f32 %v2076_v60  ;;  %v11547_v2 = vpop.eup %9147 }
 0x3ff   : > { %2122 = vadd.xlane.f32.xlu1 %v11544_v54  ;;  %2132 = vadd.xlane.f32.xlu0 %v11547_v2  ;;  %v11552_v28 = vpop.eup %9149  ;;  %9159 = vpow2.f32 %v2072_v21  ;;  %v2084_v38 = vmul.f32 1.442695, %v2038_v30  ;;  %v2086_v6 = vmul.f32 1.442695, %v2039_v27 }
 0x400   : > { %v1987_v55 = vpop.xlane.xlu1 %1986  ;;  %v1985_v11 = vpop.xlane.xlu0 %1984 }
 0x401   : > { %v2037_v24 = vsub.f32 %v11444_v0, %v1987_v55  ;;  %v2036_v50 = vsub.f32 %v11441_v51, %v1985_v11 }
 0x402   : > { %v11555_v25 = vpop.eup %9151 }
 0x403   : > { %v2082_v46 = vmul.f32 1.442695, %v2037_v24  ;;  %2134 = vadd.xlane.f32.xlu0 %v11552_v28  ;;  %2128 = vadd.xlane.f32.xlu1 %v11555_v25  ;;  %v11560_v0 = vpop.eup %9153  ;;  %v2080_v58 = vmul.f32 1.442695, %v2036_v50  ;;  %v11593_v50 = vpop.f32.mrf.mxu1 }
 0x405   : > { %9161 = vpow2.f32 %v2082_v46  ;;  %v11597_v27 = vpop.f32.mrf.mxu1 }
 0x406   : > { %9163 = vpow2.f32 %v2078_v63 }
 0x407   : > { %2130 = vadd.xlane.f32.xlu0 %v11560_v0  ;;  %9165 = vpow2.f32 %v2084_v38 }
 0x408   : > { %9167 = vpow2.f32 %v2080_v58 }
 0x409   : > { %9169 = vpow2.f32 %v2086_v6 }
 0x40a   : > { %v11563_v49 = vpop.eup %9155 }
 0x40b   : > { %v11566_v59 = vpop.eup %9157  ;;  %2138 = vadd.xlane.f32.xlu1 %v11563_v49 }
 0x40c   : > { %15183 = vst [vmem:[#allocation45_spill] sm:$0xff] %v11566_v59  ;;  %2140 = vadd.xlane.f32.xlu0 %v11566_v59  ;;  %v11570_v60 = vpop.eup %9159 }
 0x410   : > { %2136 = vadd.xlane.f32.xlu0 %v11570_v60 }
 0x412   : > { %v11573_v51 = vpop.eup %9161 }
 0x413   : > { %15184 = vst [vmem:[#allocation46_spill] sm:$0xff] %v11573_v51  ;;  %v11575_v48 = vpop.eup %9163  ;;  %2146 = vadd.xlane.f32.xlu1 %v11573_v51 }
 0x414   : > { %15185 = vst [vmem:[#allocation47_spill] sm:$0xff] %v11575_v48  ;;  %2142 = vadd.xlane.f32.xlu0 %v11575_v48  ;;  %v11579_v45 = vpop.eup %9165 }
 0x415   : > { %15186 = vst [vmem:[#allocation48_spill] sm:$0xff] %v11579_v45  ;;  %v11582_v23 = vpop.eup %9167 }
 0x416   : > { %15187 = vst [vmem:[#allocation49_spill] sm:$0xff] %v11582_v23  ;;  %v11585_v52 = vpop.eup %9169 }
 0x417   : > { %15188 = vst [vmem:[#allocation50_spill] sm:$0xff] %v11585_v52 }
 0x418   : > { %2148 = vadd.xlane.f32.xlu0 %v11579_v45 }
 0x41c   : > { %2144 = vadd.xlane.f32.xlu0 %v11582_v23 }
 0x41e   : > { %v1997_v16 = vpop.xlane.xlu0 %1996 }
 0x41f   : > { %v2042_v3 = vsub.f32 %v11449_v42, %v1997_v16 }
 0x420   : > { %2150 = vadd.xlane.f32.xlu0 %v11585_v52 }
 0x421   : > { %v2092_v21 = vmul.f32 1.442695, %v2042_v3 }
 0x422   : > { %v1999_v55 = vpop.xlane.xlu1 %1998  ;;  %v1993_v24 = vpop.xlane.xlu0 %1992 }
 0x423   : > { %9171 = vpow2.f32 %v2092_v21  ;;  %v2040_v63 = vsub.f32 %v11453_v62, %v1993_v24  ;;  %v2043_v30 = vsub.f32 %v11456_v15, %v1999_v55  ;;  %v11604_v15 = vpop.f32.mrf.mxu1 }
 0x424   : > { %2697 = vrot.lane.b32.xlu1 %v11035_v17, %s9954_s8 }
 0x425   : > { %v2088_v46 = vmul.f32 1.442695, %v2040_v63  ;;  %v2094_v38 = vmul.f32 1.442695, %v2043_v30  ;;  %v2623_v3 = vpop.f32.mrf.mxu1 }
 0x426   : > { %v1995_v11 = vpop.xlane.xlu1 %1994  ;;  %v11601_v6 = vpop.xlane.xlu0 %2004  ;;  %v11627_v23 = vadd.f32 %v2623_v3, %v11321_v12 }
 0x427   : > { %9173 = vpow2.f32 %v2088_v46  ;;  %v11613_v63 = vpop.f32.mrf.mxu1  ;;  %v2041_v30 = vsub.f32 %v11461_v57, %v1995_v11 }
 0x428   : > { %9175 = vpow2.f32 %v2094_v38 }
 0x429   : > { %v11621_v13 = vpop.f32.mrf.mxu1 }
 0x42a   : > { %v11595_v42 = vpop.xlane.xlu1 %2006  ;;  %v11609_v21 = vpop.xlane.xlu0 %2000 }
 0x42b   : > { %v8238_v52 = vpop.f32.mrf.mxu1 }
 0x42e   : > { %v2003_v62 = vpop.xlane.xlu1 %2002  ;;  %v11617_v46 = vpop.xlane.xlu0 %2012 }
 0x430   : > { %v11599_v58 = vpop.eup %9171 }
 0x431   : > { %15189 = vst [vmem:[#allocation51_spill] sm:$0xff] %v11599_v58  ;;  %2156 = vadd.xlane.f32.xlu0 %v11599_v58  ;;  %v2090_v58 = vmul.f32 1.442695, %v2041_v30 }
 0x432   : > { %v2015_v55 = vpop.xlane.xlu1 %2014  ;;  %v2009_v45 = vpop.xlane.xlu0 %2008 }
 0x433   : > { %9177 = vpow2.f32 %v2090_v58  ;;  %v2048_v11 = vsub.f32 %v11485_v1, %v2009_v45  ;;  %v2051_v58 = vsub.f32 %v11488_v5, %v2015_v55 }
 0x434   : > { %v11606_v16 = vpop.eup %9173 }
 0x435   : > { %15190 = vst [vmem:[#allocation52_spill] sm:$0xff] %v11606_v16  ;;  %2152 = vadd.xlane.f32.xlu0 %v11606_v16  ;;  %v11611_v24 = vpop.eup %9175  ;;  %v2045_v16 = vsub.f32 %v11477_v36, %v2003_v62  ;;  %v2104_v36 = vmul.f32 1.442695, %v2048_v11  ;;  %v2110_v62 = vmul.f32 1.442695, %v2051_v58 }
 0x436   : > { %15191 = vst [vmem:[#allocation53_spill] sm:$0xff] %v11611_v24  ;;  %v11619_v38 = vpop.xlane.xlu1 %2010 }
 0x437   : > { %v2098_v57 = vmul.f32 1.442695, %v2045_v16 }
 0x439   : > { %2158 = vadd.xlane.f32.xlu0 %v11611_v24  ;;  %v2639_v24 = vpop.f32.mrf.mxu1  ;;  %9179 = vpow2.f32 %v2098_v57 }
 0x43a   : > { %v11624_v51 = vpop.xlane.xlu1 %2020  ;;  %v11632_v59 = vadd.f32 %v2639_v24, %v11364_v22  ;;  %9181 = vpow2.f32 %v2104_v36  ;;  %v11643_v22 = vadd.f32 %v8238_v52, %v11347_v14 }
 0x43b   : > { %9183 = vpow2.f32 %v2110_v62  ;;  %v11646_v3 = vpop.f32.mrf.mxu1 }
 0x43d   : > { %v11651_v55 = vpop.f32.mrf.mxu1 }
 0x43e   : > { %v2017_v48 = vpop.xlane.xlu1 %2016 }
 0x43f   : > { %v2052_v12 = vsub.f32 %v11501_v20, %v2017_v48  ;;  %v8242_v14 = vpop.f32.mrf.mxu1 }
 0x440   : > { %v11637_v16 = vpop.eup %9177 }
 0x441   : > { %v2112_v5 = vmul.f32 1.442695, %v2052_v12  ;;  %v11676_v12 = vadd.f32 %v11597_v27, %v11315_v9  ;;  %v2044_v9 = vsub.f32 %v11469_v44, %v11609_v21 }
 0x442   : > { %v2023_v1 = vpop.xlane.xlu1 %2022 }
 0x443   : > { %v2055_v45 = vsub.f32 %v11505_v7, %v2023_v1  ;;  %9185 = vpow2.f32 %v2112_v5  ;;  %v2655_v7 = vpop.f32.mrf.mxu1  ;;  %v2046_v1 = vsub.f32 %v11464_v41, %v11601_v6  ;;  %v11681_v5 = vadd.f32 %v8242_v14, %v11382_v43 }
 0x444   : > { %v11671_v36 = vadd.f32 %v2655_v7, %v11400_v53  ;;  %v11687_v53 = vadd.f32 %v11593_v50, %v11307_v47  ;;  %v11698_v43 = vadd.f32 %v11604_v15, %v11329_v18  ;;  %v2047_v47 = vsub.f32 %v11472_v8, %v11595_v42 }
 0x445   : > { %v2118_v20 = vmul.f32 1.442695, %v2055_v45  ;;  %v11662_v57 = vpop.f32.mrf.mxu1  ;;  %v2096_v41 = vmul.f32 1.442695, %v2044_v9  ;;  %v2050_v18 = vsub.f32 %v11480_v31, %v11617_v46  ;;  %v2049_v8 = vsub.f32 %v11493_v40, %v11619_v38 }
 0x446   : > { %v11649_v48 = vpop.eup %9179  ;;  %v2102_v44 = vmul.f32 1.442695, %v2047_v47  ;;  %v11718_v42 = vadd.f32 %v11613_v63, %v11342_v19 }
 0x447   : > { %9187 = vpow2.f32 %v2118_v20  ;;  %v11654_v24 = vpop.eup %9181  ;;  %v11667_v58 = vpop.f32.mrf.mxu1  ;;  %v2100_v20 = vmul.f32 1.442695, %v2046_v1  ;;  %v2108_v6 = vmul.f32 1.442695, %v2050_v18 }
 0x448   : > { %2862 = vmax.xlane.f32.xlu1 %v11627_v23  ;;  %v11657_v52 = vpop.eup %9183 }
 0x449   : > { %v8246_v62 = vpop.f32.mrf.mxu1  ;;  %9189 = vpow2.f32 %v2100_v20 }
 0x44a   : > { %v11703_v50 = vadd.f32 %v8246_v62, %v11418_v33  ;;  %9191 = vpow2.f32 %v2096_v41  ;;  %v2019_v33 = vpop.xlane.xlu1 %2018 }
 0x44b   : > { %v2671_v45 = vpop.f32.mrf.mxu1  ;;  %9193 = vpow2.f32 %v2102_v44  ;;  %v2053_v19 = vsub.f32 %v11509_v4, %v2019_v33 }
 0x44c   : > { %2870 = vmax.xlane.f32.xlu1 %v11632_v59  ;;  %v11692_v27 = vadd.f32 %v2671_v45, %v11436_v32  ;;  %v11709_v32 = vadd.f32 %v11621_v13, %v11359_v10  ;;  %v2054_v13 = vsub.f32 %v11497_v39, %v11624_v51  ;;  %v2106_v10 = vmul.f32 1.442695, %v2049_v8  ;;  %v15192_v8 = vld [vmem:[#allocation10_spill] sm:$0xff] }
 0x44d   : > { %9195 = vpow2.f32 %v2108_v6  ;;  %v2114_v51 = vmul.f32 1.442695, %v2053_v19 }
 0x44e   : > { %v2116_v31 = vmul.f32 1.442695, %v2054_v13  ;;  %9197 = vpow2.f32 %v2106_v10 }
 0x44f   : > { %2695 = vrot.lane.b32.xlu0 %v11044_v29, %s9954_s8  ;;  %s9955_s8 = smov 56  }
 0x450   : > { %2154 = vadd.xlane.f32.xlu1 %v11637_v16  ;;  %v11660_v30 = vpop.eup %9185  ;;  %9199 = vpow2.f32 %v2116_v31 }
 0x454   : > { %2874 = vmax.xlane.f32.xlu1 %v11643_v22  ;;  %v11665_v11 = vpop.eup %9187 }
 0x456   : > { %v11723_v21 = vpop.eup %9189 }
 0x457   : > { %v11727_v46 = vpop.eup %9191 }
 0x458   : > { %2162 = vadd.xlane.f32.xlu1 %v11649_v48  ;;  %v11732_v14 = vpop.eup %9193 }
 0x45a   : > { %v11737_v62 = vpop.eup %9195 }
 0x45b   : > { %v11740_v1 = vpop.eup %9197 }
 0x45c   : > { %2168 = vadd.xlane.f32.xlu1 %v11654_v24 }
 0x45d   : > { %v11744_v20 = vpop.eup %9199 }
 0x460   : > { %2174 = vadd.xlane.f32.xlu1 %v11657_v52 }
 0x464   : > { %2176 = vadd.xlane.f32.xlu1 %v11660_v30 }
 0x468   : > { %2182 = vadd.xlane.f32.xlu1 %v11665_v11 }
 0x46c   : > { %2878 = vmax.xlane.f32.xlu1 %v11671_v36 }
 0x46e   : > { %2860 = vmax.xlane.f32.xlu0 %v11676_v12 }
 0x470   : > { %2882 = vmax.xlane.f32.xlu1 %v11681_v5 }
 0x472   : > { %2864 = vmax.xlane.f32.xlu0 %v11687_v53 }
 0x474   : > { %2886 = vmax.xlane.f32.xlu1 %v11692_v27 }
 0x476   : > { %2866 = vmax.xlane.f32.xlu0 %v11698_v43 }
 0x478   : > { %2890 = vmax.xlane.f32.xlu1 %v11703_v50 }
 0x47a   : > { %2868 = vmax.xlane.f32.xlu0 %v11709_v32 }
 0x47c   : > { %v2125_v63 = vpop.xlane.xlu0 %2124 }
 0x47e   : > { %2872 = vmax.xlane.f32.xlu0 %v11718_v42 }
 0x480   : > { %v2121_v15 = vpop.xlane.xlu1 %2120 }
 0x482   : > { %2164 = vadd.xlane.f32.xlu0 %v11723_v21 }
 0x484   : > { %v2127_v40 = vpop.xlane.xlu1 %2126 }
 0x485   : > { %9201 = vrcp.f32 %v2127_v40  ;;  %v15193_v40 = vld [vmem:[#allocation12_spill] sm:$0xff] }
 0x486   : > { %9203 = vrcp.f32 %v2121_v15  ;;  %2160 = vadd.xlane.f32.xlu0 %v11727_v46 }
 0x487   : > { %9205 = vrcp.f32 %v2125_v63 }
 0x488   : > { %v2123_v39 = vpop.xlane.xlu1 %2122  ;;  %v2133_v38 = vpop.xlane.xlu0 %2132 }
 0x489   : > { %9207 = vrcp.f32 %v2123_v39  ;;  %3176 = vrot.lane.b32.xlu1 %v10966_v37, %s9955_s8 }
 0x48a   : > { %2166 = vadd.xlane.f32.xlu0 %v11732_v14  ;;  %9209 = vpow2.f32 %v2114_v51 }
 0x48c   : > { %v2129_v4 = vpop.xlane.xlu1 %2128  ;;  %v2135_v7 = vpop.xlane.xlu0 %2134 }
 0x48d   : > { %3174 = vrot.lane.b32.xlu1 %v10977_v34, %s9955_s8  ;;  %9211 = vrcp.f32 %v2135_v7 }
 0x48e   : > { %2172 = vadd.xlane.f32.xlu0 %v11737_v62  ;;  %9213 = vrcp.f32 %v2129_v4  ;;  %v15196_v4 = vld [vmem:[#allocation5_spill] sm:$0xff] }
 0x48f   : > { %9215 = vrcp.f32 %v2133_v38 }
 0x490   : > { %v2131_v45 = vpop.xlane.xlu0 %2130 }
 0x491   : > { %3172 = vrot.lane.b32.xlu1 %v10989_v26, %s9955_s8  ;;  %9217 = vrcp.f32 %v2131_v45  ;;  %v15197_v45 = vld [vmem:[#allocation42_spill] sm:$0xff] }
 0x492   : > { %v9202_v9 = vpop.eup %9201  ;;  %2170 = vadd.xlane.f32.xlu0 %v11740_v1 }
 0x493   : > { %v9204_v47 = vpop.eup %9203  ;;  %v2219_v6 = vmul.f32 %v9202_v9, %v11540_v61 }
 0x494   : > { %v9206_v41 = vpop.eup %9205  ;;  %v2139_v44 = vpop.xlane.xlu1 %2138  ;;  %v2216_v13 = vmul.f32 %v9204_v47, %v11535_v56 }
 0x495   : > { %v2141_v18 = vpop.xlane.xlu0 %2140  ;;  %3168 = vrot.lane.b32.xlu1 %v15192_v8, %s9955_s8  ;;  %9219 = vrcp.f32 %v2139_v44  ;;  %v2218_v15 = vmul.f32 %v9206_v41, %v11531_v35  ;;  %v15195_v35 = vld [vmem:[#allocation21_spill] sm:$0xff]  ;;  %v15198_v44 = vld [vmem:[#allocation35_spill] sm:$0xff] }
 0x496   : > { %v9208_v33 = vpop.eup %9207  ;;  %2180 = vadd.xlane.f32.xlu0 %v11744_v20 }
 0x497   : > { %v2217_v10 = vmul.f32 %v9208_v33, %v11544_v54  ;;  %v11756_v63 = vpop.eup %9209  ;;  %v2249_v39 = vpack.c.bf16 %v2219_v6, %v2218_v15  ;;  %v15194_v54 = vld [vmem:[#allocation36_spill] sm:$0xff] }
 0x498   : > { %v11761_v51 = vadd.f32 %v11651_v55, %v15194_v54  ;;  %v15203_v54 = vld [vmem:[#allocation37_spill] sm:$0xff] }
 0x499   : > { %v2137_v31 = vpop.xlane.xlu0 %2136  ;;  %3166 = vrot.lane.b32.xlu1 %v15193_v40, %s9955_s8  ;;  %v2248_v19 = vpack.c.bf16 %v2217_v10, %v2216_v13  ;;  %v15199_v10 = vld [vmem:[#allocation22_spill] sm:$0xff] }
 0x49a   : > { %9221 = vrcp.f32 %v2137_v31  ;;  %2178 = vadd.xlane.f32.xlu0 %v11756_v63  ;;  %v9212_v61 = vpop.eup %9211 }
 0x49b   : > { %8167 = vmatprep.mubr.bf16.mxu0 %v2248_v19  ;;  %9223 = vrcp.f32 %v2141_v18  ;;  %v9214_v56 = vpop.eup %9213  ;;  %v2223_v47 = vmul.f32 %v9212_v61, %v11552_v28  ;;  %v11773_v18 = vadd.f32 %v11646_v3, %v15198_v44  ;;  %v15200_v3 = vld [vmem:[#allocation38_spill] sm:$0xff]  ;;  %v15208_v44 = vld [vmem:[#allocation20_spill] sm:$0xff] }
 0x49c   : > { %8168 = vmatmul.mubr.bf16.vlgmr.msra.gmra.mxu0 %v2249_v39  ;;  %v9216_v7 = vpop.eup %9215  ;;  %v2220_v41 = vmul.f32 %v9214_v56, %v11555_v25  ;;  %v2147_v33 = vpop.xlane.xlu1 %2146  ;;  %v11783_v15 = vadd.f32 %v11667_v58, %v15200_v3  ;;  %v15201_v19 = vld [vmem:[#allocation6_spill] sm:$0xff]  ;;  %v15202_v39 = vld [vmem:[#allocation23_spill] sm:$0xff] }
 0x49d   : > { %8184 = vmatpush3.bf16.msra.mxu0 %v15195_v35  ;;  %v2143_v38 = vpop.xlane.xlu0 %2142  ;;  %3164 = vrot.lane.b32.xlu1 %v15196_v4, %s9955_s8  ;;  %v2222_v13 = vmul.f32 %v9216_v7, %v11547_v2  ;;  %v11794_v35 = vadd.f32 %v11662_v57, %v15203_v54  ;;  %v15204_v7 = vld [vmem:[#allocation17_spill] sm:$0xff]  ;;  %v15215_v54 = vld [vmem:[#allocation50_spill] sm:$0xff] }
 0x49e   : > { %9225 = vrcp.f32 %v2143_v38  ;;  %8185 = vmatprep.subr.bf16.mxu0 %v15197_v45  ;;  %v9218_v9 = vpop.eup %9217  ;;  %2876 = vmax.xlane.f32.xlu0 %v11761_v51 }
 0x49f   : > { %v2221_v55 = vmul.f32 %v9218_v9, %v11560_v0  ;;  %v2251_v25 = vpack.c.bf16 %v2223_v47, %v2222_v13  ;;  %9227 = vrcp.f32 %v2147_v33  ;;  %v15205_v47 = vld [vmem:[#allocation19_spill] sm:$0xff] }
 0x4a1   : > { %8186 = vmatpush3.bf16.msra.mxu0 %v15197_v45  ;;  %v2149_v6 = vpop.xlane.xlu0 %2148  ;;  %3299 = vrot.lane.b32.xlu1 %v11035_v17, %s9955_s8  ;;  %v2250_v28 = vpack.c.bf16 %v2221_v55, %v2220_v41  ;;  %v15207_v41 = vld [vmem:[#allocation47_spill] sm:$0xff] }
 0x4a2   : > { %8187 = vmatprep.subr.bf16.mxu0 %v15199_v10  ;;  %2880 = vmax.xlane.f32.xlu0 %v11773_v18  ;;  %v9220_v0 = vpop.eup %9219 }
 0x4a3   : > { %8171 = vmatprep.mubr.bf16.mxu0 %v2250_v28  ;;  %v2225_v58 = vmul.f32 %v9220_v0, %v11563_v49  ;;  %v15206_v49 = vld [vmem:[#allocation45_spill] sm:$0xff]  ;;  %v15212_v0 = vld [vmem:[#allocation46_spill] sm:$0xff] }
 0x4a4   : > { %8172 = vmatmul.mubr.bf16.gmra.mxu0 %v2251_v25  ;;  %v15211_v28 = vld [vmem:[#allocation49_spill] sm:$0xff] }
 0x4a5   : > { %v2145_v31 = vpop.xlane.xlu0 %2144  ;;  %3436 = vrot.lane.b32.xlu1 %v15201_v19, %s9956_s20  ;;  %8188 = vmatpush3.bf16.msra.mxu0 %v15199_v10  ;;  %v15210_v10 = vld [vmem:[#allocation24_spill] sm:$0xff] }
 0x4a6   : > { %9229 = vrcp.f32 %v2145_v31  ;;  %8189 = vmatprep.subr.bf16.mxu0 %v15202_v39  ;;  %2884 = vmax.xlane.f32.xlu0 %v11783_v15 }
 0x4a7   : > { %v9222_v2 = vpop.eup %9221  ;;  %9231 = vrcp.f32 %v2149_v6  ;;  %v15209_v6 = vld [vmem:[#allocation18_spill] sm:$0xff] }
 0x4a8   : > { %v2224_v61 = vmul.f32 %v9222_v2, %v11570_v60  ;;  %v9224_v56 = vpop.eup %9223 }
 0x4a9   : > { %v2151_v38 = vpop.xlane.xlu0 %2150  ;;  %3295 = vrot.lane.b32.xlu1 %v15204_v7, %s9955_s8  ;;  %8190 = vmatpush3.bf16.msra.mxu0 %v15202_v39  ;;  %v2226_v60 = vmul.f32 %v9224_v56, %v15206_v49 }
 0x4aa   : > { %9233 = vrcp.f32 %v2151_v38  ;;  %v2252_v45 = vpack.c.bf16 %v2225_v58, %v2224_v61  ;;  %8191 = vmatprep.subr.bf16.mxu0 %v15205_v47  ;;  %2888 = vmax.xlane.f32.xlu0 %v11794_v35  ;;  %v15213_v61 = vld [vmem:[#allocation25_spill] sm:$0xff]  ;;  %v15214_v58 = vld [vmem:[#allocation48_spill] sm:$0xff] }
 0x4ab   : > { %v9226_v9 = vpop.eup %9225 }
 0x4ac   : > { %8175 = vmatprep.mubr.bf16.mxu0 %v2252_v45  ;;  %v2227_v55 = vmul.f32 %v9226_v9, %v15207_v41  ;;  %v9228_v33 = vpop.eup %9227  ;;  %v15216_v9 = vld [vmem:[#allocation26_spill] sm:$0xff] }
 0x4ad   : > { %3434 = vrot.lane.b32.xlu1 %v10966_v37, %s9956_s20  ;;  %8192 = vmatpush3.bf16.msra.mxu0 %v15205_v47  ;;  %v2229_v3 = vmul.f32 %v9228_v33, %v15212_v0  ;;  %v15217_v47 = vld [vmem:[#allocation8_spill] sm:$0xff]  ;;  %v15218_v41 = vld [vmem:[#allocation14_spill] sm:$0xff] }
 0x4ae   : > { %v2253_v57 = vpack.c.bf16 %v2227_v55, %v2226_v60  ;;  %8193 = vmatprep.subr.bf16.mxu0 %v15208_v44  ;;  %v11828_v60 = vpop.permute.xlu1 %2697 }
 0x4b0   : > { %8176 = vmatmul.mubr.bf16.gmra.mxu0 %v2253_v57 }
 0x4b1   : > { %3293 = vrot.lane.b32.xlu1 %v15209_v6, %s9955_s8  ;;  %8194 = vmatpush3.bf16.msra.mxu0 %v15208_v44 }
 0x4b2   : > { %8195 = vmatprep.subr.bf16.mxu0 %v15210_v10 }
 0x4b3   : > { %v9230_v13 = vpop.eup %9229 }
 0x4b4   : > { %v2228_v25 = vmul.f32 %v9230_v13, %v15211_v28  ;;  %v9232_v31 = vpop.eup %9231 }
 0x4b5   : > { %3432 = vrot.lane.b32.xlu1 %v10977_v34, %s9956_s20  ;;  %8196 = vmatpush3.bf16.msra.mxu0 %v15210_v10  ;;  %v2230_v56 = vmul.f32 %v9232_v31, %v15214_v58  ;;  %v15222_v34 = vld [vmem:[#allocation44_spill] sm:$0xff] }
 0x4b6   : > { %v2254_v2 = vpack.c.bf16 %v2229_v3, %v2228_v25  ;;  %8197 = vmatprep.subr.bf16.mxu0 %v15213_v61 }
 0x4b7   : > { %v9234_v39 = vpop.eup %9233 }
 0x4b8   : > { %8179 = vmatprep.mubr.bf16.mxu0 %v2254_v2  ;;  %v2231_v38 = vmul.f32 %v9234_v39, %v15215_v54  ;;  %v15219_v39 = vld [vmem:[#allocation53_spill] sm:$0xff] }
 0x4b9   : > { %8198 = vmatpush3.bf16.msra.mxu0 %v15213_v61 }
 0x4ba   : > { %v2255_v45 = vpack.c.bf16 %v2231_v38, %v2230_v56  ;;  %8743 = vmatprep.subr.msk.bf16.mxu0 %vm1645_vm2, %v15216_v9  ;;  %v2157_v49 = vpop.xlane.xlu0 %2156  ;;  %v15220_v56 = vld [vmem:[#allocation52_spill] sm:$0xff] }
 0x4bc   : > { %8180 = vmatmul.mubr.bf16.gmra.mxu0 %v2255_v45  ;;  %v15221_v45 = vld [vmem:[#allocation51_spill] sm:$0xff] }
 0x4be   : > { %v2153_v55 = vpop.xlane.xlu0 %2152 }
 0x4c0   : > { %3178 = vrot.lane.b32.xlu0 %v15201_v19, %s9955_s8  ;;  %v2761_v19 = vsel %vm1645_vm2, %v15216_v9, 0 }
 0x4c2   : > { %v2159_v44 = vpop.xlane.xlu0 %2158 }
 0x4c3   : > { %9235 = vrcp.f32 %v2159_v44 }
 0x4c4   : > { %3170 = vrot.lane.b32.xlu0 %v15217_v47, %s9955_s8  ;;  %9237 = vrcp.f32 %v2153_v55 }
 0x4c5   : > { %9239 = vrcp.f32 %v2157_v49 }
 0x4c8   : > { %3297 = vrot.lane.b32.xlu0 %v11044_v29, %s9955_s8 }
 0x4cc   : > { %3291 = vrot.lane.b32.xlu0 %v15218_v41, %s9955_s8 }
 0x4d0   : > { %v9236_v25 = vpop.eup %9235 }
 0x4d1   : > { %v2863_v57 = vpop.xlane.xlu1 %2862  ;;  %v9238_v3 = vpop.eup %9237  ;;  %v2235_v61 = vmul.f32 %v9236_v25, %v15219_v39 }
 0x4d2   : > { %v9240_v31 = vpop.eup %9239  ;;  %v2232_v54 = vmul.f32 %v9238_v3, %v15220_v56  ;;  %v11852_v3 = vpop.permute.xlu0 %2695 }
 0x4d3   : > { %v2234_v49 = vmul.f32 %v9240_v31, %v15221_v45  ;;  %v2758_v31 = vsel %vm1645_vm2, %v15222_v34, 0 }
 0x4d5   : > { %v2871_v33 = vpop.xlane.xlu1 %2870  ;;  %v2257_v44 = vpack.c.bf16 %v2235_v61, %v2234_v49  ;;  %v15224_v49 = vld [vmem:[#allocation28_spill] sm:$0xff] }
 0x4d9   : > { %v2155_v13 = vpop.xlane.xlu1 %2154 }
 0x4da   : > { %9241 = vrcp.f32 %v2155_v13 }
 0x4dd   : > { %v11832_v10 = vpop.xlane.xlu1 %2874 }
 0x4e1   : > { %v11834_v28 = vpop.xlane.xlu1 %2162 }
 0x4e5   : > { %v11836_v0 = vpop.xlane.xlu1 %2168 }
 0x4e7   : > { %v9242_v2 = vpop.eup %9241 }
 0x4e8   : > { %v2233_v38 = vmul.f32 %v9242_v2, %v11637_v16  ;;  %v15223_v2 = vld [vmem:[#allocation27_spill] sm:$0xff] }
 0x4e9   : > { %v11839_v58 = vpop.xlane.xlu1 %2174  ;;  %v2755_v45 = vsel %vm1645_vm2, %v15223_v2, 0 }
 0x4ea   : > { %v2256_v55 = vpack.c.bf16 %v2233_v38, %v2232_v54 }
 0x4ec   : > { %8199 = vmatprep.mubr.bf16.mxu0 %v2256_v55 }
 0x4ed   : > { %v11844_v13 = vpop.xlane.xlu1 %2176  ;;  %8200 = vmatmul.mubr.bf16.vlgmr.msra.gmra.mxu0 %v2257_v44  ;;  %v2925_v44 = vsub.f32 %v11627_v23, %v2863_v57  ;;  %v15225_v57 = vld [vmem:[#allocation29_spill] sm:$0xff] }
 0x4ee   : > { %8248 = vmatpush3.bf16.xpose.msra.mxu0 %v2761_v19 }
 0x4ef   : > { %8744 = vmatprep.subr.msk.bf16.mxu0 %vm1645_vm2, %v15222_v34 }
 0x4f1   : > { %v11850_v25 = vpop.xlane.xlu1 %2182 }
 0x4f5   : > { %v11854_v16 = vpop.xlane.xlu1 %2878 }
 0x4f6   : > { %8250 = vmatpush3.bf16.xpose.msra.mxu0 %v2758_v31 }
 0x4f7   : > { %8745 = vmatprep.subr.msk.bf16.mxu0 %vm1645_vm2, %v15223_v2  ;;  %v2861_v39 = vpop.xlane.xlu0 %2860 }
 0x4f8   : > { %v2924_v19 = vsub.f32 %v11676_v12, %v2861_v39 }
 0x4f9   : > { %v11860_v61 = vpop.xlane.xlu1 %2882 }
 0x4fa   : > { %v2956_v9 = vmul.f32 1.442695, %v2924_v19  ;;  %v2929_v19 = vsub.f32 %v11632_v59, %v2871_v33 }
 0x4fb   : > { %v2865_v56 = vpop.xlane.xlu0 %2864 }
 0x4fc   : > { %9243 = vpow2.f32 %v2956_v9  ;;  %v2926_v38 = vsub.f32 %v11687_v53, %v2865_v56  ;;  %v2958_v9 = vmul.f32 1.442695, %v2925_v44  ;;  %v2752_v56 = vsel %vm1645_vm2, %v15224_v49, 0 }
 0x4fd   : > { %v11863_v54 = vpop.xlane.xlu1 %2886 }
 0x4fe   : > { %8252 = vmatpush3.bf16.xpose.msra.mxu0 %v2755_v45  ;;  %v2960_v34 = vmul.f32 1.442695, %v2926_v38  ;;  %v2966_v38 = vmul.f32 1.442695, %v2929_v19  ;;  %v15226_v19 = vld [vmem:[#allocation31_spill] sm:$0xff] }
 0x4ff   : > { %8746 = vmatprep.subr.msk.bf16.mxu0 %vm1645_vm2, %v15224_v49  ;;  %v2867_v55 = vpop.xlane.xlu0 %2866  ;;  %v2931_v49 = vsub.f32 %v11643_v22, %v11832_v10 }
 0x500   : > { %9245 = vpow2.f32 %v2960_v34  ;;  %v2927_v31 = vsub.f32 %v11698_v43, %v2867_v55 }
 0x501   : > { %v11871_v12 = vpop.xlane.xlu1 %2890 }
 0x502   : > { %v2962_v39 = vmul.f32 1.442695, %v2927_v31  ;;  %v2749_v31 = vsel %vm1645_vm2, %v15225_v57, 0 }
 0x503   : > { %v2869_v53 = vpop.xlane.xlu0 %2868 }
 0x504   : > { %9247 = vpow2.f32 %v2962_v39  ;;  %v2928_v23 = vsub.f32 %v11709_v32, %v2869_v53  ;;  %v2970_v39 = vmul.f32 1.442695, %v2931_v49 }
 0x505   : > { %v11875_v2 = vpop.permute.xlu1 %3176  ;;  %9249 = vpow2.f32 %v2958_v9 }
 0x506   : > { %8254 = vmatpush3.bf16.xpose.msra.mxu0 %v2752_v56  ;;  %9251 = vpow2.f32 %v2966_v38  ;;  %v2964_v55 = vmul.f32 1.442695, %v2928_v23  ;;  %v2746_v56 = vsel %vm1645_vm2, %v15226_v19, 0  ;;  %v15227_v38 = vld [vmem:[#allocation30_spill] sm:$0xff] }
 0x507   : > { %8747 = vmatprep.subr.msk.bf16.mxu0 %vm1645_vm2, %v15225_v57  ;;  %v2873_v45 = vpop.xlane.xlu0 %2872 }
 0x508   : > { %v2930_v59 = vsub.f32 %v11718_v42, %v2873_v45 }
 0x509   : > { %v11882_v43 = vpop.permute.xlu1 %3174  ;;  %v11885_v33 = vpop.eup %9243 }
 0x50a   : > { %v2968_v34 = vmul.f32 1.442695, %v2930_v59  ;;  %3020 = vadd.xlane.f32.xlu1 %v11885_v33 }
 0x50b   : > { %v2165_v32 = vpop.xlane.xlu0 %2164 }
 0x50c   : > { %9253 = vpow2.f32 %v2968_v34 }
 0x50d   : > { %v11890_v44 = vpop.eup %9245  ;;  %9255 = vrcp.f32 %v11834_v28  ;;  %v11895_v42 = vpop.permute.xlu1 %3172 }
 0x50e   : > { %8256 = vmatpush3.bf16.xpose.msra.mxu0 %v2749_v31  ;;  %3024 = vadd.xlane.f32.xlu0 %v11890_v44  ;;  %9257 = vpow2.f32 %v2964_v55  ;;  %v2743_v31 = vsel %vm1645_vm2, %v15227_v38, 0 }
 0x50f   : > { %8748 = vmatprep.subr.msk.bf16.mxu0 %vm1645_vm2, %v15226_v19  ;;  %v2161_v22 = vpop.xlane.xlu0 %2160 }
 0x510   : > { %9259 = vrcp.f32 %v2161_v22  ;;  %v15228_v22 = vld [vmem:[#allocation33_spill] sm:$0xff] }
 0x511   : > { %v11900_v10 = vpop.eup %9247  ;;  %9261 = vrcp.f32 %v2165_v32  ;;  %v11903_v28 = vpop.permute.xlu1 %3168 }
 0x512   : > { %3026 = vadd.xlane.f32.xlu1 %v11900_v10  ;;  %9263 = vpow2.f32 %v2970_v39  ;;  %v11905_v9 = vpop.eup %9249 }
 0x513   : > { %v2167_v53 = vpop.xlane.xlu0 %2166  ;;  %v11912_v57 = vpop.eup %9251 }
 0x514   : > { %9265 = vrcp.f32 %v2167_v53 }
 0x515   : > { %v11917_v59 = vpop.permute.xlu1 %3166 }
 0x516   : > { %8258 = vmatpush3.bf16.xpose.msra.mxu0 %v2746_v56  ;;  %3022 = vadd.xlane.f32.xlu1 %v11905_v9 }
 0x517   : > { %8749 = vmatprep.subr.msk.bf16.mxu0 %vm1645_vm2, %v15227_v38  ;;  %v2173_v23 = vpop.xlane.xlu0 %2172 }
 0x518   : > { %9267 = vrcp.f32 %v2173_v23 }
 0x519   : > { %v11914_v45 = vpop.eup %9253  ;;  %9269 = vrcp.f32 %v11836_v0  ;;  %v11933_v56 = vpop.permute.xlu1 %3164 }
 0x51a   : > { %3030 = vadd.xlane.f32.xlu1 %v11912_v57  ;;  %3032 = vadd.xlane.f32.xlu0 %v11914_v45  ;;  %v9256_v34 = vpop.eup %9255  ;;  %9271 = vrcp.f32 %v11839_v58 }
 0x51b   : > { %v2171_v49 = vpop.xlane.xlu0 %2170  ;;  %v11922_v55 = vpop.eup %9257  ;;  %v2237_v39 = vmul.f32 %v9256_v34, %v11649_v48 }
 0x51c   : > { %9273 = vrcp.f32 %v2171_v49 }
 0x51d   : > { %v9260_v32 = vpop.eup %9259 }
 0x51e   : > { %8260 = vmatpush3.bf16.xpose.msra.mxu0 %v2743_v31  ;;  %3028 = vadd.xlane.f32.xlu0 %v11922_v55  ;;  %v2236_v0 = vmul.f32 %v9260_v32, %v11727_v46  ;;  %v9262_v19 = vpop.eup %9261  ;;  %v2740_v32 = vsel %vm1645_vm2, %v15228_v22, 0 }
 0x51f   : > { %8750 = vmatprep.subr.msk.bf16.mxu0 %vm1645_vm2, %v15228_v22  ;;  %v2181_v58 = vpop.xlane.xlu0 %2180  ;;  %v11931_v53 = vpop.eup %9263  ;;  %v2238_v46 = vmul.f32 %v9262_v19, %v11723_v21 }
 0x520   : > { %v2258_v23 = vpack.c.bf16 %v2237_v39, %v2236_v0  ;;  %9275 = vrcp.f32 %v2181_v58  ;;  %v3300_v0 = vpop.permute.xlu1 %3299 }
 0x521   : > { %v9266_v49 = vpop.eup %9265  ;;  %9277 = vrcp.f32 %v11844_v13  ;;  %v2935_v13 = vsub.f32 %v11681_v5, %v11860_v61  ;;  %v2933_v5 = vsub.f32 %v11671_v36, %v11854_v16 }
 0x522   : > { %3034 = vadd.xlane.f32.xlu0 %v11931_v53  ;;  %8203 = vmatprep.mubr.bf16.mxu0 %v2258_v23  ;;  %v2239_v48 = vmul.f32 %v9266_v49, %v11732_v14  ;;  %9279 = vrcp.f32 %v11850_v25 }
 0x523   : > { %v2179_v38 = vpop.xlane.xlu0 %2178 }
 0x524   : > { %9281 = vrcp.f32 %v2179_v38  ;;  %v2259_v34 = vpack.c.bf16 %v2239_v48, %v2238_v46  ;;  %v2978_v46 = vmul.f32 1.442695, %v2935_v13 }
 0x525   : > { %v9268_v31 = vpop.eup %9267 }
 0x526   : > { %8262 = vmatpush3.bf16.xpose.msra.mxu0 %v2740_v32  ;;  %v9270_v39 = vpop.eup %9269  ;;  %v2242_v58 = vmul.f32 %v9268_v31, %v11737_v62  ;;  %v2974_v31 = vmul.f32 1.442695, %v2933_v5 }
 0x527   : > { %8311 = vmatprep.subr.bf16.mxu0 %v3300_v0  ;;  %8204 = vmatmul.mubr.bf16.gmra.mxu0 %v2259_v34  ;;  %v2877_v21 = vpop.xlane.xlu0 %2876  ;;  %v9272_v19 = vpop.eup %9271  ;;  %v2240_v49 = vmul.f32 %v9270_v39, %v11654_v24 }
 0x528   : > { %v2932_v14 = vsub.f32 %v11761_v51, %v2877_v21  ;;  %v2243_v38 = vmul.f32 %v9272_v19, %v11657_v52 }
 0x529   : > { %v9274_v25 = vpop.eup %9273 }
 0x52a   : > { %v2972_v23 = vmul.f32 1.442695, %v2932_v14  ;;  %v2241_v22 = vmul.f32 %v9274_v25, %v11740_v1  ;;  %v2261_v51 = vpack.c.bf16 %v2243_v38, %v2242_v58  ;;  %v11960_v25 = vpop.permute.xlu1 %3436 }
 0x52b   : > { %v2881_v48 = vpop.xlane.xlu0 %2880 }
 0x52c   : > { %9283 = vpow2.f32 %v2972_v23  ;;  %v2934_v61 = vsub.f32 %v11773_v18, %v2881_v48  ;;  %v2260_v34 = vpack.c.bf16 %v2241_v22, %v2240_v49  ;;  %v15229_v23 = vld [vmem:[#allocation32_spill] sm:$0xff]  ;;  %v15230_v22 = vld [vmem:[#allocation34_spill] sm:$0xff]  ;;  %v15231_v48 = vld [vmem:[#allocation39_spill] sm:$0xff] }
 0x52d   : > { %v9276_v32 = vpop.eup %9275  ;;  %9285 = vpow2.f32 %v2978_v46 }
 0x52e   : > { %v2976_v21 = vmul.f32 1.442695, %v2934_v61  ;;  %8207 = vmatprep.mubr.bf16.mxu0 %v2260_v34  ;;  %v9278_v62 = vpop.eup %9277  ;;  %v2246_v39 = vmul.f32 %v9276_v32, %v11744_v20  ;;  %v15233_v61 = vld [vmem:[#allocation40_spill] sm:$0xff]  ;;  %v15235_v34 = vld [vmem:[#allocation15_spill] sm:$0xff] }
 0x52f   : > { %8208 = vmatmul.mubr.bf16.gmra.mxu0 %v2261_v51  ;;  %v11952_v24 = vpop.xlane.xlu0 %2884  ;;  %v9280_v1 = vpop.eup %9279  ;;  %v2244_v36 = vmul.f32 %v9278_v62, %v11660_v30 }
 0x530   : > { %9287 = vpow2.f32 %v2976_v21  ;;  %v2247_v13 = vmul.f32 %v9280_v1, %v11665_v11  ;;  %v2939_v21 = vsub.f32 %v11703_v50, %v11871_v12  ;;  %v15237_v50 = vld [vmem:[#allocation13_spill] sm:$0xff] }
 0x531   : > { %v9282_v52 = vpop.eup %9281  ;;  %9289 = vpow2.f32 %v2974_v31 }
 0x532   : > { %v2245_v18 = vmul.f32 %v9282_v52, %v11756_v63  ;;  %v2263_v14 = vpack.c.bf16 %v2247_v13, %v2246_v39  ;;  %v3296_v63 = vpop.permute.xlu1 %3295  ;;  %v2986_v62 = vmul.f32 1.442695, %v2939_v21  ;;  %v15245_v21 = vld [vmem:[#allocation9_spill] sm:$0xff] }
 0x533   : > { %v11957_v16 = vpop.xlane.xlu0 %2888 }
 0x534   : > { %v2262_v19 = vpack.c.bf16 %v2245_v18, %v2244_v36 }
 0x536   : > { %8211 = vmatprep.mubr.bf16.mxu0 %v2262_v19 }
 0x537   : > { %8212 = vmatmul.mubr.bf16.gmra.mxu0 %v2263_v14  ;;  %v3179_v58 = vpop.permute.xlu0 %3178 }
 0x538   : > { %8263 = vmatprep.mubr.msk.bf16.mxu0 %vm1645_vm2, %v15229_v23  ;;  %8279 = vmatprep.subr.bf16.mxu1 %v3179_v58 }
 0x539   : > { %v11964_v20 = vpop.eup %9283  ;;  %8280 = vmatpush3.bf16.msra.mxu1 %v3179_v58 }
 0x53a   : > { %3036 = vadd.xlane.f32.xlu1 %v11964_v20  ;;  %8281 = vmatprep.subr.bf16.mxu1 %v11875_v2  ;;  %v11968_v11 = vpop.eup %9285 }
 0x53b   : > { %v3171_v30 = vpop.permute.xlu0 %3170 }
 0x53d   : > { %v11970_v49 = vpop.eup %9287  ;;  %8282 = vmatpush3.bf16.msra.mxu1 %v11875_v2  ;;  %v11983_v2 = vpop.permute.xlu1 %3434 }
 0x53e   : > { %3042 = vadd.xlane.f32.xlu1 %v11968_v11  ;;  %3040 = vadd.xlane.f32.xlu0 %v11970_v49  ;;  %v11980_v38 = vpop.eup %9289 }
 0x53f   : > { %8283 = vmatprep.subr.bf16.mxu1 %v11882_v43  ;;  %8264 = vmatmul.mubr.msk.bf16.vlgmr.msra.gmra.mxu0 %vm1645_vm2, %v15230_v22  ;;  %v3298_v46 = vpop.permute.xlu0 %3297 }
 0x540   : > { %8312 = vmatpush3.bf16.msra.mxu0 %v3300_v0  ;;  %8267 = vmatprep.mubr.msk.bf16.mxu0 %vm1645_vm2, %v15231_v48  ;;  %v15232_v0 = vld [vmem:[#allocation41_spill] sm:$0xff] }
 0x541   : > { %8313 = vmatprep.subr.bf16.mxu0 %v3298_v46  ;;  %8284 = vmatpush3.bf16.msra.mxu1 %v11882_v43  ;;  %v3294_v5 = vpop.permute.xlu1 %3293 }
 0x542   : > { %3038 = vadd.xlane.f32.xlu0 %v11980_v38  ;;  %8285 = vmatprep.subr.bf16.mxu1 %v11895_v42 }
 0x543   : > { %v3292_v43 = vpop.permute.xlu0 %3291 }
 0x544   : > { %8314 = vmatpush3.bf16.msra.mxu0 %v3298_v46 }
 0x545   : > { %8315 = vmatprep.subr.bf16.mxu0 %v3296_v63  ;;  %8286 = vmatpush3.bf16.msra.mxu1 %v11895_v42  ;;  %v15234_v42 = vld [vmem:[#allocation43_spill] sm:$0xff] }
 0x546   : > { %8287 = vmatprep.subr.bf16.mxu1 %v3171_v30 }
 0x547   : > { %8268 = vmatmul.mubr.msk.bf16.gmra.mxu0 %vm1645_vm2, %v15232_v0 }
 0x548   : > { %8316 = vmatpush3.bf16.msra.mxu0 %v3296_v63  ;;  %8271 = vmatprep.mubr.msk.bf16.mxu0 %vm1645_vm2, %v15233_v61 }
 0x549   : > { %8317 = vmatprep.subr.bf16.mxu0 %v3294_v5  ;;  %8288 = vmatpush3.bf16.msra.mxu1 %v3171_v30 }
 0x54a   : > { %8289 = vmatprep.subr.bf16.mxu1 %v11903_v28 }
 0x54c   : > { %8318 = vmatpush3.bf16.msra.mxu0 %v3294_v5 }
 0x54d   : > { %8319 = vmatprep.subr.bf16.mxu0 %v3292_v43  ;;  %8290 = vmatpush3.bf16.msra.mxu1 %v11903_v28  ;;  %v15236_v28 = vld [vmem:[#allocation16_spill] sm:$0xff] }
 0x54e   : > { %8291 = vmatprep.subr.bf16.mxu1 %v11917_v59 }
 0x54f   : > { %8272 = vmatmul.mubr.msk.bf16.gmra.mxu0 %vm1645_vm2, %v15234_v42  ;;  %3287 = vrot.lane.b32.xlu1 %v15235_v34, %s9955_s8 }
 0x550   : > { %8320 = vmatpush3.bf16.msra.mxu0 %v3292_v43  ;;  %8275 = vmatprep.mubr.msk.bf16.mxu0 %vm1645_vm2, %v11852_v3  ;;  %v2937_v3 = vsub.f32 %v11692_v27, %v11863_v54  ;;  %v12038_v54 = vpop.permute.xlu1 %3432 }
 0x551   : > { %8292 = vmatpush3.bf16.msra.mxu1 %v11917_v59  ;;  %v2936_v59 = vsub.f32 %v11783_v15, %v11952_v24 }
 0x552   : > { %8293 = vmatprep.subr.bf16.mxu1 %v11933_v56  ;;  %v2982_v51 = vmul.f32 1.442695, %v2937_v3 }
 0x553   : > { %3430 = vrot.lane.b32.xlu1 %v10989_v26, %s9956_s20  ;;  %v2980_v32 = vmul.f32 1.442695, %v2936_v59 }
 0x554   : > { %9291 = vpow2.f32 %v2982_v51 }
 0x555   : > { %8294 = vmatpush3.bf16.msra.mxu1 %v11933_v56  ;;  %v2938_v56 = vsub.f32 %v11794_v35, %v11957_v16  ;;  %9293 = vpow2.f32 %v2980_v32 }
 0x556   : > { %8751 = vmatprep.subr.msk.bf16.mxu1 %vm1645_vm2, %v11960_v25 }
 0x557   : > { %8276 = vmatmul.mubr.msk.bf16.gmra.mxu0 %vm1645_vm2, %v11828_v60  ;;  %v2984_v60 = vmul.f32 1.442695, %v2938_v56 }
 0x558   : > { %3289 = vrot.lane.b32.xlu0 %v15236_v28, %s9955_s8 }
 0x559   : > { %9295 = vpow2.f32 %v2984_v60 }
 0x55a   : > { %9297 = vpow2.f32 %v2986_v62 }
 0x55c   : > { %v12052_v52 = vpop.f32.mrf.mxu0 }
 0x55d   : > { %15238 = vst [vmem:[#allocation36_spill] sm:$0xff] %v12052_v52 }
 0x55e   : > { %v12058_v36 = vpop.f32.mrf.mxu0 }
 0x55f   : > { %15239 = vst [vmem:[#allocation21_spill] sm:$0xff] %v12058_v36 }
 0x560   : > { %v12064_v13 = vpop.f32.mrf.mxu0 }
 0x561   : > { %v12020_v1 = vpop.eup %9291  ;;  %15240 = vst [vmem:[#allocation42_spill] sm:$0xff] %v12064_v13 }
 0x562   : > { %v12022_v27 = vpop.eup %9293  ;;  %v12070_v58 = vpop.f32.mrf.mxu0 }
 0x563   : > { %15241 = vst [vmem:[#allocation35_spill] sm:$0xff] %v12070_v58 }
 0x564   : > { %v12077_v48 = vpop.f32.mrf.mxu0 }
 0x565   : > { %15242 = vst [vmem:[#allocation22_spill] sm:$0xff] %v12077_v48 }
 0x566   : > { %v12026_v15 = vpop.eup %9295  ;;  %v12086_v3 = vpop.f32.mrf.mxu0 }
 0x567   : > { %v12029_v35 = vpop.eup %9297  ;;  %15243 = vst [vmem:[#allocation38_spill] sm:$0xff] %v12086_v3 }
 0x577   : > { %3046 = vadd.xlane.f32.xlu1 %v12020_v1  ;;  %3044 = vadd.xlane.f32.xlu0 %v12022_v27 }
 0x57b   : > { %3048 = vadd.xlane.f32.xlu0 %v12026_v15 }
 0x57f   : > { %3050 = vadd.xlane.f32.xlu0 %v12029_v35 }
 0x588   : > { %3285 = vrot.lane.b32.xlu1 %v15237_v50, %s9955_s8 }
 0x58c   : > { %3613 = vrot.lane.b32.xlu1 %v11035_v17, %s9956_s20 }
 0x590   : > { %3426 = vrot.lane.b32.xlu1 %v15192_v8, %s9956_s20 }
 0x593   : > { %v3021_v12 = vpop.xlane.xlu1 %3020 }
 0x594   : > { %3609 = vrot.lane.b32.xlu1 %v15204_v7, %s9956_s20 }
 0x595   : > { %3428 = vrot.lane.b32.xlu0 %v15217_v47, %s9956_s20 }
 0x597   : > { %v3025_v31 = vpop.xlane.xlu0 %3024 }
 0x598   : > { %3607 = vrot.lane.b32.xlu1 %v15209_v6, %s9956_s20 }
 0x599   : > { %3611 = vrot.lane.b32.xlu0 %v11044_v29, %s9956_s20 }
 0x59b   : > { %v3027_v24 = vpop.xlane.xlu1 %3026 }
 0x59c   : > { %3408 = vrot.lane.b32.xlu1 %v15193_v40, %s9957_s29  ;;  %9299 = vrcp.f32 %v3027_v24 }
 0x59d   : > { %3424 = vrot.lane.b32.xlu0 %v15193_v40, %s9956_s20  ;;  %9301 = vrcp.f32 %v3021_v12 }
 0x59e   : > { %9303 = vrcp.f32 %v3025_v31  ;;  %v15248_v31 = vld [vmem:[#allocation6_spill] sm:$0xff] }
 0x59f   : > { %v3023_v39 = vpop.xlane.xlu1 %3022 }
 0x5a0   : > { %9305 = vrcp.f32 %v3023_v39  ;;  %3605 = vrot.lane.b32.xlu1 %v15218_v41, %s9956_s20 }
 0x5a1   : > { %3422 = vrot.lane.b32.xlu0 %v15196_v4, %s9956_s20 }
 0x5a3   : > { %v3031_v18 = vpop.xlane.xlu1 %3030  ;;  %v3033_v16 = vpop.xlane.xlu0 %3032 }
 0x5a4   : > { %3601 = vrot.lane.b32.xlu1 %v15235_v34, %s9956_s20  ;;  %9307 = vrcp.f32 %v3031_v18 }
 0x5a5   : > { %3406 = vrot.lane.b32.xlu0 %v15196_v4, %s9957_s29 }
 0x5a7   : > { %v3029_v19 = vpop.xlane.xlu0 %3028 }
 0x5a8   : > { %9309 = vrcp.f32 %v3029_v19  ;;  %3583 = vrot.lane.b32.xlu1 %v15237_v50, %s9957_s29 }
 0x5a9   : > { %3603 = vrot.lane.b32.xlu0 %v15236_v28, %s9956_s20  ;;  %v9300_v14 = vpop.eup %9299  ;;  %9311 = vrcp.f32 %v3033_v16 }
 0x5aa   : > { %v9302_v23 = vpop.eup %9301  ;;  %v3119_v46 = vmul.f32 %v9300_v14, %v11900_v10 }
 0x5ab   : > { %v3035_v30 = vpop.xlane.xlu0 %3034  ;;  %v9304_v63 = vpop.eup %9303  ;;  %v3116_v0 = vmul.f32 %v9302_v23, %v11885_v33  ;;  %v3484_v33 = vsel %vm1645_vm2, %v11960_v25, 0 }
 0x5ac   : > { %9313 = vrcp.f32 %v3035_v30  ;;  %3410 = vrot.lane.b32.xlu1 %v15192_v8, %s9957_s29  ;;  %v3118_v61 = vmul.f32 %v9304_v63, %v11890_v44 }
 0x5ad   : > { %v9306_v22 = vpop.eup %9305  ;;  %3599 = vrot.lane.b32.xlu0 %v15237_v50, %s9956_s20  ;;  %s9959_s20 = smov 72  }
 0x5ae   : > { %v3117_v5 = vmul.f32 %v9306_v22, %v11905_v9  ;;  %v3149_v42 = vpack.c.bf16 %v3119_v46, %v3118_v61  ;;  %v12096_v9 = vpop.f32.mrf.mxu0 }
 0x5af   : > { %15244 = vst [vmem:[#allocation23_spill] sm:$0xff] %v12096_v9  ;;  %v12356_v9 = vld [vmem:[%s15172_s27 + $0x68] sm:$0xff] }
 0x5b0   : > { %3414 = vrot.lane.b32.xlu1 %v10989_v26, %s9957_s29  ;;  %v3148_v43 = vpack.c.bf16 %v3117_v5, %v3116_v0  ;;  %v12104_v60 = vpop.f32.mrf.mxu0 }
 0x5b1   : > { %3585 = vrot.lane.b32.xlu0 %v15235_v34, %s9957_s29  ;;  %v9308_v10 = vpop.eup %9307  ;;  %15246 = vst [vmem:[#allocation37_spill] sm:$0xff] %v12104_v60  ;;  %v12347_v60 = vld [vmem:[%s15172_s27 + $0x78] sm:$0xff] }
 0x5b2   : > { %8295 = vmatprep.mubr.bf16.mxu1 %v3148_v43  ;;  %v3121_v51 = vmul.f32 %v9308_v10, %v11912_v57  ;;  %v12110_v57 = vpop.f32.mrf.mxu0 }
 0x5b3   : > { %8296 = vmatmul.mubr.bf16.vlgmr.msra.gmra.mxu1 %v3149_v42  ;;  %15247 = vst [vmem:[#allocation17_spill] sm:$0xff] %v12110_v57 }
 0x5b4   : > { %8344 = vmatpush3.bf16.xpose.msra.mxu1 %v3484_v33  ;;  %3418 = vrot.lane.b32.xlu1 %v10966_v37, %s9957_s29  ;;  %v12116_v39 = vpop.f32.mrf.mxu0 }
 0x5b5   : > { %v9310_v44 = vpop.eup %9309  ;;  %8752 = vmatprep.subr.msk.bf16.mxu1 %vm1645_vm2, %v11983_v2  ;;  %3412 = vrot.lane.b32.xlu0 %v15217_v47, %s9957_s29  ;;  %15249 = vst [vmem:[#allocation19_spill] sm:$0xff] %v12116_v39 }
 0x5b6   : > { %v3120_v59 = vmul.f32 %v9310_v44, %v11922_v55  ;;  %v9312_v32 = vpop.eup %9311  ;;  %v3481_v55 = vsel %vm1645_vm2, %v11983_v2, 0  ;;  %v12122_v2 = vpop.f32.mrf.mxu0 }
 0x5b7   : > { %v3122_v62 = vmul.f32 %v9312_v32, %v11914_v45  ;;  %15250 = vst [vmem:[#allocation45_spill] sm:$0xff] %v12122_v2  ;;  %v12338_v2 = vld [vmem:[%s15172_s27 + $0x60] sm:$0xff] }
 0x5b8   : > { %3587 = vrot.lane.b32.xlu1 %v15236_v28, %s9957_s29  ;;  %v3150_v25 = vpack.c.bf16 %v3121_v51, %v3120_v59  ;;  %v12124_v19 = vpop.f32.mrf.mxu0 }
 0x5b9   : > { %v9314_v56 = vpop.eup %9313  ;;  %3416 = vrot.lane.b32.xlu0 %v15245_v21, %s9957_s29  ;;  %15251 = vst [vmem:[#allocation47_spill] sm:$0xff] %v12124_v19 }
 0x5ba   : > { %8299 = vmatprep.mubr.bf16.mxu1 %v3150_v25  ;;  %v3123_v12 = vmul.f32 %v9314_v56, %v11931_v53  ;;  %v3478_v53 = vsel %vm1645_vm2, %v12038_v54, 0  ;;  %v12126_v14 = vpop.f32.mrf.mxu0 }
 0x5bb   : > { %15252 = vst [vmem:[#allocation20_spill] sm:$0xff] %v12126_v14  ;;  %v12309_v14 = vld [vmem:[%s15172_s27 + $0x58] sm:$0xff] }
 0x5bc   : > { %8346 = vmatpush3.bf16.xpose.msra.mxu1 %v3481_v55  ;;  %v3151_v24 = vpack.c.bf16 %v3123_v12, %v3122_v62  ;;  %v12128_v63 = vpop.f32.mrf.mxu0 }
 0x5bd   : > { %8753 = vmatprep.subr.msk.bf16.mxu1 %vm1645_vm2, %v12038_v54  ;;  %3420 = vrot.lane.b32.xlu0 %v15248_v31, %s9957_s29  ;;  %15253 = vst [vmem:[#allocation18_spill] sm:$0xff] %v12128_v63 }
 0x5be   : > { %8300 = vmatmul.mubr.bf16.gmra.mxu1 %v3151_v24  ;;  %v12132_v0 = vpop.f32.mrf.mxu0 }
 0x5bf   : > { %15254 = vst [vmem:[#allocation24_spill] sm:$0xff] %v12132_v0 }
 0x5c0   : > { %v12134_v42 = vpop.f32.mrf.mxu0 }
 0x5c1   : > { %3589 = vrot.lane.b32.xlu0 %v15218_v41, %s9957_s29  ;;  %15255 = vst [vmem:[#allocation49_spill] sm:$0xff] %v12134_v42  ;;  %v12301_v42 = vld [vmem:[%s15172_s27 + $0x40] sm:$0xff] }
 0x5c2   : > { %v12136_v33 = vpop.f32.mrf.mxu0 }
 0x5c3   : > { %v3037_v45 = vpop.xlane.xlu1 %3036  ;;  %15256 = vst [vmem:[#allocation46_spill] sm:$0xff] %v12136_v33 }
 0x5c4   : > { %8348 = vmatpush3.bf16.xpose.msra.mxu1 %v3478_v53  ;;  %v12142_v56 = vpop.f32.mrf.mxu0 }
 0x5c5   : > { %15257 = vst [vmem:[#allocation25_spill] sm:$0xff] %v12142_v56 }
 0x5c6   : > { %v12144_v12 = vpop.f32.mrf.mxu0 }
 0x5c7   : > { %v3043_v18 = vpop.xlane.xlu1 %3042  ;;  %v3041_v16 = vpop.xlane.xlu0 %3040  ;;  %15258 = vst [vmem:[#allocation48_spill] sm:$0xff] %v12144_v12 }
 0x5c8   : > { %9315 = vrcp.f32 %v3043_v18  ;;  %v12146_v55 = vpop.f32.mrf.mxu0 }
 0x5c9   : > { %9317 = vrcp.f32 %v3041_v16  ;;  %15259 = vst [vmem:[#allocation50_spill] sm:$0xff] %v12146_v55 }
 0x5ca   : > { %9319 = vrcp.f32 %v3037_v45 }
 0x5cb   : > { %v3288_v23 = vpop.permute.xlu1 %3287  ;;  %v3039_v30 = vpop.xlane.xlu0 %3038 }
 0x5cc   : > { %9321 = vrcp.f32 %v3039_v30 }
 0x5cf   : > { %v3431_v22 = vpop.permute.xlu1 %3430  ;;  %v3290_v46 = vpop.permute.xlu0 %3289 }
 0x5d0   : > { %8321 = vmatprep.subr.bf16.mxu0 %v3290_v46  ;;  %8754 = vmatprep.subr.msk.bf16.mxu1 %vm1645_vm2, %v3431_v22  ;;  %v3475_v54 = vsel %vm1645_vm2, %v3431_v22, 0 }
 0x5d1   : > { %8322 = vmatpush3.bf16.msra.mxu0 %v3290_v46  ;;  %8350 = vmatpush3.bf16.xpose.msra.mxu1 %v3475_v54  ;;  %v12175_v54 = vld [vmem:[%s15172_s27 + $0x10] sm:$0xff] }
 0x5d2   : > { %8323 = vmatprep.subr.bf16.mxu0 %v3288_v23 }
 0x5d5   : > { %v9316_v5 = vpop.eup %9315  ;;  %8324 = vmatpush3.bf16.msra.mxu0 %v3288_v23 }
 0x5d6   : > { %v9318_v61 = vpop.eup %9317  ;;  %v3127_v59 = vmul.f32 %v9316_v5, %v11968_v11 }
 0x5d7   : > { %v9320_v43 = vpop.eup %9319  ;;  %v3126_v44 = vmul.f32 %v9318_v61, %v11970_v49 }
 0x5d8   : > { %v3124_v51 = vmul.f32 %v9320_v43, %v11964_v20 }
 0x5d9   : > { %v9322_v10 = vpop.eup %9321  ;;  %v3153_v62 = vpack.c.bf16 %v3127_v59, %v3126_v44  ;;  %v12184_v59 = vld [vmem:[%s15172_s27] sm:$0xff] }
 0x5da   : > { %v3125_v32 = vmul.f32 %v9322_v10, %v11980_v38 }
 0x5dc   : > { %v3152_v25 = vpack.c.bf16 %v3125_v32, %v3124_v51  ;;  %v12192_v32 = vld [vmem:[%s15172_s27 + $0x18] sm:$0xff] }
 0x5de   : > { %8303 = vmatprep.mubr.bf16.mxu1 %v3152_v25 }
 0x5df   : > { %8304 = vmatmul.mubr.bf16.gmra.mxu1 %v3153_v62 }
 0x5e7   : > { %v12148_v24 = vpop.f32.mrf.mxu0 }
 0x5e8   : > { %15260 = vst [vmem:[#allocation26_spill] sm:$0xff] %v12148_v24 }
 0x5e9   : > { %v12150_v45 = vpop.f32.mrf.mxu0 }
 0x5ea   : > { %15261 = vst [vmem:[#allocation14_spill] sm:$0xff] %v12150_v45 }
 0x5eb   : > { %v12152_v49 = vpop.f32.mrf.mxu0 }
 0x5ec   : > { %15262 = vst [vmem:[#allocation53_spill] sm:$0xff] %v12152_v49 }
 0x5ed   : > { %v12154_v11 = vpop.f32.mrf.mxu0 }
 0x5ee   : > { %15263 = vst [vmem:[#allocation52_spill] sm:$0xff] %v12154_v11 }
 0x5ef   : > { %v12156_v20 = vpop.f32.mrf.mxu0 }
 0x5f0   : > { %15264 = vst [vmem:[#allocation51_spill] sm:$0xff] %v12156_v20 }
 0x5f1   : > { %v12158_v38 = vpop.f32.mrf.mxu0 }
 0x5f2   : > { %15265 = vst [vmem:[#allocation44_spill] sm:$0xff] %v12158_v38 }
 0x5f3   : > { %v12160_v53 = vpop.f32.mrf.mxu0 }
 0x5f4   : > { %15266 = vst [vmem:[#allocation27_spill] sm:$0xff] %v12160_v53 }
 0x5f5   : > { %v12162_v18 = vpop.f32.mrf.mxu0 }
 0x5f6   : > { %15267 = vst [vmem:[#allocation28_spill] sm:$0xff] %v12162_v18 }
 0x5f7   : > { %v12164_v16 = vpop.f32.mrf.mxu0 }
 0x5f8   : > { %15268 = vst [vmem:[#allocation29_spill] sm:$0xff] %v12164_v16 }
 0x5f9   : > { %v12166_v23 = vpop.f32.mrf.mxu0 }
 0x5fa   : > { %15269 = vst [vmem:[#allocation31_spill] sm:$0xff] %v12166_v23 }
 0x5fb   : > { %v12168_v30 = vpop.f32.mrf.mxu0 }
 0x5fc   : > { %15270 = vst [vmem:[#allocation30_spill] sm:$0xff] %v12168_v30 }
 0x5fd   : > { %v12170_v22 = vpop.f32.mrf.mxu0 }
 0x5fe   : > { %15271 = vst [vmem:[#allocation33_spill] sm:$0xff] %v12170_v22 }
 0x5ff   : > { %v8265_v46 = vpop.f32.mrf.mxu0 }
 0x600   : > { %v12178_v5 = vadd.f32 %v12175_v54, %v8265_v46  ;;  %v3047_v61 = vpop.xlane.xlu1 %3046  ;;  %v3045_v43 = vpop.xlane.xlu0 %3044 }
 0x601   : > { %9323 = vrcp.f32 %v3047_v61  ;;  %v2797_v10 = vpop.f32.mrf.mxu0 }
 0x602   : > { %9325 = vrcp.f32 %v3045_v43  ;;  %2896 = vmax.xlane.f32.xlu0 %v12178_v5  ;;  %v12187_v51 = vadd.f32 %v12184_v59, %v2797_v10  ;;  %v12202_v43 = vld [vmem:[%s15172_s27 + $0x8] sm:$0xff] }
 0x603   : > { %v8266_v44 = vpop.f32.mrf.mxu0 }
 0x604   : > { %v12195_v25 = vadd.f32 %v12192_v32, %v8266_v44  ;;  %v3286_v62 = vpop.permute.xlu1 %3285  ;;  %v3049_v46 = vpop.xlane.xlu0 %3048 }
 0x605   : > { %v2800_v61 = vpop.f32.mrf.mxu0  ;;  %8325 = vmatprep.subr.bf16.mxu0 %v3286_v62  ;;  %9327 = vrcp.f32 %v3049_v46 }
 0x606   : > { %2898 = vmax.xlane.f32.xlu1 %v12195_v25  ;;  %2892 = vmax.xlane.f32.xlu0 %v12187_v51  ;;  %v12205_v10 = vadd.f32 %v12202_v43, %v2800_v61 }
 0x607   : > { %8326 = vmatpush3.bf16.msra.mxu0 %v3286_v62 }
 0x608   : > { %v12207_v44 = vpop.permute.xlu1 %3613  ;;  %v3051_v23 = vpop.xlane.xlu0 %3050 }
 0x609   : > { %15272 = vst [vmem:[#allocation32_spill] sm:$0xff] %v12207_v44  ;;  %9329 = vrcp.f32 %v3051_v23  ;;  %8759 = vmatprep.subr.msk.bf16.mxu0 %vm1645_vm2, %v12207_v44 }
 0x60a   : > { %2894 = vmax.xlane.f32.xlu1 %v12205_v10 }
 0x60c   : > { %v3427_v22 = vpop.permute.xlu1 %3426  ;;  %v3429_v46 = vpop.permute.xlu0 %3428 }
 0x60d   : > { %8755 = vmatprep.subr.msk.bf16.mxu1 %vm1645_vm2, %v3429_v46  ;;  %v3472_v62 = vsel %vm1645_vm2, %v3429_v46, 0  ;;  %v3469_v46 = vsel %vm1645_vm2, %v3427_v22, 0 }
 0x60e   : > { %v9324_v16 = vpop.eup %9323  ;;  %8352 = vmatpush3.bf16.xpose.msra.mxu1 %v3472_v62 }
 0x60f   : > { %v9326_v30 = vpop.eup %9325  ;;  %8756 = vmatprep.subr.msk.bf16.mxu1 %vm1645_vm2, %v3427_v22  ;;  %v3129_v61 = vmul.f32 %v9324_v16, %v12020_v1  ;;  %v8269_v22 = vpop.f32.mrf.mxu0 }
 0x610   : > { %v12216_v38 = vpop.permute.xlu1 %3609  ;;  %v12218_v23 = vpop.permute.xlu0 %3611  ;;  %v3128_v18 = vmul.f32 %v9326_v30, %v12022_v27 }
 0x611   : > { %15273 = vst [vmem:[#allocation34_spill] sm:$0xff] %v12216_v38  ;;  %15274 = vst [vmem:[#allocation39_spill] sm:$0xff] %v12218_v23 }
 0x612   : > { %v3154_v20 = vpack.c.bf16 %v3129_v61, %v3128_v18  ;;  %v9328_v53 = vpop.eup %9327 }
 0x613   : > { %v3130_v1 = vmul.f32 %v9328_v53, %v12026_v15 }
 0x614   : > { %8307 = vmatprep.mubr.bf16.mxu1 %v3154_v20  ;;  %v12221_v45 = vpop.permute.xlu1 %3607  ;;  %v3425_v11 = vpop.permute.xlu0 %3424 }
 0x615   : > { %15275 = vst [vmem:[#allocation41_spill] sm:$0xff] %v12221_v45  ;;  %v3466_v18 = vsel %vm1645_vm2, %v3425_v11, 0 }
 0x616   : > { %v9330_v62 = vpop.eup %9329  ;;  %8354 = vmatpush3.bf16.xpose.msra.mxu1 %v3469_v46  ;;  %v2813_v46 = vpop.f32.mrf.mxu0 }
 0x617   : > { %8757 = vmatprep.subr.msk.bf16.mxu1 %vm1645_vm2, %v3425_v11  ;;  %v3131_v16 = vmul.f32 %v9330_v62, %v12029_v35 }
 0x618   : > { %v3409_v24 = vpop.permute.xlu1 %3408  ;;  %v3423_v49 = vpop.permute.xlu0 %3422 }
 0x619   : > { %v3155_v56 = vpack.c.bf16 %v3131_v16, %v3130_v1  ;;  %v3463_v53 = vsel %vm1645_vm2, %v3423_v49, 0  ;;  %v8270_v62 = vpop.f32.mrf.mxu0 }
 0x61b   : > { %3591 = vrot.lane.b32.xlu1 %v15209_v6, %s9957_s29  ;;  %8308 = vmatmul.mubr.bf16.gmra.mxu1 %v3155_v56 }
 0x61c   : > { %v12229_v27 = vpop.permute.xlu1 %3605  ;;  %3593 = vrot.lane.b32.xlu0 %v15204_v7, %s9957_s29  ;;  %v3407_v20 = vpop.permute.xlu0 %3406 }
 0x61d   : > { %15276 = vst [vmem:[#allocation40_spill] sm:$0xff] %v12229_v27  ;;  %8359 = vmatprep.mubr.msk.bf16.mxu1 %vm1645_vm2, %v3407_v20  ;;  %v12254_v20 = vld [vmem:[%s15172_s27 + $0x30] sm:$0xff] }
 0x61e   : > { %8356 = vmatpush3.bf16.xpose.msra.mxu1 %v3466_v18 }
 0x61f   : > { %8758 = vmatprep.subr.msk.bf16.mxu1 %vm1645_vm2, %v3423_v49  ;;  %v2816_v49 = vpop.f32.mrf.mxu0 }
 0x620   : > { %v12236_v15 = vpop.permute.xlu1 %3601  ;;  %v12238_v35 = vpop.permute.xlu0 %3603 }
 0x621   : > { %15277 = vst [vmem:[#allocation43_spill] sm:$0xff] %v12236_v15  ;;  %15278 = vst [vmem:[#allocation54_spill] sm:$0xff] %v12238_v35  ;;  %v8273_v18 = vpop.f32.mrf.mxu0 }
 0x623   : > { %v2829_v33 = vpop.f32.mrf.mxu0 }
 0x624   : > { %v12241_v56 = vpop.permute.xlu1 %3583  ;;  %v12243_v30 = vpop.permute.xlu0 %3599 }
 0x625   : > { %15279 = vst [vmem:[#allocation55_spill] sm:$0xff] %v12241_v56  ;;  %15280 = vst [vmem:[#allocation56_spill] sm:$0xff] %v12243_v30 }
 0x626   : > { %8358 = vmatpush3.bf16.xpose.msra.mxu1 %v3463_v53 }
 0x628   : > { %v3411_v61 = vpop.permute.xlu1 %3410  ;;  %v12246_v11 = vpop.permute.xlu0 %3585 }
 0x629   : > { %15281 = vst [vmem:[#allocation57_spill] sm:$0xff] %v12246_v11 }
 0x62c   : > { %v3413_v1 = vpop.permute.xlu0 %3412  ;;  %v3415_v16 = vpop.permute.xlu1 %3414 }
 0x62d   : > { %8360 = vmatmul.mubr.msk.bf16.vlgmr.msra.gmra.mxu1 %vm1645_vm2, %v3409_v24  ;;  %v12257_v24 = vadd.f32 %v12254_v20, %v8269_v22 }
 0x62e   : > { %8363 = vmatprep.mubr.msk.bf16.mxu1 %vm1645_vm2, %v3411_v61  ;;  %v12263_v61 = vld [vmem:[%s15172_s27 + $0x20] sm:$0xff] }
 0x630   : > { %v3417_v53 = vpop.permute.xlu0 %3416  ;;  %v3419_v55 = vpop.permute.xlu1 %3418 }
 0x634   : > { %v3421_v63 = vpop.permute.xlu0 %3420  ;;  %v12382_v56 = vpop.permute.xlu1 %3587 }
 0x635   : > { %8364 = vmatmul.mubr.msk.bf16.gmra.mxu1 %vm1645_vm2, %v3413_v1  ;;  %v12266_v1 = vadd.f32 %v12263_v61, %v2813_v46  ;;  %v12283_v46 = vld [vmem:[%s15172_s27 + $0x28] sm:$0xff]  ;;  %15290 = vst [vmem:[#allocation66_spill] sm:$0xff] %v12382_v56 }
 0x636   : > { %8367 = vmatprep.mubr.msk.bf16.mxu1 %vm1645_vm2, %v3415_v16  ;;  %v12271_v16 = vld [vmem:[%s15172_s27 + $0x38] sm:$0xff]  ;;  %v12286_v12 = vadd.f32 %v12283_v46, %v2816_v49  ;;  %v12304_v49 = vadd.f32 %v12301_v42, %v2829_v33  ;;  %v12320_v33 = vld [vmem:[%s15172_s27 + $0x48] sm:$0xff] }
 0x637   : > { %v12274_v22 = vadd.f32 %v12271_v16, %v8270_v62  ;;  %v12291_v62 = vld [vmem:[%s15172_s27 + $0x50] sm:$0xff] }
 0x638   : > { %v12380_v28 = vpop.permute.xlu0 %3589 }
 0x639   : > { %15289 = vst [vmem:[#allocation65_spill] sm:$0xff] %v12380_v28 }
 0x63b   : > { %2904 = vmax.xlane.f32.xlu0 %v12257_v24 }
 0x63d   : > { %8368 = vmatmul.mubr.msk.bf16.gmra.mxu1 %vm1645_vm2, %v3417_v53  ;;  %v12294_v53 = vadd.f32 %v12291_v62, %v8273_v18 }
 0x63e   : > { %8371 = vmatprep.mubr.msk.bf16.mxu1 %vm1645_vm2, %v3419_v55  ;;  %v8274_v55 = vpop.f32.mrf.mxu0 }
 0x63f   : > { %2906 = vmax.xlane.f32.xlu1 %v12274_v22  ;;  %2900 = vmax.xlane.f32.xlu0 %v12266_v1  ;;  %v12312_v18 = vadd.f32 %v12309_v14, %v8274_v55 }
 0x640   : > { %v2832_v0 = vpop.f32.mrf.mxu0 }
 0x641   : > { %v12323_v39 = vadd.f32 %v12320_v33, %v2832_v0 }
 0x642   : > { %v8277_v19 = vpop.f32.mrf.mxu0 }
 0x643   : > { %2902 = vmax.xlane.f32.xlu1 %v12286_v12  ;;  %2912 = vmax.xlane.f32.xlu0 %v12294_v53 }
 0x644   : > { %v2845_v57 = vpop.f32.mrf.mxu0 }
 0x645   : > { %8372 = vmatmul.mubr.msk.bf16.gmra.mxu1 %vm1645_vm2, %v3421_v63  ;;  %v12329_v63 = vld [vmem:[%s15172_s27 + $0x70] sm:$0xff]  ;;  %v12341_v0 = vadd.f32 %v12338_v2, %v2845_v57 }
 0x646   : > { %v12332_v55 = vadd.f32 %v12329_v63, %v8277_v19  ;;  %v8278_v3 = vpop.f32.mrf.mxu0 }
 0x647   : > { %2914 = vmax.xlane.f32.xlu1 %v12312_v18  ;;  %2908 = vmax.xlane.f32.xlu0 %v12304_v49  ;;  %v12350_v19 = vadd.f32 %v12347_v60, %v8278_v3 }
 0x648   : > { %v2848_v48 = vpop.f32.mrf.mxu0 }
 0x649   : > { %v12359_v57 = vadd.f32 %v12356_v9, %v2848_v48 }
 0x64b   : > { %2910 = vmax.xlane.f32.xlu1 %v12323_v39 }
 0x64f   : > { %2920 = vmax.xlane.f32.xlu1 %v12332_v55 }
 0x653   : > { %2916 = vmax.xlane.f32.xlu1 %v12341_v0 }
 0x657   : > { %2922 = vmax.xlane.f32.xlu1 %v12350_v19 }
 0x65b   : > { %2918 = vmax.xlane.f32.xlu1 %v12359_v57 }
 0x673   : > { %v12362_v52 = vpop.f32.mrf.mxu1 }
 0x674   : > { %15282 = vst [vmem:[#allocation58_spill] sm:$0xff] %v12362_v52 }
 0x675   : > { %v12364_v13 = vpop.f32.mrf.mxu1 }
 0x676   : > { %15283 = vst [vmem:[#allocation59_spill] sm:$0xff] %v12364_v13 }
 0x677   : > { %v12366_v36 = vpop.f32.mrf.mxu1 }
 0x678   : > { %15284 = vst [vmem:[#allocation60_spill] sm:$0xff] %v12366_v36 }
 0x679   : > { %v12370_v58 = vpop.f32.mrf.mxu1 }
 0x67a   : > { %15285 = vst [vmem:[#allocation61_spill] sm:$0xff] %v12370_v58 }
 0x67e   : > { %v12372_v50 = vpop.f32.mrf.mxu1 }
 0x67f   : > { %15286 = vst [vmem:[#allocation62_spill] sm:$0xff] %v12372_v50 }
 0x680   : > { %v12374_v34 = vpop.f32.mrf.mxu1 }
 0x681   : > { %15287 = vst [vmem:[#allocation63_spill] sm:$0xff] %v12374_v34 }
 0x682   : > { %v12376_v11 = vpop.f32.mrf.mxu1 }
 0x683   : > { %15288 = vst [vmem:[#allocation64_spill] sm:$0xff] %v12376_v11 }
 0x684   : > { %v12389_v50 = vpop.f32.mrf.mxu1 }
 0x685   : > { %15291 = vst [vmem:[#allocation67_spill] sm:$0xff] %v12389_v50 }
 0x68b   : > { %v2897_v13 = vpop.xlane.xlu0 %2896 }
 0x68c   : > { %v2942_v30 = vsub.f32 %v12178_v5, %v2897_v13 }
 0x68e   : > { %v2992_v15 = vmul.f32 1.442695, %v2942_v30 }
 0x68f   : > { %v2899_v3 = vpop.xlane.xlu1 %2898  ;;  %v2893_v52 = vpop.xlane.xlu0 %2892 }
 0x690   : > { %9331 = vpow2.f32 %v2992_v15  ;;  %v2940_v36 = vsub.f32 %v12187_v51, %v2893_v52  ;;  %v2943_v34 = vsub.f32 %v12195_v25, %v2899_v3 }
 0x692   : > { %v2988_v58 = vmul.f32 1.442695, %v2940_v36  ;;  %v2994_v35 = vmul.f32 1.442695, %v2943_v34 }
 0x694   : > { %9333 = vpow2.f32 %v2988_v58  ;;  %v2895_v58 = vpop.xlane.xlu1 %2894 }
 0x695   : > { %9335 = vpow2.f32 %v2994_v35  ;;  %v2941_v51 = vsub.f32 %v12205_v10, %v2895_v58 }
 0x697   : > { %v2990_v25 = vmul.f32 1.442695, %v2941_v51 }
 0x698   : > { %v12414_v35 = vpop.permute.xlu1 %3591 }
 0x699   : > { %9337 = vpow2.f32 %v2990_v25  ;;  %15295 = vst [vmem:[#allocation71_spill] sm:$0xff] %v12414_v35 }
 0x69d   : > { %v12387_v48 = vpop.eup %9331 }
 0x69e   : > { %3056 = vadd.xlane.f32.xlu0 %v12387_v48 }
 0x69f   : > { %v12392_v11 = vpop.f32.mrf.mxu1 }
 0x6a0   : > { %15292 = vst [vmem:[#allocation68_spill] sm:$0xff] %v12392_v11 }
 0x6a1   : > { %v12394_v13 = vpop.f32.mrf.mxu1  ;;  %v12396_v5 = vpop.eup %9333 }
 0x6a2   : > { %15293 = vst [vmem:[#allocation69_spill] sm:$0xff] %v12394_v13  ;;  %3052 = vadd.xlane.f32.xlu1 %v12396_v5  ;;  %v12403_v36 = vpop.eup %9335 }
 0x6a3   : > { %v12399_v52 = vpop.f32.mrf.mxu1 }
 0x6a4   : > { %15294 = vst [vmem:[#allocation70_spill] sm:$0xff] %v12399_v52  ;;  %v12422_v52 = vpop.permute.xlu0 %3593 }
 0x6a5   : > { %v12416_v30 = vpop.f32.mrf.mxu1  ;;  %15299 = vst [vmem:[#allocation75_spill] sm:$0xff] %v12422_v52 }
 0x6a6   : > { %3058 = vadd.xlane.f32.xlu1 %v12403_v36  ;;  %v12411_v15 = vpop.eup %9337  ;;  %15296 = vst [vmem:[#allocation72_spill] sm:$0xff] %v12416_v30 }
 0x6b4   : > { %3597 = vrot.lane.b32.xlu0 %v11035_v17, %s9957_s29 }
 0x6b7   : > { %3595 = vrot.lane.b32.xlu1 %v11044_v29, %s9957_s29  ;;  %s9958_s29 = smov 48  }
 0x6c4   : > { %v2905_v58 = vpop.xlane.xlu0 %2904 }
 0x6c5   : > { %v2946_v10 = vsub.f32 %v12257_v24, %v2905_v58 }
 0x6c8   : > { %v2907_v34 = vpop.xlane.xlu1 %2906  ;;  %v2901_v25 = vpop.xlane.xlu0 %2900 }
 0x6c9   : > { %v2944_v45 = vsub.f32 %v12266_v1, %v2901_v25 }
 0x6cb   : > { %v2996_v38 = vmul.f32 1.442695, %v2944_v45 }
 0x6cc   : > { %v2903_v51 = vpop.xlane.xlu1 %2902  ;;  %v2913_v30 = vpop.xlane.xlu0 %2912 }
 0x6cd   : > { %9339 = vpow2.f32 %v2996_v38 }
 0x6d0   : > { %v2915_v50 = vpop.xlane.xlu1 %2914  ;;  %v2909_v23 = vpop.xlane.xlu0 %2908 }
 0x6d1   : > { %v2948_v45 = vsub.f32 %v12304_v49, %v2909_v23 }
 0x6d3   : > { %3054 = vadd.xlane.f32.xlu0 %v12411_v15 }
 0x6d4   : > { %v2911_v56 = vpop.xlane.xlu1 %2910 }
 0x6d8   : > { %v2921_v1 = vpop.xlane.xlu1 %2920 }
 0x6db   : > { %v12418_v3 = vpop.f32.mrf.mxu1 }
 0x6dc   : > { %15297 = vst [vmem:[#allocation73_spill] sm:$0xff] %v12418_v3 }
 0x6dd   : > { %v12420_v11 = vpop.f32.mrf.mxu1 }
 0x6de   : > { %15298 = vst [vmem:[#allocation74_spill] sm:$0xff] %v12420_v11 }
 0x6df   : > { %v12424_v13 = vpop.f32.mrf.mxu1 }
 0x6e0   : > { %15300 = vst [vmem:[#allocation76_spill] sm:$0xff] %v12424_v13  ;;  %v2947_v13 = vsub.f32 %v12274_v22, %v2907_v34  ;;  %v2951_v34 = vsub.f32 %v12312_v18, %v2915_v50  ;;  %v2949_v50 = vsub.f32 %v12323_v39, %v2911_v56 }
 0x6e1   : > { %v12428_v28 = vpop.f32.mrf.mxu1 }
 0x6e2   : > { %15301 = vst [vmem:[#allocation77_spill] sm:$0xff] %v12428_v28  ;;  %v3002_v58 = vmul.f32 1.442695, %v2947_v13 }
 0x6ed   : > { %v8361_v35 = vpop.f32.mrf.mxu1 }
 0x6ef   : > { %v3520_v27 = vpop.f32.mrf.mxu1 }
 0x6f0   : > { %v12432_v11 = vadd.f32 %v12184_v59, %v3520_v27  ;;  %v3000_v59 = vmul.f32 1.442695, %v2946_v10  ;;  %v2945_v27 = vsub.f32 %v12286_v12, %v2903_v51  ;;  %v3004_v12 = vmul.f32 1.442695, %v2948_v45 }
 0x6f1   : > { %v8362_v52 = vpop.f32.mrf.mxu1  ;;  %v2954_v51 = vsub.f32 %v12332_v55, %v2921_v1 }
 0x6f2   : > { %3760 = vmax.xlane.f32.xlu1 %v12432_v11  ;;  %v12438_v28 = vadd.f32 %v12192_v32, %v8362_v52  ;;  %v12448_v32 = vadd.f32 %v12175_v54, %v8361_v35  ;;  %9341 = vpow2.f32 %v3000_v59  ;;  %v2950_v52 = vsub.f32 %v12294_v53, %v2913_v30 }
 0x6f3   : > { %v3523_v3 = vpop.f32.mrf.mxu1  ;;  %9343 = vpow2.f32 %v3002_v58  ;;  %v3010_v53 = vmul.f32 1.442695, %v2951_v34  ;;  %v3006_v30 = vmul.f32 1.442695, %v2949_v50 }
 0x6f4   : > { %v12441_v44 = vadd.f32 %v12202_v43, %v3523_v3  ;;  %v2998_v43 = vmul.f32 1.442695, %v2945_v27  ;;  %v2917_v3 = vpop.xlane.xlu1 %2916  ;;  %v3008_v49 = vmul.f32 1.442695, %v2950_v52 }
 0x6f5   : > { %v8365_v25 = vpop.f32.mrf.mxu1  ;;  %v2952_v18 = vsub.f32 %v12341_v0, %v2917_v3  ;;  %v12476_v0 = vpop.eup %9339 }
 0x6f6   : > { %3762 = vmax.xlane.f32.xlu0 %v12441_v44  ;;  %3766 = vmax.xlane.f32.xlu1 %v12438_v28  ;;  %9345 = vpow2.f32 %v2998_v43  ;;  %v12464_v13 = vadd.f32 %v12254_v20, %v8365_v25 }
 0x6f7   : > { %v3536_v24 = vpop.f32.mrf.mxu1  ;;  %9347 = vpow2.f32 %v3004_v12  ;;  %v3012_v39 = vmul.f32 1.442695, %v2952_v18 }
 0x6f8   : > { %v12454_v38 = vadd.f32 %v12263_v61, %v3536_v24  ;;  %9349 = vpow2.f32 %v3008_v49 }
 0x6f9   : > { %v8366_v22 = vpop.f32.mrf.mxu1  ;;  %9351 = vpow2.f32 %v3010_v53 }
 0x6fa   : > { %3764 = vmax.xlane.f32.xlu0 %v12448_v32  ;;  %v12467_v61 = vadd.f32 %v12271_v16, %v8366_v22  ;;  %9353 = vpow2.f32 %v3006_v30  ;;  %v3016_v16 = vmul.f32 1.442695, %v2954_v51 }
 0x6fb   : > { %v3539_v10 = vpop.f32.mrf.mxu1  ;;  %9355 = vpow2.f32 %v3012_v39 }
 0x6fc   : > { %v12457_v23 = vadd.f32 %v12283_v46, %v3539_v10  ;;  %v2923_v46 = vpop.xlane.xlu1 %2922  ;;  %9357 = vpow2.f32 %v3016_v16 }
 0x6fd   : > { %v8369_v54 = vpop.f32.mrf.mxu1  ;;  %v2955_v56 = vsub.f32 %v12350_v19, %v2923_v46 }
 0x6fe   : > { %3768 = vmax.xlane.f32.xlu0 %v12454_v38  ;;  %3770 = vmax.xlane.f32.xlu1 %v12457_v23 }
 0x6ff   : > { %v3552_v35 = vpop.f32.mrf.mxu1  ;;  %v12480_v25 = vpop.eup %9341  ;;  %v3018_v59 = vmul.f32 1.442695, %v2955_v56 }
 0x700   : > { %v12474_v20 = vadd.f32 %v12301_v42, %v3552_v35  ;;  %v12482_v55 = vpop.eup %9343  ;;  %v2919_v58 = vpop.xlane.xlu1 %2918 }
 0x701   : > { %9359 = vpow2.f32 %v3018_v59  ;;  %v8370_v1 = vpop.f32.mrf.mxu1  ;;  %v2953_v43 = vsub.f32 %v12359_v57, %v2919_v58  ;;  %v12512_v57 = vadd.f32 %v12291_v62, %v8369_v54 }
 0x702   : > { %3772 = vmax.xlane.f32.xlu0 %v12464_v13  ;;  %3774 = vmax.xlane.f32.xlu1 %v12467_v61  ;;  %v12520_v18 = vadd.f32 %v12309_v14, %v8370_v1 }
 0x703   : > { %v12486_v42 = vpop.eup %9345  ;;  %v3555_v45 = vpop.f32.mrf.mxu1  ;;  %v3014_v10 = vmul.f32 1.442695, %v2953_v43 }
 0x704   : > { %v12488_v19 = vpop.eup %9347  ;;  %v12515_v53 = vadd.f32 %v12320_v33, %v3555_v45 }
 0x705   : > { %v12492_v27 = vpop.eup %9349  ;;  %v8373_v34 = vpop.f32.mrf.mxu1  ;;  %9361 = vpow2.f32 %v3014_v10  ;;  %v15302_v10 = vld [vmem:[#allocation32_spill] sm:$0xff] }
 0x706   : > { %3776 = vmax.xlane.f32.xlu0 %v12474_v20  ;;  %3060 = vadd.xlane.f32.xlu1 %v12476_v0  ;;  %v12494_v24 = vpop.eup %9351  ;;  %v12528_v62 = vadd.f32 %v12329_v63, %v8373_v34 }
 0x707   : > { %v12498_v22 = vpop.eup %9353  ;;  %v3568_v49 = vpop.f32.mrf.mxu1 }
 0x708   : > { %v12501_v52 = vpop.eup %9355  ;;  %v12523_v46 = vadd.f32 %v12338_v2, %v3568_v49  ;;  %v3661_v49 = vsel %vm1645_vm2, %v15302_v10, 0  ;;  %v15306_v10 = vld [vmem:[#allocation40_spill] sm:$0xff] }
 0x709   : > { %v12505_v3 = vpop.eup %9357  ;;  %v8374_v50 = vpop.f32.mrf.mxu1 }
 0x70a   : > { %3064 = vadd.xlane.f32.xlu0 %v12480_v25  ;;  %3066 = vadd.xlane.f32.xlu1 %v12482_v55  ;;  %v12536_v14 = vadd.f32 %v12347_v60, %v8374_v50  ;;  %v15303_v50 = vld [vmem:[#allocation39_spill] sm:$0xff] }
 0x70b   : > { %v3571_v35 = vpop.f32.mrf.mxu1 }
 0x70c   : > { %v12531_v33 = vadd.f32 %v12356_v9, %v3571_v35 }
 0x70e   : > { %3062 = vadd.xlane.f32.xlu0 %v12486_v42  ;;  %3068 = vadd.xlane.f32.xlu1 %v12488_v19  ;;  %v12507_v12 = vpop.eup %9359 }
 0x712   : > { %3072 = vadd.xlane.f32.xlu0 %v12492_v27  ;;  %3074 = vadd.xlane.f32.xlu1 %v12494_v24  ;;  %v12538_v2 = vpop.eup %9361 }
 0x716   : > { %3070 = vadd.xlane.f32.xlu0 %v12498_v22  ;;  %3076 = vadd.xlane.f32.xlu1 %v12501_v52 }
 0x71a   : > { %3080 = vadd.xlane.f32.xlu0 %v12505_v3  ;;  %3082 = vadd.xlane.f32.xlu1 %v12507_v12 }
 0x71e   : > { %3780 = vmax.xlane.f32.xlu0 %v12512_v57  ;;  %3778 = vmax.xlane.f32.xlu1 %v12515_v53 }
 0x722   : > { %3784 = vmax.xlane.f32.xlu0 %v12523_v46  ;;  %3782 = vmax.xlane.f32.xlu1 %v12520_v18 }
 0x726   : > { %3788 = vmax.xlane.f32.xlu0 %v12528_v62  ;;  %3786 = vmax.xlane.f32.xlu1 %v12531_v33 }
 0x727   : > { %v3057_v60 = vpop.xlane.xlu0 %3056 }
 0x72a   : > { %3078 = vadd.xlane.f32.xlu0 %v12538_v2  ;;  %3790 = vmax.xlane.f32.xlu1 %v12536_v14 }
 0x72b   : > { %v3053_v9 = vpop.xlane.xlu1 %3052  ;;  %v12566_v54 = vpop.permute.xlu0 %3597 }
 0x72f   : > { %v3059_v63 = vpop.xlane.xlu1 %3058 }
 0x730   : > { %9363 = vrcp.f32 %v3059_v63 }
 0x731   : > { %9365 = vrcp.f32 %v3053_v9 }
 0x732   : > { %9367 = vrcp.f32 %v3057_v60 }
 0x733   : > { %v12586_v35 = vpop.permute.xlu1 %3595 }
 0x73b   : > { %4076 = vrot.lane.b32.xlu1 %v10966_v37, %s9958_s29 }
 0x73d   : > { %v9364_v51 = vpop.eup %9363 }
 0x73e   : > { %v9366_v39 = vpop.eup %9365  ;;  %v3135_v59 = vmul.f32 %v9364_v51, %v12403_v36  ;;  %v3658_v36 = vsel %vm1645_vm2, %v15303_v50, 0 }
 0x73f   : > { %4074 = vrot.lane.b32.xlu1 %v15245_v21, %s9958_s29  ;;  %v9368_v56 = vpop.eup %9367  ;;  %v3132_v1 = vmul.f32 %v9366_v39, %v12396_v5  ;;  %v15304_v5 = vld [vmem:[#allocation34_spill] sm:$0xff] }
 0x740   : > { %4078 = vrot.lane.b32.xlu0 %v15248_v31, %s9958_s29  ;;  %v3134_v45 = vmul.f32 %v9368_v56, %v12387_v48  ;;  %v3655_v60 = vsel %vm1645_vm2, %v15304_v5, 0 }
 0x742   : > { %v3157_v34 = vpack.c.bf16 %v3135_v59, %v3134_v45 }
 0x743   : > { %4072 = vrot.lane.b32.xlu1 %v10989_v26, %s9958_s29 }
 0x744   : > { %4070 = vrot.lane.b32.xlu0 %v15217_v47, %s9958_s29 }
 0x747   : > { %4068 = vrot.lane.b32.xlu1 %v15192_v8, %s9958_s29 }
 0x748   : > { %4195 = vrot.lane.b32.xlu0 %v15204_v7, %s9958_s29 }
 0x74b   : > { %4066 = vrot.lane.b32.xlu1 %v15193_v40, %s9958_s29 }
 0x74c   : > { %4193 = vrot.lane.b32.xlu0 %v15209_v6, %s9958_s29 }
 0x74f   : > { %4064 = vrot.lane.b32.xlu1 %v15196_v4, %s9958_s29 }
 0x753   : > { %4199 = vrot.lane.b32.xlu1 %v11035_v17, %s9958_s29 }
 0x757   : > { %4336 = vrot.lane.b32.xlu1 %v15248_v31, %s9959_s20 }
 0x75b   : > { %4197 = vrot.lane.b32.xlu1 %v11044_v29, %s9958_s29 }
 0x75c   : > { %v3055_v30 = vpop.xlane.xlu0 %3054 }
 0x75d   : > { %9369 = vrcp.f32 %v3055_v30  ;;  %v15305_v30 = vld [vmem:[#allocation41_spill] sm:$0xff] }
 0x75f   : > { %4334 = vrot.lane.b32.xlu1 %v10966_v37, %s9959_s20 }
 0x763   : > { %4191 = vrot.lane.b32.xlu1 %v15218_v41, %s9958_s29 }
 0x767   : > { %4332 = vrot.lane.b32.xlu1 %v15245_v21, %s9959_s20 }
 0x76a   : > { %v9370_v16 = vpop.eup %9369 }
 0x76b   : > { %v3133_v58 = vmul.f32 %v9370_v16, %v12411_v15 }
 0x76d   : > { %v3156_v43 = vpack.c.bf16 %v3133_v58, %v3132_v1 }
 0x76f   : > { %8327 = vmatprep.mubr.bf16.mxu0 %v3156_v43  ;;  %v3652_v43 = vsel %vm1645_vm2, %v15305_v30, 0 }
 0x770   : > { %8328 = vmatmul.mubr.bf16.vlgmr.msra.gmra.mxu0 %v3157_v34 }
 0x771   : > { %8376 = vmatpush3.bf16.xpose.msra.mxu0 %v3661_v49 }
 0x772   : > { %8760 = vmatprep.subr.msk.bf16.mxu0 %vm1645_vm2, %v15303_v50 }
 0x779   : > { %8378 = vmatpush3.bf16.xpose.msra.mxu0 %v3658_v36 }
 0x77a   : > { %8761 = vmatprep.subr.msk.bf16.mxu0 %vm1645_vm2, %v15304_v5 }
 0x77b   : > { %v3761_v48 = vpop.xlane.xlu1 %3760 }
 0x77c   : > { %v3824_v56 = vsub.f32 %v12432_v11, %v3761_v48 }
 0x77e   : > { %v3856_v45 = vmul.f32 1.442695, %v3824_v56 }
 0x77f   : > { %v3763_v15 = vpop.xlane.xlu0 %3762  ;;  %v3767_v51 = vpop.xlane.xlu1 %3766 }
 0x780   : > { %v3825_v9 = vsub.f32 %v12441_v44, %v3763_v15  ;;  %v3827_v44 = vsub.f32 %v12438_v28, %v3767_v51 }
 0x781   : > { %8380 = vmatpush3.bf16.xpose.msra.mxu0 %v3655_v60 }
 0x782   : > { %v3858_v63 = vmul.f32 1.442695, %v3825_v9  ;;  %8762 = vmatprep.subr.msk.bf16.mxu0 %vm1645_vm2, %v15305_v30  ;;  %v3862_v50 = vmul.f32 1.442695, %v3827_v44 }
 0x783   : > { %v3765_v39 = vpop.xlane.xlu0 %3764 }
 0x784   : > { %v3826_v16 = vsub.f32 %v12448_v32, %v3765_v39  ;;  %9371 = vpow2.f32 %v3858_v63 }
 0x786   : > { %v3860_v59 = vmul.f32 1.442695, %v3826_v16 }
 0x787   : > { %v3771_v1 = vpop.xlane.xlu1 %3770  ;;  %v3769_v58 = vpop.xlane.xlu0 %3768 }
 0x788   : > { %9373 = vpow2.f32 %v3860_v59  ;;  %v3829_v34 = vsub.f32 %v12457_v23, %v3771_v1  ;;  %v3828_v11 = vsub.f32 %v12454_v38, %v3769_v58  ;;  %v3649_v38 = vsel %vm1645_vm2, %v15306_v10, 0  ;;  %v15308_v58 = vld [vmem:[#allocation43_spill] sm:$0xff] }
 0x789   : > { %8382 = vmatpush3.bf16.xpose.msra.mxu0 %v3652_v43  ;;  %9375 = vpow2.f32 %v3856_v45 }
 0x78a   : > { %8763 = vmatprep.subr.msk.bf16.mxu0 %vm1645_vm2, %v15306_v10  ;;  %v3866_v5 = vmul.f32 1.442695, %v3829_v34  ;;  %v3864_v15 = vmul.f32 1.442695, %v3828_v11  ;;  %9377 = vpow2.f32 %v3862_v50  ;;  %v3643_v50 = vsel %vm1645_vm2, %v15308_v58, 0 }
 0x78b   : > { %v3775_v32 = vpop.xlane.xlu1 %3774  ;;  %v3773_v49 = vpop.xlane.xlu0 %3772 }
 0x78c   : > { %v3831_v36 = vsub.f32 %v12467_v61, %v3775_v32  ;;  %v3830_v28 = vsub.f32 %v12464_v13, %v3773_v49  ;;  %v15307_v61 = vld [vmem:[#allocation54_spill] sm:$0xff] }
 0x78d   : > { %v3646_v59 = vsel %vm1645_vm2, %v15307_v61, 0 }
 0x78e   : > { %v3868_v48 = vmul.f32 1.442695, %v3830_v28  ;;  %v3870_v23 = vmul.f32 1.442695, %v3831_v36 }
 0x78f   : > { %v3061_v9 = vpop.xlane.xlu1 %3060  ;;  %v3777_v60 = vpop.xlane.xlu0 %3776 }
 0x790   : > { %v3832_v63 = vsub.f32 %v12474_v20, %v3777_v60  ;;  %9379 = vpow2.f32 %v3868_v48 }
 0x791   : > { %8384 = vmatpush3.bf16.xpose.msra.mxu0 %v3649_v38  ;;  %v12609_v30 = vpop.eup %9371  ;;  %9381 = vpow2.f32 %v3866_v5  ;;  %v15309_v5 = vld [vmem:[#allocation56_spill] sm:$0xff] }
 0x792   : > { %8764 = vmatprep.subr.msk.bf16.mxu0 %vm1645_vm2, %v15307_v61  ;;  %9383 = vpow2.f32 %v3864_v15  ;;  %3922 = vadd.xlane.f32.xlu0 %v12609_v30  ;;  %v3872_v39 = vmul.f32 1.442695, %v3832_v63 }
 0x793   : > { %v3067_v13 = vpop.xlane.xlu1 %3066  ;;  %v3065_v51 = vpop.xlane.xlu0 %3064  ;;  %9385 = vpow2.f32 %v3870_v23 }
 0x794   : > { %9387 = vrcp.f32 %v3067_v13 }
 0x795   : > { %v12614_v56 = vpop.eup %9373  ;;  %9389 = vrcp.f32 %v3065_v51 }
 0x796   : > { %3924 = vadd.xlane.f32.xlu1 %v12614_v56  ;;  %9391 = vrcp.f32 %v3061_v9  ;;  %v12619_v1 = vpop.eup %9375 }
 0x797   : > { %v3069_v20 = vpop.xlane.xlu1 %3068  ;;  %v3063_v16 = vpop.xlane.xlu0 %3062  ;;  %9393 = vpow2.f32 %v3872_v39 }
 0x798   : > { %9395 = vrcp.f32 %v3063_v16  ;;  %v12624_v43 = vpop.eup %9377 }
 0x799   : > { %8386 = vmatpush3.bf16.xpose.msra.mxu0 %v3646_v59 }
 0x79a   : > { %8765 = vmatprep.subr.msk.bf16.mxu0 %vm1645_vm2, %v15308_v58  ;;  %3920 = vadd.xlane.f32.xlu1 %v12619_v1  ;;  %v3640_v58 = vsel %vm1645_vm2, %v15309_v5, 0 }
 0x79b   : > { %v3075_v45 = vpop.xlane.xlu1 %3074  ;;  %v3073_v44 = vpop.xlane.xlu0 %3072 }
 0x79c   : > { %9397 = vrcp.f32 %v3075_v45 }
 0x79d   : > { %v12626_v34 = vpop.eup %9379  ;;  %9399 = vrcp.f32 %v3073_v44 }
 0x79e   : > { %3926 = vadd.xlane.f32.xlu1 %v12624_v43  ;;  %v12629_v10 = vpop.eup %9381  ;;  %9401 = vrcp.f32 %v3069_v20  ;;  %3932 = vadd.xlane.f32.xlu0 %v12626_v34 }
 0x79f   : > { %v3077_v11 = vpop.xlane.xlu1 %3076  ;;  %v3071_v32 = vpop.xlane.xlu0 %3070 }
 0x7a0   : > { %v12632_v49 = vpop.eup %9383  ;;  %9403 = vrcp.f32 %v3071_v32 }
 0x7a1   : > { %v12636_v36 = vpop.eup %9385  ;;  %8388 = vmatpush3.bf16.xpose.msra.mxu0 %v3643_v50 }
 0x7a2   : > { %v9388_v28 = vpop.eup %9387  ;;  %8766 = vmatprep.subr.msk.bf16.mxu0 %vm1645_vm2, %v15309_v5  ;;  %3928 = vadd.xlane.f32.xlu1 %v12632_v49 }
 0x7a3   : > { %v9390_v48 = vpop.eup %9389  ;;  %3930 = vadd.xlane.f32.xlu0 %v12629_v10  ;;  %v3083_v15 = vpop.xlane.xlu1 %3082  ;;  %v3139_v61 = vmul.f32 %v9388_v28, %v12482_v55 }
 0x7a4   : > { %v3081_v9 = vpop.xlane.xlu0 %3080  ;;  %v9392_v60 = vpop.eup %9391  ;;  %v3138_v38 = vmul.f32 %v9390_v48, %v12480_v25 }
 0x7a5   : > { %v12642_v23 = vpop.eup %9393  ;;  %v3136_v39 = vmul.f32 %v9392_v60, %v12476_v0 }
 0x7a6   : > { %v9396_v63 = vpop.eup %9395  ;;  %3934 = vadd.xlane.f32.xlu1 %v12636_v36  ;;  %v3159_v32 = vpack.c.bf16 %v3139_v61, %v3138_v38 }
 0x7a7   : > { %3936 = vadd.xlane.f32.xlu0 %v12642_v23  ;;  %v3779_v13 = vpop.xlane.xlu1 %3778  ;;  %v3137_v20 = vmul.f32 %v9396_v63, %v12486_v42 }
 0x7a8   : > { %v3781_v51 = vpop.xlane.xlu0 %3780  ;;  %v3833_v16 = vsub.f32 %v12515_v53, %v3779_v13 }
 0x7a9   : > { %v3834_v59 = vsub.f32 %v12512_v57, %v3781_v51  ;;  %8390 = vmatpush3.bf16.xpose.msra.mxu0 %v3640_v58  ;;  %v3158_v45 = vpack.c.bf16 %v3137_v20, %v3136_v39  ;;  %v9398_v25 = vpop.eup %9397 }
 0x7aa   : > { %v3874_v44 = vmul.f32 1.442695, %v3833_v16  ;;  %v9400_v50 = vpop.eup %9399  ;;  %v3143_v60 = vmul.f32 %v9398_v25, %v12494_v24 }
 0x7ab   : > { %v3876_v55 = vmul.f32 1.442695, %v3834_v59  ;;  %8331 = vmatprep.mubr.bf16.mxu0 %v3158_v45  ;;  %v3783_v28 = vpop.xlane.xlu1 %3782  ;;  %v9402_v0 = vpop.eup %9401  ;;  %v3142_v5 = vmul.f32 %v9400_v50, %v12492_v27 }
 0x7ac   : > { %v12654_v48 = vpop.xlane.xlu0 %3784  ;;  %9405 = vpow2.f32 %v3874_v44  ;;  %v3835_v42 = vsub.f32 %v12520_v18, %v3783_v28  ;;  %8332 = vmatmul.mubr.bf16.gmra.mxu0 %v3159_v32  ;;  %v3140_v61 = vmul.f32 %v9402_v0, %v12488_v19 }
 0x7ad   : > { %9407 = vpow2.f32 %v3876_v55  ;;  %v9404_v57 = vpop.eup %9403  ;;  %v3161_v18 = vpack.c.bf16 %v3143_v60, %v3142_v5  ;;  %v15313_v5 = vld [vmem:[#allocation66_spill] sm:$0xff] }
 0x7ae   : > { %v3878_v53 = vmul.f32 1.442695, %v3835_v42  ;;  %v3141_v13 = vmul.f32 %v9404_v57, %v12498_v22 }
 0x7af   : > { %v12659_v63 = vpop.xlane.xlu1 %3786 }
 0x7b0   : > { %v12661_v38 = vpop.xlane.xlu0 %3788  ;;  %9409 = vpow2.f32 %v3878_v53  ;;  %v3160_v51 = vpack.c.bf16 %v3141_v13, %v3140_v61  ;;  %v15310_v53 = vld [vmem:[#allocation55_spill] sm:$0xff] }
 0x7b1   : > { %9411 = vrcp.f32 %v3083_v15  ;;  %v15314_v61 = vld [vmem:[#allocation15_spill] sm:$0xff] }
 0x7b2   : > { %9413 = vrcp.f32 %v3081_v9  ;;  %8335 = vmatprep.mubr.bf16.mxu0 %v3160_v51 }
 0x7b3   : > { %v12665_v39 = vpop.xlane.xlu1 %3790  ;;  %9415 = vrcp.f32 %v3077_v11 }
 0x7b4   : > { %v3079_v20 = vpop.xlane.xlu0 %3078  ;;  %8336 = vmatmul.mubr.bf16.gmra.mxu0 %v3161_v18  ;;  %v15315_v18 = vld [vmem:[#allocation65_spill] sm:$0xff] }
 0x7b5   : > { %9417 = vrcp.f32 %v3079_v20  ;;  %v15316_v20 = vld [vmem:[#allocation71_spill] sm:$0xff] }
 0x7b7   : > { %v4077_v27 = vpop.permute.xlu1 %4076 }
 0x7b8   : > { %v4079_v24 = vpop.permute.xlu0 %4078 }
 0x7b9   : > { %8407 = vmatprep.subr.bf16.mxu1 %v4079_v24  ;;  %v12667_v16 = vpop.eup %9405 }
 0x7ba   : > { %8408 = vmatpush3.bf16.msra.mxu1 %v4079_v24  ;;  %v12669_v19 = vpop.eup %9407  ;;  %3938 = vadd.xlane.f32.xlu1 %v12667_v16  ;;  %v3836_v24 = vsub.f32 %v12523_v46, %v12654_v48 }
 0x7bb   : > { %8409 = vmatprep.subr.bf16.mxu1 %v4077_v27  ;;  %3940 = vadd.xlane.f32.xlu0 %v12669_v19  ;;  %v4075_v22 = vpop.permute.xlu1 %4074 }
 0x7bc   : > { %v4071_v28 = vpop.permute.xlu0 %4070 }
 0x7bd   : > { %v12673_v15 = vpop.eup %9409 }
 0x7be   : > { %8410 = vmatpush3.bf16.msra.mxu1 %v4077_v27  ;;  %v9412_v11 = vpop.eup %9411 }
 0x7bf   : > { %8411 = vmatprep.subr.bf16.mxu1 %v4075_v22  ;;  %3942 = vadd.xlane.f32.xlu0 %v12673_v15  ;;  %v4073_v9 = vpop.permute.xlu1 %4072  ;;  %v9414_v59 = vpop.eup %9413  ;;  %v3147_v55 = vmul.f32 %v9412_v11, %v12507_v12  ;;  %v15311_v12 = vld [vmem:[#allocation16_spill] sm:$0xff] }
 0x7c0   : > { %v9416_v58 = vpop.eup %9415  ;;  %v3146_v44 = vmul.f32 %v9414_v59, %v12505_v3  ;;  %v4196_v51 = vpop.permute.xlu0 %4195  ;;  %v3839_v59 = vsub.f32 %v12536_v14, %v12665_v39 }
 0x7c1   : > { %v3144_v32 = vmul.f32 %v9416_v58, %v12501_v52  ;;  %v15317_v58 = vld [vmem:[#allocation75_spill] sm:$0xff] }
 0x7c2   : > { %8412 = vmatpush3.bf16.msra.mxu1 %v4075_v22  ;;  %v9418_v45 = vpop.eup %9417  ;;  %v3163_v57 = vpack.c.bf16 %v3147_v55, %v3146_v44  ;;  %v3837_v22 = vsub.f32 %v12531_v33, %v12659_v63  ;;  %v3886_v46 = vmul.f32 1.442695, %v3839_v59 }
 0x7c3   : > { %8413 = vmatprep.subr.bf16.mxu1 %v4073_v9  ;;  %v4069_v25 = vpop.permute.xlu1 %4068  ;;  %v3145_v50 = vmul.f32 %v9418_v45, %v12538_v2  ;;  %v15312_v2 = vld [vmem:[#allocation57_spill] sm:$0xff] }
 0x7c4   : > { %v4194_v11 = vpop.permute.xlu0 %4193  ;;  %v3882_v45 = vmul.f32 1.442695, %v3837_v22 }
 0x7c5   : > { %v3162_v0 = vpack.c.bf16 %v3145_v50, %v3144_v32 }
 0x7c6   : > { %8414 = vmatpush3.bf16.msra.mxu1 %v4073_v9  ;;  %v3880_v9 = vmul.f32 1.442695, %v3836_v24 }
 0x7c7   : > { %8415 = vmatprep.subr.bf16.mxu1 %v4071_v28  ;;  %v4067_v42 = vpop.permute.xlu1 %4066  ;;  %8339 = vmatprep.mubr.bf16.mxu0 %v3162_v0 }
 0x7c8   : > { %8340 = vmatmul.mubr.bf16.gmra.mxu0 %v3163_v57  ;;  %9419 = vpow2.f32 %v3880_v9 }
 0x7c9   : > { %8391 = vmatprep.mubr.msk.bf16.mxu0 %vm1645_vm2, %v15310_v53  ;;  %9421 = vpow2.f32 %v3882_v45 }
 0x7ca   : > { %8416 = vmatpush3.bf16.msra.mxu1 %v4071_v28  ;;  %9423 = vpow2.f32 %v3886_v46 }
 0x7cb   : > { %8417 = vmatprep.subr.bf16.mxu1 %v4069_v25  ;;  %v4065_v3 = vpop.permute.xlu1 %4064  ;;  %4189 = vrot.lane.b32.xlu1 %v15311_v12, %s9958_s29 }
 0x7ce   : > { %8418 = vmatpush3.bf16.msra.mxu1 %v4069_v25  ;;  %v3838_v25 = vsub.f32 %v12528_v62, %v12661_v38 }
 0x7cf   : > { %8419 = vmatprep.subr.bf16.mxu1 %v4067_v42  ;;  %v4200_v52 = vpop.permute.xlu1 %4199  ;;  %4330 = vrot.lane.b32.xlu1 %v10989_v26, %s9959_s20 }
 0x7d0   : > { %8439 = vmatprep.subr.bf16.mxu0 %v4200_v52  ;;  %8392 = vmatmul.mubr.msk.bf16.vlgmr.msra.gmra.mxu0 %vm1645_vm2, %v15312_v2  ;;  %v3884_v33 = vmul.f32 1.442695, %v3838_v25 }
 0x7d1   : > { %8395 = vmatprep.mubr.msk.bf16.mxu0 %vm1645_vm2, %v15313_v5  ;;  %8440 = vmatpush3.bf16.msra.mxu0 %v4200_v52 }
 0x7d2   : > { %8420 = vmatpush3.bf16.msra.mxu1 %v4067_v42  ;;  %9425 = vpow2.f32 %v3884_v33 }
 0x7d3   : > { %8421 = vmatprep.subr.bf16.mxu1 %v4065_v3  ;;  %v12690_v60 = vpop.permute.xlu1 %4336 }
 0x7d4   : > { %v4384_v45 = vsel %vm1645_vm2, %v12690_v60, 0 }
 0x7d5   : > { %4187 = vrot.lane.b32.xlu0 %v15314_v61, %s9958_s29  ;;  %v12716_v14 = vpop.eup %9419 }
 0x7d6   : > { %8422 = vmatpush3.bf16.msra.mxu1 %v4065_v3  ;;  %v12718_v48 = vpop.eup %9421 }
 0x7d7   : > { %8767 = vmatprep.subr.msk.bf16.mxu1 %vm1645_vm2, %v12690_v60  ;;  %v4198_v13 = vpop.permute.xlu1 %4197  ;;  %v12722_v62 = vpop.eup %9423 }
 0x7d8   : > { %8441 = vmatprep.subr.bf16.mxu0 %v4198_v13  ;;  %8396 = vmatmul.mubr.msk.bf16.gmra.mxu0 %vm1645_vm2, %v15315_v18 }
 0x7d9   : > { %8399 = vmatprep.mubr.msk.bf16.mxu0 %vm1645_vm2, %v15316_v20  ;;  %8442 = vmatpush3.bf16.msra.mxu0 %v4198_v13 }
 0x7da   : > { %8443 = vmatprep.subr.bf16.mxu0 %v4196_v51 }
 0x7db   : > { %v12700_v27 = vpop.permute.xlu1 %4334 }
 0x7dd   : > { %8444 = vmatpush3.bf16.msra.mxu0 %v4196_v51 }
 0x7de   : > { %8445 = vmatprep.subr.bf16.mxu0 %v4194_v11 }
 0x7df   : > { %v4192_v44 = vpop.permute.xlu1 %4191 }
 0x7e0   : > { %8400 = vmatmul.mubr.msk.bf16.gmra.mxu0 %vm1645_vm2, %v15317_v58 }
 0x7e1   : > { %8403 = vmatprep.mubr.msk.bf16.mxu0 %vm1645_vm2, %v12586_v35  ;;  %8446 = vmatpush3.bf16.msra.mxu0 %v4194_v11  ;;  %v12724_v35 = vpop.eup %9425 }
 0x7e2   : > { %8447 = vmatprep.subr.bf16.mxu0 %v4192_v44 }
 0x7e3   : > { %v12746_v63 = vpop.permute.xlu1 %4332 }
 0x7e5   : > { %8448 = vmatpush3.bf16.msra.mxu0 %v4192_v44 }
 0x7e8   : > { %8404 = vmatmul.mubr.msk.bf16.gmra.mxu0 %vm1645_vm2, %v12566_v54  ;;  %v15318_v54 = vld [vmem:[#allocation13_spill] sm:$0xff] }
 0x7f3   : > { %3944 = vadd.xlane.f32.xlu1 %v12716_v14 }
 0x7f4   : > { %3946 = vadd.xlane.f32.xlu0 %v12718_v48 }
 0x7f7   : > { %3950 = vadd.xlane.f32.xlu1 %v12722_v62 }
 0x7f8   : > { %3948 = vadd.xlane.f32.xlu0 %v12724_v35 }
 0x808   : > { %4328 = vrot.lane.b32.xlu1 %v15217_v47, %s9959_s20 }
 0x80c   : > { %4513 = vrot.lane.b32.xlu1 %v11035_v17, %s9959_s20 }
 0x80e   : > { %4185 = vrot.lane.b32.xlu0 %v15318_v54, %s9958_s29 }
 0x810   : > { %4511 = vrot.lane.b32.xlu1 %v11044_v29, %s9959_s20 }
 0x812   : > { %4326 = vrot.lane.b32.xlu0 %v15192_v8, %s9959_s20 }
 0x814   : > { %4324 = vrot.lane.b32.xlu1 %v15193_v40, %s9959_s20 }
 0x816   : > { %4509 = vrot.lane.b32.xlu0 %v15204_v7, %s9959_s20 }
 0x818   : > { %4322 = vrot.lane.b32.xlu1 %v15196_v4, %s9959_s20 }
 0x81a   : > { %4507 = vrot.lane.b32.xlu0 %v15209_v6, %s9959_s20 }
 0x81b   : > { %v3923_v38 = vpop.xlane.xlu0 %3922 }
 0x81c   : > { %4306 = vrot.lane.b32.xlu1 %v15196_v4, %s9960_s23  ;;  %9427 = vrcp.f32 %v3923_v38 }
 0x81e   : > { %4308 = vrot.lane.b32.xlu0 %v15193_v40, %s9960_s23 }
 0x81f   : > { %v3925_v39 = vpop.xlane.xlu1 %3924 }
 0x820   : > { %4505 = vrot.lane.b32.xlu1 %v15218_v41, %s9959_s20 }
 0x822   : > { %4312 = vrot.lane.b32.xlu0 %v15217_v47, %s9960_s23 }
 0x823   : > { %v3921_v55 = vpop.xlane.xlu1 %3920 }
 0x824   : > { %9429 = vrcp.f32 %v3921_v55  ;;  %4310 = vrot.lane.b32.xlu1 %v15192_v8, %s9960_s23 }
 0x825   : > { %9431 = vrcp.f32 %v3925_v39 }
 0x826   : > { %4314 = vrot.lane.b32.xlu0 %v10989_v26, %s9960_s23 }
 0x827   : > { %v3927_v32 = vpop.xlane.xlu1 %3926  ;;  %v3933_v50 = vpop.xlane.xlu0 %3932 }
 0x828   : > { %9433 = vrcp.f32 %v3927_v32  ;;  %4503 = vrot.lane.b32.xlu1 %v15311_v12, %s9959_s20 }
 0x829   : > { %v9428_v42 = vpop.eup %9427 }
 0x82a   : > { %v4017_v5 = vmul.f32 %v9428_v42, %v12609_v30 }
 0x82b   : > { %v3929_v28 = vpop.xlane.xlu1 %3928 }
 0x82c   : > { %9435 = vrcp.f32 %v3929_v28  ;;  %v3931_v0 = vpop.xlane.xlu0 %3930 }
 0x82d   : > { %9437 = vrcp.f32 %v3931_v0 }
 0x82e   : > { %9439 = vrcp.f32 %v3933_v50 }
 0x82f   : > { %v3935_v57 = vpop.xlane.xlu1 %3934 }
 0x830   : > { %9441 = vrcp.f32 %v3935_v57  ;;  %v12762_v53 = vpop.f32.mrf.mxu0  ;;  %v3937_v39 = vpop.xlane.xlu0 %3936 }
 0x831   : > { %15319 = vst [vmem:[#allocation32_spill] sm:$0xff] %v12762_v53  ;;  %v9430_v3 = vpop.eup %9429  ;;  %9443 = vrcp.f32 %v3937_v39 }
 0x832   : > { %v12764_v52 = vpop.f32.mrf.mxu0  ;;  %v4016_v2 = vmul.f32 %v9430_v3, %v12619_v1  ;;  %v9432_v13 = vpop.eup %9431 }
 0x833   : > { %15320 = vst [vmem:[#allocation39_spill] sm:$0xff] %v12764_v52  ;;  %v4018_v11 = vmul.f32 %v9432_v13, %v12614_v56 }
 0x834   : > { %v12768_v51 = vpop.f32.mrf.mxu0  ;;  %v4048_v18 = vpack.c.bf16 %v4017_v5, %v4016_v2 }
 0x835   : > { %15321 = vst [vmem:[#allocation34_spill] sm:$0xff] %v12768_v51  ;;  %v9434_v20 = vpop.eup %9433 }
 0x836   : > { %v12772_v22 = vpop.f32.mrf.mxu0  ;;  %8423 = vmatprep.mubr.bf16.mxu1 %v4048_v18  ;;  %v4019_v9 = vmul.f32 %v9434_v20, %v12624_v43 }
 0x837   : > { %15322 = vst [vmem:[#allocation41_spill] sm:$0xff] %v12772_v22 }
 0x838   : > { %v4049_v59 = vpack.c.bf16 %v4019_v9, %v4018_v11 }
 0x839   : > { %v9436_v30 = vpop.eup %9435 }
 0x83a   : > { %v9438_v58 = vpop.eup %9437  ;;  %8424 = vmatmul.mubr.bf16.vlgmr.msra.gmra.mxu1 %v4049_v59  ;;  %v4020_v25 = vmul.f32 %v9436_v30, %v12632_v49  ;;  %v4381_v49 = vsel %vm1645_vm2, %v12700_v27, 0 }
 0x83b   : > { %v9440_v44 = vpop.eup %9439  ;;  %8472 = vmatpush3.bf16.xpose.msra.mxu1 %v4384_v45  ;;  %v4021_v46 = vmul.f32 %v9438_v58, %v12629_v10 }
 0x83c   : > { %8768 = vmatprep.subr.msk.bf16.mxu1 %vm1645_vm2, %v12700_v27  ;;  %v4022_v33 = vmul.f32 %v9440_v44, %v12626_v34 }
 0x83d   : > { %v9442_v56 = vpop.eup %9441  ;;  %v4050_v43 = vpack.c.bf16 %v4021_v46, %v4020_v25 }
 0x83e   : > { %v4023_v38 = vmul.f32 %v9442_v56, %v12636_v36  ;;  %v4378_v36 = vsel %vm1645_vm2, %v12746_v63, 0  ;;  %v9444_v27 = vpop.eup %9443 }
 0x83f   : > { %8427 = vmatprep.mubr.bf16.mxu1 %v4050_v43  ;;  %v4024_v57 = vmul.f32 %v9444_v27, %v12642_v23 }
 0x840   : > { %v4051_v55 = vpack.c.bf16 %v4023_v38, %v4022_v33 }
 0x842   : > { %8428 = vmatmul.mubr.bf16.gmra.mxu1 %v4051_v55 }
 0x843   : > { %8474 = vmatpush3.bf16.xpose.msra.mxu1 %v4381_v49  ;;  %v3939_v60 = vpop.xlane.xlu1 %3938 }
 0x844   : > { %9445 = vrcp.f32 %v3939_v60  ;;  %8769 = vmatprep.subr.msk.bf16.mxu1 %vm1645_vm2, %v12746_v63  ;;  %v3941_v10 = vpop.xlane.xlu0 %3940 }
 0x845   : > { %9447 = vrcp.f32 %v3941_v10 }
 0x847   : > { %v4190_v32 = vpop.permute.xlu1 %4189 }
 0x848   : > { %v3943_v34 = vpop.xlane.xlu0 %3942  ;;  %8449 = vmatprep.subr.bf16.mxu0 %v4190_v32 }
 0x849   : > { %9449 = vrcp.f32 %v3943_v34  ;;  %8450 = vmatpush3.bf16.msra.mxu0 %v4190_v32 }
 0x84b   : > { %8476 = vmatpush3.bf16.xpose.msra.mxu1 %v4378_v36  ;;  %v4331_v50 = vpop.permute.xlu1 %4330 }
 0x84c   : > { %v4188_v28 = vpop.permute.xlu0 %4187  ;;  %8770 = vmatprep.subr.msk.bf16.mxu1 %vm1645_vm2, %v4331_v50  ;;  %v4375_v42 = vsel %vm1645_vm2, %v4331_v50, 0 }
 0x84d   : > { %8451 = vmatprep.subr.bf16.mxu0 %v4188_v28 }
 0x84e   : > { %8452 = vmatpush3.bf16.msra.mxu0 %v4188_v28 }
 0x851   : > { %v9446_v0 = vpop.eup %9445 }
 0x852   : > { %v4025_v3 = vmul.f32 %v9446_v0, %v12667_v16  ;;  %v9448_v2 = vpop.eup %9447 }
 0x853   : > { %8478 = vmatpush3.bf16.xpose.msra.mxu1 %v4375_v42  ;;  %v4026_v63 = vmul.f32 %v9448_v2, %v12669_v19 }
 0x854   : > { %v4052_v5 = vpack.c.bf16 %v4025_v3, %v4024_v57 }
 0x856   : > { %v9450_v13 = vpop.eup %9449  ;;  %8431 = vmatprep.mubr.bf16.mxu1 %v4052_v5 }
 0x857   : > { %v4027_v18 = vmul.f32 %v9450_v13, %v12673_v15 }
 0x859   : > { %v4053_v20 = vpack.c.bf16 %v4027_v18, %v4026_v63 }
 0x85b   : > { %8432 = vmatmul.mubr.bf16.gmra.mxu1 %v4053_v20 }
 0x86c   : > { %v12798_v11 = vpop.f32.mrf.mxu0 }
 0x86d   : > { %15323 = vst [vmem:[#allocation40_spill] sm:$0xff] %v12798_v11 }
 0x86e   : > { %v12800_v9 = vpop.f32.mrf.mxu0 }
 0x86f   : > { %15324 = vst [vmem:[#allocation54_spill] sm:$0xff] %v12800_v9 }
 0x870   : > { %v12802_v59 = vpop.f32.mrf.mxu0 }
 0x871   : > { %15325 = vst [vmem:[#allocation43_spill] sm:$0xff] %v12802_v59 }
 0x872   : > { %v12806_v16 = vpop.f32.mrf.mxu0 }
 0x873   : > { %15326 = vst [vmem:[#allocation56_spill] sm:$0xff] %v12806_v16 }
 0x874   : > { %v12810_v58 = vpop.f32.mrf.mxu0 }
 0x875   : > { %15327 = vst [vmem:[#allocation55_spill] sm:$0xff] %v12810_v58  ;;  %v13001_v58 = vld [vmem:[%s15172_s27 + $0x68] sm:$0xff] }
 0x876   : > { %v12812_v19 = vpop.f32.mrf.mxu0  ;;  %15340 = vst [vmem:[#allocation82_spill] sm:$0xff] %v13001_v58 }
 0x877   : > { %15328 = vst [vmem:[#allocation16_spill] sm:$0xff] %v12812_v19 }
 0x878   : > { %v12814_v15 = vpop.f32.mrf.mxu0 }
 0x879   : > { %15329 = vst [vmem:[#allocation57_spill] sm:$0xff] %v12814_v15 }
 0x87a   : > { %v12818_v25 = vpop.f32.mrf.mxu0 }
 0x87b   : > { %15330 = vst [vmem:[#allocation66_spill] sm:$0xff] %v12818_v25 }
 0x87c   : > { %v3945_v46 = vpop.xlane.xlu1 %3944 }
 0x87d   : > { %9451 = vrcp.f32 %v3945_v46  ;;  %v3947_v56 = vpop.xlane.xlu0 %3946  ;;  %v12852_v46 = vld [vmem:[%s15172_s27 + $0x10] sm:$0xff] }
 0x87e   : > { %9453 = vrcp.f32 %v3947_v56 }
 0x880   : > { %v3951_v43 = vpop.xlane.xlu1 %3950 }
 0x881   : > { %9455 = vrcp.f32 %v3951_v43  ;;  %v3949_v33 = vpop.xlane.xlu0 %3948 }
 0x882   : > { %9457 = vrcp.f32 %v3949_v33 }
 0x884   : > { %v4329_v38 = vpop.permute.xlu1 %4328 }
 0x885   : > { %v4186_v39 = vpop.permute.xlu0 %4185  ;;  %8771 = vmatprep.subr.msk.bf16.mxu1 %vm1645_vm2, %v4329_v38  ;;  %v4372_v55 = vsel %vm1645_vm2, %v4329_v38, 0 }
 0x886   : > { %8453 = vmatprep.subr.bf16.mxu0 %v4186_v39  ;;  %8480 = vmatpush3.bf16.xpose.msra.mxu1 %v4372_v55  ;;  %v12864_v55 = vld [vmem:[%s15172_s27] sm:$0xff] }
 0x887   : > { %8454 = vmatpush3.bf16.msra.mxu0 %v4186_v39 }
 0x888   : > { %v12824_v49 = vpop.permute.xlu1 %4513  ;;  %v12826_v60 = vpop.f32.mrf.mxu0 }
 0x889   : > { %15331 = vst [vmem:[#allocation15_spill] sm:$0xff] %v12826_v60  ;;  %v4327_v10 = vpop.permute.xlu0 %4326  ;;  %8775 = vmatprep.subr.msk.bf16.mxu0 %vm1645_vm2, %v12824_v49 }
 0x88a   : > { %v9452_v32 = vpop.eup %9451  ;;  %8772 = vmatprep.subr.msk.bf16.mxu1 %vm1645_vm2, %v4327_v10  ;;  %v12831_v36 = vpop.f32.mrf.mxu0  ;;  %v4369_v42 = vsel %vm1645_vm2, %v4327_v10, 0 }
 0x88b   : > { %v9454_v34 = vpop.eup %9453  ;;  %15332 = vst [vmem:[#allocation65_spill] sm:$0xff] %v12831_v36  ;;  %v4028_v50 = vmul.f32 %v9452_v32, %v12716_v14  ;;  %v12872_v32 = vld [vmem:[%s15172_s27 + $0x18] sm:$0xff] }
 0x88c   : > { %v12834_v28 = vpop.permute.xlu1 %4511  ;;  %v4029_v27 = vmul.f32 %v9454_v34, %v12718_v48  ;;  %v12837_v0 = vpop.f32.mrf.mxu0 }
 0x88d   : > { %15333 = vst [vmem:[#allocation71_spill] sm:$0xff] %v12837_v0  ;;  %v12858_v38 = vpop.permute.xlu0 %4509 }
 0x88e   : > { %v9456_v57 = vpop.eup %9455  ;;  %8482 = vmatpush3.bf16.xpose.msra.mxu1 %v4369_v42  ;;  %v4054_v2 = vpack.c.bf16 %v4029_v27, %v4028_v50  ;;  %v12842_v13 = vpop.f32.mrf.mxu0 }
 0x88f   : > { %v9458_v5 = vpop.eup %9457  ;;  %15334 = vst [vmem:[#allocation75_spill] sm:$0xff] %v12842_v13  ;;  %v4031_v63 = vmul.f32 %v9456_v57, %v12722_v62  ;;  %v12884_v57 = vld [vmem:[%s15172_s27 + $0x8] sm:$0xff] }
 0x890   : > { %8435 = vmatprep.mubr.bf16.mxu1 %v4054_v2  ;;  %v4325_v48 = vpop.permute.xlu1 %4324  ;;  %v4030_v18 = vmul.f32 %v9458_v5, %v12724_v35  ;;  %v8393_v20 = vpop.f32.mrf.mxu0  ;;  %v12892_v5 = vld [vmem:[%s15172_s27 + $0x30] sm:$0xff] }
 0x891   : > { %8773 = vmatprep.subr.msk.bf16.mxu1 %vm1645_vm2, %v4325_v48  ;;  %v12855_v56 = vadd.f32 %v12852_v46, %v8393_v20  ;;  %v4366_v39 = vsel %vm1645_vm2, %v4325_v48, 0  ;;  %v12897_v48 = vpop.permute.xlu0 %4507 }
 0x892   : > { %v4055_v43 = vpack.c.bf16 %v4031_v63, %v4030_v18  ;;  %v3697_v62 = vpop.f32.mrf.mxu0 }
 0x893   : > { %3796 = vmax.xlane.f32.xlu0 %v12855_v56  ;;  %v12867_v10 = vadd.f32 %v12864_v55, %v3697_v62  ;;  %v12905_v62 = vld [vmem:[%s15172_s27 + $0x20] sm:$0xff] }
 0x894   : > { %8436 = vmatmul.mubr.bf16.gmra.mxu1 %v4055_v43  ;;  %v4323_v33 = vpop.permute.xlu1 %4322  ;;  %v8394_v35 = vpop.f32.mrf.mxu0 }
 0x895   : > { %v12875_v34 = vadd.f32 %v12872_v32, %v8394_v35  ;;  %v4363_v43 = vsel %vm1645_vm2, %v4323_v33, 0 }
 0x896   : > { %8484 = vmatpush3.bf16.xpose.msra.mxu1 %v4366_v39  ;;  %v3700_v50 = vpop.f32.mrf.mxu0  ;;  %v12913_v39 = vld [vmem:[%s15172_s27 + $0x38] sm:$0xff] }
 0x897   : > { %8774 = vmatprep.subr.msk.bf16.mxu1 %vm1645_vm2, %v4323_v33  ;;  %3798 = vmax.xlane.f32.xlu1 %v12875_v34  ;;  %v12887_v2 = vadd.f32 %v12884_v57, %v3700_v50 }
 0x898   : > { %3792 = vmax.xlane.f32.xlu0 %v12867_v10  ;;  %v4307_v27 = vpop.permute.xlu1 %4306  ;;  %v8397_v42 = vpop.f32.mrf.mxu0 }
 0x899   : > { %8487 = vmatprep.mubr.msk.bf16.mxu1 %vm1645_vm2, %v4307_v27  ;;  %v12895_v63 = vadd.f32 %v12892_v5, %v8397_v42  ;;  %v4309_v42 = vpop.permute.xlu0 %4308 }
 0x89a   : > { %v3713_v18 = vpop.f32.mrf.mxu0 }
 0x89b   : > { %3794 = vmax.xlane.f32.xlu1 %v12887_v2  ;;  %v12908_v35 = vadd.f32 %v12905_v62, %v3713_v18  ;;  %v12925_v18 = vld [vmem:[%s15172_s27 + $0x28] sm:$0xff] }
 0x89c   : > { %3804 = vmax.xlane.f32.xlu0 %v12895_v63  ;;  %v8398_v20 = vpop.f32.mrf.mxu0  ;;  %v12918_v27 = vpop.permute.xlu1 %4505 }
 0x89d   : > { %v12916_v50 = vadd.f32 %v12913_v39, %v8398_v20  ;;  %v12933_v20 = vld [vmem:[%s15172_s27 + $0x50] sm:$0xff]  ;;  %v4313_v24 = vpop.permute.xlu0 %4312 }
 0x89e   : > { %8486 = vmatpush3.bf16.xpose.msra.mxu1 %v4363_v43  ;;  %v3716_v33 = vpop.f32.mrf.mxu0 }
 0x89f   : > { %3806 = vmax.xlane.f32.xlu1 %v12916_v50  ;;  %v12928_v3 = vadd.f32 %v12925_v18, %v3716_v33  ;;  %v12944_v33 = vld [vmem:[%s15172_s27 + $0x40] sm:$0xff] }
 0x8a0   : > { %3800 = vmax.xlane.f32.xlu0 %v12908_v35  ;;  %v8401_v14 = vpop.f32.mrf.mxu0  ;;  %v4311_v45 = vpop.permute.xlu1 %4310 }
 0x8a1   : > { %v12936_v43 = vadd.f32 %v12933_v20, %v8401_v14  ;;  %v12952_v14 = vld [vmem:[%s15172_s27 + $0x58] sm:$0xff] }
 0x8a2   : > { %v3729_v44 = vpop.f32.mrf.mxu0  ;;  %15335 = vst [vmem:[#allocation13_spill] sm:$0xff] %v12952_v14 }
 0x8a3   : > { %3802 = vmax.xlane.f32.xlu1 %v12928_v3  ;;  %v12947_v23 = vadd.f32 %v12944_v33, %v3729_v44  ;;  %v12963_v44 = vld [vmem:[%s15172_s27 + $0x48] sm:$0xff] }
 0x8a4   : > { %3812 = vmax.xlane.f32.xlu0 %v12936_v43  ;;  %v8402_v30 = vpop.f32.mrf.mxu0  ;;  %15336 = vst [vmem:[#allocation78_spill] sm:$0xff] %v12963_v44 }
 0x8a5   : > { %8488 = vmatmul.mubr.msk.bf16.vlgmr.msra.gmra.mxu1 %vm1645_vm2, %v4309_v42  ;;  %v12955_v1 = vadd.f32 %v12952_v14, %v8402_v30  ;;  %v4315_v30 = vpop.permute.xlu0 %4314 }
 0x8a6   : > { %8491 = vmatprep.mubr.msk.bf16.mxu1 %vm1645_vm2, %v4311_v45  ;;  %v3732_v42 = vpop.f32.mrf.mxu0  ;;  %v12973_v45 = vld [vmem:[%s15172_s27 + $0x70] sm:$0xff] }
 0x8a7   : > { %3814 = vmax.xlane.f32.xlu1 %v12955_v1  ;;  %v12966_v36 = vadd.f32 %v12963_v44, %v3732_v42  ;;  %15337 = vst [vmem:[#allocation79_spill] sm:$0xff] %v12973_v45  ;;  %v12983_v42 = vld [vmem:[%s15172_s27 + $0x60] sm:$0xff] }
 0x8a8   : > { %3808 = vmax.xlane.f32.xlu0 %v12947_v23  ;;  %v8405_v13 = vpop.f32.mrf.mxu0  ;;  %15338 = vst [vmem:[#allocation80_spill] sm:$0xff] %v12983_v42 }
 0x8a9   : > { %v12976_v60 = vadd.f32 %v12973_v45, %v8405_v13  ;;  %v12992_v13 = vld [vmem:[%s15172_s27 + $0x78] sm:$0xff] }
 0x8aa   : > { %v3745_v0 = vpop.f32.mrf.mxu0  ;;  %15339 = vst [vmem:[#allocation81_spill] sm:$0xff] %v12992_v13 }
 0x8ab   : > { %3810 = vmax.xlane.f32.xlu1 %v12966_v36 }
 0x8ac   : > { %v8406_v19 = vpop.f32.mrf.mxu0 }
 0x8ad   : > { %8492 = vmatmul.mubr.msk.bf16.gmra.mxu1 %vm1645_vm2, %v4313_v24  ;;  %v12986_v24 = vadd.f32 %v12983_v42, %v3745_v0 }
 0x8ae   : > { %8495 = vmatprep.mubr.msk.bf16.mxu1 %vm1645_vm2, %v4315_v30  ;;  %v12995_v30 = vadd.f32 %v12992_v13, %v8406_v19  ;;  %v3748_v25 = vpop.f32.mrf.mxu0 }
 0x8af   : > { %3820 = vmax.xlane.f32.xlu1 %v12976_v60  ;;  %v13004_v0 = vadd.f32 %v13001_v58, %v3748_v25 }
 0x8b3   : > { %3816 = vmax.xlane.f32.xlu1 %v12986_v24 }
 0x8b7   : > { %3822 = vmax.xlane.f32.xlu1 %v12995_v30 }
 0x8bb   : > { %3818 = vmax.xlane.f32.xlu1 %v13004_v0 }
 0x8be   : > { %4501 = vrot.lane.b32.xlu0 %v15314_v61, %s9959_s20 }
 0x8cc   : > { %4316 = vrot.lane.b32.xlu1 %v15245_v21, %s9960_s23 }
 0x8fa   : > { %v13011_v19 = vpop.f32.mrf.mxu1 }
 0x8fb   : > { %15341 = vst [vmem:[#allocation83_spill] sm:$0xff] %v13011_v19  ;;  %v13037_v19 = vpop.permute.xlu1 %4503 }
 0x8fc   : > { %v13013_v15 = vpop.f32.mrf.mxu1 }
 0x8fd   : > { %15342 = vst [vmem:[#allocation84_spill] sm:$0xff] %v13013_v15 }
 0x8fe   : > { %v13015_v9 = vpop.f32.mrf.mxu1 }
 0x8ff   : > { %15343 = vst [vmem:[#allocation85_spill] sm:$0xff] %v13015_v9 }
 0x900   : > { %v13019_v11 = vpop.f32.mrf.mxu1 }
 0x901   : > { %15344 = vst [vmem:[#allocation86_spill] sm:$0xff] %v13019_v11 }
 0x902   : > { %v13023_v59 = vpop.f32.mrf.mxu1 }
 0x903   : > { %15345 = vst [vmem:[#allocation87_spill] sm:$0xff] %v13023_v59 }
 0x904   : > { %v13025_v52 = vpop.f32.mrf.mxu1 }
 0x905   : > { %15346 = vst [vmem:[#allocation88_spill] sm:$0xff] %v13025_v52 }
 0x906   : > { %v13027_v22 = vpop.f32.mrf.mxu1 }
 0x907   : > { %15347 = vst [vmem:[#allocation89_spill] sm:$0xff] %v13027_v22 }
 0x908   : > { %v13031_v51 = vpop.f32.mrf.mxu1 }
 0x909   : > { %15348 = vst [vmem:[#allocation90_spill] sm:$0xff] %v13031_v51 }
 0x91b   : > { %v13035_v16 = vpop.f32.mrf.mxu1 }
 0x91c   : > { %15349 = vst [vmem:[#allocation91_spill] sm:$0xff] %v13035_v16  ;;  %v3797_v9 = vpop.xlane.xlu0 %3796 }
 0x91d   : > { %v13039_v25 = vpop.f32.mrf.mxu1  ;;  %v3842_v15 = vsub.f32 %v12855_v56, %v3797_v9 }
 0x91e   : > { %15350 = vst [vmem:[#allocation92_spill] sm:$0xff] %v13039_v25 }
 0x91f   : > { %v13042_v11 = vpop.f32.mrf.mxu1  ;;  %v3892_v8 = vmul.f32 1.442695, %v3842_v15 }
 0x920   : > { %15351 = vst [vmem:[#allocation93_spill] sm:$0xff] %v13042_v11  ;;  %v3799_v59 = vpop.xlane.xlu1 %3798 }
 0x921   : > { %v3793_v22 = vpop.xlane.xlu0 %3792  ;;  %9459 = vpow2.f32 %v3892_v8  ;;  %v13047_v52 = vpop.f32.mrf.mxu1  ;;  %v3843_v51 = vsub.f32 %v12875_v34, %v3799_v59 }
 0x922   : > { %v3840_v4 = vsub.f32 %v12867_v10, %v3793_v22  ;;  %15352 = vst [vmem:[#allocation94_spill] sm:$0xff] %v13047_v52 }
 0x923   : > { %v3894_v15 = vmul.f32 1.442695, %v3843_v51 }
 0x924   : > { %v3888_v47 = vmul.f32 1.442695, %v3840_v4  ;;  %v3795_v9 = vpop.xlane.xlu1 %3794 }
 0x925   : > { %v3841_v56 = vsub.f32 %v12887_v2, %v3795_v9 }
 0x926   : > { %9461 = vpow2.f32 %v3888_v47 }
 0x927   : > { %v3890_v21 = vmul.f32 1.442695, %v3841_v56  ;;  %v3805_v56 = vpop.xlane.xlu0 %3804 }
 0x928   : > { %v3807_v53 = vpop.xlane.xlu1 %3806  ;;  %v3846_v26 = vsub.f32 %v12895_v63, %v3805_v56 }
 0x929   : > { %9463 = vpow2.f32 %v3890_v21 }
 0x92a   : > { %9465 = vpow2.f32 %v3894_v15  ;;  %v3900_v42 = vmul.f32 1.442695, %v3846_v26 }
 0x92b   : > { %v3801_v15 = vpop.xlane.xlu0 %3800 }
 0x92c   : > { %v3803_v8 = vpop.xlane.xlu1 %3802  ;;  %v3844_v14 = vsub.f32 %v12908_v35, %v3801_v15 }
 0x92d   : > { %v3845_v11 = vsub.f32 %v12928_v3, %v3803_v8  ;;  %v3847_v8 = vsub.f32 %v12916_v50, %v3807_v53 }
 0x92e   : > { %v13053_v16 = vpop.eup %9459  ;;  %v3896_v56 = vmul.f32 1.442695, %v3844_v14 }
 0x92f   : > { %3956 = vadd.xlane.f32.xlu0 %v13053_v16  ;;  %v3813_v25 = vpop.xlane.xlu0 %3812 }
 0x930   : > { %v3815_v22 = vpop.xlane.xlu1 %3814 }
 0x933   : > { %v13056_v59 = vpop.eup %9461  ;;  %v3809_v44 = vpop.xlane.xlu0 %3808 }
 0x934   : > { %3952 = vadd.xlane.f32.xlu0 %v13056_v59  ;;  %v3811_v4 = vpop.xlane.xlu1 %3810  ;;  %v3848_v63 = vsub.f32 %v12947_v23, %v3809_v44 }
 0x935   : > { %v3849_v23 = vsub.f32 %v12966_v36, %v3811_v4 }
 0x936   : > { %v13059_v10 = vpop.eup %9463 }
 0x937   : > { %v13061_v34 = vpop.eup %9465  ;;  %3954 = vadd.xlane.f32.xlu1 %v13059_v10  ;;  %v3906_v50 = vmul.f32 1.442695, %v3849_v23 }
 0x938   : > { %3958 = vadd.xlane.f32.xlu0 %v13061_v34  ;;  %v3821_v47 = vpop.xlane.xlu1 %3820 }
 0x93c   : > { %v3817_v21 = vpop.xlane.xlu1 %3816 }
 0x93d   : > { %v3852_v35 = vsub.f32 %v12986_v24, %v3817_v21 }
 0x93f   : > { %v3912_v44 = vmul.f32 1.442695, %v3852_v35 }
 0x940   : > { %v13065_v51 = vpop.xlane.xlu1 %3822 }
 0x944   : > { %v13067_v2 = vpop.xlane.xlu1 %3818 }
 0x945   : > { %v3853_v15 = vsub.f32 %v13004_v0, %v13067_v2 }
 0x948   : > { %4318 = vrot.lane.b32.xlu1 %v10966_v37, %s9960_s23  ;;  %v4317_v9 = vpop.permute.xlu1 %4316  ;;  %v3904_v37 = vmul.f32 1.442695, %v3848_v63 }
 0x949   : > { %8496 = vmatmul.mubr.msk.bf16.gmra.mxu1 %vm1645_vm2, %v4317_v9  ;;  %v3898_v9 = vmul.f32 1.442695, %v3845_v11  ;;  %v3854_v11 = vsub.f32 %v12976_v60, %v3821_v47  ;;  %v3855_v47 = vsub.f32 %v12995_v30, %v13065_v51 }
 0x94b   : > { %9467 = vpow2.f32 %v3898_v9  ;;  %v3916_v26 = vmul.f32 1.442695, %v3854_v11  ;;  %v3918_v21 = vmul.f32 1.442695, %v3855_v47 }
 0x94c   : > { %9469 = vpow2.f32 %v3900_v42 }
 0x94e   : > { %4320 = vrot.lane.b32.xlu0 %v15248_v31, %s9960_s23  ;;  %v3850_v31 = vsub.f32 %v12936_v43, %v3813_v25  ;;  %v3902_v43 = vmul.f32 1.442695, %v3847_v8  ;;  %v3851_v25 = vsub.f32 %v12955_v1, %v3815_v22  ;;  %v13148_v8 = vpop.permute.xlu0 %4501 }
 0x950   : > { %v3908_v3 = vmul.f32 1.442695, %v3850_v31  ;;  %v3910_v31 = vmul.f32 1.442695, %v3851_v25 }
 0x952   : > { %9471 = vpow2.f32 %v3908_v3  ;;  %v3914_v3 = vmul.f32 1.442695, %v3853_v15 }
 0x953   : > { %9473 = vpow2.f32 %v3896_v56 }
 0x954   : > { %v13074_v40 = vpop.f32.mrf.mxu1  ;;  %9475 = vpow2.f32 %v3904_v37 }
 0x955   : > { %9477 = vpow2.f32 %v3902_v43 }
 0x956   : > { %v13076_v52 = vpop.f32.mrf.mxu1  ;;  %9479 = vpow2.f32 %v3916_v26 }
 0x957   : > { %9481 = vpow2.f32 %v3910_v31 }
 0x958   : > { %v13080_v13 = vpop.f32.mrf.mxu1  ;;  %v13096_v53 = vpop.eup %9467  ;;  %9483 = vpow2.f32 %v3912_v44 }
 0x959   : > { %v13098_v14 = vpop.eup %9469  ;;  %9485 = vpow2.f32 %v3906_v50 }
 0x95a   : > { %v13084_v58 = vpop.f32.mrf.mxu1  ;;  %9487 = vpow2.f32 %v3918_v21 }
 0x95b   : > { %9489 = vpow2.f32 %v3914_v3 }
 0x95f   : > { %v13102_v37 = vpop.eup %9471 }
 0x960   : > { %v13104_v1 = vpop.eup %9473 }
 0x961   : > { %v13108_v60 = vpop.eup %9475 }
 0x962   : > { %v13110_v36 = vpop.eup %9477 }
 0x963   : > { %v13114_v42 = vpop.eup %9479 }
 0x964   : > { %v13116_v24 = vpop.eup %9481 }
 0x965   : > { %v13120_v22 = vpop.eup %9483  ;;  %v8489_v9 = vpop.f32.mrf.mxu1 }
 0x966   : > { %v13122_v4 = vpop.eup %9485  ;;  %v13174_v21 = vadd.f32 %v12852_v46, %v8489_v9 }
 0x967   : > { %v4420_v63 = vpop.f32.mrf.mxu1  ;;  %v13150_v26 = vpop.eup %9487 }
 0x968   : > { %v13156_v2 = vpop.eup %9489  ;;  %v13164_v44 = vadd.f32 %v12864_v55, %v4420_v63 }
 0x969   : > { %v8490_v56 = vpop.f32.mrf.mxu1 }
 0x96a   : > { %v13179_v15 = vadd.f32 %v12872_v32, %v8490_v56 }
 0x96b   : > { %v4423_v11 = vpop.f32.mrf.mxu1 }
 0x96c   : > { %3962 = vadd.xlane.f32.xlu1 %v13096_v53  ;;  %v13154_v30 = vadd.f32 %v12884_v57, %v4423_v11 }
 0x96d   : > { %3964 = vadd.xlane.f32.xlu0 %v13098_v14  ;;  %v8493_v25 = vpop.f32.mrf.mxu1 }
 0x96e   : > { %v13171_v47 = vadd.f32 %v12892_v5, %v8493_v25 }
 0x96f   : > { %v4436_v0 = vpop.f32.mrf.mxu1 }
 0x970   : > { %3972 = vadd.xlane.f32.xlu1 %v13102_v37  ;;  %v13161_v23 = vadd.f32 %v12905_v62, %v4436_v0 }
 0x971   : > { %3960 = vadd.xlane.f32.xlu0 %v13104_v1  ;;  %v8494_v62 = vpop.f32.mrf.mxu1 }
 0x972   : > { %v13191_v56 = vadd.f32 %v12913_v39, %v8494_v62  ;;  %v4555_v39 = vsel %vm1645_vm2, %v12858_v38, 0 }
 0x973   : > { %v4439_v63 = vpop.f32.mrf.mxu1 }
 0x974   : > { %3968 = vadd.xlane.f32.xlu1 %v13108_v60  ;;  %v13185_v9 = vadd.f32 %v12925_v18, %v4439_v63 }
 0x975   : > { %3966 = vadd.xlane.f32.xlu0 %v13110_v36 }
 0x978   : > { %3980 = vadd.xlane.f32.xlu1 %v13114_v42 }
 0x979   : > { %3974 = vadd.xlane.f32.xlu0 %v13116_v24 }
 0x97c   : > { %3976 = vadd.xlane.f32.xlu1 %v13120_v22 }
 0x97d   : > { %3970 = vadd.xlane.f32.xlu0 %v13122_v4 }
 0x98d   : > { %4499 = vrot.lane.b32.xlu1 %v15318_v54, %s9959_s20  ;;  %s9961_s20 = smov 40  }
 0x991   : > { %4485 = vrot.lane.b32.xlu1 %v15314_v61, %s9960_s23 }
 0x993   : > { %4483 = vrot.lane.b32.xlu0 %v15318_v54, %s9960_s23 }
 0x995   : > { %4489 = vrot.lane.b32.xlu1 %v15218_v41, %s9960_s23 }
 0x997   : > { %4487 = vrot.lane.b32.xlu0 %v15311_v12, %s9960_s23 }
 0x999   : > { %4493 = vrot.lane.b32.xlu1 %v15204_v7, %s9960_s23 }
 0x99b   : > { %4491 = vrot.lane.b32.xlu0 %v15209_v6, %s9960_s23 }
 0x99d   : > { %4497 = vrot.lane.b32.xlu1 %v11035_v17, %s9960_s23 }
 0x99f   : > { %4495 = vrot.lane.b32.xlu0 %v11044_v29, %s9960_s23  ;;  %s9963_s23 = smov 16  }
 0x9b8   : > { %v3957_v43 = vpop.xlane.xlu0 %3956 }
 0x9bd   : > { %v3953_v35 = vpop.xlane.xlu0 %3952 }
 0x9be   : > { %3982 = vadd.xlane.f32.xlu0 %v13150_v26  ;;  %9491 = vrcp.f32 %v3953_v35 }
 0x9bf   : > { %9493 = vrcp.f32 %v3957_v43 }
 0x9c0   : > { %v3955_v51 = vpop.xlane.xlu1 %3954 }
 0x9c1   : > { %9495 = vrcp.f32 %v3955_v51  ;;  %v3959_v31 = vpop.xlane.xlu0 %3958  ;;  %4662 = vmax.xlane.f32.xlu1 %v13154_v30 }
 0x9c2   : > { %9497 = vrcp.f32 %v3959_v31  ;;  %3978 = vadd.xlane.f32.xlu0 %v13156_v2 }
 0x9c4   : > { %v4319_v57 = vpop.permute.xlu1 %4318 }
 0x9c5   : > { %v4321_v50 = vpop.permute.xlu0 %4320  ;;  %8499 = vmatprep.mubr.msk.bf16.mxu1 %vm1645_vm2, %v4319_v57  ;;  %4668 = vmax.xlane.f32.xlu1 %v13161_v23 }
 0x9c6   : > { %4660 = vmax.xlane.f32.xlu0 %v13164_v44  ;;  %8500 = vmatmul.mubr.msk.bf16.gmra.mxu1 %vm1645_vm2, %v4321_v50  ;;  %v4543_v50 = vsel %vm1645_vm2, %v13148_v8, 0 }
 0x9c9   : > { %4672 = vmax.xlane.f32.xlu1 %v13171_v47 }
 0x9ca   : > { %4664 = vmax.xlane.f32.xlu0 %v13174_v21 }
 0x9cb   : > { %v9492_v55 = vpop.eup %9491 }
 0x9cc   : > { %v9494_v3 = vpop.eup %9493  ;;  %v4032_v5 = vmul.f32 %v9492_v55, %v13056_v59  ;;  %v4561_v59 = vsel %vm1645_vm2, %v12824_v49, 0  ;;  %v4552_v49 = vsel %vm1645_vm2, %v12897_v48, 0 }
 0x9cd   : > { %v4034_v25 = vmul.f32 %v9494_v3, %v13053_v16  ;;  %v4558_v16 = vsel %vm1645_vm2, %v12834_v28, 0 }
 0x9ce   : > { %v9496_v11 = vpop.eup %9495  ;;  %4666 = vmax.xlane.f32.xlu0 %v13179_v15 }
 0x9cf   : > { %v9498_v43 = vpop.eup %9497  ;;  %v4033_v46 = vmul.f32 %v9496_v11, %v13059_v10 }
 0x9d0   : > { %v4035_v35 = vmul.f32 %v9498_v43, %v13061_v34 }
 0x9d1   : > { %v4056_v0 = vpack.c.bf16 %v4033_v46, %v4032_v5 }
 0x9d2   : > { %4670 = vmax.xlane.f32.xlu0 %v13185_v9  ;;  %v4057_v32 = vpack.c.bf16 %v4035_v35, %v4034_v25 }
 0x9d3   : > { %8455 = vmatprep.mubr.bf16.mxu0 %v4056_v0 }
 0x9d4   : > { %8456 = vmatmul.mubr.bf16.vlgmr.msra.gmra.mxu0 %v4057_v32 }
 0x9d5   : > { %8504 = vmatpush3.bf16.xpose.msra.mxu0 %v4561_v59 }
 0x9d6   : > { %4674 = vmax.xlane.f32.xlu0 %v13191_v56  ;;  %8776 = vmatprep.subr.msk.bf16.mxu0 %vm1645_vm2, %v12834_v28  ;;  %v4549_v28 = vsel %vm1645_vm2, %v12918_v27, 0 }
 0x9dd   : > { %8506 = vmatpush3.bf16.xpose.msra.mxu0 %v4558_v16 }
 0x9de   : > { %8777 = vmatprep.subr.msk.bf16.mxu0 %vm1645_vm2, %v12858_v38 }
 0x9e5   : > { %8508 = vmatpush3.bf16.xpose.msra.mxu0 %v4555_v39 }
 0x9e6   : > { %8778 = vmatprep.subr.msk.bf16.mxu0 %vm1645_vm2, %v12897_v48  ;;  %v4546_v48 = vsel %vm1645_vm2, %v13037_v19, 0 }
 0x9ed   : > { %8510 = vmatpush3.bf16.xpose.msra.mxu0 %v4552_v49 }
 0x9ee   : > { %8779 = vmatprep.subr.msk.bf16.mxu0 %vm1645_vm2, %v12918_v27 }
 0x9f5   : > { %8512 = vmatpush3.bf16.xpose.msra.mxu0 %v4549_v28  ;;  %v3963_v18 = vpop.xlane.xlu1 %3962  ;;  %v15353_v28 = vld [vmem:[#allocation78_spill] sm:$0xff] }
 0x9f6   : > { %8780 = vmatprep.subr.msk.bf16.mxu0 %vm1645_vm2, %v13037_v19  ;;  %v3965_v38 = vpop.xlane.xlu0 %3964  ;;  %9499 = vrcp.f32 %v3963_v18 }
 0x9f9   : > { %v3973_v10 = vpop.xlane.xlu1 %3972 }
 0x9fa   : > { %v3961_v34 = vpop.xlane.xlu0 %3960 }
 0x9fb   : > { %9501 = vrcp.f32 %v3961_v34 }
 0x9fc   : > { %9503 = vrcp.f32 %v3965_v38 }
 0x9fd   : > { %8514 = vmatpush3.bf16.xpose.msra.mxu0 %v4546_v48  ;;  %v3969_v51 = vpop.xlane.xlu1 %3968 }
 0x9fe   : > { %8781 = vmatprep.subr.msk.bf16.mxu0 %vm1645_vm2, %v13148_v8  ;;  %v3967_v27 = vpop.xlane.xlu0 %3966 }
 0x9ff   : > { %9505 = vrcp.f32 %v3967_v27 }
 0xa01   : > { %v3981_v31 = vpop.xlane.xlu1 %3980 }
 0xa02   : > { %v3975_v57 = vpop.xlane.xlu0 %3974 }
 0xa03   : > { %9507 = vrcp.f32 %v3975_v57  ;;  %v9500_v55 = vpop.eup %9499 }
 0xa04   : > { %9509 = vrcp.f32 %v3969_v51  ;;  %v4037_v5 = vmul.f32 %v9500_v55, %v13096_v53 }
 0xa05   : > { %8516 = vmatpush3.bf16.xpose.msra.mxu0 %v4543_v50  ;;  %v3977_v62 = vpop.xlane.xlu1 %3976  ;;  %9511 = vrcp.f32 %v3973_v10 }
 0xa06   : > { %v3971_v19 = vpop.xlane.xlu0 %3970 }
 0xa07   : > { %9513 = vrcp.f32 %v3971_v19 }
 0xa08   : > { %v9502_v3 = vpop.eup %9501 }
 0xa09   : > { %v8497_v63 = vpop.f32.mrf.mxu1  ;;  %v4500_v11 = vpop.permute.xlu1 %4499  ;;  %v4036_v43 = vmul.f32 %v9502_v3, %v13104_v1 }
 0xa0a   : > { %v9504_v46 = vpop.eup %9503  ;;  %8782 = vmatprep.subr.msk.bf16.mxu0 %vm1645_vm2, %v4500_v11  ;;  %v4540_v25 = vsel %vm1645_vm2, %v4500_v11, 0  ;;  %v13231_v49 = vadd.f32 %v12933_v20, %v8497_v63  ;;  %v4484_v55 = vpop.permute.xlu0 %4483 }
 0xa0b   : > { %v4452_v8 = vpop.f32.mrf.mxu1  ;;  %v4058_v35 = vpack.c.bf16 %v4037_v5, %v4036_v43  ;;  %v4038_v16 = vmul.f32 %v9504_v46, %v13098_v14 }
 0xa0c   : > { %v9506_v0 = vpop.eup %9505  ;;  %v13225_v32 = vadd.f32 %v12944_v33, %v4452_v8 }
 0xa0d   : > { %8459 = vmatprep.mubr.bf16.mxu0 %v4058_v35  ;;  %8518 = vmatpush3.bf16.xpose.msra.mxu0 %v4540_v25  ;;  %v8498_v59 = vpop.f32.mrf.mxu1  ;;  %v4039_v1 = vmul.f32 %v9506_v0, %v13110_v36  ;;  %v15354_v36 = vld [vmem:[#allocation13_spill] sm:$0xff] }
 0xa0e   : > { %4676 = vmax.xlane.f32.xlu1 %v13225_v32  ;;  %v13239_v34 = vadd.f32 %v15354_v36, %v8498_v59  ;;  %v4488_v19 = vpop.permute.xlu0 %4487  ;;  %v15355_v59 = vld [vmem:[#allocation80_spill] sm:$0xff] }
 0xa0f   : > { %v4455_v53 = vpop.f32.mrf.mxu1  ;;  %v4059_v39 = vpack.c.bf16 %v4039_v1, %v4038_v16 }
 0xa10   : > { %v13234_v18 = vadd.f32 %v15353_v28, %v4455_v53  ;;  %v9508_v38 = vpop.eup %9507 }
 0xa11   : > { %8460 = vmatmul.mubr.bf16.gmra.mxu0 %v4059_v39  ;;  %v9510_v33 = vpop.eup %9509  ;;  %v4043_v48 = vmul.f32 %v9508_v38, %v13116_v24  ;;  %v15356_v39 = vmov %v12973_v45  ;;  %v15357_v38 = vld [vmem:[#allocation82_spill] sm:$0xff]  ;;  %v9877_v45 = vld [vmem:[%s15172_s27 + $0x18] sm:$0xff] }
 0xa12   : > { %4678 = vmax.xlane.f32.xlu0 %v13234_v18  ;;  %4680 = vmax.xlane.f32.xlu1 %v13231_v49  ;;  %v9512_v14 = vpop.eup %9511  ;;  %v4040_v20 = vmul.f32 %v9510_v33, %v13108_v60  ;;  %v4492_v3 = vpop.permute.xlu0 %4491 }
 0xa13   : > { %v4042_v27 = vmul.f32 %v9512_v14, %v13102_v37  ;;  %v15358_v14 = vld [vmem:[#allocation81_spill] sm:$0xff] }
 0xa14   : > { %v9514_v10 = vpop.eup %9513 }
 0xa15   : > { %v4041_v51 = vmul.f32 %v9514_v10, %v13122_v4  ;;  %v4061_v50 = vpack.c.bf16 %v4043_v48, %v4042_v27 }
 0xa16   : > { %4682 = vmax.xlane.f32.xlu0 %v13239_v34  ;;  %v4496_v63 = vpop.permute.xlu0 %4495 }
 0xa17   : > { %v4060_v57 = vpack.c.bf16 %v4041_v51, %v4040_v20 }
 0xa19   : > { %8463 = vmatprep.mubr.bf16.mxu0 %v4060_v57 }
 0xa1a   : > { %8464 = vmatmul.mubr.bf16.gmra.mxu0 %v4061_v50  ;;  %v15359_v50 = vld [vmem:[#allocation6_spill] sm:$0xff] }
 0xa47   : > { %v3983_v11 = vpop.xlane.xlu0 %3982 }
 0xa48   : > { %9515 = vrcp.f32 %v3983_v11 }
 0xa49   : > { %9517 = vrcp.f32 %v3977_v62 }
 0xa4a   : > { %9519 = vrcp.f32 %v3981_v31  ;;  %v4486_v31 = vpop.permute.xlu1 %4485 }
 0xa4b   : > { %v3979_v24 = vpop.xlane.xlu0 %3978 }
 0xa4c   : > { %9521 = vrcp.f32 %v3979_v24  ;;  %v15362_v24 = vld [vmem:[#allocation9_spill] sm:$0xff] }
 0xa4e   : > { %v4490_v62 = vpop.permute.xlu1 %4489 }
 0xa55   : > { %v9516_v60 = vpop.eup %9515 }
 0xa56   : > { %v9518_v4 = vpop.eup %9517  ;;  %v4047_v37 = vmul.f32 %v9516_v60, %v13150_v26 }
 0xa57   : > { %v9520_v43 = vpop.eup %9519  ;;  %v4044_v46 = vmul.f32 %v9518_v4, %v13120_v22  ;;  %v4494_v22 = vpop.permute.xlu1 %4493  ;;  %v15363_v4 = vld [vmem:[#allocation8_spill] sm:$0xff] }
 0xa58   : > { %v4046_v8 = vmul.f32 %v9520_v43, %v13114_v42 }
 0xa59   : > { %v9522_v5 = vpop.eup %9521 }
 0xa5a   : > { %v4045_v25 = vmul.f32 %v9522_v5, %v13156_v2  ;;  %v4063_v0 = vpack.c.bf16 %v4047_v37, %v4046_v8 }
 0xa5b   : > { %v4498_v42 = vpop.permute.xlu1 %4497 }
 0xa5c   : > { %v4062_v35 = vpack.c.bf16 %v4045_v25, %v4044_v46 }
 0xa5e   : > { %8467 = vmatprep.mubr.bf16.mxu0 %v4062_v35 }
 0xa5f   : > { %8468 = vmatmul.mubr.bf16.gmra.mxu0 %v4063_v0 }
 0xa60   : > { %8519 = vmatprep.mubr.msk.bf16.mxu0 %vm1645_vm2, %v4484_v55  ;;  %v4661_v55 = vpop.xlane.xlu0 %4660 }
 0xa64   : > { %v4665_v11 = vpop.xlane.xlu0 %4664 }
 0xa65   : > { %v4726_v25 = vsub.f32 %v13174_v21, %v4665_v11 }
 0xa67   : > { %8520 = vmatmul.mubr.msk.bf16.vlgmr.msra.gmra.mxu0 %vm1645_vm2, %v4486_v31  ;;  %v4724_v31 = vsub.f32 %v13164_v44, %v4661_v55 }
 0xa68   : > { %8523 = vmatprep.mubr.msk.bf16.mxu0 %vm1645_vm2, %v4488_v19  ;;  %v15360_v19 = vld [vmem:[#allocation7_spill] sm:$0xff]  ;;  %v4667_v43 = vpop.xlane.xlu0 %4666 }
 0xa6c   : > { %v4671_v46 = vpop.xlane.xlu0 %4670 }
 0xa6f   : > { %8524 = vmatmul.mubr.msk.bf16.gmra.mxu0 %vm1645_vm2, %v4490_v62  ;;  %v4760_v62 = vmul.f32 1.442695, %v4726_v25 }
 0xa70   : > { %8527 = vmatprep.mubr.msk.bf16.mxu0 %vm1645_vm2, %v4492_v3  ;;  %v4663_v3 = vpop.xlane.xlu1 %4662 }
 0xa74   : > { %v4669_v60 = vpop.xlane.xlu1 %4668 }
 0xa75   : > { %v4728_v8 = vsub.f32 %v13161_v23, %v4669_v60 }
 0xa77   : > { %8528 = vmatmul.mubr.msk.bf16.gmra.mxu0 %vm1645_vm2, %v4494_v22  ;;  %v4675_v22 = vpop.xlane.xlu0 %4674 }
 0xa78   : > { %8531 = vmatprep.mubr.msk.bf16.mxu0 %vm1645_vm2, %v4496_v63  ;;  %v15361_v63 = vld [vmem:[#allocation11_spill] sm:$0xff]  ;;  %v4673_v5 = vpop.xlane.xlu1 %4672 }
 0xa79   : > { %v4730_v37 = vsub.f32 %v13171_v47, %v4673_v5 }
 0xa7b   : > { %v4768_v35 = vmul.f32 1.442695, %v4730_v37 }
 0xa7d   : > { %9523 = vpow2.f32 %v4768_v35 }
 0xa7e   : > { %9525 = vpow2.f32 %v4760_v62 }
 0xa7f   : > { %8532 = vmatmul.mubr.msk.bf16.gmra.mxu0 %vm1645_vm2, %v4498_v42  ;;  %v4764_v42 = vmul.f32 1.442695, %v4728_v8 }
 0xa81   : > { %9527 = vpow2.f32 %v4764_v42 }
 0xa86   : > { %v8501_v26 = vpop.f32.mrf.mxu1 }
 0xa87   : > { %v13263_v28 = vadd.f32 %v15356_v39, %v8501_v26  ;;  %v4727_v26 = vsub.f32 %v13179_v15, %v4667_v43 }
 0xa88   : > { %v4468_v2 = vpop.f32.mrf.mxu1 }
 0xa89   : > { %v13259_v16 = vadd.f32 %v15355_v59, %v4468_v2  ;;  %v4756_v2 = vmul.f32 1.442695, %v4724_v31  ;;  %v4731_v59 = vsub.f32 %v13191_v56, %v4675_v22  ;;  %v4762_v21 = vmul.f32 1.442695, %v4727_v26 }
 0xa8a   : > { %v8502_v1 = vpop.f32.mrf.mxu1  ;;  %v13307_v55 = vpop.eup %9523 }
 0xa8b   : > { %4684 = vmax.xlane.f32.xlu1 %v13259_v16  ;;  %v13271_v10 = vadd.f32 %v15358_v14, %v8502_v1  ;;  %v4725_v1 = vsub.f32 %v13154_v30, %v4663_v3  ;;  %9529 = vpow2.f32 %v4756_v2 }
 0xa8c   : > { %v4471_v53 = vpop.f32.mrf.mxu1  ;;  %9531 = vpow2.f32 %v4762_v21 }
 0xa8d   : > { %v13266_v33 = vadd.f32 %v15357_v38, %v4471_v53  ;;  %v4770_v53 = vmul.f32 1.442695, %v4731_v59  ;;  %v4758_v39 = vmul.f32 1.442695, %v4725_v1  ;;  %v4729_v38 = vsub.f32 %v13185_v9, %v4671_v46  ;;  %v15371_v1 = vld [vmem:[#allocation10_spill] sm:$0xff]  ;;  %v9875_v59 = vld [vmem:[%s15172_s27 + $0x10] sm:$0xff] }
 0xa8f   : > { %4686 = vmax.xlane.f32.xlu0 %v13266_v33  ;;  %4688 = vmax.xlane.f32.xlu1 %v13263_v28  ;;  %9533 = vpow2.f32 %v4770_v53  ;;  %v4766_v56 = vmul.f32 1.442695, %v4729_v38 }
 0xa90   : > { %9535 = vpow2.f32 %v4758_v39 }
 0xa93   : > { %4690 = vmax.xlane.f32.xlu0 %v13271_v10 }
 0xa94   : > { %v13274_v36 = vpop.f32.mrf.mxu0 }
 0xa96   : > { %v13276_v48 = vpop.f32.mrf.mxu0 }
 0xa97   : > { %v4677_v0 = vpop.xlane.xlu1 %4676 }
 0xa98   : > { %v13278_v20 = vpop.f32.mrf.mxu0  ;;  %v4732_v15 = vsub.f32 %v13225_v32, %v4677_v0 }
 0xa9a   : > { %v13282_v27 = vpop.f32.mrf.mxu0 }
 0xa9b   : > { %v4681_v47 = vpop.xlane.xlu1 %4680  ;;  %v4679_v23 = vpop.xlane.xlu0 %4678 }
 0xa9c   : > { %v4734_v44 = vsub.f32 %v13231_v49, %v4681_v47  ;;  %v4733_v30 = vsub.f32 %v13234_v18, %v4679_v23  ;;  %v13310_v49 = vpop.eup %9525  ;;  %v15370_v47 = vld [vmem:[#allocation12_spill] sm:$0xff] }
 0xa9d   : > { %v13314_v32 = vpop.eup %9527 }
 0xa9e   : > { %v4776_v14 = vmul.f32 1.442695, %v4734_v44  ;;  %v4774_v9 = vmul.f32 1.442695, %v4733_v30  ;;  %v13316_v11 = vpop.eup %9529 }
 0xaa0   : > { %4978 = vrot.lane.b32.xlu1 %v15359_v50, %s9961_s20  ;;  %v4683_v50 = vpop.xlane.xlu0 %4682  ;;  %9537 = vpow2.f32 %v4776_v14 }
 0xaa1   : > { %v4735_v3 = vsub.f32 %v13239_v34, %v4683_v50  ;;  %9539 = vpow2.f32 %v4766_v56  ;;  %v13322_v34 = vpop.eup %9531 }
 0xaa4   : > { %4976 = vrot.lane.b32.xlu1 %v15360_v19, %s9961_s20  ;;  %v4772_v19 = vmul.f32 1.442695, %v4732_v15 }
 0xaa6   : > { %9541 = vpow2.f32 %v4772_v19 }
 0xaa7   : > { %9543 = vpow2.f32 %v4774_v9 }
 0xaa8   : > { %4972 = vrot.lane.b32.xlu1 %v15361_v63, %s9961_s20  ;;  %v4778_v63 = vmul.f32 1.442695, %v4735_v3 }
 0xaa9   : > { %4974 = vrot.lane.b32.xlu0 %v15362_v24, %s9961_s20  ;;  %v13324_v24 = vpop.eup %9533 }
 0xaaa   : > { %9545 = vpow2.f32 %v4778_v63  ;;  %v13332_v43 = vpop.eup %9535 }
 0xaad   : > { %4970 = vrot.lane.b32.xlu0 %v15363_v4, %s9961_s20  ;;  %v13336_v37 = vpop.eup %9537 }
 0xaae   : > { %v13344_v8 = vpop.eup %9539 }
 0xab3   : > { %v13348_v0 = vpop.eup %9541 }
 0xab4   : > { %v13354_v62 = vpop.eup %9543 }
 0xab7   : > { %v13358_v42 = vpop.eup %9545 }
 0xacc   : > { %4832 = vadd.xlane.f32.xlu1 %v13307_v55  ;;  %4824 = vadd.xlane.f32.xlu0 %v13310_v49 }
 0xad0   : > { %4828 = vadd.xlane.f32.xlu1 %v13314_v32  ;;  %4820 = vadd.xlane.f32.xlu0 %v13316_v11 }
 0xad1   : > { %v13320_v18 = vpop.f32.mrf.mxu0 }
 0xad3   : > { %v13326_v60 = vpop.f32.mrf.mxu0 }
 0xad4   : > { %15364 = vst [vmem:[#allocation78_spill] sm:$0xff] %v13326_v60  ;;  %4826 = vadd.xlane.f32.xlu0 %v13322_v34  ;;  %4834 = vadd.xlane.f32.xlu1 %v13324_v24 }
 0xad5   : > { %v13330_v4 = vpop.f32.mrf.mxu0 }
 0xad7   : > { %v13338_v46 = vpop.f32.mrf.mxu0 }
 0xad8   : > { %15365 = vst [vmem:[#allocation13_spill] sm:$0xff] %v13338_v46  ;;  %4822 = vadd.xlane.f32.xlu0 %v13332_v43  ;;  %4840 = vadd.xlane.f32.xlu1 %v13336_v37 }
 0xada   : > { %v13346_v35 = vpop.f32.mrf.mxu0 }
 0xadb   : > { %15366 = vst [vmem:[#allocation80_spill] sm:$0xff] %v13346_v35 }
 0xadc   : > { %v13350_v31 = vpop.f32.mrf.mxu0  ;;  %4830 = vadd.xlane.f32.xlu0 %v13344_v8  ;;  %4836 = vadd.xlane.f32.xlu1 %v13348_v0 }
 0xadd   : > { %15367 = vst [vmem:[#allocation79_spill] sm:$0xff] %v13350_v31  ;;  %v9880_v31 = vld [vmem:[%s15172_s27 + $0x20] sm:$0xff] }
 0xade   : > { %v13356_v22 = vpop.f32.mrf.mxu0 }
 0xadf   : > { %15368 = vst [vmem:[#allocation82_spill] sm:$0xff] %v13356_v22 }
 0xae0   : > { %v13362_v2 = vpop.f32.mrf.mxu0  ;;  %4838 = vadd.xlane.f32.xlu0 %v13354_v62  ;;  %4842 = vadd.xlane.f32.xlu1 %v13358_v42 }
 0xae1   : > { %15369 = vst [vmem:[#allocation81_spill] sm:$0xff] %v13362_v2 }
 0xaf1   : > { %4966 = vrot.lane.b32.xlu1 %v15370_v47, %s9961_s20 }
 0xaf6   : > { %4968 = vrot.lane.b32.xlu0 %v15371_v1, %s9961_s20 }
 0xb14   : > { %v4685_v21 = vpop.xlane.xlu1 %4684 }
 0xb15   : > { %v4736_v23 = vsub.f32 %v13259_v16, %v4685_v21 }
 0xb17   : > { %v4780_v53 = vmul.f32 1.442695, %v4736_v23 }
 0xb18   : > { %v4689_v44 = vpop.xlane.xlu1 %4688  ;;  %v4687_v39 = vpop.xlane.xlu0 %4686 }
 0xb19   : > { %9547 = vpow2.f32 %v4780_v53  ;;  %v4737_v38 = vsub.f32 %v13266_v33, %v4687_v39  ;;  %v4738_v15 = vsub.f32 %v13263_v28, %v4689_v44 }
 0xb1b   : > { %v4782_v14 = vmul.f32 1.442695, %v4737_v38  ;;  %v4784_v19 = vmul.f32 1.442695, %v4738_v15  ;;  %v15376_v15 = vld [vmem:[#allocation5_spill] sm:$0xff] }
 0xb1c   : > { %v4979_v50 = vpop.permute.xlu1 %4978  ;;  %v4691_v56 = vpop.xlane.xlu0 %4690 }
 0xb1d   : > { %v4739_v30 = vsub.f32 %v13271_v10, %v4691_v56  ;;  %8535 = vmatprep.subr.bf16.mxu1 %v4979_v50  ;;  %9549 = vpow2.f32 %v4782_v14 }
 0xb1e   : > { %8536 = vmatpush3.bf16.msra.mxu1 %v4979_v50 }
 0xb1f   : > { %v4786_v3 = vmul.f32 1.442695, %v4739_v30  ;;  %v13376_v9 = vpop.f32.mrf.mxu0 }
 0xb20   : > { %15372 = vst [vmem:[#allocation6_spill] sm:$0xff] %v13376_v9  ;;  %v4977_v16 = vpop.permute.xlu1 %4976  ;;  %v4975_v33 = vpop.permute.xlu0 %4974 }
 0xb21   : > { %9551 = vpow2.f32 %v4786_v3  ;;  %v13378_v63 = vpop.f32.mrf.mxu0  ;;  %8537 = vmatprep.subr.bf16.mxu1 %v4977_v16 }
 0xb22   : > { %15373 = vst [vmem:[#allocation7_spill] sm:$0xff] %v13378_v63  ;;  %9553 = vpow2.f32 %v4784_v19  ;;  %8538 = vmatpush3.bf16.msra.mxu1 %v4977_v16 }
 0xb23   : > { %v13380_v28 = vpop.f32.mrf.mxu0  ;;  %8539 = vmatprep.subr.bf16.mxu1 %v4975_v33 }
 0xb24   : > { %15374 = vst [vmem:[#allocation11_spill] sm:$0xff] %v13380_v28  ;;  %v4973_v21 = vpop.permute.xlu1 %4972  ;;  %v4971_v53 = vpop.permute.xlu0 %4970 }
 0xb25   : > { %v13384_v47 = vpop.f32.mrf.mxu0 }
 0xb26   : > { %15375 = vst [vmem:[#allocation9_spill] sm:$0xff] %v13384_v47  ;;  %v13386_v1 = vpop.eup %9547  ;;  %8540 = vmatpush3.bf16.msra.mxu1 %v4975_v33 }
 0xb27   : > { %4844 = vadd.xlane.f32.xlu1 %v13386_v1  ;;  %8541 = vmatprep.subr.bf16.mxu1 %v4973_v21  ;;  %v8521_v14 = vpop.f32.mrf.mxu0 }
 0xb28   : > { %v13421_v26 = vadd.f32 %v9875_v59, %v8521_v14 }
 0xb29   : > { %v4597_v50 = vpop.f32.mrf.mxu0 }
 0xb2a   : > { %8542 = vmatpush3.bf16.msra.mxu1 %v4973_v21  ;;  %v13391_v44 = vpop.eup %9549 }
 0xb2b   : > { %8543 = vmatprep.subr.bf16.mxu1 %v4971_v53  ;;  %4846 = vadd.xlane.f32.xlu0 %v13391_v44  ;;  %v8522_v56 = vpop.f32.mrf.mxu0 }
 0xb2c   : > { %v13436_v59 = vadd.f32 %v9877_v45, %v8522_v56  ;;  %v9879_v45 = vld [vmem:[%s15172_s27 + $0x8] sm:$0xff] }
 0xb2d   : > { %v4600_v30 = vpop.f32.mrf.mxu0 }
 0xb2e   : > { %v13394_v39 = vpop.eup %9551  ;;  %8544 = vmatpush3.bf16.msra.mxu1 %v4971_v53  ;;  %v13452_v56 = vadd.f32 %v9879_v45, %v4600_v30 }
 0xb2f   : > { %v13396_v38 = vpop.eup %9553  ;;  %4850 = vadd.xlane.f32.xlu1 %v13394_v39  ;;  %v8525_v16 = vpop.f32.mrf.mxu0 }
 0xb30   : > { %4848 = vadd.xlane.f32.xlu0 %v13396_v38 }
 0xb31   : > { %v4613_v53 = vpop.f32.mrf.mxu0 }
 0xb32   : > { %v13459_v2 = vadd.f32 %v9880_v31, %v4613_v53  ;;  %v9882_v53 = vld [vmem:[%s15172_s27 + $0x50] sm:$0xff] }
 0xb40   : > { %5099 = vrot.lane.b32.xlu1 %v11035_v17, %s9961_s20 }
 0xb46   : > { %4964 = vrot.lane.b32.xlu0 %v15376_v15, %s9961_s20  ;;  %v8526_v15 = vpop.f32.mrf.mxu0 }
 0xb48   : > { %v4616_v25 = vpop.f32.mrf.mxu0 }
 0xb4a   : > { %5097 = vrot.lane.b32.xlu0 %v11044_v29, %s9961_s20  ;;  %v8529_v14 = vpop.f32.mrf.mxu0 }
 0xb4b   : > { %v13473_v60 = vadd.f32 %v9882_v53, %v8529_v14 }
 0xb4c   : > { %v4629_v47 = vpop.f32.mrf.mxu0 }
 0xb55   : > { %v13406_v19 = vpop.xlane.xlu1 %4832  ;;  %v13408_v3 = vpop.xlane.xlu0 %4824 }
 0xb59   : > { %v13410_v33 = vpop.xlane.xlu1 %4828  ;;  %v4821_v21 = vpop.xlane.xlu0 %4820 }
 0xb5a   : > { %9555 = vrcp.f32 %v4821_v21  ;;  %v9876_v21 = vld [vmem:[%s15172_s27] sm:$0xff] }
 0xb5b   : > { %v13431_v51 = vadd.f32 %v9876_v21, %v4597_v50  ;;  %v9878_v50 = vld [vmem:[%s15172_s27 + $0x30] sm:$0xff] }
 0xb5c   : > { %v13447_v21 = vadd.f32 %v9878_v50, %v8525_v16  ;;  %v9881_v16 = vld [vmem:[%s15172_s27 + $0x38] sm:$0xff]  ;;  %v8530_v50 = vpop.f32.mrf.mxu0 }
 0xb5d   : > { %v13412_v17 = vpop.xlane.xlu1 %4834  ;;  %v13414_v23 = vpop.xlane.xlu0 %4826  ;;  %v13464_v30 = vadd.f32 %v9881_v16, %v8526_v15 }
 0xb5e   : > { %v4632_v16 = vpop.f32.mrf.mxu0 }
 0xb61   : > { %v13416_v10 = vpop.xlane.xlu1 %4840  ;;  %v4823_v29 = vpop.xlane.xlu0 %4822 }
 0xb62   : > { %9557 = vrcp.f32 %v4823_v29 }
 0xb63   : > { %9559 = vrcp.f32 %v13414_v23 }
 0xb64   : > { %4696 = vmax.xlane.f32.xlu1 %v13421_v26 }
 0xb65   : > { %v13424_v5 = vpop.xlane.xlu1 %4836  ;;  %v13426_v57 = vpop.xlane.xlu0 %4830 }
 0xb66   : > { %9561 = vrcp.f32 %v13426_v57 }
 0xb67   : > { %v9556_v28 = vpop.eup %9555  ;;  %9563 = vrcp.f32 %v13408_v3 }
 0xb68   : > { %4692 = vmax.xlane.f32.xlu1 %v13431_v51  ;;  %v4916_v22 = vmul.f32 %v9556_v28, %v13316_v11  ;;  %v9884_v11 = vld [vmem:[%s15172_s27 + $0x40] sm:$0xff]  ;;  %v8533_v28 = vpop.f32.mrf.mxu0  ;;  %9565 = vrcp.f32 %v13410_v33 }
 0xb69   : > { %4698 = vmax.xlane.f32.xlu0 %v13436_v59  ;;  %v13440_v29 = vpop.xlane.xlu1 %4842  ;;  %v13442_v63 = vpop.xlane.xlu0 %4838  ;;  %9567 = vrcp.f32 %v13412_v17 }
 0xb6a   : > { %9569 = vrcp.f32 %v13442_v63 }
 0xb6b   : > { %9571 = vrcp.f32 %v13406_v19 }
 0xb6c   : > { %4704 = vmax.xlane.f32.xlu1 %v13447_v21  ;;  %9573 = vrcp.f32 %v13424_v5 }
 0xb6d   : > { %4694 = vmax.xlane.f32.xlu0 %v13452_v56  ;;  %v4969_v9 = vpop.permute.xlu0 %4968  ;;  %v4967_v45 = vpop.permute.xlu1 %4966  ;;  %9575 = vrcp.f32 %v13440_v29 }
 0xb6e   : > { %8545 = vmatprep.subr.bf16.mxu1 %v4969_v9 }
 0xb6f   : > { %8546 = vmatpush3.bf16.msra.mxu1 %v4969_v9  ;;  %v9558_v35 = vpop.eup %9557  ;;  %v9883_v9 = vld [vmem:[%s15172_s27 + $0x28] sm:$0xff] }
 0xb70   : > { %4700 = vmax.xlane.f32.xlu1 %v13459_v2  ;;  %8547 = vmatprep.subr.bf16.mxu1 %v4967_v45  ;;  %v4917_v31 = vmul.f32 %v9558_v35, %v13332_v43  ;;  %v13478_v15 = vadd.f32 %v9883_v9, %v4616_v25  ;;  %v13485_v43 = vadd.f32 %v9884_v11, %v4629_v47  ;;  %v9885_v35 = vld [vmem:[%s15172_s27 + $0x58] sm:$0xff]  ;;  %v9887_v47 = vld [vmem:[%s15172_s27 + $0x48] sm:$0xff]  ;;  %v9560_v33 = vpop.eup %9559 }
 0xb71   : > { %4706 = vmax.xlane.f32.xlu0 %v13464_v30  ;;  %v13490_v25 = vadd.f32 %v9885_v35, %v8530_v50  ;;  %v13502_v14 = vadd.f32 %v9887_v47, %v4632_v16  ;;  %v9888_v50 = vld [vmem:[%s15172_s27 + $0x60] sm:$0xff]  ;;  %v4919_v17 = vmul.f32 %v9560_v33, %v13322_v34 }
 0xb72   : > { %v4948_v46 = vpack.c.bf16 %v4917_v31, %v4916_v22 }
 0xb73   : > { %8548 = vmatpush3.bf16.msra.mxu1 %v4967_v45  ;;  %v4645_v45 = vpop.f32.mrf.mxu0  ;;  %v9562_v11 = vpop.eup %9561 }
 0xb74   : > { %4712 = vmax.xlane.f32.xlu1 %v13473_v60  ;;  %8551 = vmatprep.mubr.bf16.mxu1 %v4948_v46  ;;  %v9886_v46 = vld [vmem:[%s15172_s27 + $0x70] sm:$0xff]  ;;  %v13509_v31 = vadd.f32 %v9888_v50, %v4645_v45  ;;  %v9564_v35 = vpop.eup %9563  ;;  %v4921_v19 = vmul.f32 %v9562_v11, %v13344_v8 }
 0xb75   : > { %4702 = vmax.xlane.f32.xlu0 %v13478_v15  ;;  %v13497_v22 = vadd.f32 %v9886_v46, %v8533_v28  ;;  %v8534_v53 = vpop.f32.mrf.mxu0  ;;  %v9566_v28 = vpop.eup %9565  ;;  %v4918_v5 = vmul.f32 %v9564_v35, %v13310_v49 }
 0xb76   : > { %v4920_v47 = vmul.f32 %v9566_v28, %v13314_v32  ;;  %v9568_v29 = vpop.eup %9567 }
 0xb77   : > { %v4648_v9 = vpop.f32.mrf.mxu0  ;;  %v4949_v45 = vpack.c.bf16 %v4919_v17, %v4918_v5  ;;  %v9570_v34 = vpop.eup %9569 }
 0xb78   : > { %4708 = vmax.xlane.f32.xlu1 %v13485_v43  ;;  %v4925_v49 = vmul.f32 %v9570_v34, %v13354_v62 }
 0xb79   : > { %4714 = vmax.xlane.f32.xlu0 %v13490_v25 }
 0xb7c   : > { %4720 = vmax.xlane.f32.xlu1 %v13497_v22 }
 0xb7d   : > { %4710 = vmax.xlane.f32.xlu0 %v13502_v14 }
 0xb80   : > { %4716 = vmax.xlane.f32.xlu1 %v13509_v31 }
 0xb91   : > { %5095 = vrot.lane.b32.xlu1 %v15204_v7, %s9961_s20  ;;  %v9889_v7 = vld [vmem:[%s15172_s27 + $0x78] sm:$0xff] }
 0xb93   : > { %5093 = vrot.lane.b32.xlu0 %v15209_v6, %s9961_s20  ;;  %v13527_v6 = vadd.f32 %v9889_v7, %v8534_v53  ;;  %v4950_v53 = vpack.c.bf16 %v4921_v19, %v4920_v47  ;;  %v9572_v7 = vpop.eup %9571 }
 0xb94   : > { %v9574_v8 = vpop.eup %9573 }
 0xb95   : > { %5091 = vrot.lane.b32.xlu1 %v15218_v41, %s9961_s20  ;;  %v9890_v41 = vld [vmem:[%s15172_s27 + $0x68] sm:$0xff]  ;;  %v4924_v32 = vmul.f32 %v9574_v8, %v13348_v0 }
 0xb99   : > { %5087 = vrot.lane.b32.xlu1 %v15314_v61, %s9961_s20  ;;  %v13533_v61 = vadd.f32 %v9890_v41, %v4648_v9  ;;  %v4922_v9 = vmul.f32 %v9572_v7, %v13307_v55 }
 0xbb0   : > { %v4845_v57 = vpop.xlane.xlu1 %4844 }
 0xbb2   : > { %4722 = vmax.xlane.f32.xlu0 %v13527_v6 }
 0xbb4   : > { %v4847_v23 = vpop.xlane.xlu0 %4846 }
 0xbb5   : > { %9577 = vrcp.f32 %v4847_v23  ;;  %v4952_v23 = vpack.c.bf16 %v4925_v49, %v4924_v32 }
 0xbb6   : > { %4718 = vmax.xlane.f32.xlu0 %v13533_v61  ;;  %9579 = vrcp.f32 %v13416_v10  ;;  %v4923_v10 = vmul.f32 %v9568_v29, %v13324_v24 }
 0xbb7   : > { %9581 = vrcp.f32 %v4845_v57  ;;  %v9576_v57 = vpop.eup %9575 }
 0xbb8   : > { %v4851_v3 = vpop.xlane.xlu1 %4850  ;;  %v4951_v41 = vpack.c.bf16 %v4923_v10, %v4922_v9 }
 0xbb9   : > { %v4849_v16 = vpop.xlane.xlu0 %4848  ;;  %9583 = vrcp.f32 %v4851_v3 }
 0xbba   : > { %9585 = vrcp.f32 %v4849_v16  ;;  %v4927_v16 = vmul.f32 %v9576_v57, %v13358_v42 }
 0xbbc   : > { %v5100_v46 = vpop.permute.xlu1 %5099 }
 0xbbd   : > { %v4965_v63 = vpop.permute.xlu0 %4964  ;;  %8567 = vmatprep.subr.bf16.mxu0 %v5100_v46 }
 0xbbe   : > { %8549 = vmatprep.subr.bf16.mxu1 %v4965_v63  ;;  %8568 = vmatpush3.bf16.msra.mxu0 %v5100_v46 }
 0xbbf   : > { %8550 = vmatpush3.bf16.msra.mxu1 %v4965_v63 }
 0xbc1   : > { %v5098_v50 = vpop.permute.xlu0 %5097 }
 0xbc2   : > { %8552 = vmatmul.mubr.bf16.vlgmr.msra.gmra.mxu1 %v4949_v45  ;;  %8569 = vmatprep.subr.bf16.mxu0 %v5098_v50  ;;  %v9578_v33 = vpop.eup %9577 }
 0xbc3   : > { %8555 = vmatprep.mubr.bf16.mxu1 %v4950_v53  ;;  %8570 = vmatpush3.bf16.msra.mxu0 %v5098_v50  ;;  %v9580_v11 = vpop.eup %9579  ;;  %v4929_v24 = vmul.f32 %v9578_v33, %v13391_v44 }
 0xbc4   : > { %v9582_v3 = vpop.eup %9581  ;;  %v4926_v62 = vmul.f32 %v9580_v11, %v13336_v37 }
 0xbc5   : > { %v4928_v55 = vmul.f32 %v9582_v3, %v13386_v1 }
 0xbc6   : > { %v9584_v0 = vpop.eup %9583  ;;  %v4953_v35 = vpack.c.bf16 %v4927_v16, %v4926_v62 }
 0xbc7   : > { %v9586_v28 = vpop.eup %9585  ;;  %v4954_v46 = vpack.c.bf16 %v4929_v24, %v4928_v55  ;;  %v4931_v63 = vmul.f32 %v9584_v0, %v13394_v39 }
 0xbc8   : > { %v4930_v17 = vmul.f32 %v9586_v28, %v13396_v38 }
 0xbca   : > { %8556 = vmatmul.mubr.bf16.gmra.mxu1 %v4951_v41  ;;  %v4955_v19 = vpack.c.bf16 %v4931_v63, %v4930_v17 }
 0xbcb   : > { %8559 = vmatprep.mubr.bf16.mxu1 %v4952_v23 }
 0xbcc   : > { %5089 = vrot.lane.b32.xlu0 %v15311_v12, %s9961_s20 }
 0xbd2   : > { %8560 = vmatmul.mubr.bf16.gmra.mxu1 %v4953_v35 }
 0xbd3   : > { %8563 = vmatprep.mubr.bf16.mxu1 %v4954_v46 }
 0xbda   : > { %8564 = vmatmul.mubr.bf16.gmra.mxu1 %v4955_v19 }
 0xbed   : > { %v4697_v12 = vpop.xlane.xlu1 %4696 }
 0xbee   : > { %v4742_v42 = vsub.f32 %v13421_v26, %v4697_v12 }
 0xbf0   : > { %v4792_v44 = vmul.f32 1.442695, %v4742_v42 }
 0xbf1   : > { %v4693_v5 = vpop.xlane.xlu1 %4692 }
 0xbf2   : > { %9587 = vpow2.f32 %v4792_v44  ;;  %v4740_v37 = vsub.f32 %v13431_v51, %v4693_v5  ;;  %v4699_v1 = vpop.xlane.xlu0 %4698 }
 0xbf3   : > { %v4743_v47 = vsub.f32 %v13436_v59, %v4699_v1 }
 0xbf4   : > { %v4788_v45 = vmul.f32 1.442695, %v4740_v37 }
 0xbf5   : > { %v4705_v29 = vpop.xlane.xlu1 %4704  ;;  %v4794_v50 = vmul.f32 1.442695, %v4743_v47 }
 0xbf6   : > { %9589 = vpow2.f32 %v4788_v45  ;;  %v4695_v38 = vpop.xlane.xlu0 %4694  ;;  %v4746_v39 = vsub.f32 %v13447_v21, %v4705_v29 }
 0xbf7   : > { %v4741_v53 = vsub.f32 %v13452_v56, %v4695_v38  ;;  %9591 = vpow2.f32 %v4794_v50 }
 0xbf8   : > { %v4800_v10 = vmul.f32 1.442695, %v4746_v39 }
 0xbf9   : > { %v4790_v34 = vmul.f32 1.442695, %v4741_v53  ;;  %v4701_v7 = vpop.xlane.xlu1 %4700 }
 0xbfa   : > { %v4744_v26 = vsub.f32 %v13459_v2, %v4701_v7  ;;  %v4707_v8 = vpop.xlane.xlu0 %4706 }
 0xbfb   : > { %9593 = vpow2.f32 %v4790_v34  ;;  %v4747_v51 = vsub.f32 %v13464_v30, %v4707_v8 }
 0xbfc   : > { %v4796_v59 = vmul.f32 1.442695, %v4744_v26 }
 0xbfd   : > { %v4713_v49 = vpop.xlane.xlu1 %4712  ;;  %v4802_v9 = vmul.f32 1.442695, %v4747_v51 }
 0xbfe   : > { %9595 = vpow2.f32 %v4796_v59  ;;  %v4703_v32 = vpop.xlane.xlu0 %4702  ;;  %v4750_v21 = vsub.f32 %v13473_v60, %v4713_v49  ;;  %v15379_v59 = vld [vmem:[#allocation60_spill] sm:$0xff]  ;;  %v15380_v49 = vld [vmem:[#allocation58_spill] sm:$0xff] }
 0xbff   : > { %v13565_v41 = vpop.eup %9587  ;;  %9597 = vpow2.f32 %v4800_v10  ;;  %v4745_v56 = vsub.f32 %v13478_v15, %v4703_v32  ;;  %v15377_v10 = vld [vmem:[#allocation59_spill] sm:$0xff]  ;;  %v15382_v32 = vld [vmem:[#allocation85_spill] sm:$0xff] }
 0xc00   : > { %4856 = vadd.xlane.f32.xlu0 %v13565_v41  ;;  %9599 = vpow2.f32 %v4802_v9  ;;  %v4808_v11 = vmul.f32 1.442695, %v4750_v21  ;;  %v15381_v9 = vpack.i.bf16 %v15379_v59, %v15380_v49  ;;  %v15383_v21 = vld [vmem:[#allocation83_spill] sm:$0xff] }
 0xc01   : > { %v4798_v2 = vmul.f32 1.442695, %v4745_v56  ;;  %v4709_v57 = vpop.xlane.xlu1 %4708  ;;  %v15384_v56 = vpack.i.bf16 %v15382_v32, %v15383_v21  ;;  %v15399_v32 = vld [vmem:[#allocation69_spill] sm:$0xff]  ;;  %v15400_v21 = vld [vmem:[#allocation72_spill] sm:$0xff] }
 0xc02   : > { %v4748_v23 = vsub.f32 %v13485_v43, %v4709_v57  ;;  %v4715_v30 = vpop.xlane.xlu0 %4714  ;;  %v15386_v57 = vld [vmem:[#allocation84_spill] sm:$0xff] }
 0xc03   : > { %v13571_v33 = vpop.eup %9589  ;;  %9601 = vpow2.f32 %v4798_v2  ;;  %v4751_v3 = vsub.f32 %v13490_v25, %v4715_v30  ;;  %v15385_v2 = vld [vmem:[#allocation86_spill] sm:$0xff] }
 0xc04   : > { %v4804_v16 = vmul.f32 1.442695, %v4748_v23  ;;  %4852 = vadd.xlane.f32.xlu1 %v13571_v33  ;;  %v13575_v62 = vpop.eup %9591  ;;  %v15387_v23 = vpack.i.bf16 %v15385_v2, %v15386_v57  ;;  %v9063_v30 = vld [vmem:[%s10081_s15 + $0x8] sm:$0xff]   ;;  %v15402_v57 = vld [vmem:[#allocation68_spill] sm:$0xff] }
 0xc05   : > { %v4721_v60 = vpop.xlane.xlu1 %4720  ;;  %v4810_v15 = vmul.f32 1.442695, %v4751_v3  ;;  %8599 = vmatprep.subr.bf16.mxu1 %v9063_v30  ;;  %v15401_v2 = vld [vmem:[#allocation70_spill] sm:$0xff] }
 0xc06   : > { %9603 = vpow2.f32 %v4804_v16  ;;  %v4711_v24 = vpop.xlane.xlu0 %4710  ;;  %v4754_v55 = vsub.f32 %v13497_v22, %v4721_v60  ;;  %8600 = vmatpush3.bf16.msra.mxu1 %v9063_v30 }
 0xc07   : > { %9605 = vpow2.f32 %v4808_v11  ;;  %v4749_v43 = vsub.f32 %v13502_v14, %v4711_v24  ;;  %v9064_v11 = vld [vmem:[%s10081_s15] sm:$0xff]  }
 0xc08   : > { %v13579_v0 = vpop.eup %9593  ;;  %4858 = vadd.xlane.f32.xlu1 %v13575_v62  ;;  %9607 = vpow2.f32 %v4810_v15  ;;  %v4816_v17 = vmul.f32 1.442695, %v4754_v55  ;;  %8601 = vmatprep.subr.bf16.mxu1 %v9064_v11 }
 0xc09   : > { %v4806_v35 = vmul.f32 1.442695, %v4749_v43  ;;  %4854 = vadd.xlane.f32.xlu0 %v13579_v0  ;;  %v4717_v25 = vpop.xlane.xlu1 %4716 }
 0xc0a   : > { %v4752_v28 = vsub.f32 %v13509_v31, %v4717_v25  ;;  %v5094_v12 = vpop.permute.xlu0 %5093  ;;  %8602 = vmatpush3.bf16.msra.mxu1 %v9064_v11  ;;  %v15389_v25 = vld [vmem:[#allocation67_spill] sm:$0xff]  ;;  %v15404_v11 = vld [vmem:[#allocation93_spill] sm:$0xff] }
 0xc0b   : > { %v13584_v46 = vpop.eup %9595  ;;  %9609 = vpow2.f32 %v4806_v35  ;;  %v15388_v35 = vld [vmem:[#allocation63_spill] sm:$0xff] }
 0xc0c   : > { %v13586_v63 = vpop.eup %9597  ;;  %v4812_v22 = vmul.f32 1.442695, %v4752_v28  ;;  %4860 = vadd.xlane.f32.xlu1 %v13584_v46  ;;  %v8851_v28 = vpack.i.bf16 %v15389_v25, %v15388_v35 }
 0xc0d   : > { %4864 = vadd.xlane.f32.xlu0 %v13586_v63  ;;  %v5096_v14 = vpop.permute.xlu1 %5095  ;;  %v13590_v19 = vpop.eup %9599 }
 0xc0e   : > { %9611 = vpow2.f32 %v4812_v22  ;;  %8571 = vmatprep.subr.bf16.mxu0 %v5096_v14  ;;  %v15390_v22 = vld [vmem:[#allocation64_spill] sm:$0xff] }
 0xc0f   : > { %9613 = vpow2.f32 %v4816_v17  ;;  %8572 = vmatpush3.bf16.msra.mxu0 %v5096_v14  ;;  %v15391_v14 = vld [vmem:[#allocation62_spill] sm:$0xff] }
 0xc10   : > { %v13592_v31 = vpop.eup %9601  ;;  %4866 = vadd.xlane.f32.xlu1 %v13590_v19  ;;  %8573 = vmatprep.subr.bf16.mxu0 %v5094_v12 }
 0xc11   : > { %4862 = vadd.xlane.f32.xlu0 %v13592_v31  ;;  %v5092_v44 = vpop.permute.xlu1 %5091 }
 0xc13   : > { %v13596_v42 = vpop.eup %9603  ;;  %8574 = vmatpush3.bf16.msra.mxu0 %v5094_v12  ;;  %v15392_v12 = vpack.i.bf16 %v15390_v22, %v15391_v14 }
 0xc14   : > { %v13598_v5 = vpop.eup %9605  ;;  %4868 = vadd.xlane.f32.xlu1 %v13596_v42  ;;  %8575 = vmatprep.subr.bf16.mxu0 %v5092_v44 }
 0xc15   : > { %4872 = vadd.xlane.f32.xlu0 %v13598_v5  ;;  %v13602_v37 = vpop.eup %9607  ;;  %v5088_v26 = vpop.permute.xlu1 %5087 }
 0xc17   : > { %8576 = vmatpush3.bf16.msra.mxu0 %v5092_v44 }
 0xc18   : > { %v13604_v1 = vpop.eup %9609  ;;  %4874 = vadd.xlane.f32.xlu1 %v13602_v37 }
 0xc19   : > { %4870 = vadd.xlane.f32.xlu0 %v13604_v1 }
 0xc1b   : > { %v13608_v47 = vpop.eup %9611 }
 0xc1c   : > { %v13610_v45 = vpop.eup %9613  ;;  %4876 = vadd.xlane.f32.xlu1 %v13608_v47 }
 0xc1d   : > { %4880 = vadd.xlane.f32.xlu0 %v13610_v45 }
 0xc3b   : > { %v4723_v29 = vpop.xlane.xlu0 %4722 }
 0xc3c   : > { %v4755_v50 = vsub.f32 %v13527_v6, %v4723_v29 }
 0xc3e   : > { %v4818_v38 = vmul.f32 1.442695, %v4755_v50 }
 0xc3f   : > { %v4719_v39 = vpop.xlane.xlu0 %4718 }
 0xc40   : > { %9615 = vpow2.f32 %v4818_v38  ;;  %v4753_v53 = vsub.f32 %v13533_v61, %v4719_v39  ;;  %v15378_v61 = vld [vmem:[#allocation61_spill] sm:$0xff]  ;;  %v15394_v39 = vld [vmem:[#allocation87_spill] sm:$0xff] }
 0xc41   : > { %v8821_v51 = vpack.i.bf16 %v15378_v61, %v15377_v10  ;;  %v15393_v38 = vld [vmem:[#allocation89_spill] sm:$0xff]  ;;  %v15396_v10 = vld [vmem:[#allocation90_spill] sm:$0xff]  ;;  %v15397_v61 = vld [vmem:[#allocation88_spill] sm:$0xff] }
 0xc42   : > { %v4814_v34 = vmul.f32 1.442695, %v4753_v53  ;;  %v15395_v53 = vpack.i.bf16 %v15393_v38, %v15394_v39  ;;  %v15412_v38 = vld [vmem:[#allocation76_spill] sm:$0xff]  ;;  %v15413_v39 = vld [vmem:[#allocation73_spill] sm:$0xff] }
 0xc43   : > { %v5090_v7 = vpop.permute.xlu0 %5089 }
 0xc44   : > { %9617 = vpow2.f32 %v4814_v34  ;;  %8577 = vmatprep.subr.bf16.mxu0 %v5090_v7 }
 0xc45   : > { %8578 = vmatpush3.bf16.msra.mxu0 %v5090_v7 }
 0xc46   : > { %8579 = vmatprep.subr.bf16.mxu0 %v5088_v26 }
 0xc49   : > { %8580 = vmatpush3.bf16.msra.mxu0 %v5088_v26 }
 0xc4d   : > { %v13616_v8 = vpop.eup %9615 }
 0xc4e   : > { %4882 = vadd.xlane.f32.xlu1 %v13616_v8 }
 0xc51   : > { %v13619_v6 = vpop.eup %9617 }
 0xc52   : > { %4878 = vadd.xlane.f32.xlu0 %v13619_v6 }
 0xc5f   : > { %8822 = vrot.lane.b32.xlu1 %v8821_v51, %s9962_s24  ;;  %v15398_v51 = vpack.i.bf16 %v15396_v10, %v15397_v61  ;;  %v15417_v61 = vld [vmem:[#allocation34_spill] sm:$0xff] }
 0xc63   : > { %8827 = vrot.lane.b32.xlu1 %v15381_v9, %s9962_s24 }
 0xc67   : > { %8837 = vrot.lane.b32.xlu1 %v15384_v56, %s9963_s23  ;;  %v8881_v56 = vpack.i.bf16 %v15400_v21, %v15399_v32  ;;  %v15426_v32 = vld [vmem:[#allocation40_spill] sm:$0xff] }
 0xc68   : > { %5085 = vrot.lane.b32.xlu0 %v15318_v54, %s9961_s20 }
 0xc6c   : > { %8832 = vrot.lane.b32.xlu0 %v15387_v23, %s9963_s23  ;;  %v15403_v23 = vpack.i.bf16 %v15401_v2, %v15402_v57  ;;  %v15429_v2 = vld [vmem:[#allocation54_spill] sm:$0xff] }
 0xc82   : > { %v8553_v3 = vpop.f32.mrf.mxu1 }
 0xc84   : > { %v5022_v16 = vpop.f32.mrf.mxu1 }
 0xc86   : > { %v8554_v60 = vpop.f32.mrf.mxu1 }
 0xc87   : > { %v8846_v15 = vpack.i.bf16 %v8554_v60, %v8553_v3  ;;  %v15405_v3 = vld [vmem:[#allocation91_spill] sm:$0xff] }
 0xc88   : > { %v5025_v24 = vpop.f32.mrf.mxu1 }
 0xc89   : > { %v8841_v55 = vpack.i.bf16 %v5025_v24, %v5022_v16  ;;  %8847 = vrot.lane.b32.xlu1 %v8846_v15, %s9964_s9  ;;  %v13645_v17 = vpop.xlane.xlu0 %4856  ;;  %v15406_v16 = vpack.i.bf16 %v15404_v11, %v15405_v3  ;;  %v15435_v11 = vld [vmem:[#allocation57_spill] sm:$0xff]  ;;  %v15436_v3 = vld [vmem:[#allocation55_spill] sm:$0xff] }
 0xc8a   : > { %v8557_v54 = vpop.f32.mrf.mxu1 }
 0xc8b   : > { %8842 = vrot.lane.b32.xlu0 %v8841_v55, %s9964_s9  ;;  %v15407_v55 = vld [vmem:[#allocation94_spill] sm:$0xff] }
 0xc8c   : > { %v5038_v43 = vpop.f32.mrf.mxu1 }
 0xc8d   : > { %8857 = vrot.lane.b32.xlu1 %v15392_v12, %s9962_s24  ;;  %v4853_v44 = vpop.xlane.xlu1 %4852 }
 0xc8e   : > { %v8558_v29 = vpop.f32.mrf.mxu1  ;;  %9619 = vrcp.f32 %v4853_v44  ;;  %v15410_v44 = vld [vmem:[#allocation74_spill] sm:$0xff] }
 0xc8f   : > { %8852 = vrot.lane.b32.xlu0 %v8851_v28, %s9962_s24  ;;  %v8876_v26 = vpack.i.bf16 %v8558_v29, %v8557_v54  ;;  %v15408_v54 = vld [vmem:[#allocation92_spill] sm:$0xff]  ;;  %v15411_v29 = vld [vmem:[#allocation77_spill] sm:$0xff] }
 0xc90   : > { %v5041_v50 = vpop.f32.mrf.mxu1 }
 0xc91   : > { %8867 = vrot.lane.b32.xlu1 %v15395_v53, %s9963_s23  ;;  %v8871_v49 = vpack.i.bf16 %v5041_v50, %v5038_v43  ;;  %v15409_v43 = vpack.i.bf16 %v15407_v55, %v15408_v54  ;;  %v8911_v50 = vpack.i.bf16 %v15411_v29, %v15410_v44  ;;  %v15414_v53 = vpack.i.bf16 %v15412_v38, %v15413_v39 }
 0xc92   : > { %v8561_v34 = vpop.f32.mrf.mxu1  ;;  %v4855_v7 = vpop.xlane.xlu0 %4854 }
 0xc93   : > { %9621 = vrcp.f32 %v4855_v7  ;;  %8862 = vrot.lane.b32.xlu0 %v15398_v51, %s9963_s23  ;;  %v15418_v51 = vld [vmem:[#allocation32_spill] sm:$0xff] }
 0xc94   : > { %v5054_v59 = vpop.f32.mrf.mxu1 }
 0xc95   : > { %8877 = vrot.lane.b32.xlu1 %v8876_v26, %s9964_s9  ;;  %v15416_v26 = vpack.i.bf16 %v13084_v58, %v13076_v52  ;;  %v15423_v52 = vpack.i.bf16 %v13278_v20, %v13274_v36  ;;  %v15424_v58 = vpack.i.bf16 %v13282_v27, %v13276_v48  ;;  %v15431_v36 = vpack.i.bf16 %v13330_v4, %v13320_v18  ;;  %v15433_v48 = vld [vmem:[#allocation78_spill] sm:$0xff] }
 0xc96   : > { %v8562_v9 = vpop.f32.mrf.mxu1  ;;  %v4865_v20 = vpop.xlane.xlu0 %4864 }
 0xc97   : > { %8872 = vrot.lane.b32.xlu0 %v8871_v49, %s9964_s9  ;;  %v8906_v24 = vpack.i.bf16 %v8562_v9, %v8561_v34  ;;  %v15425_v9 = vld [vmem:[#allocation43_spill] sm:$0xff] }
 0xc98   : > { %v5057_v30 = vpop.f32.mrf.mxu1  ;;  %v15427_v21 = vpack.i.bf16 %v15425_v9, %v15426_v32 }
 0xc99   : > { %8887 = vrot.lane.b32.xlu1 %v15403_v23, %s9962_s24  ;;  %v8901_v25 = vpack.i.bf16 %v5057_v30, %v5054_v59  ;;  %v15419_v59 = vpack.i.bf16 %v15417_v61, %v15418_v51  ;;  %v15432_v23 = vld [vmem:[#allocation13_spill] sm:$0xff]  ;;  %v4859_v30 = vpop.xlane.xlu1 %4858 }
 0xc9a   : > { %v8565_v15 = vpop.f32.mrf.mxu1  ;;  %v15434_v27 = vpack.i.bf16 %v15432_v23, %v15433_v48  ;;  %v4863_v55 = vpop.xlane.xlu0 %4862  ;;  %9623 = vrcp.f32 %v4859_v30 }
 0xc9b   : > { %8882 = vrot.lane.b32.xlu0 %v8881_v56, %s9962_s24  ;;  %v9620_v60 = vpop.eup %9619  ;;  %v15428_v56 = vld [vmem:[#allocation56_spill] sm:$0xff]  ;;  %9625 = vrcp.f32 %v4863_v55 }
 0xc9c   : > { %v4932_v28 = vmul.f32 %v9620_v60, %v13571_v33  ;;  %v5070_v14 = vpop.f32.mrf.mxu1  ;;  %v15415_v33 = vpack.i.bf16 %v13080_v13, %v13074_v40  ;;  %v15420_v40 = vld [vmem:[#allocation41_spill] sm:$0xff]  ;;  %v15421_v13 = vld [vmem:[#allocation39_spill] sm:$0xff]  ;;  %v15430_v57 = vpack.i.bf16 %v15428_v56, %v15429_v2  ;;  %v15438_v60 = vld [vmem:[#allocation66_spill] sm:$0xff]  ;;  %9627 = vrcp.f32 %v13645_v17 }
 0xc9d   : > { %8897 = vrot.lane.b32.xlu1 %v15406_v16, %s9963_s23  ;;  %v15422_v49 = vpack.i.bf16 %v15420_v40, %v15421_v13  ;;  %v15437_v16 = vpack.i.bf16 %v15435_v11, %v15436_v3  ;;  %v4861_v18 = vpop.xlane.xlu1 %4860 }
 0xc9e   : > { %v8566_v34 = vpop.f32.mrf.mxu1  ;;  %v4873_v4 = vpop.xlane.xlu0 %4872  ;;  %9629 = vrcp.f32 %v4861_v18  ;;  %v15442_v18 = vld [vmem:[#allocation21_spill] sm:$0xff] }
 0xc9f   : > { %8892 = vrot.lane.b32.xlu0 %v15409_v43, %s9963_s23  ;;  %v8936_v7 = vpack.i.bf16 %v8566_v34, %v8565_v15  ;;  %v15439_v15 = vld [vmem:[#allocation16_spill] sm:$0xff] }
 0xca0   : > { %v9622_v35 = vpop.eup %9621 }
 0xca1   : > { %8907 = vrot.lane.b32.xlu1 %v8906_v24, %s9964_s9  ;;  %v4933_v22 = vmul.f32 %v9622_v35, %v13579_v0  ;;  %v5073_v0 = vpop.f32.mrf.mxu1  ;;  %v15440_v24 = vpack.i.bf16 %v15438_v60, %v15439_v15  ;;  %v4867_v54 = vpop.xlane.xlu1 %4866 }
 0xca2   : > { %v8931_v10 = vpack.i.bf16 %v5073_v0, %v5070_v14  ;;  %v4871_v43 = vpop.xlane.xlu0 %4870  ;;  %9631 = vrcp.f32 %v4867_v54 }
 0xca3   : > { %8902 = vrot.lane.b32.xlu0 %v8901_v25, %s9964_s9  ;;  %v4956_v12 = vpack.c.bf16 %v4933_v22, %v4932_v28  ;;  %9633 = vrcp.f32 %v4871_v43  ;;  %v15444_v43 = vld [vmem:[#allocation36_spill] sm:$0xff] }
 0xca4   : > { %9635 = vrcp.f32 %v4865_v20 }
 0xca5   : > { %8917 = vrot.lane.b32.xlu1 %v15414_v53, %s9962_s24  ;;  %8583 = vmatprep.mubr.bf16.mxu0 %v4956_v12  ;;  %v4869_v35 = vpop.xlane.xlu1 %4868 }
 0xca6   : > { %v4881_v25 = vpop.xlane.xlu0 %4880  ;;  %9637 = vrcp.f32 %v4869_v35 }
 0xca7   : > { %8912 = vrot.lane.b32.xlu0 %v8911_v50, %s9962_s24  ;;  %v9624_v22 = vpop.eup %9623 }
 0xca8   : > { %v9626_v12 = vpop.eup %9625  ;;  %v4935_v50 = vmul.f32 %v9624_v22, %v13575_v62 }
 0xca9   : > { %8927 = vrot.lane.b32.xlu1 %v15415_v33, %s9963_s23  ;;  %v4875_v28 = vpop.xlane.xlu1 %4874  ;;  %v9628_v44 = vpop.eup %9627  ;;  %v4937_v39 = vmul.f32 %v9626_v12, %v13592_v31 }
 0xcaa   : > { %9639 = vrcp.f32 %v4875_v28  ;;  %v4934_v53 = vmul.f32 %v9628_v44, %v13565_v41 }
 0xcab   : > { %8922 = vrot.lane.b32.xlu0 %v15416_v26, %s9963_s23  ;;  %v9630_v29 = vpop.eup %9629 }
 0xcac   : > { %v4936_v34 = vmul.f32 %v9630_v29, %v13584_v46  ;;  %v4957_v33 = vpack.c.bf16 %v4935_v50, %v4934_v53 }
 0xcad   : > { %8937 = vrot.lane.b32.xlu1 %v8936_v7, %s9964_s9  ;;  %v4877_v38 = vpop.xlane.xlu1 %4876 }
 0xcae   : > { %v4958_v26 = vpack.c.bf16 %v4937_v39, %v4936_v34 }
 0xcaf   : > { %8932 = vrot.lane.b32.xlu0 %v8931_v10, %s9964_s9  ;;  %v9632_v0 = vpop.eup %9631 }
 0xcb0   : > { %v9634_v10 = vpop.eup %9633  ;;  %v4939_v31 = vmul.f32 %v9632_v0, %v13590_v19 }
 0xcb1   : > { %8947 = vrot.lane.b32.xlu1 %v15419_v59, %s9962_s24  ;;  %v9636_v62 = vpop.eup %9635  ;;  %v4941_v41 = vmul.f32 %v9634_v10, %v13604_v1 }
 0xcb2   : > { %v4938_v51 = vmul.f32 %v9636_v62, %v13586_v63 }
 0xcb3   : > { %8942 = vrot.lane.b32.xlu0 %v15422_v49, %s9962_s24  ;;  %v9638_v61 = vpop.eup %9637 }
 0xcb4   : > { %v4940_v59 = vmul.f32 %v9638_v61, %v13596_v42  ;;  %v4959_v46 = vpack.c.bf16 %v4939_v31, %v4938_v51 }
 0xcb5   : > { %8957 = vrot.lane.b32.xlu1 %v15423_v52, %s9963_s23 }
 0xcb6   : > { %v4960_v49 = vpack.c.bf16 %v4941_v41, %v4940_v59 }
 0xcb7   : > { %8952 = vrot.lane.b32.xlu0 %v15424_v58, %s9963_s23  ;;  %v9640_v40 = vpop.eup %9639 }
 0xcb8   : > { %v4943_v32 = vmul.f32 %v9640_v40, %v13602_v37 }
 0xcb9   : > { %8967 = vrot.lane.b32.xlu1 %v15427_v21, %s9962_s24 }
 0xcbb   : > { %8962 = vrot.lane.b32.xlu0 %v15430_v57, %s9962_s24 }
 0xcbd   : > { %8977 = vrot.lane.b32.xlu1 %v15431_v36, %s9963_s23 }
 0xcbf   : > { %8972 = vrot.lane.b32.xlu0 %v15434_v27, %s9963_s23 }
 0xcc1   : > { %8987 = vrot.lane.b32.xlu1 %v15437_v16, %s9962_s24 }
 0xcc3   : > { %8982 = vrot.lane.b32.xlu0 %v15440_v24, %s9962_s24 }
 0xcd7   : > { %v4883_v7 = vpop.xlane.xlu1 %4882 }
 0xcdb   : > { %v4879_v14 = vpop.xlane.xlu0 %4878  ;;  %v8823_v13 = vpop.permute.xlu1 %8822 }
 0xcdc   : > { %9641 = vrcp.f32 %v4879_v14  ;;  %v8825_v37 = vunpack.i.h.bf16 %v8823_v13  ;;  %v8824_v27 = vunpack.i.l.bf16 %v8823_v13 }
 0xcdd   : > { %9643 = vrcp.f32 %v4873_v4  ;;  %v15443_v4 = vld [vmem:[#allocation42_spill] sm:$0xff] }
 0xcde   : > { %9645 = vrcp.f32 %v4877_v38 }
 0xcdf   : > { %v5086_v17 = vpop.permute.xlu0 %5085  ;;  %9647 = vrcp.f32 %v4883_v7  ;;  %v8828_v21 = vpop.permute.xlu1 %8827 }
 0xce0   : > { %8581 = vmatprep.subr.bf16.mxu0 %v5086_v17  ;;  %9649 = vrcp.f32 %v4881_v25  ;;  %v8829_v30 = vunpack.i.l.bf16 %v8828_v21 }
 0xce1   : > { %8582 = vmatpush3.bf16.msra.mxu0 %v5086_v17 }
 0xce2   : > { %v5592_v35 = vsel %vm1645_vm2, %v15444_v43, %v8829_v30 }
 0xce3   : > { %v8838_v20 = vpop.permute.xlu1 %8837  ;;  %v8833_v23 = vpop.permute.xlu0 %8832 }
 0xce4   : > { %8584 = vmatmul.mubr.bf16.vlgmr.msra.gmra.mxu0 %v4957_v33  ;;  %v8839_v11 = vunpack.i.l.bf16 %v8838_v20  ;;  %v8834_v16 = vunpack.i.l.bf16 %v8833_v23 }
 0xce5   : > { %8587 = vmatprep.mubr.bf16.mxu0 %v4958_v26 }
 0xce6   : > { %v5625_v28 = vsel %vm5622_vm3, %v5592_v35, %v8839_v11 }
 0xce9   : > { %v9642_v52 = vpop.eup %9641 }
 0xcea   : > { %v9644_v58 = vpop.eup %9643  ;;  %v4945_v19 = vmul.f32 %v9642_v52, %v13619_v6  ;;  %v8830_v6 = vunpack.i.h.bf16 %v8828_v21  ;;  %v15445_v52 = vld [vmem:[#allocation23_spill] sm:$0xff]  ;;  %v15448_v21 = vld [vmem:[#allocation38_spill] sm:$0xff] }
 0xceb   : > { %v9646_v9 = vpop.eup %9645  ;;  %v4942_v1 = vmul.f32 %v9644_v58, %v13598_v5  ;;  %v8840_v5 = vunpack.i.h.bf16 %v8838_v20 }
 0xcec   : > { %8588 = vmatmul.mubr.bf16.gmra.mxu0 %v4959_v46  ;;  %v4944_v63 = vmul.f32 %v9646_v9, %v13608_v47  ;;  %v9648_v42 = vpop.eup %9647  ;;  %v8835_v47 = vunpack.i.h.bf16 %v8833_v23  ;;  %v5593_v54 = vsel %vm1645_vm2, %v15443_v4, %v8830_v6  ;;  %v15446_v9 = vld [vmem:[#allocation22_spill] sm:$0xff] }
 0xced   : > { %8591 = vmatprep.mubr.bf16.mxu0 %v4960_v49  ;;  %v4961_v56 = vpack.c.bf16 %v4943_v32, %v4942_v1  ;;  %v9650_v57 = vpop.eup %9649  ;;  %v4947_v36 = vmul.f32 %v9648_v42, %v13616_v8  ;;  %v15441_v8 = vld [vmem:[#allocation35_spill] sm:$0xff]  ;;  %v5626_v22 = vsel %vm5622_vm3, %v5593_v54, %v8840_v5 }
 0xcee   : > { %v4962_v2 = vpack.c.bf16 %v4945_v19, %v4944_v63  ;;  %v4946_v48 = vmul.f32 %v9650_v57, %v13610_v45  ;;  %v5591_v55 = vsel %vm1645_vm2, %v15441_v8, %v8825_v37  ;;  %v5590_v45 = vsel %vm1645_vm2, %v15442_v18, %v8824_v27  ;;  %v15447_v19 = vld [vmem:[#allocation37_spill] sm:$0xff] }
 0xcef   : > { %v5624_v44 = vsel %vm5622_vm3, %v5591_v55, %v8835_v47  ;;  %v5623_v29 = vsel %vm5622_vm3, %v5590_v45, %v8834_v16 }
 0xcf0   : > { %v4963_v3 = vpack.c.bf16 %v4947_v36, %v4946_v48 }
 0xcf4   : > { %8592 = vmatmul.mubr.bf16.gmra.mxu0 %v4961_v56 }
 0xcf5   : > { %8595 = vmatprep.mubr.bf16.mxu0 %v4962_v2 }
 0xcfb   : > { %v8848_v60 = vpop.permute.xlu1 %8847 }
 0xcfc   : > { %v8850_v15 = vunpack.i.h.bf16 %v8848_v60  ;;  %v8849_v24 = vunpack.i.l.bf16 %v8848_v60  ;;  %8596 = vmatmul.mubr.bf16.gmra.mxu0 %v4963_v3 }
 0xcfd   : > { %v8843_v25 = vpop.permute.xlu0 %8842 }
 0xcfe   : > { %v8845_v14 = vunpack.i.h.bf16 %v8843_v25  ;;  %v8844_v12 = vunpack.i.l.bf16 %v8843_v25  ;;  %v5658_v50 = vsel %vm5655_vm4, %v5625_v28, %v8849_v24  ;;  %v5659_v38 = vsel %vm5655_vm4, %v5626_v22, %v8850_v15  ;;  %v15449_v25 = vld [vmem:[#allocation45_spill] sm:$0xff] }
 0xcff   : > { %v8858_v17 = vpop.permute.xlu1 %8857  ;;  %v5689_v0 = vpack.c.bf16 %v5659_v38, %v5658_v50  ;;  %v15450_v22 = vld [vmem:[#allocation17_spill] sm:$0xff] }
 0xd00   : > { %v5656_v39 = vsel %vm5655_vm4, %v5623_v29, %v8844_v12  ;;  %v5657_v53 = vsel %vm5655_vm4, %v5624_v44, %v8845_v14  ;;  %v8860_v26 = vunpack.i.h.bf16 %v8858_v17  ;;  %v8859_v10 = vunpack.i.l.bf16 %v8858_v17  ;;  %v15451_v12 = vld [vmem:[#allocation47_spill] sm:$0xff] }
 0xd01   : > { %v8853_v34 = vpop.permute.xlu0 %8852  ;;  %v5688_v33 = vpack.c.bf16 %v5657_v53, %v5656_v39  ;;  %v15452_v29 = vld [vmem:[#allocation19_spill] sm:$0xff] }
 0xd02   : > { %v8855_v62 = vunpack.i.h.bf16 %v8853_v34  ;;  %v8854_v61 = vunpack.i.l.bf16 %v8853_v34  ;;  %v5597_v58 = vsel %vm1645_vm2, %v15445_v52, %v8860_v26  ;;  %v5596_v32 = vsel %vm1645_vm2, %v15446_v9, %v8859_v10 }
 0xd03   : > { %v8868_v7 = vpop.permute.xlu1 %8867  ;;  %8603 = vmatprep.mubr.msk.bf16.mxu1 %vm784_vm1, %v5688_v33 }
 0xd04   : > { %8604 = vmatmul.mubr.msk.bf16.vlgmr.msra.gmra.mxu1 %vm784_vm1, %v5689_v0  ;;  %v8870_v41 = vunpack.i.h.bf16 %v8868_v7  ;;  %v8869_v51 = vunpack.i.l.bf16 %v8868_v7  ;;  %v5595_v1 = vsel %vm1645_vm2, %v15447_v19, %v8855_v62  ;;  %v5594_v63 = vsel %vm1645_vm2, %v15448_v21, %v8854_v61 }
 0xd05   : > { %v8863_v31 = vpop.permute.xlu0 %8862 }
 0xd06   : > { %v8865_v59 = vunpack.i.h.bf16 %v8863_v31  ;;  %v8864_v46 = vunpack.i.l.bf16 %v8863_v31  ;;  %v5629_v42 = vsel %vm5622_vm3, %v5596_v32, %v8869_v51  ;;  %v5630_v2 = vsel %vm5622_vm3, %v5597_v58, %v8870_v41 }
 0xd07   : > { %v8878_v40 = vpop.permute.xlu1 %8877 }
 0xd08   : > { %v8880_v13 = vunpack.i.h.bf16 %v8878_v40  ;;  %v8879_v49 = vunpack.i.l.bf16 %v8878_v40  ;;  %v5627_v20 = vsel %vm5622_vm3, %v5594_v63, %v8864_v46  ;;  %v5628_v23 = vsel %vm5622_vm3, %v5595_v1, %v8865_v59 }
 0xd09   : > { %v8873_v56 = vpop.permute.xlu0 %8872 }
 0xd0a   : > { %v8875_v57 = vunpack.i.h.bf16 %v8873_v56  ;;  %v8874_v36 = vunpack.i.l.bf16 %v8873_v56  ;;  %v5662_v48 = vsel %vm5655_vm4, %v5629_v42, %v8879_v49  ;;  %v5663_v37 = vsel %vm5655_vm4, %v5630_v2, %v8880_v13  ;;  %v15453_v56 = vld [vmem:[#allocation24_spill] sm:$0xff] }
 0xd0b   : > { %v8888_v27 = vpop.permute.xlu1 %8887  ;;  %v5691_v3 = vpack.c.bf16 %v5663_v37, %v5662_v48  ;;  %v15454_v2 = vld [vmem:[#allocation20_spill] sm:$0xff] }
 0xd0c   : > { %v5660_v6 = vsel %vm5655_vm4, %v5627_v20, %v8874_v36  ;;  %v5661_v30 = vsel %vm5655_vm4, %v5628_v23, %v8875_v57  ;;  %v8890_v16 = vunpack.i.h.bf16 %v8888_v27  ;;  %v8889_v60 = vunpack.i.l.bf16 %v8888_v27  ;;  %v15455_v36 = vld [vmem:[#allocation49_spill] sm:$0xff]  ;;  %v15456_v23 = vld [vmem:[#allocation18_spill] sm:$0xff] }
 0xd0d   : > { %v8883_v5 = vpop.permute.xlu0 %8882  ;;  %v5690_v11 = vpack.c.bf16 %v5661_v30, %v5660_v6 }
 0xd0e   : > { %v8885_v15 = vunpack.i.h.bf16 %v8883_v5  ;;  %v8884_v24 = vunpack.i.l.bf16 %v8883_v5  ;;  %v5601_v28 = vsel %vm1645_vm2, %v15449_v25, %v8890_v16  ;;  %v5600_v14 = vsel %vm1645_vm2, %v15450_v22, %v8889_v60  ;;  %v15458_v22 = vld [vmem:[#allocation80_spill] sm:$0xff] }
 0xd0f   : > { %v8898_v47 = vpop.permute.xlu1 %8897  ;;  %8607 = vmatprep.mubr.msk.bf16.mxu1 %vm784_vm1, %v5690_v11 }
 0xd10   : > { %8608 = vmatmul.mubr.msk.bf16.gmra.mxu1 %vm784_vm1, %v5691_v3  ;;  %v8900_v55 = vunpack.i.h.bf16 %v8898_v47  ;;  %v8899_v18 = vunpack.i.l.bf16 %v8898_v47  ;;  %v5599_v44 = vsel %vm1645_vm2, %v15451_v12, %v8885_v15  ;;  %v5598_v50 = vsel %vm1645_vm2, %v15452_v29, %v8884_v24  ;;  %v15460_v29 = vld [vmem:[#allocation81_spill] sm:$0xff] }
 0xd11   : > { %v8893_v8 = vpop.permute.xlu0 %8892 }
 0xd12   : > { %v8895_v45 = vunpack.i.h.bf16 %v8893_v8  ;;  %v8894_v4 = vunpack.i.l.bf16 %v8893_v8  ;;  %v5633_v17 = vsel %vm5622_vm3, %v5600_v14, %v8899_v18  ;;  %v5634_v39 = vsel %vm5622_vm3, %v5601_v28, %v8900_v55  ;;  %v15457_v28 = vld [vmem:[#allocation82_spill] sm:$0xff] }
 0xd13   : > { %v8908_v54 = vpop.permute.xlu1 %8907  ;;  %v15459_v14 = vpack.i.bf16 %v15457_v28, %v15458_v22  ;;  %v9895_v22 = vld [vmem:[%s14979_s14 + $0x20] sm:$0xff] }
 0xd14   : > { %v8910_v43 = vunpack.i.h.bf16 %v8908_v54  ;;  %v8909_v35 = vunpack.i.l.bf16 %v8908_v54  ;;  %v5631_v33 = vsel %vm5622_vm3, %v5598_v50, %v8894_v4  ;;  %v5632_v0 = vsel %vm5622_vm3, %v5599_v44, %v8895_v45  ;;  %v15461_v50 = vld [vmem:[#allocation79_spill] sm:$0xff] }
 0xd15   : > { %v8903_v38 = vpop.permute.xlu0 %8902 }
 0xd16   : > { %v8905_v53 = vunpack.i.h.bf16 %v8903_v38  ;;  %v8904_v34 = vunpack.i.l.bf16 %v8903_v38  ;;  %v5666_v7 = vsel %vm5655_vm4, %v5633_v17, %v8909_v35  ;;  %v5667_v26 = vsel %vm5655_vm4, %v5634_v39, %v8910_v43 }
 0xd17   : > { %v8918_v10 = vpop.permute.xlu1 %8917  ;;  %v5693_v51 = vpack.c.bf16 %v5667_v26, %v5666_v7  ;;  %v15462_v38 = vpack.i.bf16 %v15460_v29, %v15461_v50 }
 0xd18   : > { %v5664_v62 = vsel %vm5655_vm4, %v5631_v33, %v8904_v34  ;;  %v5665_v61 = vsel %vm5655_vm4, %v5632_v0, %v8905_v53  ;;  %v8920_v46 = vunpack.i.h.bf16 %v8918_v10  ;;  %v8919_v40 = vunpack.i.l.bf16 %v8918_v10  ;;  %v15463_v33 = vld [vmem:[#allocation71_spill] sm:$0xff] }
 0xd19   : > { %v5692_v31 = vpack.c.bf16 %v5665_v61, %v5664_v62  ;;  %v8913_v41 = vpop.permute.xlu0 %8912  ;;  %v15464_v0 = vld [vmem:[#allocation15_spill] sm:$0xff]  ;;  %v15467_v61 = vld [vmem:[#allocation65_spill] sm:$0xff] }
 0xd1a   : > { %v8915_v13 = vunpack.i.h.bf16 %v8913_v41  ;;  %v8914_v49 = vunpack.i.l.bf16 %v8913_v41  ;;  %v5605_v42 = vsel %vm1645_vm2, %v15453_v56, %v8920_v46  ;;  %v5604_v57 = vsel %vm1645_vm2, %v15454_v2, %v8919_v40  ;;  %v15466_v62 = vld [vmem:[#allocation75_spill] sm:$0xff]  ;;  %v13858_v2 = vld [vmem:[%s10087_s21] ss:$0 sm:$0xff] }
 0xd1b   : > { %v8928_v59 = vpop.permute.xlu1 %8927  ;;  %8611 = vmatprep.mubr.msk.bf16.mxu1 %vm784_vm1, %v5692_v31  ;;  %v15465_v7 = vpack.i.bf16 %v15463_v33, %v15464_v0  ;;  %v15468_v31 = vpack.i.bf16 %v15466_v62, %v15467_v61  ;;  %v15469_v40 = vld [vmem:[#allocation11_spill] sm:$0xff]  ;;  %v9897_v33 = vld [vmem:[%s14979_s14 + $0x28] sm:$0xff]  ;;  %v9898_v61 = vld [vmem:[%s14979_s14 + $0x38] sm:$0xff] }
 0xd1c   : > { %8612 = vmatmul.mubr.msk.bf16.gmra.mxu1 %vm784_vm1, %v5693_v51  ;;  %v8930_v58 = vunpack.i.h.bf16 %v8928_v59  ;;  %v8929_v9 = vunpack.i.l.bf16 %v8928_v59  ;;  %v5603_v20 = vsel %vm1645_vm2, %v15455_v36, %v8915_v13  ;;  %v5602_v48 = vsel %vm1645_vm2, %v15456_v23, %v8914_v49  ;;  %v15470_v13 = vld [vmem:[#allocation6_spill] sm:$0xff] }
 0xd1d   : > { %v8923_v52 = vpop.permute.xlu0 %8922  ;;  %v15471_v49 = vpack.i.bf16 %v15469_v40, %v15470_v13 }
 0xd1e   : > { %v8925_v32 = vunpack.i.h.bf16 %v8923_v52  ;;  %v8924_v19 = vunpack.i.l.bf16 %v8923_v52  ;;  %v5637_v27 = vsel %vm5622_vm3, %v5604_v57, %v8929_v9  ;;  %v5638_v6 = vsel %vm5622_vm3, %v5605_v42, %v8930_v58  ;;  %v15472_v9 = vld [vmem:[#allocation9_spill] sm:$0xff] }
 0xd1f   : > { %v8938_v1 = vpop.permute.xlu1 %8937 }
 0xd20   : > { %v8940_v21 = vunpack.i.h.bf16 %v8938_v1  ;;  %v8939_v63 = vunpack.i.l.bf16 %v8938_v1  ;;  %v5635_v11 = vsel %vm5622_vm3, %v5602_v48, %v8924_v19  ;;  %v5636_v3 = vsel %vm5622_vm3, %v5603_v20, %v8925_v32  ;;  %v15473_v32 = vld [vmem:[#allocation7_spill] sm:$0xff]  ;;  %v9891_v48 = vld [vmem:[%s14979_s14] sm:$0xff] }
 0xd21   : > { %v8933_v37 = vpop.permute.xlu0 %8932  ;;  %v15474_v19 = vpack.i.bf16 %v15472_v9, %v15473_v32  ;;  %v9899_v9 = vld [vmem:[%s14979_s14 + $0x40] sm:$0xff] }
 0xd22   : > { %v8935_v30 = vunpack.i.h.bf16 %v8933_v37  ;;  %v8934_v5 = vunpack.i.l.bf16 %v8933_v37  ;;  %v5670_v47 = vsel %vm5655_vm4, %v5637_v27, %v8939_v63  ;;  %v5671_v16 = vsel %vm5655_vm4, %v5638_v6, %v8940_v21  ;;  %v9892_v6 = vld [vmem:[%s14979_s14 + $0x8] sm:$0xff] }
 0xd23   : > { %v5695_v8 = vpack.c.bf16 %v5671_v16, %v5670_v47 }
 0xd24   : > { %v5668_v60 = vsel %vm5655_vm4, %v5635_v11, %v8934_v5  ;;  %v5669_v15 = vsel %vm5655_vm4, %v5636_v3, %v8935_v30  ;;  %v9893_v5 = vld [vmem:[%s14979_s14 + $0x10] sm:$0xff] }
 0xd25   : > { %v5694_v24 = vpack.c.bf16 %v5669_v15, %v5668_v60 }
 0xd27   : > { %8615 = vmatprep.mubr.msk.bf16.mxu1 %vm784_vm1, %v5694_v24  ;;  %v9894_v24 = vld [vmem:[%s14979_s14 + $0x18] sm:$0xff] }
 0xd28   : > { %8616 = vmatmul.mubr.msk.bf16.gmra.mxu1 %vm784_vm1, %v5695_v8 }
 0xda4   : > { %v8585_v55 = vpop.f32.mrf.mxu0 }
 0xda6   : > { %v5143_v18 = vpop.f32.mrf.mxu0 }
 0xda8   : > { %v8586_v45 = vpop.f32.mrf.mxu0 }
 0xda9   : > { %v8991_v4 = vpack.i.bf16 %v8586_v45, %v8585_v55 }
 0xdaa   : > { %v5146_v54 = vpop.f32.mrf.mxu0 }
 0xdab   : > { %v8996_v43 = vpack.i.bf16 %v5146_v54, %v5143_v18  ;;  %8992 = vrot.lane.b32.xlu1 %v8991_v4, %s9964_s9 }
 0xdac   : > { %v8589_v35 = vpop.f32.mrf.mxu0 }
 0xdad   : > { %8997 = vrot.lane.b32.xlu0 %v8996_v43, %s9964_s9 }
 0xdae   : > { %v5159_v25 = vpop.f32.mrf.mxu0 }
 0xdaf   : > { %9007 = vrot.lane.b32.xlu1 %v15459_v14, %s9963_s23 }
 0xdb0   : > { %v8590_v12 = vpop.f32.mrf.mxu0 }
 0xdb1   : > { %v9011_v44 = vpack.i.bf16 %v8590_v12, %v8589_v35  ;;  %9002 = vrot.lane.b32.xlu0 %v15462_v38, %s9963_s23 }
 0xdb2   : > { %v5162_v17 = vpop.f32.mrf.mxu0 }
 0xdb3   : > { %v9016_v39 = vpack.i.bf16 %v5162_v17, %v5159_v25  ;;  %9012 = vrot.lane.b32.xlu1 %v9011_v44, %s9964_s9  ;;  %v9896_v17 = vld [vmem:[%s14979_s14 + $0x30] sm:$0xff] }
 0xdb4   : > { %v8593_v53 = vpop.f32.mrf.mxu0 }
 0xdb5   : > { %9017 = vrot.lane.b32.xlu0 %v9016_v39, %s9964_s9 }
 0xdb6   : > { %v5175_v34 = vpop.f32.mrf.mxu0 }
 0xdb7   : > { %9027 = vrot.lane.b32.xlu1 %v15465_v7, %s9962_s24 }
 0xdb8   : > { %v8594_v26 = vpop.f32.mrf.mxu0 }
 0xdb9   : > { %v9031_v10 = vpack.i.bf16 %v8594_v26, %v8593_v53  ;;  %9022 = vrot.lane.b32.xlu0 %v15468_v31, %s9962_s24 }
 0xdba   : > { %v5178_v41 = vpop.f32.mrf.mxu0 }
 0xdbb   : > { %v9036_v51 = vpack.i.bf16 %v5178_v41, %v5175_v34  ;;  %9032 = vrot.lane.b32.xlu1 %v9031_v10, %s9964_s9 }
 0xdbc   : > { %v8597_v59 = vpop.f32.mrf.mxu0 }
 0xdbd   : > { %9037 = vrot.lane.b32.xlu0 %v9036_v51, %s9964_s9 }
 0xdbe   : > { %v5191_v46 = vpop.f32.mrf.mxu0 }
 0xdbf   : > { %9047 = vrot.lane.b32.xlu1 %v15471_v49, %s9963_s23 }
 0xdc0   : > { %v8598_v52 = vpop.f32.mrf.mxu0 }
 0xdc1   : > { %v9056_v58 = vpack.i.bf16 %v8598_v52, %v8597_v59  ;;  %9042 = vrot.lane.b32.xlu0 %v15474_v19, %s9963_s23 }
 0xdc2   : > { %v5194_v1 = vpop.f32.mrf.mxu0 }
 0xdc3   : > { %v9051_v21 = vpack.i.bf16 %v5194_v1, %v5191_v46  ;;  %9057 = vrot.lane.b32.xlu1 %v9056_v58, %s9964_s9 }
 0xdc4   : > { %v8605_v63 = vpop.f32.mrf.mxu1 }
 0xdc5   : > { %9052 = vrot.lane.b32.xlu0 %v9051_v21, %s9964_s9  ;;  %v5818_v23 = vadd.f32 %v8605_v63, %v13858_v2 }
 0xdc6   : > { %v5809_v56 = vpop.f32.mrf.mxu1 }
 0xdc7   : > { %v5810_v57 = vadd.f32 %v13858_v2, %v5809_v56  ;;  %v13876_v11 = vadd.f32 %v9893_v5, %v5818_v23  ;;  %v13964_v23 = vpop.permute.xlu0 %8942 }
 0xdc8   : > { %v8606_v42 = vpop.f32.mrf.mxu1 }
 0xdc9   : > { %v13866_v37 = vadd.f32 %v9891_v48, %v5810_v57  ;;  %v5821_v3 = vadd.f32 %v8606_v42, %v13858_v2  ;;  %v5976_v55 = vsel %vm784_vm1, %v13876_v11, 0.0  ;;  %v6068_v54 = vmul.f32 %v13876_v11, %v13876_v11  ;;  %v13955_v42 = vpop.permute.xlu1 %8947  ;;  %v9900_v57 = vld [vmem:[%s14979_s14 + $0x50] sm:$0xff] }
 0xdca   : > { %v5812_v36 = vpop.f32.mrf.mxu1 }
 0xdcb   : > { %v5813_v20 = vadd.f32 %v13858_v2, %v5812_v36  ;;  %v5970_v47 = vsel %vm784_vm1, %v13866_v37, 0.0  ;;  %v6066_v15 = vmul.f32 %v13866_v37, %v13866_v37  ;;  %v13888_v8 = vadd.f32 %v9894_v24, %v5821_v3 }
 0xdcc   : > { %v6104_v12 = vsel %vm784_vm1, %v6068_v54, 0.0 }
 0xdcd   : > { %v13871_v30 = vadd.f32 %v9892_v6, %v5813_v20  ;;  %15476 = vst [vmem:[#allocation12_spill] sm:$0xff] %v13888_v8  ;;  %v6098_v4 = vsel %vm784_vm1, %v6066_v15, 0.0  ;;  %v5979_v43 = vsel %vm784_vm1, %v13888_v8, 0.0  ;;  %v6069_v50 = vmul.f32 %v13888_v8, %v13888_v8  ;;  %v9902_v15 = vld [vmem:[%s14979_s14 + $0x58] sm:$0xff] }
 0xdcf   : > { %15475 = vst [vmem:[#allocation8_spill] sm:$0xff] %v13871_v30  ;;  %v5973_v60 = vsel %vm784_vm1, %v13871_v30, 0.0  ;;  %v6067_v35 = vmul.f32 %v13871_v30, %v13871_v30  ;;  %v6107_v7 = vsel %vm784_vm1, %v6069_v50, 0.0 }
 0xdd0   : > { %v8609_v27 = vpop.f32.mrf.mxu1 }
 0xdd1   : > { %v5834_v28 = vadd.f32 %v8609_v27, %v13858_v2  ;;  %v6101_v29 = vsel %vm784_vm1, %v6067_v35, 0.0  ;;  %v9901_v27 = vld [vmem:[%s14979_s14 + $0x48] sm:$0xff] }
 0xdd2   : > { %v5825_v16 = vpop.f32.mrf.mxu1 }
 0xdd3   : > { %v5826_v45 = vadd.f32 %v13858_v2, %v5825_v16  ;;  %v13914_v39 = vadd.f32 %v9896_v17, %v5834_v28 }
 0xdd4   : > { %v8610_v18 = vpop.f32.mrf.mxu1 }
 0xdd5   : > { %v13904_v14 = vadd.f32 %v9895_v22, %v5826_v45  ;;  %15478 = vst [vmem:[#allocation5_spill] sm:$0xff] %v13914_v39  ;;  %v5837_v34 = vadd.f32 %v8610_v18, %v13858_v2  ;;  %v5988_v10 = vsel %vm784_vm1, %v13914_v39, 0.0  ;;  %v6072_v40 = vmul.f32 %v13914_v39, %v13914_v39  ;;  %v13986_v45 = vpop.permute.xlu0 %8952 }
 0xdd6   : > { %v5828_v25 = vpop.f32.mrf.mxu1 }
 0xdd7   : > { %15477 = vst [vmem:[#allocation10_spill] sm:$0xff] %v13904_v14  ;;  %v5829_v44 = vadd.f32 %v13858_v2, %v5828_v25  ;;  %v5982_v53 = vsel %vm784_vm1, %v13904_v14, 0.0  ;;  %v6070_v62 = vmul.f32 %v13904_v14, %v13904_v14  ;;  %v13932_v31 = vadd.f32 %v9898_v61, %v5837_v34 }
 0xdd8   : > { %v6116_v19 = vsel %vm784_vm1, %v6072_v40, 0.0  ;;  %v9066_v40 = vld [vmem:[%s10104_s30] sm:$0xff]  }
 0xdd9   : > { %v13922_v0 = vadd.f32 %v9897_v33, %v5829_v44  ;;  %15480 = vst [vmem:[#allocation61_spill] sm:$0xff] %v13932_v31  ;;  %v6110_v46 = vsel %vm784_vm1, %v6070_v62, 0.0  ;;  %v5991_v13 = vsel %vm784_vm1, %v13932_v31, 0.0  ;;  %v6073_v63 = vmul.f32 %v13932_v31, %v13932_v31  ;;  %v9903_v44 = vld [vmem:[%s14979_s14 + $0x60] sm:$0xff]  ;;  %v9065_v33 = vld [vmem:[%s10104_s30 + $0x8] sm:$0xff]  }
 0xdda   : > { %8635 = vmatprep.subr.bf16.mxu0 %v9065_v33 }
 0xddb   : > { %15479 = vst [vmem:[#allocation59_spill] sm:$0xff] %v13922_v0  ;;  %v5985_v41 = vsel %vm784_vm1, %v13922_v0, 0.0  ;;  %v6071_v49 = vmul.f32 %v13922_v0, %v13922_v0  ;;  %v6119_v5 = vsel %vm784_vm1, %v6073_v63, 0.0  ;;  %8636 = vmatpush3.bf16.msra.mxu0 %v9065_v33 }
 0xddc   : > { %v8613_v38 = vpop.f32.mrf.mxu1  ;;  %8637 = vmatprep.subr.bf16.mxu0 %v9066_v40 }
 0xddd   : > { %v5850_v58 = vadd.f32 %v8613_v38, %v13858_v2  ;;  %v6113_v21 = vsel %vm784_vm1, %v6071_v49, 0.0  ;;  %v14005_v38 = vpop.permute.xlu0 %8962 }
 0xdde   : > { %v5841_v26 = vpop.f32.mrf.mxu1 }
 0xddf   : > { %v5842_v59 = vadd.f32 %v13858_v2, %v5841_v26  ;;  %v13960_v36 = vadd.f32 %v9900_v57, %v5850_v58  ;;  %8638 = vmatpush3.bf16.msra.mxu0 %v9066_v40  ;;  %v8945_v57 = vunpack.i.h.bf16 %v13964_v23 }
 0xde0   : > { %v8614_v51 = vpop.f32.mrf.mxu1 }
 0xde1   : > { %v13948_v32 = vadd.f32 %v9899_v9, %v5842_v59  ;;  %15482 = vst [vmem:[#allocation58_spill] sm:$0xff] %v13960_v36  ;;  %v5853_v48 = vadd.f32 %v8614_v51, %v13858_v2 }
 0xde2   : > { %v5844_v52 = vpop.f32.mrf.mxu1 }
 0xde3   : > { %15481 = vst [vmem:[#allocation60_spill] sm:$0xff] %v13948_v32  ;;  %v5845_v1 = vadd.f32 %v13858_v2, %v5844_v52  ;;  %v5994_v20 = vsel %vm784_vm1, %v13948_v32, 0.0  ;;  %v6074_v16 = vmul.f32 %v13948_v32, %v13948_v32  ;;  %v13982_v24 = vadd.f32 %v9902_v15, %v5853_v48  ;;  %v9906_v52 = vld [vmem:[%s14979_s14 + $0x78] sm:$0xff] }
 0xde4   : > { %5971 = vadd.xlane.f32.xlu0 %v5970_v47  ;;  %v6000_v47 = vsel %vm784_vm1, %v13960_v36, 0.0  ;;  %v8955_v15 = vunpack.i.h.bf16 %v13986_v45 }
 0xde5   : > { %v13970_v6 = vadd.f32 %v9901_v27, %v5845_v1  ;;  %15484 = vst [vmem:[#allocation83_spill] sm:$0xff] %v13982_v24  ;;  %v6122_v54 = vsel %vm784_vm1, %v6074_v16, 0.0  ;;  %v6003_v35 = vsel %vm784_vm1, %v13982_v24, 0.0  ;;  %v6077_v34 = vmul.f32 %v13982_v24, %v13982_v24 }
 0xde7   : > { %5974 = vadd.xlane.f32.xlu1 %v5973_v60  ;;  %15483 = vst [vmem:[#allocation85_spill] sm:$0xff] %v13970_v6  ;;  %v13977_v60 = vpop.permute.xlu1 %8957  ;;  %v6075_v25 = vmul.f32 %v13970_v6, %v13970_v6  ;;  %v6131_v59 = vsel %vm784_vm1, %v6077_v34, 0.0 }
 0xde8   : > { %5977 = vadd.xlane.f32.xlu0 %v5976_v55  ;;  %v8617_v56 = vpop.f32.mrf.mxu1  ;;  %v5997_v55 = vsel %vm784_vm1, %v13970_v6, 0.0 }
 0xdea   : > { %v5857_v3 = vpop.f32.mrf.mxu1 }
 0xdeb   : > { %6099 = vadd.xlane.f32.xlu1 %v6098_v4  ;;  %v5858_v4 = vadd.f32 %v13858_v2, %v5857_v3  ;;  %v13996_v22 = vpop.permute.xlu1 %8967  ;;  %v8959_v3 = vunpack.i.l.bf16 %v13977_v60 }
 0xdec   : > { %5980 = vadd.xlane.f32.xlu0 %v5979_v43  ;;  %v8618_v18 = vpop.f32.mrf.mxu1  ;;  %v6076_v43 = vmul.f32 %v13960_v36, %v13960_v36  ;;  %v8970_v40 = vunpack.i.h.bf16 %v13996_v22 }
 0xded   : > { %v5869_v61 = vadd.f32 %v8618_v18, %v13858_v2  ;;  %v15490_v18 = vld [vmem:[#allocation46_spill] sm:$0xff] }
 0xdee   : > { %v5860_v28 = vpop.f32.mrf.mxu1  ;;  %v6128_v50 = vsel %vm784_vm1, %v6076_v43, 0.0 }
 0xdef   : > { %6105 = vadd.xlane.f32.xlu1 %v6104_v12  ;;  %v5866_v12 = vadd.f32 %v8617_v56, %v13858_v2  ;;  %v5861_v17 = vadd.f32 %v13858_v2, %v5860_v28  ;;  %v14019_v62 = vpop.permute.xlu1 %8977  ;;  %v14038_v58 = vadd.f32 %v9906_v52, %v5869_v61 }
 0xdf0   : > { %6102 = vadd.xlane.f32.xlu0 %v6101_v29  ;;  %v14002_v29 = vadd.f32 %v9903_v44, %v5858_v4 }
 0xdf1   : > { %15488 = vst [vmem:[#allocation67_spill] sm:$0xff] %v14038_v58  ;;  %v6015_v27 = vsel %vm784_vm1, %v14038_v58, 0.0 }
 0xdf2   : > { %15485 = vst [vmem:[#allocation86_spill] sm:$0xff] %v14002_v29  ;;  %v6078_v49 = vmul.f32 %v14002_v29, %v14002_v29 }
 0xdf3   : > { %5983 = vadd.xlane.f32.xlu1 %v5982_v53  ;;  %v6125_v53 = vsel %vm784_vm1, %v6075_v25, 0.0  ;;  %v14043_v1 = vpop.permute.xlu1 %8987  ;;  %v15491_v25 = vld [vmem:[#allocation50_spill] sm:$0xff] }
 0xdf4   : > { %6108 = vadd.xlane.f32.xlu0 %v6107_v7  ;;  %v9904_v7 = vld [vmem:[%s14979_s14 + $0x70] sm:$0xff]  ;;  %v6134_v63 = vsel %vm784_vm1, %v6078_v49, 0.0  ;;  %v5607_v28 = vsel %vm1645_vm2, %v15491_v25, %v8945_v57  ;;  %v8980_v57 = vunpack.i.h.bf16 %v14019_v62 }
 0xdf5   : > { %v14015_v26 = vadd.f32 %v9904_v7, %v5866_v12 }
 0xdf7   : > { %5989 = vadd.xlane.f32.xlu1 %v5988_v10  ;;  %15486 = vst [vmem:[#allocation84_spill] sm:$0xff] %v14015_v26  ;;  %v6006_v10 = vsel %vm784_vm1, %v14002_v29, 0.0  ;;  %v6080_v56 = vmul.f32 %v14015_v26, %v14015_v26 }
 0xdf8   : > { %5986 = vadd.xlane.f32.xlu0 %v5985_v41  ;;  %v9905_v41 = vld [vmem:[%s14979_s14 + $0x68] sm:$0xff] }
 0xdf9   : > { %v14025_v51 = vadd.f32 %v9905_v41, %v5861_v17 }
 0xdfb   : > { %6111 = vadd.xlane.f32.xlu1 %v6110_v46  ;;  %15487 = vst [vmem:[#allocation63_spill] sm:$0xff] %v14025_v51  ;;  %v14028_v46 = vpop.permute.xlu0 %8972  ;;  %v6009_v9 = vsel %vm784_vm1, %v14025_v51, 0.0 }
 0xdfc   : > { %5992 = vadd.xlane.f32.xlu0 %v5991_v13  ;;  %v6012_v13 = vsel %vm784_vm1, %v14015_v26, 0.0 }
 0xdff   : > { %6117 = vadd.xlane.f32.xlu1 %v6116_v19  ;;  %v8950_v19 = vunpack.i.h.bf16 %v13955_v42  ;;  %v14051_v48 = vpop.permute.xlu0 %8982 }
 0xe00   : > { %6114 = vadd.xlane.f32.xlu0 %v6113_v21  ;;  %v8949_v21 = vunpack.i.l.bf16 %v13955_v42  ;;  %v8960_v42 = vunpack.i.h.bf16 %v13977_v60  ;;  %v15492_v60 = vld [vmem:[#allocation25_spill] sm:$0xff] }
 0xe02   : > { %v5608_v4 = vsel %vm1645_vm2, %v15490_v18, %v8949_v21  ;;  %v15496_v18 = vld [vmem:[#allocation14_spill] sm:$0xff] }
 0xe03   : > { %5995 = vadd.xlane.f32.xlu1 %v5994_v20  ;;  %v8944_v20 = vunpack.i.l.bf16 %v13964_v23  ;;  %v8954_v23 = vunpack.i.l.bf16 %v13986_v45  ;;  %v6081_v45 = vmul.f32 %v14038_v58, %v14038_v58  ;;  %v5641_v17 = vsel %vm5622_vm3, %v5608_v4, %v8959_v3 }
 0xe04   : > { %6120 = vadd.xlane.f32.xlu0 %v6119_v5  ;;  %v6079_v5 = vmul.f32 %v14025_v51, %v14025_v51 }
 0xe05   : > { %v5606_v12 = vsel %vm1645_vm2, %v15492_v60, %v8944_v20  ;;  %v8979_v20 = vunpack.i.l.bf16 %v14019_v62  ;;  %v15495_v62 = vld [vmem:[#allocation52_spill] sm:$0xff] }
 0xe06   : > { %v5639_v7 = vsel %vm5622_vm3, %v5606_v12, %v8954_v23 }
 0xe07   : > { %6001 = vadd.xlane.f32.xlu1 %v6000_v47  ;;  %v15489_v47 = vld [vmem:[#allocation48_spill] sm:$0xff] }
 0xe08   : > { %5998 = vadd.xlane.f32.xlu0 %v5997_v55  ;;  %v5609_v16 = vsel %vm1645_vm2, %v15489_v47, %v8950_v19  ;;  %v8964_v19 = vunpack.i.l.bf16 %v14005_v38 }
 0xe0a   : > { %v5610_v4 = vsel %vm1645_vm2, %v15496_v18, %v8964_v19 }
 0xe0b   : > { %6123 = vadd.xlane.f32.xlu1 %v6122_v54 }
 0xe0c   : > { %6004 = vadd.xlane.f32.xlu0 %v6003_v35  ;;  %v6140_v35 = vsel %vm784_vm1, %v6080_v56, 0.0  ;;  %v6143_v56 = vsel %vm784_vm1, %v6081_v45, 0.0  ;;  %v8990_v45 = vunpack.i.h.bf16 %v14043_v1 }
 0xe0f   : > { %6129 = vadd.xlane.f32.xlu1 %v6128_v50  ;;  %v6137_v50 = vsel %vm784_vm1, %v6079_v5, 0.0  ;;  %v8974_v5 = vunpack.i.l.bf16 %v14028_v46 }
 0xe10   : > { %6126 = vadd.xlane.f32.xlu0 %v6125_v53  ;;  %v5642_v53 = vsel %vm5622_vm3, %v5609_v16, %v8960_v42 }
 0xe13   : > { %6007 = vadd.xlane.f32.xlu1 %v6006_v10  ;;  %v5640_v10 = vsel %vm5622_vm3, %v5607_v28, %v8955_v15  ;;  %v15494_v15 = vld [vmem:[#allocation26_spill] sm:$0xff]  ;;  %v5643_v28 = vsel %vm5622_vm3, %v5610_v4, %v8974_v5 }
 0xe14   : > { %6132 = vadd.xlane.f32.xlu0 %v6131_v59 }
 0xe17   : > { %6013 = vadd.xlane.f32.xlu1 %v6012_v13  ;;  %v8969_v13 = vunpack.i.l.bf16 %v13996_v22  ;;  %v8975_v22 = vunpack.i.h.bf16 %v14028_v46 }
 0xe18   : > { %6010 = vadd.xlane.f32.xlu0 %v6009_v9  ;;  %v8965_v9 = vunpack.i.h.bf16 %v14005_v38  ;;  %v15493_v38 = vld [vmem:[#allocation53_spill] sm:$0xff] }
 0xe19   : > { %v5613_v16 = vsel %vm1645_vm2, %v15493_v38, %v8970_v40  ;;  %v5612_v23 = vsel %vm1645_vm2, %v15494_v15, %v8969_v13 }
 0xe1b   : > { %6135 = vadd.xlane.f32.xlu1 %v6134_v63 }
 0xe1c   : > { %6016 = vadd.xlane.f32.xlu0 %v6015_v27 }
 0xe1d   : > { %v8993_v55 = vpop.permute.xlu1 %8992 }
 0xe1e   : > { %v8995_v54 = vunpack.i.h.bf16 %v8993_v55  ;;  %v8994_v43 = vunpack.i.l.bf16 %v8993_v55  ;;  %v5611_v55 = vsel %vm1645_vm2, %v15495_v62, %v8965_v9 }
 0xe1f   : > { %v8998_v44 = vpop.permute.xlu0 %8997  ;;  %6141 = vadd.xlane.f32.xlu1 %v6140_v35  ;;  %v5644_v60 = vsel %vm5622_vm3, %v5611_v55, %v8975_v22 }
 0xe20   : > { %v9000_v34 = vunpack.i.h.bf16 %v8998_v44  ;;  %v8999_v33 = vunpack.i.l.bf16 %v8998_v44  ;;  %6138 = vadd.xlane.f32.xlu0 %v6137_v50  ;;  %v5675_v61 = vsel %vm5655_vm4, %v5642_v53, %v8995_v54  ;;  %v5674_v41 = vsel %vm5655_vm4, %v5641_v17, %v8994_v43 }
 0xe21   : > { %v9008_v59 = vpop.permute.xlu1 %9007  ;;  %v5697_v27 = vpack.c.bf16 %v5675_v61, %v5674_v41  ;;  %v5645_v54 = vsel %vm5622_vm3, %v5612_v23, %v8979_v20  ;;  %v5646_v43 = vsel %vm5622_vm3, %v5613_v16, %v8980_v57  ;;  %v15498_v57 = vld [vmem:[#allocation51_spill] sm:$0xff]  ;;  %v15499_v20 = vld [vmem:[#allocation28_spill] sm:$0xff] }
 0xe22   : > { %v5672_v49 = vsel %vm5655_vm4, %v5639_v7, %v8999_v33  ;;  %v5673_v52 = vsel %vm5655_vm4, %v5640_v10, %v9000_v34  ;;  %v8989_v34 = vunpack.i.l.bf16 %v14043_v1  ;;  %v8985_v33 = vunpack.i.h.bf16 %v14051_v48 }
 0xe23   : > { %v5696_v21 = vpack.c.bf16 %v5673_v52, %v5672_v49  ;;  %v9003_v63 = vpop.permute.xlu0 %9002  ;;  %v8984_v7 = vunpack.i.l.bf16 %v14051_v48  ;;  %v9010_v41 = vunpack.i.h.bf16 %v9008_v59  ;;  %v9009_v40 = vunpack.i.l.bf16 %v9008_v59  ;;  %v15500_v59 = vld [vmem:[#allocation44_spill] sm:$0xff] }
 0xe24   : > { %6144 = vadd.xlane.f32.xlu0 %v6143_v56  ;;  %v9005_v49 = vunpack.i.h.bf16 %v9003_v63  ;;  %v9004_v52 = vunpack.i.l.bf16 %v9003_v63  ;;  %v15497_v56 = vld [vmem:[#allocation27_spill] sm:$0xff]  ;;  %v5616_v48 = vsel %vm1645_vm2, %v15498_v57, %v8989_v34 }
 0xe25   : > { %v9013_v42 = vpop.permute.xlu1 %9012  ;;  %8619 = vmatprep.mubr.msk.bf16.mxu1 %vm784_vm1, %v5696_v21  ;;  %v5617_v1 = vsel %vm1645_vm2, %v15497_v56, %v8990_v45  ;;  %v5614_v22 = vsel %vm1645_vm2, %v15500_v59, %v8984_v7 }
 0xe26   : > { %v9015_v3 = vunpack.i.h.bf16 %v9013_v42  ;;  %v9014_v47 = vunpack.i.l.bf16 %v9013_v42  ;;  %8620 = vmatmul.mubr.msk.bf16.gmra.mxu1 %vm784_vm1, %v5697_v27  ;;  %v5615_v27 = vsel %vm1645_vm2, %v15499_v20, %v8985_v33  ;;  %v5650_v5 = vsel %vm5622_vm3, %v5617_v1, %v9010_v41  ;;  %v15501_v33 = vld [vmem:[#allocation30_spill] sm:$0xff] }
 0xe27   : > { %v9018_v46 = vpop.permute.xlu0 %9017  ;;  %v5649_v42 = vsel %vm5622_vm3, %v5616_v48, %v9009_v40  ;;  %v5647_v38 = vsel %vm5622_vm3, %v5614_v22, %v9004_v52  ;;  %v5648_v16 = vsel %vm5622_vm3, %v5615_v27, %v9005_v49  ;;  %v15504_v40 = vld [vmem:[#allocation31_spill] sm:$0xff] }
 0xe28   : > { %v9020_v35 = vunpack.i.h.bf16 %v9018_v46  ;;  %v9019_v25 = vunpack.i.l.bf16 %v9018_v46  ;;  %v5679_v12 = vsel %vm5655_vm4, %v5646_v43, %v9015_v3  ;;  %v5678_v44 = vsel %vm5655_vm4, %v5645_v54, %v9014_v47 }
 0xe29   : > { %v9028_v50 = vpop.permute.xlu1 %9027  ;;  %v5699_v13 = vpack.c.bf16 %v5679_v12, %v5678_v44 }
 0xe2a   : > { %v5676_v17 = vsel %vm5655_vm4, %v5643_v28, %v9019_v25  ;;  %v5677_v53 = vsel %vm5655_vm4, %v5644_v60, %v9020_v35  ;;  %v9030_v55 = vunpack.i.h.bf16 %v9028_v50  ;;  %v9029_v46 = vunpack.i.l.bf16 %v9028_v50  ;;  %v15502_v50 = vld [vmem:[#allocation29_spill] sm:$0xff] }
 0xe2b   : > { %v5698_v10 = vpack.c.bf16 %v5677_v53, %v5676_v17  ;;  %v9023_v61 = vpop.permute.xlu0 %9022 }
 0xe2c   : > { %v9025_v54 = vunpack.i.h.bf16 %v9023_v61  ;;  %v9024_v43 = vunpack.i.l.bf16 %v9023_v61  ;;  %v5621_v7 = vsel %vm1645_vm2, %v15501_v33, %v9030_v55  ;;  %v15503_v61 = vld [vmem:[#allocation33_spill] sm:$0xff] }
 0xe2d   : > { %v9033_v9 = vpop.permute.xlu1 %9032  ;;  %8623 = vmatprep.mubr.msk.bf16.mxu1 %vm784_vm1, %v5698_v10  ;;  %v5620_v10 = vsel %vm1645_vm2, %v15502_v50, %v9029_v46 }
 0xe2e   : > { %v9035_v19 = vunpack.i.h.bf16 %v9033_v9  ;;  %v9034_v21 = vunpack.i.l.bf16 %v9033_v9  ;;  %8624 = vmatmul.mubr.msk.bf16.gmra.mxu1 %vm784_vm1, %v5699_v13  ;;  %v5619_v41 = vsel %vm1645_vm2, %v15503_v61, %v9025_v54  ;;  %v5618_v13 = vsel %vm1645_vm2, %v15504_v40, %v9024_v43 }
 0xe2f   : > { %v9038_v63 = vpop.permute.xlu0 %9037 }
 0xe30   : > { %v9040_v3 = vunpack.i.h.bf16 %v9038_v63  ;;  %v9039_v47 = vunpack.i.l.bf16 %v9038_v63  ;;  %v5683_v15 = vsel %vm5655_vm4, %v5650_v5, %v9035_v19  ;;  %v5682_v23 = vsel %vm5655_vm4, %v5649_v42, %v9034_v21 }
 0xe31   : > { %v9048_v62 = vpop.permute.xlu1 %9047  ;;  %v5701_v28 = vpack.c.bf16 %v5683_v15, %v5682_v23 }
 0xe32   : > { %v5680_v18 = vsel %vm5655_vm4, %v5647_v38, %v9039_v47  ;;  %v5681_v4 = vsel %vm5655_vm4, %v5648_v16, %v9040_v3  ;;  %v9050_v60 = vunpack.i.h.bf16 %v9048_v62  ;;  %v9049_v12 = vunpack.i.l.bf16 %v9048_v62 }
 0xe33   : > { %v5700_v35 = vpack.c.bf16 %v5681_v4, %v5680_v18  ;;  %v9043_v25 = vpop.permute.xlu0 %9042 }
 0xe34   : > { %v9045_v44 = vunpack.i.h.bf16 %v9043_v25  ;;  %v9044_v45 = vunpack.i.l.bf16 %v9043_v25  ;;  %v5654_v52 = vsel %vm5622_vm3, %v5621_v7, %v9050_v60  ;;  %v5653_v9 = vsel %vm5622_vm3, %v5620_v10, %v9049_v12 }
 0xe35   : > { %v9058_v17 = vpop.permute.xlu1 %9057  ;;  %8627 = vmatprep.mubr.msk.bf16.mxu1 %vm784_vm1, %v5700_v35 }
 0xe36   : > { %v9060_v53 = vunpack.i.h.bf16 %v9058_v17  ;;  %v9059_v34 = vunpack.i.l.bf16 %v9058_v17  ;;  %8628 = vmatmul.mubr.msk.bf16.gmra.mxu1 %vm784_vm1, %v5701_v28  ;;  %v5651_v56 = vsel %vm5622_vm3, %v5618_v13, %v9044_v45  ;;  %v5652_v1 = vsel %vm5622_vm3, %v5619_v41, %v9045_v44 }
 0xe37   : > { %v9053_v49 = vpop.permute.xlu0 %9052 }
 0xe38   : > { %v9055_v19 = vunpack.i.h.bf16 %v9053_v49  ;;  %v9054_v21 = vunpack.i.l.bf16 %v9053_v49  ;;  %v5687_v57 = vsel %vm5655_vm4, %v5654_v52, %v9060_v53  ;;  %v5686_v48 = vsel %vm5655_vm4, %v5653_v9, %v9059_v34 }
 0xe39   : > { %v5703_v22 = vpack.c.bf16 %v5687_v57, %v5686_v48 }
 0xe3a   : > { %v5684_v20 = vsel %vm5655_vm4, %v5651_v56, %v9054_v21  ;;  %v5685_v27 = vsel %vm5655_vm4, %v5652_v1, %v9055_v19 }
 0xe3b   : > { %v5702_v59 = vpack.c.bf16 %v5685_v27, %v5684_v20 }
 0xe3d   : > { %8631 = vmatprep.mubr.msk.bf16.mxu1 %vm784_vm1, %v5702_v59 }
 0xe3e   : > { %8632 = vmatmul.mubr.msk.bf16.gmra.mxu1 %vm784_vm1, %v5703_v22 }
 0xe6d   : > { %v5972_v63 = vpop.xlane.xlu0 %5971 }
 0xe6e   : > { %v6194_v42 = vmul.f32 0.03125, %v5972_v63 }
 0xe70   : > { %v5975_v5 = vpop.xlane.xlu1 %5974  ;;  %v6258_v38 = vmul.f32 %v6194_v42, %v6194_v42  ;;  %v6322_v1 = vsub.f32 %v13866_v37, %v6194_v42 }
 0xe71   : > { %v5978_v3 = vpop.xlane.xlu0 %5977  ;;  %v6195_v62 = vmul.f32 0.03125, %v5975_v5 }
 0xe72   : > { %v6196_v16 = vmul.f32 0.03125, %v5978_v3 }
 0xe73   : > { %v6259_v35 = vmul.f32 %v6195_v62, %v6195_v62 }
 0xe74   : > { %v6100_v47 = vpop.xlane.xlu1 %6099  ;;  %v6260_v4 = vmul.f32 %v6196_v16, %v6196_v16  ;;  %v6324_v42 = vsub.f32 %v13876_v11, %v6196_v16 }
 0xe75   : > { %v6226_v15 = vmul.f32 0.03125, %v6100_v47  ;;  %v5981_v23 = vpop.xlane.xlu0 %5980 }
 0xe76   : > { %v14150_v25 = vmul.f32 0.03125, %v5981_v23  ;;  %v14172_v23 = vld [vmem:[%s10093_s25] ss:$0 sm:$0xff] }
 0xe77   : > { %v6290_v55 = vsub.f32 %v6226_v15, %v6258_v38  ;;  %v6323_v15 = vsub.f32 %v13871_v30, %v6195_v62 }
 0xe78   : > { %v6106_v18 = vpop.xlane.xlu1 %6105  ;;  %v6261_v53 = vmul.f32 %v14150_v25, %v14150_v25  ;;  %v6325_v16 = vsub.f32 %v13888_v8, %v14150_v25 }
 0xe79   : > { %v6354_v46 = vadd.f32 1e-05, %v6290_v55  ;;  %v6228_v54 = vmul.f32 0.03125, %v6106_v18  ;;  %v6103_v43 = vpop.xlane.xlu0 %6102 }
 0xe7a   : > { %v6227_v28 = vmul.f32 0.03125, %v6103_v43 }
 0xe7b   : > { %9651 = vrsqrt.f32 %v6354_v46  ;;  %v6292_v60 = vsub.f32 %v6228_v54, %v6260_v4 }
 0xe7c   : > { %v6291_v12 = vsub.f32 %v6227_v28, %v6259_v35  ;;  %v5984_v44 = vpop.xlane.xlu1 %5983 }
 0xe7d   : > { %v6356_v45 = vadd.f32 1e-05, %v6292_v60  ;;  %v6109_v17 = vpop.xlane.xlu0 %6108  ;;  %v14154_v10 = vmul.f32 0.03125, %v5984_v44  ;;  %v14180_v44 = vld [vmem:[%s10099_s28] ss:$0 sm:$0xff] }
 0xe7e   : > { %v6355_v34 = vadd.f32 1e-05, %v6291_v12  ;;  %v6229_v33 = vmul.f32 0.03125, %v6109_v17 }
 0xe7f   : > { %9653 = vrsqrt.f32 %v6356_v45  ;;  %v6262_v13 = vmul.f32 %v14154_v10, %v14154_v10 }
 0xe80   : > { %9655 = vrsqrt.f32 %v6355_v34  ;;  %v6293_v7 = vsub.f32 %v6229_v33, %v6261_v53  ;;  %v5990_v50 = vpop.xlane.xlu1 %5989 }
 0xe81   : > { %v5987_v61 = vpop.xlane.xlu0 %5986  ;;  %v14158_v49 = vmul.f32 0.03125, %v5990_v50 }
 0xe82   : > { %v6357_v41 = vadd.f32 1e-05, %v6293_v7  ;;  %v14160_v19 = vmul.f32 0.03125, %v5987_v61 }
 0xe83   : > { %v6264_v48 = vmul.f32 %v14158_v49, %v14158_v49 }
 0xe84   : > { %9657 = vrsqrt.f32 %v6357_v41  ;;  %v6112_v40 = vpop.xlane.xlu1 %6111  ;;  %v6263_v63 = vmul.f32 %v14160_v19, %v14160_v19 }
 0xe85   : > { %v6230_v52 = vmul.f32 0.03125, %v6112_v40  ;;  %v5993_v9 = vpop.xlane.xlu0 %5992 }
 0xe86   : > { %v14165_v27 = vmul.f32 0.03125, %v5993_v9 }
 0xe87   : > { %v6294_v21 = vsub.f32 %v6230_v52, %v6262_v13 }
 0xe88   : > { %v9652_v56 = vpop.eup %9651  ;;  %v6118_v57 = vpop.xlane.xlu1 %6117  ;;  %v6265_v46 = vmul.f32 %v14165_v27, %v14165_v27 }
 0xe89   : > { %v6358_v20 = vadd.f32 1e-05, %v6294_v21  ;;  %v6232_v59 = vmul.f32 0.03125, %v6118_v57  ;;  %v6115_v22 = vpop.xlane.xlu0 %6114  ;;  %v6418_v47 = vmul.f32 %v9652_v56, %v6322_v1 }
 0xe8a   : > { %v6231_v5 = vmul.f32 0.03125, %v6115_v22 }
 0xe8b   : > { %9659 = vrsqrt.f32 %v6358_v20  ;;  %v6296_v3 = vsub.f32 %v6232_v59, %v6264_v48  ;;  %v6456_v62 = vmul.f32 %v14172_v23, %v6418_v47 }
 0xe8c   : > { %v9654_v38 = vpop.eup %9653  ;;  %v6295_v55 = vsub.f32 %v6231_v5, %v6263_v63  ;;  %v5996_v18 = vpop.xlane.xlu1 %5995  ;;  %v6326_v5 = vsub.f32 %v13904_v14, %v14154_v10 }
 0xe8d   : > { %v9656_v4 = vpop.eup %9655  ;;  %v6360_v54 = vadd.f32 1e-05, %v6296_v3  ;;  %v6121_v43 = vpop.xlane.xlu0 %6120  ;;  %v6420_v35 = vmul.f32 %v9654_v38, %v6324_v42  ;;  %v14183_v33 = vmul.f32 0.03125, %v5996_v18  ;;  %v6494_v13 = vadd.f32 %v14180_v44, %v6456_v62 }
 0xe8e   : > { %v6359_v28 = vadd.f32 1e-05, %v6295_v55  ;;  %v6233_v60 = vmul.f32 0.03125, %v6121_v43  ;;  %v6419_v12 = vmul.f32 %v9656_v4, %v6323_v15  ;;  %v6328_v62 = vsub.f32 %v13914_v39, %v14158_v49 }
 0xe8f   : > { %9661 = vrsqrt.f32 %v6360_v54  ;;  %v6458_v50 = vmul.f32 %v14172_v23, %v6420_v35  ;;  %v6266_v9 = vmul.f32 %v14183_v33, %v14183_v33  ;;  %v6327_v35 = vsub.f32 %v13922_v0, %v14160_v19 }
 0xe90   : > { %9663 = vrsqrt.f32 %v6359_v28  ;;  %v6297_v45 = vsub.f32 %v6233_v60, %v6265_v46  ;;  %v6002_v17 = vpop.xlane.xlu1 %6001  ;;  %v6457_v53 = vmul.f32 %v14172_v23, %v6419_v12  ;;  %v6329_v19 = vsub.f32 %v13932_v31, %v14165_v27 }
 0xe91   : > { %v9658_v34 = vpop.eup %9657  ;;  %v5999_v7 = vpop.xlane.xlu0 %5998  ;;  %v14191_v21 = vmul.f32 0.03125, %v6002_v17  ;;  %v6496_v48 = vadd.f32 %v14180_v44, %v6458_v50 }
 0xe92   : > { %v6421_v61 = vmul.f32 %v9658_v34, %v6325_v16  ;;  %v6361_v41 = vadd.f32 1e-05, %v6297_v45  ;;  %v6495_v40 = vadd.f32 %v14180_v44, %v6457_v53  ;;  %v14195_v59 = vmul.f32 0.03125, %v5999_v7 }
 0xe93   : > { %v6268_v38 = vmul.f32 %v14191_v21, %v14191_v21 }
 0xe94   : > { %v6459_v25 = vmul.f32 %v14172_v23, %v6421_v61  ;;  %9665 = vrsqrt.f32 %v6361_v41  ;;  %v6124_v52 = vpop.xlane.xlu1 %6123  ;;  %v6526_v57 = vpack.c.bf16 %v6495_v40, %v6494_v13  ;;  %v6267_v4 = vmul.f32 %v14195_v59, %v14195_v59 }
 0xe95   : > { %v6234_v56 = vmul.f32 0.03125, %v6124_v52  ;;  %v6005_v1 = vpop.xlane.xlu0 %6004 }
 0xe96   : > { %v6497_v20 = vadd.f32 %v14180_v44, %v6459_v25  ;;  %8639 = vmatprep.mubr.msk.bf16.mxu0 %vm784_vm1, %v6526_v57  ;;  %v14202_v42 = vmul.f32 0.03125, %v6005_v1 }
 0xe97   : > { %v6298_v22 = vsub.f32 %v6234_v56, %v6266_v9 }
 0xe98   : > { %v9660_v63 = vpop.eup %9659  ;;  %v6527_v3 = vpack.c.bf16 %v6497_v20, %v6496_v48  ;;  %v6130_v47 = vpop.xlane.xlu1 %6129  ;;  %v6269_v16 = vmul.f32 %v14202_v42, %v14202_v42 }
 0xe99   : > { %v6362_v15 = vadd.f32 1e-05, %v6298_v22  ;;  %v6236_v55 = vmul.f32 0.03125, %v6130_v47  ;;  %v6127_v18 = vpop.xlane.xlu0 %6126  ;;  %v6422_v54 = vmul.f32 %v9660_v63, %v6326_v5 }
 0xe9a   : > { %v6235_v46 = vmul.f32 0.03125, %v6127_v18  ;;  %8640 = vmatmul.mubr.msk.bf16.vlgmr.msra.gmra.mxu0 %vm784_vm1, %v6527_v3 }
 0xe9b   : > { %9667 = vrsqrt.f32 %v6362_v15  ;;  %v6300_v43 = vsub.f32 %v6236_v55, %v6268_v38  ;;  %v6460_v50 = vmul.f32 %v14172_v23, %v6422_v54  ;;  %v6330_v15 = vsub.f32 %v13948_v32, %v14183_v33 }
 0xe9c   : > { %v9662_v10 = vpop.eup %9661  ;;  %v6299_v28 = vsub.f32 %v6235_v46, %v6267_v4  ;;  %v6008_v60 = vpop.xlane.xlu1 %6007 }
 0xe9d   : > { %v9664_v12 = vpop.eup %9663  ;;  %v6364_v45 = vadd.f32 1e-05, %v6300_v43  ;;  %v6133_v17 = vpop.xlane.xlu0 %6132  ;;  %v6424_v61 = vmul.f32 %v9662_v10, %v6328_v62  ;;  %v14217_v25 = vmul.f32 0.03125, %v6008_v60  ;;  %v6498_v1 = vadd.f32 %v14180_v44, %v6460_v50 }
 0xe9e   : > { %v6363_v53 = vadd.f32 1e-05, %v6299_v28  ;;  %v6237_v34 = vmul.f32 0.03125, %v6133_v17  ;;  %v6423_v7 = vmul.f32 %v9664_v12, %v6327_v35 }
 0xe9f   : > { %9669 = vrsqrt.f32 %v6364_v45  ;;  %v6462_v48 = vmul.f32 %v14172_v23, %v6424_v61  ;;  %v6270_v63 = vmul.f32 %v14217_v25, %v14217_v25 }
 0xea0   : > { %9671 = vrsqrt.f32 %v6363_v53  ;;  %v6301_v41 = vsub.f32 %v6237_v34, %v6269_v16  ;;  %v6014_v40 = vpop.xlane.xlu1 %6013  ;;  %v6461_v49 = vmul.f32 %v14172_v23, %v6423_v7  ;;  %v6332_v53 = vsub.f32 %v13960_v36, %v14191_v21 }
 0xea1   : > { %v9666_v13 = vpop.eup %9665  ;;  %v6011_v52 = vpop.xlane.xlu0 %6010  ;;  %v14222_v20 = vmul.f32 0.03125, %v6014_v40  ;;  %v6500_v18 = vadd.f32 %v14180_v44, %v6462_v48  ;;  %v6331_v34 = vsub.f32 %v13970_v6, %v14195_v59 }
 0xea2   : > { %v6425_v9 = vmul.f32 %v9666_v13, %v6329_v19  ;;  %v6365_v56 = vadd.f32 1e-05, %v6301_v41  ;;  %v6499_v57 = vadd.f32 %v14180_v44, %v6461_v49  ;;  %v6207_v38 = vmul.f32 0.03125, %v6011_v52 }
 0xea3   : > { %v6272_v54 = vmul.f32 %v14222_v20, %v14222_v20 }
 0xea4   : > { %9673 = vrsqrt.f32 %v6365_v56  ;;  %v6136_v27 = vpop.xlane.xlu1 %6135  ;;  %v6528_v22 = vpack.c.bf16 %v6499_v57, %v6498_v1  ;;  %v6463_v47 = vmul.f32 %v14172_v23, %v6425_v9  ;;  %v6271_v16 = vmul.f32 %v6207_v38, %v6207_v38 }
 0xea5   : > { %v6238_v5 = vmul.f32 0.03125, %v6136_v27  ;;  %v6017_v3 = vpop.xlane.xlu0 %6016  ;;  %v6333_v56 = vsub.f32 %v13982_v24, %v14202_v42 }
 0xea6   : > { %8643 = vmatprep.mubr.msk.bf16.mxu0 %vm784_vm1, %v6528_v22  ;;  %v6501_v4 = vadd.f32 %v14180_v44, %v6463_v47  ;;  %v6209_v43 = vmul.f32 0.03125, %v6017_v3 }
 0xea7   : > { %v6302_v55 = vsub.f32 %v6238_v5, %v6270_v63 }
 0xea8   : > { %v9668_v46 = vpop.eup %9667  ;;  %v6142_v10 = vpop.xlane.xlu1 %6141  ;;  %v6529_v12 = vpack.c.bf16 %v6501_v4, %v6500_v18  ;;  %v6273_v61 = vmul.f32 %v6209_v43, %v6209_v43 }
 0xea9   : > { %v6366_v35 = vadd.f32 1e-05, %v6302_v55  ;;  %v6240_v28 = vmul.f32 0.03125, %v6142_v10  ;;  %v6139_v60 = vpop.xlane.xlu0 %6138  ;;  %v6426_v62 = vmul.f32 %v9668_v46, %v6330_v15  ;;  %v6334_v55 = vsub.f32 %v14002_v29, %v14217_v25 }
 0xeaa   : > { %v6239_v45 = vmul.f32 0.03125, %v6139_v60  ;;  %8644 = vmatmul.mubr.msk.bf16.gmra.mxu0 %vm784_vm1, %v6529_v12  ;;  %v6335_v10 = vsub.f32 %v14025_v51, %v6207_v38 }
 0xeab   : > { %9675 = vrsqrt.f32 %v6366_v35  ;;  %v6304_v33 = vsub.f32 %v6240_v28, %v6272_v54  ;;  %v6464_v40 = vmul.f32 %v14172_v23, %v6426_v62  ;;  %v6336_v54 = vsub.f32 %v14015_v26, %v14222_v20 }
 0xeac   : > { %v9670_v17 = vpop.eup %9669  ;;  %v6303_v7 = vsub.f32 %v6239_v45, %v6271_v16  ;;  %v6337_v62 = vsub.f32 %v14038_v58, %v6209_v43 }
 0xead   : > { %v9672_v50 = vpop.eup %9671  ;;  %v6368_v19 = vadd.f32 1e-05, %v6304_v33  ;;  %v6145_v41 = vpop.xlane.xlu0 %6144  ;;  %v6428_v49 = vmul.f32 %v9670_v17, %v6332_v53  ;;  %v6502_v57 = vadd.f32 %v14180_v44, %v6464_v40 }
 0xeae   : > { %v6367_v13 = vadd.f32 1e-05, %v6303_v7  ;;  %v6241_v52 = vmul.f32 0.03125, %v6145_v41  ;;  %v6427_v9 = vmul.f32 %v9672_v50, %v6331_v34  ;;  %v9907_v41 = vld [vmem:[%s14979_s14 + $0x90] sm:$0xff] }
 0xeaf   : > { %9677 = vrsqrt.f32 %v6368_v19  ;;  %v6466_v63 = vmul.f32 %v14172_v23, %v6428_v49  ;;  %v9067_v49 = vld [vmem:[%s10116_s22 + $0x38] sm:$0xff]  }
 0xeb0   : > { %9679 = vrsqrt.f32 %v6367_v13  ;;  %v6305_v21 = vsub.f32 %v6241_v52, %v6273_v61  ;;  %v6465_v1 = vmul.f32 %v14172_v23, %v6427_v9  ;;  %8671 = vmatprep.subr.bf16.mxu1 %v9067_v49 }
 0xeb1   : > { %v9674_v59 = vpop.eup %9673  ;;  %v6504_v42 = vadd.f32 %v14180_v44, %v6466_v63  ;;  %8672 = vmatpush3.bf16.msra.mxu1 %v9067_v49 }
 0xeb2   : > { %v6429_v48 = vmul.f32 %v9674_v59, %v6333_v56  ;;  %v6369_v27 = vadd.f32 1e-05, %v6305_v21  ;;  %v6503_v22 = vadd.f32 %v14180_v44, %v6465_v1  ;;  %v9909_v1 = vld [vmem:[%s14979_s14 + $0x98] sm:$0xff] }
 0xeb4   : > { %9681 = vrsqrt.f32 %v6369_v27  ;;  %v6530_v5 = vpack.c.bf16 %v6503_v22, %v6502_v57  ;;  %v6467_v3 = vmul.f32 %v14172_v23, %v6429_v48  ;;  %v9068_v48 = vld [vmem:[%s10116_s22 + $0x30] sm:$0xff]   ;;  %v9910_v22 = vld [vmem:[%s14979_s14 + $0x88] sm:$0xff] }
 0xeb5   : > { %8673 = vmatprep.subr.bf16.mxu1 %v9068_v48 }
 0xeb6   : > { %8647 = vmatprep.mubr.msk.bf16.mxu0 %vm784_vm1, %v6530_v5  ;;  %v6505_v47 = vadd.f32 %v14180_v44, %v6467_v3  ;;  %8674 = vmatpush3.bf16.msra.mxu1 %v9068_v48 }
 0xeb8   : > { %v9676_v15 = vpop.eup %9675  ;;  %v6531_v18 = vpack.c.bf16 %v6505_v47, %v6504_v42 }
 0xeb9   : > { %v6430_v4 = vmul.f32 %v9676_v15, %v6334_v55  ;;  %v14305_v55 = vld [vmem:[%s10087_s21] ss:$0 sm:$0xff] }
 0xeba   : > { %8648 = vmatmul.mubr.msk.bf16.gmra.mxu0 %vm784_vm1, %v6531_v18 }
 0xebb   : > { %v6468_v12 = vmul.f32 %v14172_v23, %v6430_v4 }
 0xebc   : > { %v9678_v46 = vpop.eup %9677 }
 0xebd   : > { %v9680_v35 = vpop.eup %9679  ;;  %v6432_v28 = vmul.f32 %v9678_v46, %v6336_v54  ;;  %v6506_v33 = vadd.f32 %v14180_v44, %v6468_v12  ;;  %v9912_v12 = vld [vmem:[%s14979_s14 + $0xb0] sm:$0xff] }
 0xebe   : > { %v6431_v60 = vmul.f32 %v9680_v35, %v6335_v10  ;;  %v9070_v35 = vld [vmem:[%s10116_s22 + $0x20] sm:$0xff]  }
 0xebf   : > { %v6470_v20 = vmul.f32 %v14172_v23, %v6432_v28 }
 0xec0   : > { %v6469_v16 = vmul.f32 %v14172_v23, %v6431_v60 }
 0xec1   : > { %v9682_v25 = vpop.eup %9681  ;;  %v6508_v34 = vadd.f32 %v14180_v44, %v6470_v20  ;;  %v9913_v20 = vld [vmem:[%s14979_s14 + $0xa0] sm:$0xff] }
 0xec2   : > { %v6433_v45 = vmul.f32 %v9682_v25, %v6337_v62  ;;  %v6507_v17 = vadd.f32 %v14180_v44, %v6469_v16 }
 0xec4   : > { %v6532_v53 = vpack.c.bf16 %v6507_v17, %v6506_v33  ;;  %v6471_v38 = vmul.f32 %v14172_v23, %v6433_v45  ;;  %v9071_v17 = vld [vmem:[%s10116_s22 + $0x18] sm:$0xff]  }
 0xec6   : > { %8651 = vmatprep.mubr.msk.bf16.mxu0 %vm784_vm1, %v6532_v53  ;;  %v6509_v43 = vadd.f32 %v14180_v44, %v6471_v38  ;;  %v9908_v44 = vld [vmem:[%s14979_s14 + $0x80] sm:$0xff]  ;;  %v9914_v38 = vld [vmem:[%s14979_s14 + $0xb8] sm:$0xff] }
 0xec8   : > { %v6533_v7 = vpack.c.bf16 %v6509_v43, %v6508_v34 }
 0xeca   : > { %8652 = vmatmul.mubr.msk.bf16.gmra.mxu0 %vm784_vm1, %v6533_v7 }
 0xee6   : > { %v8621_v50 = vpop.f32.mrf.mxu1 }
 0xee7   : > { %v5882_v61 = vadd.f32 %v8621_v50, %v13858_v2 }
 0xee8   : > { %v5873_v19 = vpop.f32.mrf.mxu1 }
 0xee9   : > { %v14271_v40 = vadd.f32 %v9907_v41, %v5882_v61  ;;  %v5874_v23 = vadd.f32 %v13858_v2, %v5873_v19  ;;  %v9072_v19 = vld [vmem:[%s10116_s22 + $0x10] sm:$0xff]   ;;  %v9915_v41 = vld [vmem:[%s14979_s14 + $0xa8] sm:$0xff] }
 0xeea   : > { %v8622_v13 = vpop.f32.mrf.mxu1 }
 0xeeb   : > { %15505 = vst [vmem:[#allocation64_spill] sm:$0xff] %v14271_v40  ;;  %v14278_v52 = vadd.f32 %v9908_v44, %v5874_v23  ;;  %v5885_v9 = vadd.f32 %v8622_v13, %v13858_v2  ;;  %v6024_v56 = vsel %vm784_vm1, %v14271_v40, 0.0  ;;  %v6084_v42 = vmul.f32 %v14271_v40, %v14271_v40 }
 0xeec   : > { %v5876_v21 = vpop.f32.mrf.mxu1  ;;  %6025 = vadd.xlane.f32.xlu1 %v6024_v56 }
 0xeed   : > { %v14286_v59 = vadd.f32 %v9909_v1, %v5885_v9  ;;  %v5877_v57 = vadd.f32 %v13858_v2, %v5876_v21  ;;  %v6018_v5 = vsel %vm784_vm1, %v14278_v52, 0.0  ;;  %v9069_v2 = vld [vmem:[%s10116_s22 + $0x28] sm:$0xff]   ;;  %v6082_v15 = vmul.f32 %v14278_v52, %v14278_v52 }
 0xeee   : > { %v8625_v27 = vpop.f32.mrf.mxu1  ;;  %v6152_v4 = vsel %vm784_vm1, %v6084_v42, 0.0  ;;  %8675 = vmatprep.subr.bf16.mxu1 %v9069_v2  ;;  %v9916_v42 = vld [vmem:[%s14979_s14 + $0xd0] sm:$0xff] }
 0xeef   : > { %v14293_v63 = vadd.f32 %v9910_v22, %v5877_v57  ;;  %v6027_v3 = vsel %vm784_vm1, %v14286_v59, 0.0  ;;  %v5898_v18 = vadd.f32 %v14305_v55, %v8625_v27  ;;  %v6085_v54 = vmul.f32 %v14286_v59, %v14286_v59  ;;  %8676 = vmatpush3.bf16.msra.mxu1 %v9069_v2  ;;  %v9073_v27 = vld [vmem:[%s10116_s22 + $0x8] sm:$0xff]  }
 0xef0   : > { %v5889_v47 = vpop.f32.mrf.mxu1  ;;  %6019 = vadd.xlane.f32.xlu1 %v6018_v5  ;;  %6028 = vadd.xlane.f32.xlu0 %v6027_v3  ;;  %v6146_v60 = vsel %vm784_vm1, %v6082_v15, 0.0 }
 0xef1   : > { %v6021_v46 = vsel %vm784_vm1, %v14293_v63, 0.0  ;;  %v5890_v28 = vadd.f32 %v14305_v55, %v5889_v47  ;;  %v14319_v62 = vadd.f32 %v9912_v12, %v5898_v18  ;;  %v6155_v25 = vsel %vm784_vm1, %v6085_v54, 0.0  ;;  %8677 = vmatprep.subr.bf16.mxu1 %v9070_v35  ;;  %v9917_v54 = vld [vmem:[%s14979_s14 + $0xc0] sm:$0xff] }
 0xef2   : > { %v8626_v10 = vpop.f32.mrf.mxu1  ;;  %v6083_v45 = vmul.f32 %v14293_v63, %v14293_v63 }
 0xef3   : > { %v5901_v16 = vadd.f32 %v14305_v55, %v8626_v10  ;;  %8678 = vmatpush3.bf16.msra.mxu1 %v9070_v35  ;;  %v14329_v53 = vadd.f32 %v9913_v20, %v5890_v28  ;;  %v6036_v7 = vsel %vm784_vm1, %v14319_v62, 0.0  ;;  %v6088_v44 = vmul.f32 %v14319_v62, %v14319_v62  ;;  %v9918_v35 = vld [vmem:[%s14979_s14 + $0xd8] sm:$0xff] }
 0xef4   : > { %6153 = vadd.xlane.f32.xlu1 %v6152_v4  ;;  %6022 = vadd.xlane.f32.xlu0 %v6021_v46  ;;  %v5892_v33 = vpop.f32.mrf.mxu1  ;;  %v6149_v50 = vsel %vm784_vm1, %v6083_v45, 0.0  ;;  %v9074_v4 = vld [vmem:[%s10116_s22] sm:$0xff]   ;;  %v9919_v45 = vld [vmem:[%s14979_s14 + $0xc8] sm:$0xff] }
 0xef5   : > { %v14334_v34 = vadd.f32 %v9914_v38, %v5901_v16  ;;  %v5893_v43 = vadd.f32 %v14305_v55, %v5892_v33  ;;  %8679 = vmatprep.subr.bf16.mxu1 %v9071_v17  ;;  %v6030_v49 = vsel %vm784_vm1, %v14329_v53, 0.0  ;;  %v6086_v56 = vmul.f32 %v14329_v53, %v14329_v53 }
 0xef6   : > { %v8629_v61 = vpop.f32.mrf.mxu1  ;;  %v6164_v1 = vsel %vm784_vm1, %v6088_v44, 0.0 }
 0xef7   : > { %8680 = vmatpush3.bf16.msra.mxu1 %v9071_v17  ;;  %v14344_v23 = vadd.f32 %v9915_v41, %v5893_v43  ;;  %v6039_v13 = vsel %vm784_vm1, %v14334_v34, 0.0  ;;  %v5914_v21 = vadd.f32 %v14305_v55, %v8629_v61  ;;  %v6089_v48 = vmul.f32 %v14334_v34, %v14334_v34 }
 0xef8   : > { %6147 = vadd.xlane.f32.xlu1 %v6146_v60  ;;  %6156 = vadd.xlane.f32.xlu0 %v6155_v25  ;;  %v5905_v9 = vpop.f32.mrf.mxu1  ;;  %v6158_v3 = vsel %vm784_vm1, %v6086_v56, 0.0 }
 0xef9   : > { %8681 = vmatprep.subr.bf16.mxu1 %v9072_v19  ;;  %v6033_v57 = vsel %vm784_vm1, %v14344_v23, 0.0  ;;  %v5906_v5 = vadd.f32 %v14305_v55, %v5905_v9  ;;  %v14366_v47 = vadd.f32 %v9916_v42, %v5914_v21  ;;  %v6167_v15 = vsel %vm784_vm1, %v6089_v48, 0.0  ;;  %v9920_v9 = vld [vmem:[%s14979_s14 + $0xf0] sm:$0xff] }
 0xefa   : > { %v8630_v22 = vpop.f32.mrf.mxu1  ;;  %v6087_v18 = vmul.f32 %v14344_v23, %v14344_v23 }
 0xefb   : > { %8682 = vmatpush3.bf16.msra.mxu1 %v9072_v19  ;;  %v5917_v2 = vadd.f32 %v14305_v55, %v8630_v22  ;;  %v14376_v10 = vadd.f32 %v9917_v54, %v5906_v5  ;;  %v6048_v12 = vsel %vm784_vm1, %v14366_v47, 0.0  ;;  %v6092_v38 = vmul.f32 %v14366_v47, %v14366_v47  ;;  %v9922_v5 = vld [vmem:[%s14979_s14 + $0xf8] sm:$0xff] }
 0xefc   : > { %6037 = vadd.xlane.f32.xlu1 %v6036_v7  ;;  %6150 = vadd.xlane.f32.xlu0 %v6149_v50  ;;  %v5908_v46 = vpop.f32.mrf.mxu1  ;;  %v6161_v16 = vsel %vm784_vm1, %v6087_v18, 0.0  ;;  %v9923_v18 = vld [vmem:[%s14979_s14 + $0xe8] sm:$0xff] }
 0xefd   : > { %8683 = vmatprep.subr.bf16.mxu1 %v9073_v27  ;;  %v14381_v28 = vadd.f32 %v9918_v35, %v5917_v2  ;;  %v5909_v60 = vadd.f32 %v14305_v55, %v5908_v46  ;;  %v6042_v17 = vsel %vm784_vm1, %v14376_v10, 0.0  ;;  %v6090_v7 = vmul.f32 %v14376_v10, %v14376_v10 }
 0xefe   : > { %v8633_v25 = vpop.f32.mrf.mxu1  ;;  %v6176_v61 = vsel %vm784_vm1, %v6092_v38, 0.0  ;;  %v14455_v38 = vld [vmem:[%s10110_s0] ss:$0 sm:$0xff] }
 0xeff   : > { %8684 = vmatpush3.bf16.msra.mxu1 %v9073_v27  ;;  %v14390_v33 = vadd.f32 %v9919_v45, %v5909_v60  ;;  %v6051_v20 = vsel %vm784_vm1, %v14381_v28, 0.0  ;;  %v5930_v50 = vadd.f32 %v14305_v55, %v8633_v25  ;;  %v6093_v41 = vmul.f32 %v14381_v28, %v14381_v28  ;;  %v9921_v27 = vld [vmem:[%s14979_s14 + $0xe0] sm:$0xff]  ;;  %15506 = vst [vmem:[#allocation62_spill] sm:$0xff] %v14455_v38 }
 0xf00   : > { %6031 = vadd.xlane.f32.xlu1 %v6030_v49  ;;  %6040 = vadd.xlane.f32.xlu0 %v6039_v13  ;;  %v5921_v43 = vpop.f32.mrf.mxu1  ;;  %v6170_v44 = vsel %vm784_vm1, %v6090_v7, 0.0 }
 0xf01   : > { %8685 = vmatprep.subr.bf16.mxu1 %v9074_v4  ;;  %v6045_v19 = vsel %vm784_vm1, %v14390_v33, 0.0  ;;  %v5922_v13 = vadd.f32 %v14305_v55, %v5921_v43  ;;  %v14411_v56 = vadd.f32 %v9920_v9, %v5930_v50 }
 0xf02   : > { %v8634_v49 = vpop.f32.mrf.mxu1 }
 0xf03   : > { %8686 = vmatpush3.bf16.msra.mxu1 %v9074_v4  ;;  %v5933_v21 = vadd.f32 %v14305_v55, %v8634_v49  ;;  %v14420_v22 = vadd.f32 %v9921_v27, %v5922_v13  ;;  %v6060_v2 = vsel %vm784_vm1, %v14411_v56, 0.0 }
 0xf04   : > { %6165 = vadd.xlane.f32.xlu1 %v6164_v1  ;;  %6034 = vadd.xlane.f32.xlu0 %v6033_v57  ;;  %v6179_v1 = vsel %vm784_vm1, %v6093_v41, 0.0  ;;  %v6091_v57 = vmul.f32 %v14390_v33, %v14390_v33  ;;  %v5924_v48 = vpop.f32.mrf.mxu1 }
 0xf05   : > { %v5925_v42 = vadd.f32 %v14305_v55, %v5924_v48  ;;  %v6054_v46 = vsel %vm784_vm1, %v14420_v22, 0.0  ;;  %v6094_v55 = vmul.f32 %v14420_v22, %v14420_v22 }
 0xf07   : > { %v14434_v4 = vadd.f32 %v9923_v18, %v5925_v42  ;;  %v6182_v35 = vsel %vm784_vm1, %v6094_v55, 0.0 }
 0xf08   : > { %6159 = vadd.xlane.f32.xlu1 %v6158_v3  ;;  %6168 = vadd.xlane.f32.xlu0 %v6167_v15  ;;  %v14425_v3 = vadd.f32 %v9922_v5, %v5933_v21  ;;  %v6173_v15 = vsel %vm784_vm1, %v6091_v57, 0.0 }
 0xf09   : > { %v6057_v60 = vsel %vm784_vm1, %v14434_v4, 0.0 }
 0xf0a   : > { %v6063_v54 = vsel %vm784_vm1, %v14425_v3, 0.0 }
 0xf0c   : > { %6049 = vadd.xlane.f32.xlu1 %v6048_v12  ;;  %6162 = vadd.xlane.f32.xlu0 %v6161_v16  ;;  %v6096_v12 = vmul.f32 %v14411_v56, %v14411_v56  ;;  %v6095_v16 = vmul.f32 %v14434_v4, %v14434_v4 }
 0xf0e   : > { %v6188_v25 = vsel %vm784_vm1, %v6096_v12, 0.0  ;;  %v6185_v45 = vsel %vm784_vm1, %v6095_v16, 0.0 }
 0xf10   : > { %6043 = vadd.xlane.f32.xlu1 %v6042_v17  ;;  %6052 = vadd.xlane.f32.xlu0 %v6051_v20  ;;  %v6097_v17 = vmul.f32 %v14425_v3, %v14425_v3 }
 0xf12   : > { %v6191_v20 = vsel %vm784_vm1, %v6097_v17, 0.0 }
 0xf14   : > { %6177 = vadd.xlane.f32.xlu1 %v6176_v61  ;;  %6046 = vadd.xlane.f32.xlu0 %v6045_v19 }
 0xf18   : > { %6171 = vadd.xlane.f32.xlu1 %v6170_v44  ;;  %6180 = vadd.xlane.f32.xlu0 %v6179_v1 }
 0xf1c   : > { %6061 = vadd.xlane.f32.xlu1 %v6060_v2  ;;  %6174 = vadd.xlane.f32.xlu0 %v6173_v15 }
 0xf20   : > { %6055 = vadd.xlane.f32.xlu1 %v6054_v46  ;;  %6064 = vadd.xlane.f32.xlu0 %v6063_v54 }
 0xf24   : > { %6183 = vadd.xlane.f32.xlu1 %v6182_v35  ;;  %6058 = vadd.xlane.f32.xlu0 %v6057_v60 }
 0xf28   : > { %6189 = vadd.xlane.f32.xlu1 %v6188_v25  ;;  %6186 = vadd.xlane.f32.xlu0 %v6185_v45 }
 0xf2c   : > { %6192 = vadd.xlane.f32.xlu0 %v6191_v20 }
 0xf5a   : > { %v8641_v43 = vpop.f32.mrf.mxu0 }
 0xf5b   : > { %v14458_v7 = vadd.f32 %v8641_v43, %v14455_v38 }
 0xf5c   : > { %v6647_v50 = vpop.f32.mrf.mxu0 }
 0xf5d   : > { %v7670_v61 = vmul.f32 -1.702, %v14458_v7  ;;  %v14462_v19 = vadd.f32 %v14455_v38, %v6647_v50 }
 0xf5e   : > { %v8642_v41 = vpop.f32.mrf.mxu0 }
 0xf5f   : > { %v6842_v49 = vmul.f32 1.442695, %v7670_v61  ;;  %v7668_v13 = vmul.f32 -1.702, %v14462_v19  ;;  %v14466_v44 = vadd.f32 %v8642_v41, %v14455_v38 }
 0xf60   : > { %v6650_v9 = vpop.f32.mrf.mxu0 }
 0xf61   : > { %9683 = vpow2.f32 %v6842_v49  ;;  %v6838_v21 = vmul.f32 1.442695, %v7668_v13  ;;  %v7671_v1 = vmul.f32 -1.702, %v14466_v44  ;;  %v14470_v57 = vadd.f32 %v14455_v38, %v6650_v9 }
 0xf63   : > { %9685 = vpow2.f32 %v6838_v21  ;;  %v6844_v48 = vmul.f32 1.442695, %v7671_v1  ;;  %v7669_v27 = vmul.f32 -1.702, %v14470_v57 }
 0xf65   : > { %9687 = vpow2.f32 %v6844_v48  ;;  %v6840_v5 = vmul.f32 1.442695, %v7669_v27 }
 0xf67   : > { %9689 = vpow2.f32 %v6840_v5 }
 0xf6a   : > { %v8645_v42 = vpop.f32.mrf.mxu0 }
 0xf6b   : > { %v14474_v2 = vadd.f32 %v8645_v42, %v14455_v38 }
 0xf6c   : > { %v6663_v15 = vpop.f32.mrf.mxu0 }
 0xf6d   : > { %v7674_v46 = vmul.f32 -1.702, %v14474_v2  ;;  %v14478_v54 = vadd.f32 %v14455_v38, %v6663_v15 }
 0xf6e   : > { %v9684_v18 = vpop.eup %9683  ;;  %v8646_v35 = vpop.f32.mrf.mxu0 }
 0xf6f   : > { %v6904_v55 = vadd.f32 1.0, %v9684_v18  ;;  %v6850_v12 = vmul.f32 1.442695, %v7674_v46  ;;  %v7672_v16 = vmul.f32 -1.702, %v14478_v54  ;;  %v14482_v25 = vadd.f32 %v8646_v35, %v14455_v38 }
 0xf70   : > { %v9686_v60 = vpop.eup %9685  ;;  %v6666_v17 = vpop.f32.mrf.mxu0 }
 0xf71   : > { %9691 = vrcp.f32 %v6904_v55  ;;  %v6902_v45 = vadd.f32 1.0, %v9686_v60  ;;  %v6846_v43 = vmul.f32 1.442695, %v7672_v16  ;;  %v7675_v50 = vmul.f32 -1.702, %v14482_v25 }
 0xf72   : > { %v9688_v20 = vpop.eup %9687  ;;  %9693 = vpow2.f32 %v6850_v12  ;;  %v14486_v61 = vadd.f32 %v14455_v38, %v6666_v17 }
 0xf73   : > { %9695 = vrcp.f32 %v6902_v45  ;;  %v6905_v41 = vadd.f32 1.0, %v9688_v20  ;;  %v6852_v13 = vmul.f32 1.442695, %v7675_v50 }
 0xf74   : > { %v9690_v49 = vpop.eup %9689  ;;  %9697 = vpow2.f32 %v6846_v43  ;;  %v7673_v9 = vmul.f32 -1.702, %v14486_v61 }
 0xf75   : > { %9699 = vrcp.f32 %v6905_v41  ;;  %v6903_v21 = vadd.f32 1.0, %v9690_v49  ;;  %v6026_v1 = vpop.xlane.xlu1 %6025 }
 0xf76   : > { %9701 = vpow2.f32 %v6852_v13  ;;  %v6848_v48 = vmul.f32 1.442695, %v7673_v9  ;;  %v14489_v42 = vmul.f32 0.03125, %v6026_v1 }
 0xf77   : > { %9703 = vrcp.f32 %v6903_v21 }
 0xf78   : > { %9705 = vpow2.f32 %v6848_v48  ;;  %v6276_v20 = vmul.f32 %v14489_v42, %v14489_v42 }
 0xf79   : > { %v6020_v27 = vpop.xlane.xlu1 %6019  ;;  %v6029_v5 = vpop.xlane.xlu0 %6028 }
 0xf7a   : > { %v8649_v15 = vpop.f32.mrf.mxu0  ;;  %v14491_v18 = vmul.f32 0.03125, %v6020_v27  ;;  %v14496_v55 = vmul.f32 0.03125, %v6029_v5 }
 0xf7b   : > { %v14494_v46 = vadd.f32 %v8649_v15, %v14455_v38 }
 0xf7c   : > { %v6679_v35 = vpop.f32.mrf.mxu0  ;;  %v6274_v49 = vmul.f32 %v14491_v18, %v14491_v18  ;;  %v6277_v27 = vmul.f32 %v14496_v55, %v14496_v55 }
 0xf7d   : > { %v7678_v60 = vmul.f32 -1.702, %v14494_v46  ;;  %v14500_v12 = vadd.f32 %v14455_v38, %v6679_v35  ;;  %v6154_v16 = vpop.xlane.xlu1 %6153  ;;  %v6023_v45 = vpop.xlane.xlu0 %6022 }
 0xf7e   : > { %v9692_v17 = vpop.eup %9691  ;;  %v6244_v43 = vmul.f32 0.03125, %v6154_v16  ;;  %v8650_v50 = vpop.f32.mrf.mxu0  ;;  %v14512_v15 = vmul.f32 0.03125, %v6023_v45 }
 0xf7f   : > { %v9694_v41 = vpop.eup %9693  ;;  %v6858_v13 = vmul.f32 1.442695, %v7678_v60  ;;  %v7676_v9 = vmul.f32 -1.702, %v14500_v12  ;;  %v14508_v21 = vadd.f32 %v8650_v50, %v14455_v38  ;;  %v7000_v51 = vmul.f32 %v9692_v17, %v14458_v7 }
 0xf80   : > { %v9696_v1 = vpop.eup %9695  ;;  %v6908_v48 = vadd.f32 1.0, %v9694_v41  ;;  %v6308_v5 = vsub.f32 %v6244_v43, %v6276_v20  ;;  %v6682_v35 = vpop.f32.mrf.mxu0 }
 0xf81   : > { %v9698_v16 = vpop.eup %9697  ;;  %9707 = vpow2.f32 %v6858_v13  ;;  %v6854_v58 = vmul.f32 1.442695, %v7676_v9  ;;  %v7679_v60 = vmul.f32 -1.702, %v14508_v21  ;;  %v6148_v29 = vpop.xlane.xlu1 %6147  ;;  %v14517_v24 = vadd.f32 %v14455_v38, %v6682_v35 }
 0xf82   : > { %v6157_v26 = vpop.xlane.xlu0 %6156  ;;  %v9700_v50 = vpop.eup %9699  ;;  %9709 = vrcp.f32 %v6908_v48  ;;  %v6906_v6 = vadd.f32 1.0, %v9698_v16  ;;  %v6372_v41 = vadd.f32 1e-05, %v6308_v5  ;;  %v6998_v45 = vmul.f32 %v9696_v1, %v14462_v19 }
 0xf83   : > { %v9702_v20 = vpop.eup %9701  ;;  %9711 = vpow2.f32 %v6854_v58  ;;  %v6860_v43 = vmul.f32 1.442695, %v7679_v60  ;;  %v6242_v32 = vmul.f32 0.03125, %v6148_v29  ;;  %v7677_v13 = vmul.f32 -1.702, %v14517_v24 }
 0xf84   : > { %v9704_v7 = vpop.eup %9703  ;;  %9713 = vrcp.f32 %v6906_v6  ;;  %v6909_v17 = vadd.f32 1.0, %v9702_v20  ;;  %v6245_v9 = vmul.f32 0.03125, %v6157_v26  ;;  %v7001_v48 = vmul.f32 %v9700_v50, %v14466_v44 }
 0xf85   : > { %v9706_v36 = vpop.eup %9705  ;;  %v6999_v5 = vmul.f32 %v9704_v7, %v14470_v57  ;;  %9715 = vrsqrt.f32 %v6372_v41  ;;  %v6306_v35 = vsub.f32 %v6242_v32, %v6274_v49  ;;  %v6038_v16 = vpop.xlane.xlu1 %6037  ;;  %v6856_v58 = vmul.f32 1.442695, %v7677_v13 }
 0xf86   : > { %v6151_v0 = vpop.xlane.xlu0 %6150  ;;  %9717 = vrcp.f32 %v6909_v17  ;;  %v6907_v19 = vadd.f32 1.0, %v9706_v36  ;;  %v6309_v1 = vsub.f32 %v6245_v9, %v6277_v27  ;;  %v6275_v6 = vmul.f32 %v14512_v15, %v14512_v15 }
 0xf87   : > { %9719 = vpow2.f32 %v6860_v43  ;;  %v6370_v29 = vadd.f32 1e-05, %v6306_v35  ;;  %v6243_v60 = vmul.f32 0.03125, %v6151_v0  ;;  %v7030_v20 = vpack.c.bf16 %v6999_v5, %v6998_v45 }
 0xf88   : > { %9721 = vrcp.f32 %v6907_v19  ;;  %v6373_v26 = vadd.f32 1e-05, %v6309_v1  ;;  %v7031_v44 = vpack.c.bf16 %v7001_v48, %v7000_v51  ;;  %v14525_v49 = vmul.f32 0.03125, %v6038_v16 }
 0xf89   : > { %9723 = vpow2.f32 %v6856_v58  ;;  %v6307_v57 = vsub.f32 %v6243_v60, %v6275_v6  ;;  %v6032_v50 = vpop.xlane.xlu1 %6031  ;;  %8687 = vmatprep.mubr.bf16.mxu1 %v7030_v20  ;;  %v6340_v0 = vsub.f32 %v14271_v40, %v14489_v42 }
 0xf8a   : > { %v6041_v32 = vpop.xlane.xlu0 %6040  ;;  %9725 = vrsqrt.f32 %v6370_v29  ;;  %v8653_v36 = vpop.f32.mrf.mxu0  ;;  %8688 = vmatmul.mubr.bf16.vlgmr.msra.gmra.mxu1 %v7031_v44  ;;  %v14534_v45 = vmul.f32 0.03125, %v6032_v50  ;;  %v6280_v16 = vmul.f32 %v14525_v49, %v14525_v49 }
 0xf8b   : > { %9727 = vrsqrt.f32 %v6373_v26  ;;  %v6371_v27 = vadd.f32 1e-05, %v6307_v57  ;;  %v14528_v41 = vadd.f32 %v8653_v36, %v14455_v38  ;;  %v14536_v43 = vmul.f32 0.03125, %v6041_v32 }
 0xf8c   : > { %v6695_v7 = vpop.f32.mrf.mxu0  ;;  %v6278_v50 = vmul.f32 %v14534_v45, %v14534_v45 }
 0xf8d   : > { %9729 = vrsqrt.f32 %v6371_v27  ;;  %v7682_v13 = vmul.f32 -1.702, %v14528_v41  ;;  %v14542_v9 = vadd.f32 %v14455_v38, %v6695_v7  ;;  %v6166_v48 = vpop.xlane.xlu1 %6165  ;;  %v6281_v32 = vmul.f32 %v14536_v43, %v14536_v43 }
 0xf8e   : > { %v6035_v5 = vpop.xlane.xlu0 %6034  ;;  %v9708_v42 = vpop.eup %9707  ;;  %v6248_v19 = vmul.f32 0.03125, %v6166_v48 }
 0xf8f   : > { %v14548_v58 = vmul.f32 0.03125, %v6035_v5  ;;  %v8654_v1 = vpop.f32.mrf.mxu0  ;;  %v9710_v6 = vpop.eup %9709  ;;  %v6912_v29 = vadd.f32 1.0, %v9708_v42  ;;  %v6866_v60 = vmul.f32 1.442695, %v7682_v13  ;;  %v7680_v26 = vmul.f32 -1.702, %v14542_v9 }
 0xf90   : > { %v14552_v20 = vadd.f32 %v8654_v1, %v14455_v38  ;;  %v9712_v44 = vpop.eup %9711  ;;  %v7004_v57 = vmul.f32 %v9710_v6, %v14474_v2  ;;  %v6312_v36 = vsub.f32 %v6248_v19, %v6280_v16 }
 0xf91   : > { %v6698_v27 = vpop.f32.mrf.mxu0  ;;  %v9714_v7 = vpop.eup %9713  ;;  %9731 = vrcp.f32 %v6912_v29  ;;  %v6910_v48 = vadd.f32 1.0, %v9712_v44  ;;  %v6862_v13 = vmul.f32 1.442695, %v7680_v26  ;;  %v6279_v2 = vmul.f32 %v14548_v58, %v14548_v58 }
 0xf92   : > { %v7683_v5 = vmul.f32 -1.702, %v14552_v20  ;;  %v6160_v42 = vpop.xlane.xlu1 %6159  ;;  %v6169_v1 = vpop.xlane.xlu0 %6168  ;;  %9733 = vpow2.f32 %v6866_v60  ;;  %v6376_v51 = vadd.f32 1e-05, %v6312_v36  ;;  %v14563_v6 = vadd.f32 %v14455_v38, %v6698_v27 }
 0xf93   : > { %v9716_v35 = vpop.eup %9715  ;;  %v7002_v16 = vmul.f32 %v9714_v7, %v14478_v54  ;;  %9735 = vrcp.f32 %v6910_v48  ;;  %v6246_v29 = vmul.f32 0.03125, %v6160_v42  ;;  %v6249_v60 = vmul.f32 0.03125, %v6169_v1 }
 0xf94   : > { %v9718_v17 = vpop.eup %9717  ;;  %v6868_v19 = vmul.f32 1.442695, %v7683_v5  ;;  %9737 = vpow2.f32 %v6862_v13  ;;  %v7681_v40 = vmul.f32 -1.702, %v14563_v6  ;;  %v6436_v31 = vmul.f32 %v9716_v35, %v6340_v0 }
 0xf95   : > { %v9720_v26 = vpop.eup %9719  ;;  %v7005_v44 = vmul.f32 %v9718_v17, %v14482_v25  ;;  %9739 = vrsqrt.f32 %v6376_v51  ;;  %v6310_v39 = vsub.f32 %v6246_v29, %v6278_v50  ;;  %v6313_v13 = vsub.f32 %v6249_v60, %v6281_v32 }
 0xf96   : > { %v9722_v36 = vpop.eup %9721  ;;  %v6913_v14 = vadd.f32 1.0, %v9720_v26  ;;  %v6050_v27 = vpop.xlane.xlu1 %6049  ;;  %9741 = vpow2.f32 %v6868_v19  ;;  %v6864_v7 = vmul.f32 1.442695, %v7681_v40  ;;  %v15507_v35 = vsub.f32 %v14286_v59, %v14496_v55  ;;  %v14581_v55 = vld [vmem:[%s10093_s25] ss:$0 sm:$0xff] }
 0xf97   : > { %v6163_v38 = vpop.xlane.xlu0 %6162  ;;  %v9724_v30 = vpop.eup %9723  ;;  %v7033_v8 = vpack.c.bf16 %v7005_v44, %v7004_v57  ;;  %v7003_v54 = vmul.f32 %v9722_v36, %v14486_v61  ;;  %v6374_v17 = vadd.f32 1e-05, %v6310_v39  ;;  %v14569_v42 = vmul.f32 0.03125, %v6050_v27 }
 0xf98   : > { %v9726_v48 = vpop.eup %9725  ;;  %9743 = vrcp.f32 %v6913_v14  ;;  %v6911_v25 = vadd.f32 1.0, %v9724_v30  ;;  %v6247_v0 = vmul.f32 0.03125, %v6163_v38  ;;  %v6377_v61 = vadd.f32 1e-05, %v6313_v13 }
 0xf99   : > { %v9728_v5 = vpop.eup %9727  ;;  %9745 = vpow2.f32 %v6864_v7  ;;  %v7032_v51 = vpack.c.bf16 %v7003_v54, %v7002_v16  ;;  %v15508_v30 = vsub.f32 %v14278_v52, %v14491_v18  ;;  %v15509_v38 = vsub.f32 %v14293_v63, %v14512_v15 }
 0xf9a   : > { %9747 = vrcp.f32 %v6911_v25  ;;  %v6437_v57 = vmul.f32 %v9728_v5, %v15507_v35  ;;  %v6044_v50 = vpop.xlane.xlu1 %6043  ;;  %v9730_v39 = vpop.eup %9729  ;;  %v6311_v32 = vsub.f32 %v6247_v0, %v6279_v2  ;;  %v6284_v29 = vmul.f32 %v14569_v42, %v14569_v42 }
 0xf9b   : > { %v6053_v40 = vpop.xlane.xlu0 %6052  ;;  %v6434_v14 = vmul.f32 %v9726_v48, %v15508_v30  ;;  %9749 = vrsqrt.f32 %v6374_v17  ;;  %8691 = vmatprep.mubr.bf16.mxu1 %v7032_v51  ;;  %v6435_v1 = vmul.f32 %v9730_v39, %v15509_v38  ;;  %v6474_v44 = vmul.f32 %v14581_v55, %v6436_v31  ;;  %v14598_v31 = vld [vmem:[%s10099_s28] ss:$0 sm:$0xff] }
 0xf9c   : > { %9751 = vrsqrt.f32 %v6377_v61  ;;  %8692 = vmatmul.mubr.bf16.gmra.mxu1 %v7033_v8  ;;  %v6375_v16 = vadd.f32 1e-05, %v6311_v32  ;;  %v6475_v19 = vmul.f32 %v14581_v55, %v6437_v57  ;;  %v14588_v60 = vmul.f32 0.03125, %v6044_v50 }
 0xf9d   : > { %v6472_v2 = vmul.f32 %v14581_v55, %v6434_v14  ;;  %v6473_v36 = vmul.f32 %v14581_v55, %v6435_v1  ;;  %v6344_v54 = vsub.f32 %v14319_v62, %v14525_v49  ;;  %v14593_v7 = vmul.f32 0.03125, %v6053_v40 }
 0xf9e   : > { %v6178_v18 = vpop.xlane.xlu1 %6177  ;;  %v9732_v8 = vpop.eup %9731  ;;  %9753 = vrsqrt.f32 %v6375_v16  ;;  %v6342_v25 = vsub.f32 %v14329_v53, %v14534_v45  ;;  %v6513_v5 = vadd.f32 %v14598_v31, %v6475_v19  ;;  %v6345_v51 = vsub.f32 %v14334_v34, %v14536_v43 }
 0xf9f   : > { %v6047_v26 = vpop.xlane.xlu0 %6046  ;;  %v6252_v15 = vmul.f32 0.03125, %v6178_v18  ;;  %v9734_v27 = vpop.eup %9733  ;;  %v6510_v61 = vadd.f32 %v14598_v31, %v6472_v2  ;;  %v6511_v50 = vadd.f32 %v14598_v31, %v6473_v36  ;;  %v6282_v30 = vmul.f32 %v14588_v60, %v14588_v60 }
 0xfa0   : > { %v9736_v48 = vpop.eup %9735  ;;  %v6916_v17 = vadd.f32 1.0, %v9734_v27  ;;  %v14603_v35 = vmul.f32 0.03125, %v6047_v26  ;;  %v6512_v39 = vadd.f32 %v14598_v31, %v6474_v44  ;;  %v6285_v43 = vmul.f32 %v14593_v7, %v14593_v7 }
 0xfa1   : > { %v6316_v13 = vsub.f32 %v6252_v15, %v6284_v29  ;;  %v9738_v0 = vpop.eup %9737  ;;  %v6534_v16 = vpack.c.bf16 %v6511_v50, %v6510_v61  ;;  %v7006_v15 = vmul.f32 %v9736_v48, %v14500_v12 }
 0xfa2   : > { %v6172_v57 = vpop.xlane.xlu1 %6171  ;;  %v9740_v40 = vpop.eup %9739  ;;  %v6914_v45 = vadd.f32 1.0, %v9738_v0  ;;  %9755 = vrcp.f32 %v6916_v17  ;;  %v6535_v26 = vpack.c.bf16 %v6513_v5, %v6512_v39  ;;  %v6283_v36 = vmul.f32 %v14603_v35, %v14603_v35 }
 0xfa3   : > { %v6181_v49 = vpop.xlane.xlu0 %6180  ;;  %v6250_v14 = vmul.f32 0.03125, %v6172_v57  ;;  %v9742_v32 = vpop.eup %9741  ;;  %v6380_v38 = vadd.f32 1e-05, %v6316_v13  ;;  %8655 = vmatprep.mubr.msk.bf16.mxu0 %vm784_vm1, %v6534_v16 }
 0xfa4   : > { %v6253_v1 = vmul.f32 0.03125, %v6181_v49  ;;  %v6917_v29 = vadd.f32 1.0, %v9742_v32  ;;  %9757 = vrcp.f32 %v6914_v45  ;;  %8656 = vmatmul.mubr.msk.bf16.gmra.mxu0 %vm784_vm1, %v6535_v26  ;;  %v7008_v45 = vmul.f32 %v9732_v8, %v14494_v46 }
 0xfa5   : > { %v9744_v19 = vpop.eup %9743  ;;  %v6314_v18 = vsub.f32 %v6250_v14, %v6282_v30  ;;  %v6440_v30 = vmul.f32 %v9740_v40, %v6344_v54 }
 0xfa6   : > { %v9746_v2 = vpop.eup %9745  ;;  %v6317_v44 = vsub.f32 %v6253_v1, %v6285_v43  ;;  %v6062_v27 = vpop.xlane.xlu1 %6061  ;;  %v7009_v57 = vmul.f32 %v9744_v19, %v14508_v21  ;;  %9759 = vrcp.f32 %v6917_v29 }
 0xfa7   : > { %v6175_v0 = vpop.xlane.xlu0 %6174  ;;  %v9748_v13 = vpop.eup %9747  ;;  %v6915_v17 = vadd.f32 1.0, %v9746_v2  ;;  %v6378_v49 = vadd.f32 1e-05, %v6314_v18  ;;  %9761 = vrsqrt.f32 %v6380_v38  ;;  %v6343_v38 = vsub.f32 %v14344_v23, %v14548_v58 }
 0xfa8   : > { %v9750_v5 = vpop.eup %9749  ;;  %v7007_v12 = vmul.f32 %v9748_v13, %v14517_v24  ;;  %v6381_v48 = vadd.f32 1e-05, %v6317_v44  ;;  %v6251_v61 = vmul.f32 0.03125, %v6175_v0  ;;  %v7035_v16 = vpack.c.bf16 %v7009_v57, %v7008_v45 }
 0xfa9   : > { %v9752_v50 = vpop.eup %9751  ;;  %9763 = vrcp.f32 %v6915_v17  ;;  %v6438_v14 = vmul.f32 %v9750_v5, %v6342_v25  ;;  %v6478_v46 = vmul.f32 %v14581_v55, %v6440_v30  ;;  %v14626_v54 = vmul.f32 0.03125, %v6062_v27 }
 0xfaa   : > { %v6441_v39 = vmul.f32 %v9752_v50, %v6345_v51  ;;  %9765 = vrsqrt.f32 %v6378_v49  ;;  %v6315_v21 = vsub.f32 %v6251_v61, %v6283_v36  ;;  %v6056_v32 = vpop.xlane.xlu1 %6055  ;;  %v7034_v43 = vpack.c.bf16 %v7007_v12, %v7006_v15 }
 0xfab   : > { %v6065_v1 = vpop.xlane.xlu0 %6064  ;;  %9767 = vrsqrt.f32 %v6381_v48  ;;  %v14620_v19 = vmul.f32 0.03125, %v6056_v32  ;;  %v9754_v24 = vpop.eup %9753  ;;  %v6476_v18 = vmul.f32 %v14581_v55, %v6438_v14  ;;  %v6288_v27 = vmul.f32 %v14626_v54, %v14626_v54 }
 0xfac   : > { %v6379_v29 = vadd.f32 1e-05, %v6315_v21  ;;  %8695 = vmatprep.mubr.bf16.mxu1 %v7034_v43  ;;  %v6479_v8 = vmul.f32 %v14581_v55, %v6441_v39  ;;  %v6439_v40 = vmul.f32 %v9754_v24, %v6343_v38  ;;  %v6516_v5 = vadd.f32 %v14598_v31, %v6478_v46 }
 0xfad   : > { %8696 = vmatmul.mubr.bf16.gmra.mxu1 %v7035_v16  ;;  %v6286_v26 = vmul.f32 %v14620_v19, %v14620_v19  ;;  %v6514_v17 = vadd.f32 %v14598_v31, %v6476_v18  ;;  %v14642_v14 = vmul.f32 0.03125, %v6065_v1  ;;  %v6346_v46 = vsub.f32 %v14376_v10, %v14588_v60 }
 0xfae   : > { %9769 = vrsqrt.f32 %v6379_v29  ;;  %v6184_v25 = vpop.xlane.xlu1 %6183  ;;  %v6477_v15 = vmul.f32 %v14581_v55, %v6439_v40  ;;  %v6517_v44 = vadd.f32 %v14598_v31, %v6479_v8  ;;  %v6348_v29 = vsub.f32 %v14366_v47, %v14569_v42 }
 0xfaf   : > { %v6059_v51 = vpop.xlane.xlu0 %6058  ;;  %v6254_v2 = vmul.f32 0.03125, %v6184_v25  ;;  %v9756_v0 = vpop.eup %9755  ;;  %v6349_v8 = vsub.f32 %v14381_v28, %v14593_v7  ;;  %v6289_v60 = vmul.f32 %v14642_v14, %v14642_v14 }
 0xfb0   : > { %v14631_v58 = vmul.f32 0.03125, %v6059_v51  ;;  %v6515_v49 = vadd.f32 %v14598_v31, %v6477_v15  ;;  %v6537_v16 = vpack.c.bf16 %v6517_v44, %v6516_v5  ;;  %v7012_v42 = vmul.f32 %v9756_v0, %v14528_v41 }
 0xfb1   : > { %v6318_v36 = vsub.f32 %v6254_v2, %v6286_v26  ;;  %v9758_v12 = vpop.eup %9757 }
 0xfb2   : > { %v6190_v13 = vpop.xlane.xlu1 %6189  ;;  %v6287_v61 = vmul.f32 %v14631_v58, %v14631_v58  ;;  %v6536_v39 = vpack.c.bf16 %v6515_v49, %v6514_v17  ;;  %v7010_v51 = vmul.f32 %v9758_v12, %v14542_v9  ;;  %v6347_v9 = vsub.f32 %v14390_v33, %v14603_v35 }
 0xfb3   : > { %v6187_v57 = vpop.xlane.xlu0 %6186  ;;  %v6382_v48 = vadd.f32 1e-05, %v6318_v36  ;;  %v6256_v50 = vmul.f32 0.03125, %v6190_v13  ;;  %v9760_v30 = vpop.eup %9759 }
 0xfb4   : > { %v6255_v45 = vmul.f32 0.03125, %v6187_v57  ;;  %v9762_v21 = vpop.eup %9761  ;;  %v7013_v38 = vmul.f32 %v9760_v30, %v14552_v20  ;;  %8659 = vmatprep.mubr.msk.bf16.mxu0 %vm784_vm1, %v6536_v39 }
 0xfb5   : > { %9771 = vrsqrt.f32 %v6382_v48  ;;  %v6320_v32 = vsub.f32 %v6256_v50, %v6288_v27  ;;  %8660 = vmatmul.mubr.msk.bf16.gmra.mxu0 %vm784_vm1, %v6537_v16  ;;  %v6444_v15 = vmul.f32 %v9762_v21, %v6348_v29  ;;  %v6351_v16 = vsub.f32 %v14434_v4, %v14631_v58 }
 0xfb6   : > { %v6319_v43 = vsub.f32 %v6255_v45, %v6287_v61  ;;  %v9764_v24 = vpop.eup %9763  ;;  %v7037_v27 = vpack.c.bf16 %v7013_v38, %v7012_v42  ;;  %v6350_v45 = vsub.f32 %v14420_v22, %v14620_v19  ;;  %v14693_v42 = vld [vmem:[%s672_s26] ss:$0 sm:$0xff] }
 0xfb7   : > { %v6193_v1 = vpop.xlane.xlu0 %6192  ;;  %v9766_v25 = vpop.eup %9765  ;;  %v7011_v40 = vmul.f32 %v9764_v24, %v14563_v6  ;;  %v6384_v18 = vadd.f32 1e-05, %v6320_v32  ;;  %v6482_v49 = vmul.f32 %v14581_v55, %v6444_v15 }
 0xfb8   : > { %v6383_v26 = vadd.f32 1e-05, %v6319_v43  ;;  %v9768_v20 = vpop.eup %9767  ;;  %v6257_v2 = vmul.f32 0.03125, %v6193_v1  ;;  %v6442_v7 = vmul.f32 %v9766_v25, %v6346_v46  ;;  %v6352_v43 = vsub.f32 %v14411_v56, %v14626_v54 }
 0xfb9   : > { %v6445_v36 = vmul.f32 %v9768_v20, %v6349_v8  ;;  %9773 = vrsqrt.f32 %v6384_v18  ;;  %v7036_v44 = vpack.c.bf16 %v7011_v40, %v7010_v51  ;;  %v6520_v61 = vadd.f32 %v14598_v31, %v6482_v49 }
 0xfba   : > { %9775 = vrsqrt.f32 %v6383_v26  ;;  %v6321_v6 = vsub.f32 %v6257_v2, %v6289_v60  ;;  %v6480_v17 = vmul.f32 %v14581_v55, %v6442_v7  ;;  %v6353_v46 = vsub.f32 %v14425_v3, %v14642_v14 }
 0xfbb   : > { %v9770_v13 = vpop.eup %9769  ;;  %8699 = vmatprep.mubr.bf16.mxu1 %v7036_v44  ;;  %v6483_v57 = vmul.f32 %v14581_v55, %v6445_v36 }
 0xfbc   : > { %v6385_v41 = vadd.f32 1e-05, %v6321_v6  ;;  %8700 = vmatmul.mubr.bf16.gmra.mxu1 %v7037_v27  ;;  %v6443_v0 = vmul.f32 %v9770_v13, %v6347_v9  ;;  %v6518_v35 = vadd.f32 %v14598_v31, %v6480_v17  ;;  %v15510_v9 = vld [vmem:[#allocation12_spill] sm:$0xff]  ;;  %v15512_v17 = vld [vmem:[#allocation5_spill] sm:$0xff] }
 0xfbd   : > { %v6521_v12 = vadd.f32 %v14598_v31, %v6483_v57  ;;  %v15511_v13 = vld [vmem:[#allocation8_spill] sm:$0xff] }
 0xfbe   : > { %9777 = vrsqrt.f32 %v6385_v41  ;;  %v6481_v5 = vmul.f32 %v14581_v55, %v6443_v0 }
 0xfbf   : > { %v6539_v39 = vpack.c.bf16 %v6521_v12, %v6520_v61 }
 0xfc0   : > { %v6519_v48 = vadd.f32 %v14598_v31, %v6481_v5 }
 0xfc2   : > { %v9772_v50 = vpop.eup %9771  ;;  %v6538_v30 = vpack.c.bf16 %v6519_v48, %v6518_v35  ;;  %v15513_v35 = vld [vmem:[#allocation10_spill] sm:$0xff] }
 0xfc3   : > { %v6446_v21 = vmul.f32 %v9772_v50, %v6350_v45  ;;  %v15514_v45 = vld [vmem:[#allocation61_spill] sm:$0xff] }
 0xfc4   : > { %8663 = vmatprep.mubr.msk.bf16.mxu0 %vm784_vm1, %v6538_v30 }
 0xfc5   : > { %8664 = vmatmul.mubr.msk.bf16.gmra.mxu0 %vm784_vm1, %v6539_v39  ;;  %v6484_v19 = vmul.f32 %v14581_v55, %v6446_v21  ;;  %v15515_v21 = vld [vmem:[#allocation59_spill] sm:$0xff] }
 0xfc6   : > { %v9774_v32 = vpop.eup %9773 }
 0xfc7   : > { %v9776_v24 = vpop.eup %9775  ;;  %v6448_v38 = vmul.f32 %v9774_v32, %v6352_v43  ;;  %v6522_v51 = vadd.f32 %v14598_v31, %v6484_v19 }
 0xfc8   : > { %v6447_v29 = vmul.f32 %v9776_v24, %v6351_v16  ;;  %v15516_v16 = vld [vmem:[#allocation62_spill] sm:$0xff] }
 0xfc9   : > { %v6486_v40 = vmul.f32 %v14581_v55, %v6448_v38 }
 0xfca   : > { %v6485_v8 = vmul.f32 %v14581_v55, %v6447_v29 }
 0xfcb   : > { %v9778_v1 = vpop.eup %9777  ;;  %v6524_v26 = vadd.f32 %v14598_v31, %v6486_v40 }
 0xfcc   : > { %v6449_v25 = vmul.f32 %v9778_v1, %v6353_v46  ;;  %v6523_v54 = vadd.f32 %v14598_v31, %v6485_v8 }
 0xfce   : > { %v6540_v58 = vpack.c.bf16 %v6523_v54, %v6522_v51  ;;  %v6487_v18 = vmul.f32 %v14581_v55, %v6449_v25 }
 0xfd0   : > { %8667 = vmatprep.mubr.msk.bf16.mxu0 %vm784_vm1, %v6540_v58  ;;  %v6525_v20 = vadd.f32 %v14598_v31, %v6487_v18 }
 0xfd2   : > { %v6541_v14 = vpack.c.bf16 %v6525_v20, %v6524_v26 }
 0xfd4   : > { %8668 = vmatmul.mubr.msk.bf16.gmra.mxu0 %vm784_vm1, %v6541_v14 }
0x104a   : > { %v8689_v60 = vpop.f32.mrf.mxu1 }
0x104b   : > { %v7160_v2 = vadd.f32 %v8689_v60, %v14693_v42 }
0x104c   : > { %v7151_v7 = vpop.f32.mrf.mxu1 }
0x104d   : > { %v7280_v55 = vadd.f32 %v7160_v2, %v13876_v11  ;;  %v7152_v15 = vadd.f32 %v14693_v42, %v7151_v7  ;;  %v15517_v7 = vld [vmem:[#allocation58_spill] sm:$0xff] }
0x104e   : > { %v8690_v36 = vpop.f32.mrf.mxu1 }
0x104f   : > { %7312 = vst.msk [vmem:[%s14979_s14 + $0x10] sm:$0xff] %vm784_vm1, %v7280_v55  ;;  %v7278_v31 = vadd.f32 %v7152_v15, %v13866_v37  ;;  %v7163_v44 = vadd.f32 %v8690_v36, %v14693_v42 }
0x1050   : > { %v7154_v27 = vpop.f32.mrf.mxu1 }
0x1051   : > { %7310 = vst.msk [vmem:[%s14979_s14] sm:$0xff] %vm784_vm1, %v7278_v31  ;;  %v7281_v11 = vadd.f32 %v7163_v44, %v15510_v9  ;;  %v7155_v6 = vadd.f32 %v14693_v42, %v7154_v27  ;;  %v15518_v31 = vld [vmem:[#allocation60_spill] sm:$0xff] }
0x1053   : > { %7313 = vst.msk [vmem:[%s14979_s14 + $0x18] sm:$0xff] %vm784_vm1, %v7281_v11  ;;  %v7279_v57 = vadd.f32 %v7155_v6, %v15511_v13  ;;  %v15519_v11 = vld [vmem:[#allocation83_spill] sm:$0xff] }
0x1055   : > { %7311 = vst.msk [vmem:[%s14979_s14 + $0x8] sm:$0xff] %vm784_vm1, %v7279_v57  ;;  %v15520_v57 = vld [vmem:[#allocation85_spill] sm:$0xff] }
0x105c   : > { %v8693_v37 = vpop.f32.mrf.mxu1 }
0x105d   : > { %v7176_v41 = vadd.f32 %v8693_v37, %v14693_v42 }
0x105e   : > { %v7167_v0 = vpop.f32.mrf.mxu1 }
0x105f   : > { %v7284_v49 = vadd.f32 %v7176_v41, %v15512_v17  ;;  %v7168_v5 = vadd.f32 %v14693_v42, %v7167_v0 }
0x1060   : > { %v8694_v12 = vpop.f32.mrf.mxu1 }
0x1061   : > { %7316 = vst.msk [vmem:[%s14979_s14 + $0x30] sm:$0xff] %vm784_vm1, %v7284_v49  ;;  %v7282_v48 = vadd.f32 %v7168_v5, %v15513_v35  ;;  %v7179_v61 = vadd.f32 %v8694_v12, %v14693_v42 }
0x1062   : > { %v7170_v50 = vpop.f32.mrf.mxu1 }
0x1063   : > { %7314 = vst.msk [vmem:[%s14979_s14 + $0x20] sm:$0xff] %vm784_vm1, %v7282_v48  ;;  %v7285_v30 = vadd.f32 %v7179_v61, %v15514_v45  ;;  %v7171_v39 = vadd.f32 %v14693_v42, %v7170_v50 }
0x1064   : > { %v8657_v43 = vpop.f32.mrf.mxu0 }
0x1065   : > { %7317 = vst.msk [vmem:[%s14979_s14 + $0x38] sm:$0xff] %vm784_vm1, %v7285_v30  ;;  %v7283_v32 = vadd.f32 %v7171_v39, %v15515_v21  ;;  %v14744_v24 = vadd.f32 %v8657_v43, %v15516_v16 }
0x1066   : > { %v6711_v38 = vpop.f32.mrf.mxu0 }
0x1067   : > { %7315 = vst.msk [vmem:[%s14979_s14 + $0x28] sm:$0xff] %vm784_vm1, %v7283_v32  ;;  %v7686_v29 = vmul.f32 -1.702, %v14744_v24  ;;  %v14748_v19 = vadd.f32 %v15516_v16, %v6711_v38 }
0x1068   : > { %v8658_v46 = vpop.f32.mrf.mxu0 }
0x1069   : > { %v6874_v8 = vmul.f32 1.442695, %v7686_v29  ;;  %v7684_v1 = vmul.f32 -1.702, %v14748_v19  ;;  %v14752_v25 = vadd.f32 %v8658_v46, %v15516_v16 }
0x106a   : > { %v6714_v51 = vpop.f32.mrf.mxu0 }
0x106b   : > { %9779 = vpow2.f32 %v6874_v8  ;;  %v6870_v40 = vmul.f32 1.442695, %v7684_v1  ;;  %v7687_v58 = vmul.f32 -1.702, %v14752_v25  ;;  %v14756_v18 = vadd.f32 %v15516_v16, %v6714_v51  ;;  %v15521_v51 = vld [vmem:[#allocation84_spill] sm:$0xff] }
0x106d   : > { %v8697_v54 = vpop.f32.mrf.mxu1  ;;  %9781 = vpow2.f32 %v6870_v40  ;;  %v6876_v14 = vmul.f32 1.442695, %v7687_v58  ;;  %v7685_v60 = vmul.f32 -1.702, %v14756_v18 }
0x106e   : > { %v7192_v26 = vadd.f32 %v8697_v54, %v14693_v42 }
0x106f   : > { %v7183_v20 = vpop.f32.mrf.mxu1  ;;  %9783 = vpow2.f32 %v6876_v14  ;;  %v6872_v36 = vmul.f32 1.442695, %v7685_v60 }
0x1070   : > { %v7184_v2 = vadd.f32 %v14693_v42, %v7183_v20  ;;  %v7288_v55 = vadd.f32 %v7192_v26, %v15517_v7 }
0x1071   : > { %v8698_v15 = vpop.f32.mrf.mxu1  ;;  %9785 = vpow2.f32 %v6872_v36 }
0x1072   : > { %v7286_v44 = vadd.f32 %v7184_v2, %v15518_v31  ;;  %v7195_v27 = vadd.f32 %v8698_v15, %v14693_v42  ;;  %7320 = vst.msk [vmem:[%s14979_s14 + $0x50] sm:$0xff] %vm784_vm1, %v7288_v55  ;;  %v15522_v2 = vld [vmem:[#allocation86_spill] sm:$0xff]  ;;  %v15523_v31 = vld [vmem:[#allocation67_spill] sm:$0xff] }
0x1073   : > { %v7186_v9 = vpop.f32.mrf.mxu1 }
0x1074   : > { %7318 = vst.msk [vmem:[%s14979_s14 + $0x40] sm:$0xff] %vm784_vm1, %v7286_v44  ;;  %v7289_v6 = vadd.f32 %v7195_v27, %v15519_v11  ;;  %v7187_v13 = vadd.f32 %v14693_v42, %v7186_v9  ;;  %v15524_v9 = vld [vmem:[#allocation63_spill] sm:$0xff] }
0x1075   : > { %v8661_v41 = vpop.f32.mrf.mxu0 }
0x1076   : > { %7321 = vst.msk [vmem:[%s14979_s14 + $0x58] sm:$0xff] %vm784_vm1, %v7289_v6  ;;  %v7287_v37 = vadd.f32 %v7187_v13, %v15520_v57  ;;  %v14784_v0 = vadd.f32 %v8661_v41, %v15516_v16  ;;  %v9926_v13 = vld [vmem:[%s10110_s0] ss:$0 sm:$0xff] }
0x1077   : > { %v6727_v17 = vpop.f32.mrf.mxu0 }
0x1078   : > { %7319 = vst.msk [vmem:[%s14979_s14 + $0x48] sm:$0xff] %vm784_vm1, %v7287_v37  ;;  %v7690_v49 = vmul.f32 -1.702, %v14784_v0  ;;  %v14788_v5 = vadd.f32 %v15516_v16, %v6727_v17  ;;  %v9780_v12 = vpop.eup %9779 }
0x1079   : > { %v8662_v35 = vpop.f32.mrf.mxu0  ;;  %v6920_v48 = vadd.f32 1.0, %v9780_v12 }
0x107a   : > { %v6882_v61 = vmul.f32 1.442695, %v7690_v49  ;;  %v7688_v50 = vmul.f32 -1.702, %v14788_v5  ;;  %v14792_v45 = vadd.f32 %v8662_v35, %v15516_v16  ;;  %v9782_v39 = vpop.eup %9781 }
0x107b   : > { %v6730_v21 = vpop.f32.mrf.mxu0  ;;  %9787 = vrcp.f32 %v6920_v48  ;;  %v6918_v43 = vadd.f32 1.0, %v9782_v39 }
0x107c   : > { %v8701_v30 = vpop.f32.mrf.mxu1  ;;  %v6878_v38 = vmul.f32 1.442695, %v7688_v50  ;;  %v7691_v29 = vmul.f32 -1.702, %v14792_v45  ;;  %v9784_v8 = vpop.eup %9783  ;;  %9789 = vpow2.f32 %v6882_v61  ;;  %v14797_v1 = vadd.f32 %v15516_v16, %v6730_v21 }
0x107d   : > { %v7208_v32 = vadd.f32 %v8701_v30, %v14693_v42  ;;  %9791 = vrcp.f32 %v6918_v43  ;;  %v6921_v58 = vadd.f32 1.0, %v9784_v8 }
0x107e   : > { %v7199_v46 = vpop.f32.mrf.mxu1  ;;  %v6884_v26 = vmul.f32 1.442695, %v7691_v29  ;;  %v9786_v14 = vpop.eup %9785  ;;  %9793 = vpow2.f32 %v6878_v38  ;;  %v7689_v60 = vmul.f32 -1.702, %v14797_v1 }
0x107f   : > { %v7292_v54 = vadd.f32 %v7208_v32, %v15521_v51  ;;  %v7200_v40 = vadd.f32 %v14693_v42, %v7199_v46  ;;  %9795 = vrcp.f32 %v6921_v58  ;;  %v6919_v55 = vadd.f32 1.0, %v9786_v14 }
0x1080   : > { %v8702_v20 = vpop.f32.mrf.mxu1  ;;  %9797 = vpow2.f32 %v6884_v26  ;;  %v6880_v36 = vmul.f32 1.442695, %v7689_v60 }
0x1081   : > { %7324 = vst.msk [vmem:[%s14979_s14 + $0x70] sm:$0xff] %vm784_vm1, %v7292_v54  ;;  %v7290_v16 = vadd.f32 %v7200_v40, %v15522_v2  ;;  %v7211_v7 = vadd.f32 %v8702_v20, %v14693_v42  ;;  %9799 = vrcp.f32 %v6919_v55 }
0x1082   : > { %v7202_v15 = vpop.f32.mrf.mxu1  ;;  %9801 = vpow2.f32 %v6880_v36 }
0x1083   : > { %7322 = vst.msk [vmem:[%s14979_s14 + $0x60] sm:$0xff] %vm784_vm1, %v7290_v16  ;;  %v7293_v44 = vadd.f32 %v7211_v7, %v15523_v31  ;;  %v7203_v27 = vadd.f32 %v14693_v42, %v7202_v15 }
0x1085   : > { %7325 = vst.msk [vmem:[%s14979_s14 + $0x78] sm:$0xff] %vm784_vm1, %v7293_v44  ;;  %v7291_v11 = vadd.f32 %v7203_v27, %v15524_v9  ;;  %v8665_v6 = vpop.f32.mrf.mxu0 }
0x1086   : > { %v14820_v57 = vadd.f32 %v9926_v13, %v8665_v6 }
0x1087   : > { %7323 = vst.msk [vmem:[%s14979_s14 + $0x68] sm:$0xff] %vm784_vm1, %v7291_v11  ;;  %v6743_v37 = vpop.f32.mrf.mxu0 }
0x1088   : > { %v7694_v41 = vmul.f32 -1.702, %v14820_v57  ;;  %v14827_v17 = vadd.f32 %v9926_v13, %v6743_v37  ;;  %v9788_v48 = vpop.eup %9787 }
0x1089   : > { %v8666_v49 = vpop.f32.mrf.mxu0  ;;  %v9790_v30 = vpop.eup %9789  ;;  %v7016_v7 = vmul.f32 %v9788_v48, %v14744_v24 }
0x108a   : > { %v7692_v12 = vmul.f32 -1.702, %v14827_v17  ;;  %v14830_v35 = vadd.f32 %v9926_v13, %v8666_v49  ;;  %v6890_v61 = vmul.f32 1.442695, %v7694_v41  ;;  %v9792_v32 = vpop.eup %9791  ;;  %v6924_v43 = vadd.f32 1.0, %v9790_v30 }
0x108b   : > { %v6746_v50 = vpop.f32.mrf.mxu0  ;;  %v9794_v29 = vpop.eup %9793  ;;  %v7014_v2 = vmul.f32 %v9792_v32, %v14748_v19 }
0x108c   : > { %v6886_v39 = vmul.f32 1.442695, %v7692_v12  ;;  %v7695_v21 = vmul.f32 -1.702, %v14830_v35  ;;  %v14833_v38 = vadd.f32 %v9926_v13, %v6746_v50  ;;  %v9796_v8 = vpop.eup %9795  ;;  %v6922_v51 = vadd.f32 1.0, %v9794_v29 }
0x108d   : > { %v9798_v40 = vpop.eup %9797  ;;  %v7017_v26 = vmul.f32 %v9796_v8, %v14752_v25 }
0x108e   : > { %9803 = vpow2.f32 %v6886_v39  ;;  %v6892_v46 = vmul.f32 1.442695, %v7695_v21  ;;  %v7693_v54 = vmul.f32 -1.702, %v14833_v38  ;;  %v9800_v58 = vpop.eup %9799  ;;  %v6925_v20 = vadd.f32 1.0, %v9798_v40 }
0x108f   : > { %9805 = vpow2.f32 %v6890_v61  ;;  %v9802_v60 = vpop.eup %9801  ;;  %v7015_v16 = vmul.f32 %v9800_v58, %v14756_v18  ;;  %v7039_v31 = vpack.c.bf16 %v7017_v26, %v7016_v7 }
0x1090   : > { %9807 = vpow2.f32 %v6892_v46  ;;  %v6888_v14 = vmul.f32 1.442695, %v7693_v54  ;;  %v6923_v55 = vadd.f32 1.0, %v9802_v60 }
0x1091   : > { %9809 = vrcp.f32 %v6924_v43  ;;  %v7038_v36 = vpack.c.bf16 %v7015_v16, %v7014_v2 }
0x1092   : > { %9811 = vrcp.f32 %v6922_v51 }
0x1093   : > { %9813 = vrcp.f32 %v6925_v20  ;;  %8703 = vmatprep.mubr.bf16.mxu1 %v7038_v36 }
0x1094   : > { %9815 = vpow2.f32 %v6888_v14  ;;  %v8669_v15 = vpop.f32.mrf.mxu0  ;;  %8704 = vmatmul.mubr.bf16.gmra.mxu1 %v7039_v31 }
0x1095   : > { %9817 = vrcp.f32 %v6923_v55  ;;  %v14840_v44 = vadd.f32 %v9926_v13, %v8669_v15 }
0x1096   : > { %v6759_v25 = vpop.f32.mrf.mxu0 }
0x1097   : > { %v7698_v27 = vmul.f32 -1.702, %v14840_v44  ;;  %v14843_v19 = vadd.f32 %v9926_v13, %v6759_v25 }
0x1098   : > { %v8670_v18 = vpop.f32.mrf.mxu0 }
0x1099   : > { %v6898_v9 = vmul.f32 1.442695, %v7698_v27  ;;  %v7696_v24 = vmul.f32 -1.702, %v14843_v19  ;;  %v14846_v11 = vadd.f32 %v9926_v13, %v8670_v18 }
0x109a   : > { %v6762_v6 = vpop.f32.mrf.mxu0 }
0x109b   : > { %v9804_v37 = vpop.eup %9803  ;;  %v6894_v41 = vmul.f32 1.442695, %v7696_v24  ;;  %v7699_v49 = vmul.f32 -1.702, %v14846_v11  ;;  %v6763_v12 = vadd.f32 %v9926_v13, %v6762_v6  ;;  %9819 = vpow2.f32 %v6898_v9 }
0x109c   : > { %v9806_v48 = vpop.eup %9805  ;;  %v6926_v21 = vadd.f32 1.0, %v9804_v37 }
0x109d   : > { %v9808_v61 = vpop.eup %9807  ;;  %9821 = vpow2.f32 %v6894_v41  ;;  %v6900_v50 = vmul.f32 1.442695, %v7699_v49  ;;  %v7697_v30 = vmul.f32 -1.702, %v6763_v12  ;;  %v6928_v29 = vadd.f32 1.0, %v9806_v48 }
0x109e   : > { %v9810_v39 = vpop.eup %9809  ;;  %v6929_v32 = vadd.f32 1.0, %v9808_v61 }
0x109f   : > { %v9812_v43 = vpop.eup %9811  ;;  %9823 = vpow2.f32 %v6900_v50  ;;  %v6896_v46 = vmul.f32 1.442695, %v7697_v30  ;;  %v7020_v20 = vmul.f32 %v9810_v39, %v14784_v0 }
0x10a0   : > { %v9814_v8 = vpop.eup %9813  ;;  %9825 = vrcp.f32 %v6929_v32  ;;  %v7018_v58 = vmul.f32 %v9812_v43, %v14788_v5  ;;  %v15525_v43 = vld [vmem:[#allocation64_spill] sm:$0xff] }
0x10a1   : > { %v9816_v51 = vpop.eup %9815  ;;  %9827 = vpow2.f32 %v6896_v46  ;;  %v7021_v13 = vmul.f32 %v9814_v8, %v14792_v45 }
0x10a2   : > { %v9818_v54 = vpop.eup %9817  ;;  %9829 = vrcp.f32 %v6926_v21  ;;  %v6927_v40 = vadd.f32 1.0, %v9816_v51 }
0x10a3   : > { %v7019_v26 = vmul.f32 %v9818_v54, %v14797_v1  ;;  %9831 = vrcp.f32 %v6928_v29  ;;  %v7041_v60 = vpack.c.bf16 %v7021_v13, %v7020_v20 }
0x10a4   : > { %9833 = vrcp.f32 %v6927_v40 }
0x10a5   : > { %v7040_v14 = vpack.c.bf16 %v7019_v26, %v7018_v58 }
0x10a7   : > { %8707 = vmatprep.mubr.bf16.mxu1 %v7040_v14 }
0x10a8   : > { %8708 = vmatmul.mubr.bf16.gmra.mxu1 %v7041_v60  ;;  %v9820_v2 = vpop.eup %9819 }
0x10a9   : > { %v6932_v15 = vadd.f32 1.0, %v9820_v2 }
0x10aa   : > { %v9822_v16 = vpop.eup %9821 }
0x10ab   : > { %v6930_v7 = vadd.f32 1.0, %v9822_v16 }
0x10ac   : > { %v9824_v55 = vpop.eup %9823 }
0x10ad   : > { %v9826_v45 = vpop.eup %9825  ;;  %v6933_v36 = vadd.f32 1.0, %v9824_v55  ;;  %9835 = vrcp.f32 %v6930_v7 }
0x10ae   : > { %v9828_v31 = vpop.eup %9827  ;;  %v7025_v27 = vmul.f32 %v9826_v45, %v14830_v35 }
0x10af   : > { %v9830_v5 = vpop.eup %9829  ;;  %9837 = vrcp.f32 %v6933_v36  ;;  %v6931_v1 = vadd.f32 1.0, %v9828_v31 }
0x10b0   : > { %v9832_v25 = vpop.eup %9831  ;;  %9839 = vrcp.f32 %v6932_v15  ;;  %v7022_v18 = vmul.f32 %v9830_v5, %v14827_v17 }
0x10b1   : > { %v9834_v0 = vpop.eup %9833  ;;  %9841 = vrcp.f32 %v6931_v1  ;;  %v7024_v24 = vmul.f32 %v9832_v25, %v14820_v57 }
0x10b2   : > { %v7023_v9 = vmul.f32 %v9834_v0, %v14833_v38 }
0x10b3   : > { %v7043_v37 = vpack.c.bf16 %v7025_v27, %v7024_v24 }
0x10b4   : > { %v7042_v6 = vpack.c.bf16 %v7023_v9, %v7022_v18 }
0x10b6   : > { %8711 = vmatprep.mubr.bf16.mxu1 %v7042_v6 }
0x10b7   : > { %8712 = vmatmul.mubr.bf16.gmra.mxu1 %v7043_v37 }
0x10ba   : > { %v9836_v41 = vpop.eup %9835 }
0x10bb   : > { %v7026_v30 = vmul.f32 %v9836_v41, %v14843_v19 }
0x10bc   : > { %v9838_v49 = vpop.eup %9837 }
0x10bd   : > { %v9840_v48 = vpop.eup %9839  ;;  %v7029_v50 = vmul.f32 %v9838_v49, %v14846_v11 }
0x10be   : > { %v9842_v61 = vpop.eup %9841  ;;  %v7028_v39 = vmul.f32 %v9840_v48, %v14840_v44 }
0x10bf   : > { %v7027_v35 = vmul.f32 %v9842_v61, %v6763_v12 }
0x10c0   : > { %v7045_v21 = vpack.c.bf16 %v7029_v50, %v7028_v39 }
0x10c1   : > { %v7044_v17 = vpack.c.bf16 %v7027_v35, %v7026_v30 }
0x10c3   : > { %8715 = vmatprep.mubr.bf16.mxu1 %v7044_v17 }
0x10c4   : > { %8716 = vmatmul.mubr.bf16.gmra.mxu1 %v7045_v21 }
0x1154   : > { %v8705_v57 = vpop.f32.mrf.mxu1 }
0x1155   : > { %v7224_v38 = vadd.f32 %v8705_v57, %v14693_v42 }
0x1156   : > { %v7215_v32 = vpop.f32.mrf.mxu1 }
0x1157   : > { %v7296_v29 = vadd.f32 %v7224_v38, %v15525_v43  ;;  %v7216_v46 = vadd.f32 %v14693_v42, %v7215_v32 }
0x1158   : > { %v8706_v8 = vpop.f32.mrf.mxu1 }
0x1159   : > { %7328 = vst.msk [vmem:[%s14979_s14 + $0x90] sm:$0xff] %vm784_vm1, %v7296_v29  ;;  %v7294_v44 = vadd.f32 %v7216_v46, %v14278_v52  ;;  %v7227_v19 = vadd.f32 %v8706_v8, %v14693_v42 }
0x115a   : > { %v7218_v11 = vpop.f32.mrf.mxu1 }
0x115b   : > { %7326 = vst.msk [vmem:[%s14979_s14 + $0x80] sm:$0xff] %vm784_vm1, %v7294_v44  ;;  %v7297_v12 = vadd.f32 %v7227_v19, %v14286_v59  ;;  %v7219_v51 = vadd.f32 %v14693_v42, %v7218_v11 }
0x115d   : > { %7329 = vst.msk [vmem:[%s14979_s14 + $0x98] sm:$0xff] %vm784_vm1, %v7297_v12  ;;  %v7295_v54 = vadd.f32 %v7219_v51, %v14293_v63 }
0x115f   : > { %7327 = vst.msk [vmem:[%s14979_s14 + $0x88] sm:$0xff] %vm784_vm1, %v7295_v54 }
0x1168   : > { %v8709_v52 = vpop.f32.mrf.mxu1 }
0x1169   : > { %v7240_v13 = vadd.f32 %v8709_v52, %v14693_v42 }
0x116a   : > { %v7231_v40 = vpop.f32.mrf.mxu1 }
0x116b   : > { %v7300_v59 = vadd.f32 %v7240_v13, %v14319_v62  ;;  %v7232_v58 = vadd.f32 %v14693_v42, %v7231_v40 }
0x116c   : > { %v8710_v26 = vpop.f32.mrf.mxu1 }
0x116d   : > { %7332 = vst.msk [vmem:[%s14979_s14 + $0xb0] sm:$0xff] %vm784_vm1, %v7300_v59  ;;  %v7298_v63 = vadd.f32 %v7232_v58, %v14329_v53  ;;  %v7243_v20 = vadd.f32 %v8710_v26, %v14693_v42 }
0x116e   : > { %v7234_v14 = vpop.f32.mrf.mxu1 }
0x116f   : > { %7330 = vst.msk [vmem:[%s14979_s14 + $0xa0] sm:$0xff] %vm784_vm1, %v7298_v63  ;;  %v7301_v62 = vadd.f32 %v7243_v20, %v14334_v34  ;;  %v7235_v60 = vadd.f32 %v14693_v42, %v7234_v14 }
0x1171   : > { %7333 = vst.msk [vmem:[%s14979_s14 + $0xb8] sm:$0xff] %vm784_vm1, %v7301_v62  ;;  %v7299_v2 = vadd.f32 %v7235_v60, %v14344_v23 }
0x1173   : > { %7331 = vst.msk [vmem:[%s14979_s14 + $0xa8] sm:$0xff] %vm784_vm1, %v7299_v2 }
0x1177   : > { %v8713_v53 = vpop.f32.mrf.mxu1 }
0x1178   : > { %v7256_v16 = vadd.f32 %v8713_v53, %v14693_v42 }
0x1179   : > { %v7247_v7 = vpop.f32.mrf.mxu1 }
0x117a   : > { %v7304_v34 = vadd.f32 %v7256_v16, %v14366_v47  ;;  %v7248_v55 = vadd.f32 %v14693_v42, %v7247_v7 }
0x117b   : > { %v8714_v15 = vpop.f32.mrf.mxu1 }
0x117c   : > { %7336 = vst.msk [vmem:[%s14979_s14 + $0xd0] sm:$0xff] %vm784_vm1, %v7304_v34  ;;  %v7302_v23 = vadd.f32 %v7248_v55, %v14376_v10  ;;  %v7259_v45 = vadd.f32 %v8714_v15, %v14693_v42 }
0x117d   : > { %v7250_v36 = vpop.f32.mrf.mxu1 }
0x117e   : > { %7334 = vst.msk [vmem:[%s14979_s14 + $0xc0] sm:$0xff] %vm784_vm1, %v7302_v23  ;;  %v7305_v47 = vadd.f32 %v7259_v45, %v14381_v28  ;;  %v7251_v31 = vadd.f32 %v14693_v42, %v7250_v36 }
0x1180   : > { %7337 = vst.msk [vmem:[%s14979_s14 + $0xd8] sm:$0xff] %vm784_vm1, %v7305_v47  ;;  %v7303_v5 = vadd.f32 %v7251_v31, %v14390_v33 }
0x1182   : > { %7335 = vst.msk [vmem:[%s14979_s14 + $0xc8] sm:$0xff] %vm784_vm1, %v7303_v5 }
0x1184   : > { %v8717_v10 = vpop.f32.mrf.mxu1 }
0x1185   : > { %v7272_v1 = vadd.f32 %v8717_v10, %v14693_v42 }
0x1186   : > { %v7263_v25 = vpop.f32.mrf.mxu1 }
0x1187   : > { %v7308_v28 = vadd.f32 %v7272_v1, %v14411_v56  ;;  %v7264_v0 = vadd.f32 %v14693_v42, %v7263_v25 }
0x1188   : > { %v8718_v27 = vpop.f32.mrf.mxu1 }
0x1189   : > { %7340 = vst.msk [vmem:[%s14979_s14 + $0xf0] sm:$0xff] %vm784_vm1, %v7308_v28  ;;  %v7306_v33 = vadd.f32 %v7264_v0, %v14420_v22  ;;  %v7275_v18 = vadd.f32 %v8718_v27, %v14693_v42 }
0x118a   : > { %v7266_v9 = vpop.f32.mrf.mxu1 }
0x118b   : > { %7338 = vst.msk [vmem:[%s14979_s14 + $0xe0] sm:$0xff] %vm784_vm1, %v7306_v33  ;;  %v7309_v56 = vadd.f32 %v7275_v18, %v14425_v3  ;;  %v7267_v24 = vadd.f32 %v14693_v42, %v7266_v9 }
0x118d   : > { %7341 = vst.msk [vmem:[%s14979_s14 + $0xf8] sm:$0xff] %vm784_vm1, %v7309_v56  ;;  %v7307_v6 = vadd.f32 %v7267_v24, %v14434_v4 }
0x118f   : > { %7339 = vst.msk [vmem:[%s14979_s14 + $0xe8] sm:$0xff] %vm784_vm1, %v7307_v6 }
0x1190 PF: > { %s15526_s17 = sld [smem:[#allocation3_spill]] }
0x1191   : > { %s15527_s29 = sld [smem:[#allocation2_spill]] }
0x1192   : > { %s15528_s30 = sld [smem:[#allocation4_spill]] }
0x1196   : > { %s24_s15 = sadd.s32 1, %s15526_s17  }
0x1197   : > { %p21_p6 = scmp.ge.s32.totalorder %s24_s15, 4  }
0x1199   :  { %23 = sbr.rel (!%p21_p6) target bundleno = 7 (0x7), region = 146 }

</bundles_post_ra>
